<compile_context>
chip_gen: v5e
topology: v5e:2x2
jax: 0.10.0
libtpu: 0.0.40
codegen_flags: <defaults>
</compile_context>

<pallas_src>
import functools

import jax
import jax.numpy as jnp
from jax.experimental import pallas as pl
from jax.experimental.pallas import tpu as pltpu


def _round_up(x, m):
    return ((x + m - 1) // m) * m


# ------------------------------- fused kernel -------------------------------

def _bottleneck_kernel(x_ref, w1_ref, t1_ref, w2_ref, t2_ref, w3_ref, t3_ref,
                       wr_ref, br_ref, o_ref, h1pad_ref, *,
                       TH, W_ROWS, Ho, Wo, stride, identity_res, use_im2col):
    cin = w1_ref.shape[0]
    cmid = w1_ref.shape[1]                        # lane-padded mid channels
    t = pl.program_id(1)
    p0 = t * TH                                   # first output row of tile
    s = jnp.clip(p0 - 1, 0, Ho - W_ROWS)          # first h1 row computed
    off = p0 - s                                  # scratch row of padded row p0

    # Zero the h1 halo scratch once per image (t == 0).  The interior region
    # is fully overwritten every step, so the zero borders survive all later
    # steps.  The row-tile axis is "arbitrary" (never megacore-split), so every
    # core that processes an image executes that image's t == 0 step.
    @pl.when(t == 0)
    def _():
        h1pad_ref[...] = jnp.zeros(h1pad_ref.shape, h1pad_ref.dtype)

    # ---- conv1: 1x1 (stride folded into the read) + BN + ReLU, halo rows ---
    if stride == 1:
        xw = x_ref[0, pl.ds(s, W_ROWS), :, :]                  # (W_ROWS, Wo, Cin)
    else:
        # Only the even sub-rows were DMA'd; even columns = first Cin lanes.
        xw = x_ref[0, pl.ds(s, W_ROWS), 0, :, :][:, :, :cin]   # (W_ROWS, Wo, Cin)
    h1 = jnp.dot(xw.reshape(W_ROWS * Wo, cin), w1_ref[...],
                 preferred_element_type=jnp.float32)
    h1 = jnp.maximum(h1 + t1_ref[...], 0.0)       # BN scale folded into w1
    h1pad_ref[1:W_ROWS + 1, 1:Wo + 1, :] = (
        h1.reshape(W_ROWS, Wo, cmid).astype(h1pad_ref.dtype))

    # ---- conv2: 3x3 + BN + ReLU --------------------------------------------
    hp = h1pad_ref[pl.ds(off, TH + 2), :, :]      # (TH+2, Wp, Cmid)
    if use_im2col:
        # Small Cmid: one im2col matmul with K = 9*Cmid.
        patches = jnp.concatenate(
            [hp[dy:dy + TH, dx:dx + Wo, :]
             for dy in range(3) for dx in range(3)], axis=-1)  # (TH, Wo, 9*Cmid)
        h2 = jnp.dot(patches.reshape(TH * Wo, 9 * cmid), w2_ref[...],
                     preferred_element_type=jnp.float32)
    else:
        # Large Cmid: nine accumulating dots (K = Cmid each); avoids
        # materializing the (TH*Wo, 9*Cmid) im2col temp.
        # TODO(synk): route the dx shifts through pltpu.roll (XLU) instead of
        # sublane-offset slices to avoid relayout copies.
        h2 = jnp.zeros((TH * Wo, cmid), jnp.float32)
        for dy in range(3):
            for dx in range(3):
                k = dy * 3 + dx
                tap = hp[dy:dy + TH, dx:dx + Wo, :].reshape(TH * Wo, cmid)
                h2 = h2 + jnp.dot(tap, w2_ref[k * cmid:(k + 1) * cmid, :],
                                  preferred_element_type=jnp.float32)
    h2 = jnp.maximum(h2 + t2_ref[...], 0.0)       # BN scale folded into w2

    # ---- conv3: 1x1 + BN + ReLU, fused with the residual branch ------------
    y = jnp.dot(h2.astype(w3_ref.dtype), w3_ref[...],
                preferred_element_type=jnp.float32)
    y = jnp.maximum(y + t3_ref[...], 0.0)         # BN scale folded into w3

    if stride == 1:
        xr = x_ref[0, pl.ds(p0, TH), :, :]
    else:
        xr = x_ref[0, pl.ds(p0, TH), 0, :, :][:, :, :cin]
    xr = xr.reshape(TH * Wo, cin)
    if identity_res:
        res = xr.astype(jnp.float32)
    else:
        res = jnp.dot(xr, wr_ref[...],
                      preferred_element_type=jnp.float32) + br_ref[...]

    o_ref[...] = (y + res).reshape(1, TH, Wo, -1).astype(o_ref.dtype)


# ------------------------------ wrapper / setup ------------------------------

def _fold_bn(conv_bias, gamma, beta, mean, var, eps=1e-5):
    s = gamma / jnp.sqrt(var + eps)
    t = (conv_bias - mean) * s + beta
    return s, t


def _pad_axis(a, axis, new_size):
    pad = [(0, 0)] * a.ndim
    pad[axis] = (0, new_size - a.shape[axis])
    return jnp.pad(a, pad)


def bottleneck_forward(x_nchw, params, down=False, row_tile=None,
                       nchw_output=True):
    p = params
    bf, f32 = jnp.bfloat16, jnp.float32
    x = jnp.transpose(x_nchw, (0, 2, 3, 1)).astype(bf)     # NCHW -> NHWC
    N, H, W, cin = x.shape
    cmid = p["w1"].shape[1]
    cout = p["w3"].shape[1]
    stride = 2 if down else 1
    if down:
        assert H % 2 == 0 and W % 2 == 0, "down=True expects even H, W"
    Ho, Wo = H // stride, W // stride

    # BN folded to scale/shift; the scale goes into the conv weights, only the
    # additive shift stays in the kernel epilogue.
    s1, t1 = _fold_bn(p["b1"], **p["bn1"])
    s2, t2 = _fold_bn(p["b2"], **p["bn2"])
    s3, t3 = _fold_bn(p["b3"], **p["bn3"])

    # Pad the (internal) mid channels to a multiple of 128 lanes.
    cmid_p = _round_up(cmid, 128)
    w1 = _pad_axis(p["w1"] * s1[None, :], 1, cmid_p).astype(bf)   # (Cin, Cmid_p)
    w2 = p["w2"] * s2[None, None, None, :]                        # (3,3,Cmid,Cmid)
    w2 = _pad_axis(_pad_axis(w2, 2, cmid_p), 3, cmid_p)
    w2 = w2.reshape(9 * cmid_p, cmid_p).astype(bf)                # (9*Cmid_p, Cmid_p)
    w3 = _pad_axis(p["w3"] * s3[None, :], 0, cmid_p).astype(bf)   # (Cmid_p, Cout)
    t1 = _pad_axis(t1, 0, cmid_p).reshape(1, cmid_p).astype(f32)
    t2 = _pad_axis(t2, 0, cmid_p).reshape(1, cmid_p).astype(f32)
    t3 = t3.reshape(1, cout).astype(f32)

    identity_res = (not down) and (cin == cout)
    if down:
        wr, br = p["wd"], p["bd"]
    elif not identity_res:
        wr, br = p["weq"], p["beq"]
    else:                                                   # unused dummies
        wr, br = jnp.zeros((cin, cout), f32), jnp.zeros((cout,), f32)
    wr = wr.astype(bf)
    br = br.reshape(1, cout).astype(f32)

    use_im2col = cmid_p <= 128

    # ---- per-generation VMEM budget & row-tile selection --------------------
    try:
        vmem_cap = int(pltpu.get_tpu_info().vmem_capacity_bytes)
    except Exception:
        vmem_cap = 64 * 1024 * 1024            # conservative (v7x per-core)

    wp = _round_up(Wo + 2, 8)                  # sublane-padded scratch width

    def vmem_estimate(th):
        w_rows = min(th + 2, Ho)
        x_blk = (H * W * cin if stride == 1 else Ho * Wo * 2 * cin) * 2
        out_blk = th * Wo * cout * 2
        weights = ((cin * cmid_p + 9 * cmid_p * cmid_p + cmid_p * cout
                    + cin * cout) * 2 + (2 * cmid_p + 2 * cout) * 4)
        scratch = (w_rows + 2) * wp * cmid_p * 2
        k2 = 9 * cmid_p if use_im2col else cmid_p
        temps = (w_rows * Wo * cmid_p * 4 + th * Wo * k2 * 2
                 + th * Wo * cmid_p * 4 + 2 * th * Wo * cout * 4)
        return 2 * x_blk + 2 * out_blk + 2 * weights + scratch + temps

    budget = int(0.55 * vmem_cap)
    if row_tile is not None:
        TH = max(d for d in range(1, min(Ho, row_tile) + 1) if Ho % d == 0)
    else:
        # Largest divisor of Ho that fits the VMEM budget, targeting a matmul
        # M = TH*Wo in roughly [256, 2048].
        TH = 1
        for d in range(1, Ho + 1):
            if Ho % d or vmem_estimate(d) > budget:
                continue
            if d * Wo > 2048 and TH * Wo >= 256:
                continue
            TH = d
    T = Ho // TH
    W_ROWS = min(TH + 2, Ho)

    # ---- input layout / specs -----------------------------------------------
    if stride == 1:
        x_in = x
        x_spec = pl.BlockSpec((1, H, W, cin), lambda n, t: (n, 0, 0, 0))
        x_bytes = x_in.size * 2
    else:
        # Split rows into (even, odd); a block of 1 along that axis means only
        # the even sub-rows are DMA'd to VMEM (2x less HBM->VMEM traffic).
        x_in = x.reshape(N, Ho, 2, Wo, 2 * cin)
        x_spec = pl.BlockSpec((1, Ho, 1, Wo, 2 * cin),
                              lambda n, t: (n, 0, 0, 0, 0))
        x_bytes = x_in.size                      # half of the bf16 array read

    def const_spec(shape, single_buffer):
        idx = lambda n, t: (0,) * len(shape)
        if single_buffer and hasattr(pl, "Buffered"):
            try:
                # Grid-invariant operand: single-buffer to halve its VMEM.
                return pl.BlockSpec(shape, idx, pipeline_mode=pl.Buffered(1))
            except TypeError:
                pass
        return pl.BlockSpec(shape, idx)

    flops = 2 * N * Ho * Wo * (cin * cmid_p + 9 * cmid_p * cmid_p
                               + cmid_p * cout
                               + (0 if identity_res else cin * cout))
    bytes_accessed = (x_bytes
                      + (w1.size + w2.size + w3.size + wr.size) * 2
                      + (t1.size + t2.size + t3.size + br.size) * 4
                      + N * Ho * Wo * cout * 2)
    cost = pl.CostEstimate(flops=flops, transcendentals=0,
                           bytes_accessed=bytes_accessed)

    kern = functools.partial(
        _bottleneck_kernel, TH=TH, W_ROWS=W_ROWS, Ho=Ho, Wo=Wo,
        stride=stride, identity_res=identity_res, use_im2col=use_im2col)

    vmem_limit = int(min(max(vmem_estimate(TH) * 3 // 2, 32 * 1024 * 1024),
                         int(0.9 * vmem_cap)))

    def run(single_buffer_weights):
        in_specs = [
            x_spec,
            const_spec((cin, cmid_p), single_buffer_weights),
            const_spec((1, cmid_p), single_buffer_weights),
            const_spec((9 * cmid_p, cmid_p), single_buffer_weights),
            const_spec((1, cmid_p), single_buffer_weights),
            const_spec((cmid_p, cout), single_buffer_weights),
            const_spec((1, cout), single_buffer_weights),
            const_spec((cin, cout), single_buffer_weights),
            const_spec((1, cout), single_buffer_weights),
        ]
        return pl.pallas_call(
            kern,
            grid=(N, T),
            out_shape=jax.ShapeDtypeStruct((N, Ho, Wo, cout), jnp.bfloat16),
            in_specs=in_specs,
            out_specs=pl.BlockSpec((1, TH, Wo, cout), lambda n, t: (n, t, 0, 0)),
            scratch_shapes=[pltpu.VMEM((W_ROWS + 2, wp, cmid_p), jnp.bfloat16)],
            compiler_params=pltpu.CompilerParams(
                dimension_semantics=("parallel", "arbitrary"),
                vmem_limit_bytes=vmem_limit),
            cost_estimate=cost,
        )(x_in, w1, t1, w2, t2, w3, t3, wr, br)

    try:
        out = run(True)
    except Exception:
        # Older JAX without pl.Buffered / pipeline_mode support -> default
        # (double-buffered) specs.
        out = run(False)

    if nchw_output:
        return jnp.transpose(out, (0, 3, 1, 2))             # NHWC -> NCHW (bf16)
    return out


# ----------------------------- parameter setup -------------------------------

def init_params(key, in_dim, mid_dim, out_dim, down=False):
    keys = jax.random.split(key, 16)

    def w(k, shape):
        return 0.1 * jax.random.normal(k, shape, jnp.float32)

    def bn(k, c):
        k1, k2, k3, k4 = jax.random.split(k, 4)
        return dict(gamma=1.0 + 0.1 * jax.random.normal(k1, (c,), jnp.float32),
                    beta=0.1 * jax.random.normal(k2, (c,), jnp.float32),
                    mean=0.1 * jax.random.normal(k3, (c,), jnp.float32),
                    var=jnp.abs(jax.random.normal(k4, (c,), jnp.float32)) + 0.5)

    p = dict(
        w1=w(keys[0], (in_dim, mid_dim)), b1=w(keys[1], (mid_dim,)),
        bn1=bn(keys[2], mid_dim),
        w2=w(keys[3], (3, 3, mid_dim, mid_dim)), b2=w(keys[4], (mid_dim,)),
        bn2=bn(keys[5], mid_dim),
        w3=w(keys[6], (mid_dim, out_dim)), b3=w(keys[7], (out_dim,)),
        bn3=bn(keys[8], out_dim),
        weq=w(keys[9], (in_dim, out_dim)), beq=w(keys[10], (out_dim,)),
    )
    if down:
        p["wd"] = w(keys[11], (in_dim, out_dim))
        p["bd"] = w(keys[12], (out_dim,))
    return p


# ------------------------------ JAX reference --------------------------------

def _conv_ref(x, w, b, stride=1, pad=0):
    y = jax.lax.conv_general_dilated(
        x, w, (stride, stride), ((pad, pad), (pad, pad)),
        dimension_numbers=("NHWC", "HWIO", "NHWC"))
    return y + b


def _bn_ref(y, bn, eps=1e-5):
    return (y - bn["mean"]) * bn["gamma"] / jnp.sqrt(bn["var"] + eps) + bn["beta"]


def bottleneck_ref(x_nchw, p, down=False):
    x = jnp.transpose(x_nchw, (0, 2, 3, 1)).astype(jnp.float32)
    s1 = 2 if down else 1
    h = jax.nn.relu(_bn_ref(_conv_ref(x, p["w1"].reshape(1, 1, *p["w1"].shape),
                                      p["b1"], stride=s1), p["bn1"]))
    h = jax.nn.relu(_bn_ref(_conv_ref(h, p["w2"], p["b2"], pad=1), p["bn2"]))
    out = jax.nn.relu(_bn_ref(_conv_ref(h, p["w3"].reshape(1, 1, *p["w3"].shape),
                                        p["b3"]), p["bn3"]))
    if down:
        res = _conv_ref(x, p["wd"].reshape(1, 1, *p["wd"].shape), p["bd"], stride=2)
    else:
        if x.shape != out.shape:
            res = _conv_ref(x, p["weq"].reshape(1, 1, *p["weq"].shape), p["beq"])
        else:
            res = x
    return jnp.transpose(out + res, (0, 3, 1, 2))


# ----------------------------------- main ------------------------------------

if __name__ == "__main__":
    key = jax.random.PRNGKey(0)
    kx, kp1, kp2, kp3 = jax.random.split(key, 4)

    # 1) down=False, residual through dim_equalizer (cin != cout), im2col conv2.
    x = jax.random.normal(kx, (2, 4, 16, 16), jnp.float32)          # NCHW
    p1 = init_params(kp1, 4, 8, 16, down=False)
    out1 = jax.block_until_ready(bottleneck_forward(x, p1, down=False))
    ref1 = bottleneck_ref(x, p1, down=False)
    assert out1.shape == (2, 16, 16, 16)
    err1 = float(jnp.max(jnp.abs(out1.astype(jnp.float32) - ref1)))
    assert jnp.allclose(out1.astype(jnp.float32), ref1, rtol=2e-2, atol=5e-2), err1

    # 2) down=True, strided residual through the downsample conv.
    p2 = init_params(kp2, 4, 8, 16, down=True)
    out2 = jax.block_until_ready(bottleneck_forward(x, p2, down=True))
    ref2 = bottleneck_ref(x, p2, down=True)
    assert out2.shape == (2, 16, 8, 8)
    err2 = float(jnp.max(jnp.abs(out2.astype(jnp.float32) - ref2)))
    assert jnp.allclose(out2.astype(jnp.float32), ref2, rtol=2e-2, atol=5e-2), err2

    # 3) down=False identity residual (cin == cout) and the tap-accumulation
    #    conv2 path (mid channels padded past 128).
    x3 = jax.random.normal(kx, (2, 16, 16, 16), jnp.float32)
    p3 = init_params(kp3, 16, 130, 16, down=False)
    out3 = jax.block_until_ready(bottleneck_forward(x3, p3, down=False))
    ref3 = bottleneck_ref(x3, p3, down=False)
    assert out3.shape == (2, 16, 16, 16)
    err3 = float(jnp.max(jnp.abs(out3.astype(jnp.float32) - ref3)))
    assert jnp.allclose(out3.astype(jnp.float32), ref3, rtol=2e-2, atol=5e-2), err3

    print("KERNEL_OK")
</pallas_src>

<mosaic_0001>
module attributes {stable_mosaic.version = 11 : i64} {
  func.func @_bottleneck_kernel(%arg0: i32, %arg1: i32, %arg2: memref<1x16x16x4xbf16, #tpu.memory_space<vmem>>, %arg3: memref<4x128xbf16, #tpu.memory_space<vmem>>, %arg4: memref<1x128xf32, #tpu.memory_space<vmem>>, %arg5: memref<1152x128xbf16, #tpu.memory_space<vmem>>, %arg6: memref<1x128xf32, #tpu.memory_space<vmem>>, %arg7: memref<128x16xbf16, #tpu.memory_space<vmem>>, %arg8: memref<1x16xf32, #tpu.memory_space<vmem>>, %arg9: memref<4x16xbf16, #tpu.memory_space<vmem>>, %arg10: memref<1x16xf32, #tpu.memory_space<vmem>>, %arg11: memref<1x16x16x16xbf16, #tpu.memory_space<vmem>>, %arg12: memref<18x24x128xbf16, #tpu.memory_space<vmem>>) attributes {dimension_semantics = [#tpu.dimension_semantics<parallel>, #tpu.dimension_semantics<arbitrary>], iteration_bounds = array<i64: 2, 1>, scalar_prefetch = 0 : i64, scratch_operands = 1 : i64, tpu.core_type = #tpu.core_type<tc>, window_params = [{transform_indices = @transform_0, window_bounds = array<i64: 1, 16, 16, 4>}, {pipeline_mode = #tpu.pipeline_mode<synchronous>, transform_indices = @transform_1, window_bounds = array<i64: 4, 128>}, {pipeline_mode = #tpu.pipeline_mode<synchronous>, transform_indices = @transform_2, window_bounds = array<i64: 1, 128>}, {pipeline_mode = #tpu.pipeline_mode<synchronous>, transform_indices = @transform_3, window_bounds = array<i64: 1152, 128>}, {pipeline_mode = #tpu.pipeline_mode<synchronous>, transform_indices = @transform_4, window_bounds = array<i64: 1, 128>}, {pipeline_mode = #tpu.pipeline_mode<synchronous>, transform_indices = @transform_5, window_bounds = array<i64: 128, 16>}, {pipeline_mode = #tpu.pipeline_mode<synchronous>, transform_indices = @transform_6, window_bounds = array<i64: 1, 16>}, {pipeline_mode = #tpu.pipeline_mode<synchronous>, transform_indices = @transform_7, window_bounds = array<i64: 4, 16>}, {pipeline_mode = #tpu.pipeline_mode<synchronous>, transform_indices = @transform_8, window_bounds = array<i64: 1, 16>}, {transform_indices = @transform_9, window_bounds = array<i64: 1, 16, 16, 16>}]} {
    %c16_i32 = arith.constant 16 : i32
    %0 = arith.muli %arg1, %c16_i32 : i32
    %c1_i32 = arith.constant 1 : i32
    %1 = arith.subi %0, %c1_i32 : i32
    %c0_i32 = arith.constant 0 : i32
    %c0_i32_0 = arith.constant 0 : i32
    %2 = arith.maxsi %c0_i32, %1 : i32
    %3 = arith.minsi %c0_i32_0, %2 : i32
    %4 = arith.subi %0, %3 : i32
    %c0_i32_1 = arith.constant 0 : i32
    %5 = arith.cmpi eq, %arg1, %c0_i32_1 : i32
    %6 = arith.extui %5 : i1 to i32
    %c0_i32_2 = arith.constant 0 : i32
    %7 = arith.cmpi ne, %6, %c0_i32_2 : i32
    scf.if %7 {
      %cst_38 = arith.constant 0.000000e+00 : bf16
      %63 = vector.broadcast %cst_38 : bf16 to vector<18x24x128xbf16>
      %c0_39 = arith.constant 0 : index
      %c0_40 = arith.constant 0 : index
      %c0_41 = arith.constant 0 : index
      %64 = vector.load %arg12[%c0_39, %c0_40, %c0_41] : memref<18x24x128xbf16, #tpu.memory_space<vmem>>, vector<18x24x128xbf16>
      tpu.vector_store %arg12[%c0_39, %c0_40, %c0_41], %63 {strides = array<i32>} : memref<18x24x128xbf16, #tpu.memory_space<vmem>>, vector<18x24x128xbf16>,
    } else {
    }
    %c0 = arith.constant 0 : index
    %8 = arith.index_cast %3 : i32 to index
    %c0_3 = arith.constant 0 : index
    %c0_4 = arith.constant 0 : index
    %9 = vector.load %arg2[%c0, %8, %c0_3, %c0_4] : memref<1x16x16x4xbf16, #tpu.memory_space<vmem>>, vector<1x16x16x4xbf16>
    %10 = vector.shape_cast %9 : vector<1x16x16x4xbf16> to vector<16x16x4xbf16>
    %11 = vector.shape_cast %10 : vector<16x16x4xbf16> to vector<256x4xbf16>
    %c0_5 = arith.constant 0 : index
    %c0_6 = arith.constant 0 : index
    %12 = vector.load %arg3[%c0_5, %c0_6] : memref<4x128xbf16, #tpu.memory_space<vmem>>, vector<4x128xbf16>
    %cst = arith.constant dense<0.000000e+00> : vector<256x128xf32>
    %13 = tpu.matmul %11, %12, %cst {dimension_numbers = #tpu.dot_dimension_numbers<[1], [0], [0], [1], [0, 0, 1, 1], [], []>} : vector<256x4xbf16>, vector<4x128xbf16>, vector<256x128xf32> -> vector<256x128xf32>
    %c0_7 = arith.constant 0 : index
    %c0_8 = arith.constant 0 : index
    %14 = vector.load %arg4[%c0_7, %c0_8] : memref<1x128xf32, #tpu.memory_space<vmem>>, vector<1x128xf32>
    %15 = vector.broadcast %14 : vector<1x128xf32> to vector<256x128xf32>
    %16 = arith.addf %13, %15 : vector<256x128xf32>
    %cst_9 = arith.constant 0.000000e+00 : f32
    %17 = vector.broadcast %cst_9 : f32 to vector<256x128xf32>
    %18 = arith.maximumf %16, %17 : vector<256x128xf32>
    %19 = vector.shape_cast %18 : vector<256x128xf32> to vector<16x16x128xf32>
    %20 = arith.truncf %19 : vector<16x16x128xf32> to vector<16x16x128xbf16>
    %c1 = arith.constant 1 : index
    %c1_10 = arith.constant 1 : index
    %c0_11 = arith.constant 0 : index
    %21 = vector.load %arg12[%c1, %c1_10, %c0_11] : memref<18x24x128xbf16, #tpu.memory_space<vmem>>, vector<16x16x128xbf16>
    tpu.vector_store %arg12[%c1, %c1_10, %c0_11], %20 {strides = array<i32>} : memref<18x24x128xbf16, #tpu.memory_space<vmem>>, vector<16x16x128xbf16>,
    %22 = arith.index_cast %4 : i32 to index
    %c0_12 = arith.constant 0 : index
    %c0_13 = arith.constant 0 : index
    %23 = vector.load %arg12[%22, %c0_12, %c0_13] : memref<18x24x128xbf16, #tpu.memory_space<vmem>>, vector<18x24x128xbf16>
    %24 = vector.extract_strided_slice %23 {offsets = [0, 0, 0], sizes = [16, 16, 128], strides = [1, 1, 1]} : vector<18x24x128xbf16> to vector<16x16x128xbf16>
    %25 = vector.extract_strided_slice %23 {offsets = [0, 1, 0], sizes = [16, 16, 128], strides = [1, 1, 1]} : vector<18x24x128xbf16> to vector<16x16x128xbf16>
    %26 = vector.extract_strided_slice %23 {offsets = [0, 2, 0], sizes = [16, 16, 128], strides = [1, 1, 1]} : vector<18x24x128xbf16> to vector<16x16x128xbf16>
    %27 = vector.extract_strided_slice %23 {offsets = [1, 0, 0], sizes = [16, 16, 128], strides = [1, 1, 1]} : vector<18x24x128xbf16> to vector<16x16x128xbf16>
    %28 = vector.extract_strided_slice %23 {offsets = [1, 1, 0], sizes = [16, 16, 128], strides = [1, 1, 1]} : vector<18x24x128xbf16> to vector<16x16x128xbf16>
    %29 = vector.extract_strided_slice %23 {offsets = [1, 2, 0], sizes = [16, 16, 128], strides = [1, 1, 1]} : vector<18x24x128xbf16> to vector<16x16x128xbf16>
    %30 = vector.extract_strided_slice %23 {offsets = [2, 0, 0], sizes = [16, 16, 128], strides = [1, 1, 1]} : vector<18x24x128xbf16> to vector<16x16x128xbf16>
    %31 = vector.extract_strided_slice %23 {offsets = [2, 1, 0], sizes = [16, 16, 128], strides = [1, 1, 1]} : vector<18x24x128xbf16> to vector<16x16x128xbf16>
    %32 = vector.extract_strided_slice %23 {offsets = [2, 2, 0], sizes = [16, 16, 128], strides = [1, 1, 1]} : vector<18x24x128xbf16> to vector<16x16x128xbf16>
    %33 = tpu.concatenate %24, %25, %26, %27, %28, %29, %30, %31, %32 in 2 : vector<16x16x128xbf16>, vector<16x16x128xbf16>, vector<16x16x128xbf16>, vector<16x16x128xbf16>, vector<16x16x128xbf16>, vector<16x16x128xbf16>, vector<16x16x128xbf16>, vector<16x16x128xbf16>, vector<16x16x128xbf16> -> vector<16x16x1152xbf16>
    %34 = vector.shape_cast %33 : vector<16x16x1152xbf16> to vector<256x1152xbf16>
    %c0_14 = arith.constant 0 : index
    %c0_15 = arith.constant 0 : index
    %35 = vector.load %arg5[%c0_14, %c0_15] : memref<1152x128xbf16, #tpu.memory_space<vmem>>, vector<1152x128xbf16>
    %cst_16 = arith.constant dense<0.000000e+00> : vector<256x128xf32>
    %36 = tpu.matmul %34, %35, %cst_16 {dimension_numbers = #tpu.dot_dimension_numbers<[1], [0], [0], [1], [0, 0, 1, 1], [], []>} : vector<256x1152xbf16>, vector<1152x128xbf16>, vector<256x128xf32> -> vector<256x128xf32>
    %c0_17 = arith.constant 0 : index
    %c0_18 = arith.constant 0 : index
    %37 = vector.load %arg6[%c0_17, %c0_18] : memref<1x128xf32, #tpu.memory_space<vmem>>, vector<1x128xf32>
    %38 = vector.broadcast %37 : vector<1x128xf32> to vector<256x128xf32>
    %39 = arith.addf %36, %38 : vector<256x128xf32>
    %cst_19 = arith.constant 0.000000e+00 : f32
    %40 = vector.broadcast %cst_19 : f32 to vector<256x128xf32>
    %41 = arith.maximumf %39, %40 : vector<256x128xf32>
    %42 = arith.truncf %41 : vector<256x128xf32> to vector<256x128xbf16>
    %c0_20 = arith.constant 0 : index
    %c0_21 = arith.constant 0 : index
    %43 = vector.load %arg7[%c0_20, %c0_21] : memref<128x16xbf16, #tpu.memory_space<vmem>>, vector<128x16xbf16>
    %cst_22 = arith.constant dense<0.000000e+00> : vector<256x16xf32>
    %44 = tpu.matmul %42, %43, %cst_22 {dimension_numbers = #tpu.dot_dimension_numbers<[1], [0], [0], [1], [0, 0, 1, 1], [], []>} : vector<256x128xbf16>, vector<128x16xbf16>, vector<256x16xf32> -> vector<256x16xf32>
    %c0_23 = arith.constant 0 : index
    %c0_24 = arith.constant 0 : index
    %45 = vector.load %arg8[%c0_23, %c0_24] : memref<1x16xf32, #tpu.memory_space<vmem>>, vector<1x16xf32>
    %46 = vector.broadcast %45 : vector<1x16xf32> to vector<256x16xf32>
    %47 = arith.addf %44, %46 : vector<256x16xf32>
    %cst_25 = arith.constant 0.000000e+00 : f32
    %48 = vector.broadcast %cst_25 : f32 to vector<256x16xf32>
    %49 = arith.maximumf %47, %48 : vector<256x16xf32>
    %c0_26 = arith.constant 0 : index
    %50 = arith.index_cast %0 : i32 to index
    %c0_27 = arith.constant 0 : index
    %c0_28 = arith.constant 0 : index
    %51 = vector.load %arg2[%c0_26, %50, %c0_27, %c0_28] : memref<1x16x16x4xbf16, #tpu.memory_space<vmem>>, vector<1x16x16x4xbf16>
    %52 = vector.shape_cast %51 : vector<1x16x16x4xbf16> to vector<16x16x4xbf16>
    %53 = vector.shape_cast %52 : vector<16x16x4xbf16> to vector<256x4xbf16>
    %c0_29 = arith.constant 0 : index
    %c0_30 = arith.constant 0 : index
    %54 = vector.load %arg9[%c0_29, %c0_30] : memref<4x16xbf16, #tpu.memory_space<vmem>>, vector<4x16xbf16>
    %cst_31 = arith.constant dense<0.000000e+00> : vector<256x16xf32>
    %55 = tpu.matmul %53, %54, %cst_31 {dimension_numbers = #tpu.dot_dimension_numbers<[1], [0], [0], [1], [0, 0, 1, 1], [], []>} : vector<256x4xbf16>, vector<4x16xbf16>, vector<256x16xf32> -> vector<256x16xf32>
    %c0_32 = arith.constant 0 : index
    %c0_33 = arith.constant 0 : index
    %56 = vector.load %arg10[%c0_32, %c0_33] : memref<1x16xf32, #tpu.memory_space<vmem>>, vector<1x16xf32>
    %57 = vector.broadcast %56 : vector<1x16xf32> to vector<256x16xf32>
    %58 = arith.addf %55, %57 : vector<256x16xf32>
    %59 = arith.addf %49, %58 : vector<256x16xf32>
    %60 = vector.shape_cast %59 : vector<256x16xf32> to vector<1x16x16x16xf32>
    %61 = arith.truncf %60 : vector<1x16x16x16xf32> to vector<1x16x16x16xbf16>
    %c0_34 = arith.constant 0 : index
    %c0_35 = arith.constant 0 : index
    %c0_36 = arith.constant 0 : index
    %c0_37 = arith.constant 0 : index
    %62 = vector.load %arg11[%c0_34, %c0_35, %c0_36, %c0_37] : memref<1x16x16x16xbf16, #tpu.memory_space<vmem>>, vector<1x16x16x16xbf16>
    tpu.vector_store %arg11[%c0_34, %c0_35, %c0_36, %c0_37], %61 {strides = array<i32>} : memref<1x16x16x16xbf16, #tpu.memory_space<vmem>>, vector<1x16x16x16xbf16>,
    return
  }
  func.func @transform_0(%arg0: i32, %arg1: i32) -> (i32, i32, i32, i32) {
    %c0_i32 = arith.constant 0 : i32
    %c0_i32_0 = arith.constant 0 : i32
    %c0_i32_1 = arith.constant 0 : i32
    %c0_i32_2 = arith.constant 0 : i32
    return %arg0, %c0_i32, %c0_i32_0, %c0_i32_1 : i32, i32, i32, i32
  }
  func.func @transform_1(%arg0: i32, %arg1: i32) -> (i32, i32) {
    %c0_i32 = arith.constant 0 : i32
    %c0_i32_0 = arith.constant 0 : i32
    %c0_i32_1 = arith.constant 0 : i32
    return %c0_i32, %c0_i32_0 : i32, i32
  }
  func.func @transform_2(%arg0: i32, %arg1: i32) -> (i32, i32) {
    %c0_i32 = arith.constant 0 : i32
    %c0_i32_0 = arith.constant 0 : i32
    %c0_i32_1 = arith.constant 0 : i32
    return %c0_i32, %c0_i32_0 : i32, i32
  }
  func.func @transform_3(%arg0: i32, %arg1: i32) -> (i32, i32) {
    %c0_i32 = arith.constant 0 : i32
    %c0_i32_0 = arith.constant 0 : i32
    %c0_i32_1 = arith.constant 0 : i32
    return %c0_i32, %c0_i32_0 : i32, i32
  }
  func.func @transform_4(%arg0: i32, %arg1: i32) -> (i32, i32) {
    %c0_i32 = arith.constant 0 : i32
    %c0_i32_0 = arith.constant 0 : i32
    %c0_i32_1 = arith.constant 0 : i32
    return %c0_i32, %c0_i32_0 : i32, i32
  }
  func.func @transform_5(%arg0: i32, %arg1: i32) -> (i32, i32) {
    %c0_i32 = arith.constant 0 : i32
    %c0_i32_0 = arith.constant 0 : i32
    %c0_i32_1 = arith.constant 0 : i32
    return %c0_i32, %c0_i32_0 : i32, i32
  }
  func.func @transform_6(%arg0: i32, %arg1: i32) -> (i32, i32) {
    %c0_i32 = arith.constant 0 : i32
    %c0_i32_0 = arith.constant 0 : i32
    %c0_i32_1 = arith.constant 0 : i32
    return %c0_i32, %c0_i32_0 : i32, i32
  }
  func.func @transform_7(%arg0: i32, %arg1: i32) -> (i32, i32) {
    %c0_i32 = arith.constant 0 : i32
    %c0_i32_0 = arith.constant 0 : i32
    %c0_i32_1 = arith.constant 0 : i32
    return %c0_i32, %c0_i32_0 : i32, i32
  }
  func.func @transform_8(%arg0: i32, %arg1: i32) -> (i32, i32) {
    %c0_i32 = arith.constant 0 : i32
    %c0_i32_0 = arith.constant 0 : i32
    %c0_i32_1 = arith.constant 0 : i32
    return %c0_i32, %c0_i32_0 : i32, i32
  }
  func.func @transform_9(%arg0: i32, %arg1: i32) -> (i32, i32, i32, i32) {
    %c0_i32 = arith.constant 0 : i32
    %c0_i32_0 = arith.constant 0 : i32
    %c0_i32_1 = arith.constant 0 : i32
    return %arg0, %arg1, %c0_i32, %c0_i32_0 : i32, i32, i32, i32
  }
}

module attributes {stable_mosaic.version = 11 : i64} {
  func.func @_bottleneck_kernel(%arg0: i32, %arg1: i32, %arg2: memref<1x16x16x4xbf16, #tpu.memory_space<vmem>>, %arg3: memref<4x128xbf16, #tpu.memory_space<vmem>>, %arg4: memref<1x128xf32, #tpu.memory_space<vmem>>, %arg5: memref<1152x128xbf16, #tpu.memory_space<vmem>>, %arg6: memref<1x128xf32, #tpu.memory_space<vmem>>, %arg7: memref<128x16xbf16, #tpu.memory_space<vmem>>, %arg8: memref<1x16xf32, #tpu.memory_space<vmem>>, %arg9: memref<4x16xbf16, #tpu.memory_space<vmem>>, %arg10: memref<1x16xf32, #tpu.memory_space<vmem>>, %arg11: memref<1x16x16x16xbf16, #tpu.memory_space<vmem>>, %arg12: memref<18x24x128xbf16, #tpu.memory_space<vmem>>) attributes {dimension_semantics = [#tpu.dimension_semantics<parallel>, #tpu.dimension_semantics<arbitrary>], iteration_bounds = array<i64: 2, 1>, scalar_prefetch = 0 : i64, scratch_operands = 1 : i64, tpu.core_type = #tpu.core_type<tc>, window_params = [{transform_indices = @transform_0, window_bounds = array<i64: 1, 16, 16, 4>}, {pipeline_mode = #tpu.pipeline_mode<synchronous>, transform_indices = @transform_1, window_bounds = array<i64: 4, 128>}, {pipeline_mode = #tpu.pipeline_mode<synchronous>, transform_indices = @transform_2, window_bounds = array<i64: 1, 128>}, {pipeline_mode = #tpu.pipeline_mode<synchronous>, transform_indices = @transform_3, window_bounds = array<i64: 1152, 128>}, {pipeline_mode = #tpu.pipeline_mode<synchronous>, transform_indices = @transform_4, window_bounds = array<i64: 1, 128>}, {pipeline_mode = #tpu.pipeline_mode<synchronous>, transform_indices = @transform_5, window_bounds = array<i64: 128, 16>}, {pipeline_mode = #tpu.pipeline_mode<synchronous>, transform_indices = @transform_6, window_bounds = array<i64: 1, 16>}, {pipeline_mode = #tpu.pipeline_mode<synchronous>, transform_indices = @transform_7, window_bounds = array<i64: 4, 16>}, {pipeline_mode = #tpu.pipeline_mode<synchronous>, transform_indices = @transform_8, window_bounds = array<i64: 1, 16>}, {transform_indices = @transform_9, window_bounds = array<i64: 1, 16, 16, 16>}]} {
    %c16_i32 = arith.constant 16 : i32
    %0 = arith.muli %arg1, %c16_i32 : i32
    %c1_i32 = arith.constant 1 : i32
    %1 = arith.subi %0, %c1_i32 : i32
    %c0_i32 = arith.constant 0 : i32
    %c0_i32_0 = arith.constant 0 : i32
    %2 = arith.maxsi %c0_i32, %1 : i32
    %3 = arith.minsi %c0_i32_0, %2 : i32
    %4 = arith.subi %0, %3 : i32
    %c0_i32_1 = arith.constant 0 : i32
    %5 = arith.cmpi eq, %arg1, %c0_i32_1 : i32
    %6 = arith.extui %5 : i1 to i32
    %c0_i32_2 = arith.constant 0 : i32
    %7 = arith.cmpi ne, %6, %c0_i32_2 : i32
    scf.if %7 {
      %cst_38 = arith.constant 0.000000e+00 : bf16
      %63 = vector.broadcast %cst_38 : bf16 to vector<18x24x128xbf16>
      %c0_39 = arith.constant 0 : index
      %c0_40 = arith.constant 0 : index
      %c0_41 = arith.constant 0 : index
      %64 = vector.load %arg12[%c0_39, %c0_40, %c0_41] : memref<18x24x128xbf16, #tpu.memory_space<vmem>>, vector<18x24x128xbf16>
      tpu.vector_store %arg12[%c0_39, %c0_40, %c0_41], %63 {strides = array<i32>} : memref<18x24x128xbf16, #tpu.memory_space<vmem>>, vector<18x24x128xbf16>,
    } else {
    }
    %c0 = arith.constant 0 : index
    %8 = arith.index_cast %3 : i32 to index
    %c0_3 = arith.constant 0 : index
    %c0_4 = arith.constant 0 : index
    %9 = vector.load %arg2[%c0, %8, %c0_3, %c0_4] : memref<1x16x16x4xbf16, #tpu.memory_space<vmem>>, vector<1x16x16x4xbf16>
    %10 = vector.shape_cast %9 : vector<1x16x16x4xbf16> to vector<16x16x4xbf16>
    %11 = vector.shape_cast %10 : vector<16x16x4xbf16> to vector<256x4xbf16>
    %c0_5 = arith.constant 0 : index
    %c0_6 = arith.constant 0 : index
    %12 = vector.load %arg3[%c0_5, %c0_6] : memref<4x128xbf16, #tpu.memory_space<vmem>>, vector<4x128xbf16>
    %cst = arith.constant dense<0.000000e+00> : vector<256x128xf32>
    %13 = tpu.matmul %11, %12, %cst {dimension_numbers = #tpu.dot_dimension_numbers<[1], [0], [0], [1], [0, 0, 1, 1], [], []>} : vector<256x4xbf16>, vector<4x128xbf16>, vector<256x128xf32> -> vector<256x128xf32>
    %c0_7 = arith.constant 0 : index
    %c0_8 = arith.constant 0 : index
    %14 = vector.load %arg4[%c0_7, %c0_8] : memref<1x128xf32, #tpu.memory_space<vmem>>, vector<1x128xf32>
    %15 = vector.broadcast %14 : vector<1x128xf32> to vector<256x128xf32>
    %16 = arith.addf %13, %15 : vector<256x128xf32>
    %cst_9 = arith.constant 0.000000e+00 : f32
    %17 = vector.broadcast %cst_9 : f32 to vector<256x128xf32>
    %18 = arith.maximumf %16, %17 : vector<256x128xf32>
    %19 = vector.shape_cast %18 : vector<256x128xf32> to vector<16x16x128xf32>
    %20 = arith.truncf %19 : vector<16x16x128xf32> to vector<16x16x128xbf16>
    %c1 = arith.constant 1 : index
    %c1_10 = arith.constant 1 : index
    %c0_11 = arith.constant 0 : index
    %21 = vector.load %arg12[%c1, %c1_10, %c0_11] : memref<18x24x128xbf16, #tpu.memory_space<vmem>>, vector<16x16x128xbf16>
    tpu.vector_store %arg12[%c1, %c1_10, %c0_11], %20 {strides = array<i32>} : memref<18x24x128xbf16, #tpu.memory_space<vmem>>, vector<16x16x128xbf16>,
    %22 = arith.index_cast %4 : i32 to index
    %c0_12 = arith.constant 0 : index
    %c0_13 = arith.constant 0 : index
    %23 = vector.load %arg12[%22, %c0_12, %c0_13] : memref<18x24x128xbf16, #tpu.memory_space<vmem>>, vector<18x24x128xbf16>
    %24 = vector.extract_strided_slice %23 {offsets = [0, 0, 0], sizes = [16, 16, 128], strides = [1, 1, 1]} : vector<18x24x128xbf16> to vector<16x16x128xbf16>
    %25 = vector.extract_strided_slice %23 {offsets = [0, 1, 0], sizes = [16, 16, 128], strides = [1, 1, 1]} : vector<18x24x128xbf16> to vector<16x16x128xbf16>
    %26 = vector.extract_strided_slice %23 {offsets = [0, 2, 0], sizes = [16, 16, 128], strides = [1, 1, 1]} : vector<18x24x128xbf16> to vector<16x16x128xbf16>
    %27 = vector.extract_strided_slice %23 {offsets = [1, 0, 0], sizes = [16, 16, 128], strides = [1, 1, 1]} : vector<18x24x128xbf16> to vector<16x16x128xbf16>
    %28 = vector.extract_strided_slice %23 {offsets = [1, 1, 0], sizes = [16, 16, 128], strides = [1, 1, 1]} : vector<18x24x128xbf16> to vector<16x16x128xbf16>
    %29 = vector.extract_strided_slice %23 {offsets = [1, 2, 0], sizes = [16, 16, 128], strides = [1, 1, 1]} : vector<18x24x128xbf16> to vector<16x16x128xbf16>
    %30 = vector.extract_strided_slice %23 {offsets = [2, 0, 0], sizes = [16, 16, 128], strides = [1, 1, 1]} : vector<18x24x128xbf16> to vector<16x16x128xbf16>
    %31 = vector.extract_strided_slice %23 {offsets = [2, 1, 0], sizes = [16, 16, 128], strides = [1, 1, 1]} : vector<18x24x128xbf16> to vector<16x16x128xbf16>
    %32 = vector.extract_strided_slice %23 {offsets = [2, 2, 0], sizes = [16, 16, 128], strides = [1, 1, 1]} : vector<18x24x128xbf16> to vector<16x16x128xbf16>
    %33 = tpu.concatenate %24, %25, %26, %27, %28, %29, %30, %31, %32 in 2 : vector<16x16x128xbf16>, vector<16x16x128xbf16>, vector<16x16x128xbf16>, vector<16x16x128xbf16>, vector<16x16x128xbf16>, vector<16x16x128xbf16>, vector<16x16x128xbf16>, vector<16x16x128xbf16>, vector<16x16x128xbf16> -> vector<16x16x1152xbf16>
    %34 = vector.shape_cast %33 : vector<16x16x1152xbf16> to vector<256x1152xbf16>
    %c0_14 = arith.constant 0 : index
    %c0_15 = arith.constant 0 : index
    %35 = vector.load %arg5[%c0_14, %c0_15] : memref<1152x128xbf16, #tpu.memory_space<vmem>>, vector<1152x128xbf16>
    %cst_16 = arith.constant dense<0.000000e+00> : vector<256x128xf32>
    %36 = tpu.matmul %34, %35, %cst_16 {dimension_numbers = #tpu.dot_dimension_numbers<[1], [0], [0], [1], [0, 0, 1, 1], [], []>} : vector<256x1152xbf16>, vector<1152x128xbf16>, vector<256x128xf32> -> vector<256x128xf32>
    %c0_17 = arith.constant 0 : index
    %c0_18 = arith.constant 0 : index
    %37 = vector.load %arg6[%c0_17, %c0_18] : memref<1x128xf32, #tpu.memory_space<vmem>>, vector<1x128xf32>
    %38 = vector.broadcast %37 : vector<1x128xf32> to vector<256x128xf32>
    %39 = arith.addf %36, %38 : vector<256x128xf32>
    %cst_19 = arith.constant 0.000000e+00 : f32
    %40 = vector.broadcast %cst_19 : f32 to vector<256x128xf32>
    %41 = arith.maximumf %39, %40 : vector<256x128xf32>
    %42 = arith.truncf %41 : vector<256x128xf32> to vector<256x128xbf16>
    %c0_20 = arith.constant 0 : index
    %c0_21 = arith.constant 0 : index
    %43 = vector.load %arg7[%c0_20, %c0_21] : memref<128x16xbf16, #tpu.memory_space<vmem>>, vector<128x16xbf16>
    %cst_22 = arith.constant dense<0.000000e+00> : vector<256x16xf32>
    %44 = tpu.matmul %42, %43, %cst_22 {dimension_numbers = #tpu.dot_dimension_numbers<[1], [0], [0], [1], [0, 0, 1, 1], [], []>} : vector<256x128xbf16>, vector<128x16xbf16>, vector<256x16xf32> -> vector<256x16xf32>
    %c0_23 = arith.constant 0 : index
    %c0_24 = arith.constant 0 : index
    %45 = vector.load %arg8[%c0_23, %c0_24] : memref<1x16xf32, #tpu.memory_space<vmem>>, vector<1x16xf32>
    %46 = vector.broadcast %45 : vector<1x16xf32> to vector<256x16xf32>
    %47 = arith.addf %44, %46 : vector<256x16xf32>
    %cst_25 = arith.constant 0.000000e+00 : f32
    %48 = vector.broadcast %cst_25 : f32 to vector<256x16xf32>
    %49 = arith.maximumf %47, %48 : vector<256x16xf32>
    %c0_26 = arith.constant 0 : index
    %50 = arith.index_cast %0 : i32 to index
    %c0_27 = arith.constant 0 : index
    %c0_28 = arith.constant 0 : index
    %51 = vector.load %arg2[%c0_26, %50, %c0_27, %c0_28] : memref<1x16x16x4xbf16, #tpu.memory_space<vmem>>, vector<1x16x16x4xbf16>
    %52 = vector.shape_cast %51 : vector<1x16x16x4xbf16> to vector<16x16x4xbf16>
    %53 = vector.shape_cast %52 : vector<16x16x4xbf16> to vector<256x4xbf16>
    %c0_29 = arith.constant 0 : index
    %c0_30 = arith.constant 0 : index
    %54 = vector.load %arg9[%c0_29, %c0_30] : memref<4x16xbf16, #tpu.memory_space<vmem>>, vector<4x16xbf16>
    %cst_31 = arith.constant dense<0.000000e+00> : vector<256x16xf32>
    %55 = tpu.matmul %53, %54, %cst_31 {dimension_numbers = #tpu.dot_dimension_numbers<[1], [0], [0], [1], [0, 0, 1, 1], [], []>} : vector<256x4xbf16>, vector<4x16xbf16>, vector<256x16xf32> -> vector<256x16xf32>
    %c0_32 = arith.constant 0 : index
    %c0_33 = arith.constant 0 : index
    %56 = vector.load %arg10[%c0_32, %c0_33] : memref<1x16xf32, #tpu.memory_space<vmem>>, vector<1x16xf32>
    %57 = vector.broadcast %56 : vector<1x16xf32> to vector<256x16xf32>
    %58 = arith.addf %55, %57 : vector<256x16xf32>
    %59 = arith.addf %49, %58 : vector<256x16xf32>
    %60 = vector.shape_cast %59 : vector<256x16xf32> to vector<1x16x16x16xf32>
    %61 = arith.truncf %60 : vector<1x16x16x16xf32> to vector<1x16x16x16xbf16>
    %c0_34 = arith.constant 0 : index
    %c0_35 = arith.constant 0 : index
    %c0_36 = arith.constant 0 : index
    %c0_37 = arith.constant 0 : index
    %62 = vector.load %arg11[%c0_34, %c0_35, %c0_36, %c0_37] : memref<1x16x16x16xbf16, #tpu.memory_space<vmem>>, vector<1x16x16x16xbf16>
    tpu.vector_store %arg11[%c0_34, %c0_35, %c0_36, %c0_37], %61 {strides = array<i32>} : memref<1x16x16x16xbf16, #tpu.memory_space<vmem>>, vector<1x16x16x16xbf16>,
    return
  }
  func.func @transform_0(%arg0: i32, %arg1: i32) -> (i32, i32, i32, i32) {
    %c0_i32 = arith.constant 0 : i32
    %c0_i32_0 = arith.constant 0 : i32
    %c0_i32_1 = arith.constant 0 : i32
    %c0_i32_2 = arith.constant 0 : i32
    return %arg0, %c0_i32, %c0_i32_0, %c0_i32_1 : i32, i32, i32, i32
  }
  func.func @transform_1(%arg0: i32, %arg1: i32) -> (i32, i32) {
    %c0_i32 = arith.constant 0 : i32
    %c0_i32_0 = arith.constant 0 : i32
    %c0_i32_1 = arith.constant 0 : i32
    return %c0_i32, %c0_i32_0 : i32, i32
  }
  func.func @transform_2(%arg0: i32, %arg1: i32) -> (i32, i32) {
    %c0_i32 = arith.constant 0 : i32
    %c0_i32_0 = arith.constant 0 : i32
    %c0_i32_1 = arith.constant 0 : i32
    return %c0_i32, %c0_i32_0 : i32, i32
  }
  func.func @transform_3(%arg0: i32, %arg1: i32) -> (i32, i32) {
    %c0_i32 = arith.constant 0 : i32
    %c0_i32_0 = arith.constant 0 : i32
    %c0_i32_1 = arith.constant 0 : i32
    return %c0_i32, %c0_i32_0 : i32, i32
  }
  func.func @transform_4(%arg0: i32, %arg1: i32) -> (i32, i32) {
    %c0_i32 = arith.constant 0 : i32
    %c0_i32_0 = arith.constant 0 : i32
    %c0_i32_1 = arith.constant 0 : i32
    return %c0_i32, %c0_i32_0 : i32, i32
  }
  func.func @transform_5(%arg0: i32, %arg1: i32) -> (i32, i32) {
    %c0_i32 = arith.constant 0 : i32
    %c0_i32_0 = arith.constant 0 : i32
    %c0_i32_1 = arith.constant 0 : i32
    return %c0_i32, %c0_i32_0 : i32, i32
  }
  func.func @transform_6(%arg0: i32, %arg1: i32) -> (i32, i32) {
    %c0_i32 = arith.constant 0 : i32
    %c0_i32_0 = arith.constant 0 : i32
    %c0_i32_1 = arith.constant 0 : i32
    return %c0_i32, %c0_i32_0 : i32, i32
  }
  func.func @transform_7(%arg0: i32, %arg1: i32) -> (i32, i32) {
    %c0_i32 = arith.constant 0 : i32
    %c0_i32_0 = arith.constant 0 : i32
    %c0_i32_1 = arith.constant 0 : i32
    return %c0_i32, %c0_i32_0 : i32, i32
  }
  func.func @transform_8(%arg0: i32, %arg1: i32) -> (i32, i32) {
    %c0_i32 = arith.constant 0 : i32
    %c0_i32_0 = arith.constant 0 : i32
    %c0_i32_1 = arith.constant 0 : i32
    return %c0_i32, %c0_i32_0 : i32, i32
  }
  func.func @transform_9(%arg0: i32, %arg1: i32) -> (i32, i32, i32, i32) {
    %c0_i32 = arith.constant 0 : i32
    %c0_i32_0 = arith.constant 0 : i32
    %c0_i32_1 = arith.constant 0 : i32
    return %arg0, %arg1, %c0_i32, %c0_i32_0 : i32, i32, i32, i32
  }
}

</mosaic_0001>

<bundles_post_ra>
// kernel: tpu_custom_call.1
= control target key start
LH: loop header
LB: loop body
LE: loop exit
PB: predicated region body
PF: predicated region fallthrough
CT: control target
= control target key end

     0   :  { %14 = vsyncpa [#allocation4], 0  ;;  %s6103_s0 = inlined_call_operand.vmem [shape: bf16[2,16,16,4], index: 0, kind: input, shape index: {}]   ;;  %s6104_s1 = inlined_call_operand.vmem [shape: bf16[4,128], index: 1, kind: input, shape index: {}]   ;;  %s6105_s2 = inlined_call_operand.vmem [shape: f32[1,128], index: 2, kind: input, shape index: {}]   ;;  %s6106_s3 = inlined_call_operand.hbm [shape: bf16[1152,128], index: 3, kind: input, shape index: {}]   ;;  %s6107_s4 = inlined_call_operand.vmem [shape: f32[1,128], index: 4, kind: input, shape index: {}]   ;;  %s6108_s5 = inlined_call_operand.vmem [shape: bf16[128,16], index: 5, kind: input, shape index: {}]   ;;  %s6109_s6 = inlined_call_operand.vmem [shape: f32[1,16], index: 6, kind: input, shape index: {}]   ;;  %s6110_s7 = inlined_call_operand.vmem [shape: bf16[4,16], index: 7, kind: input, shape index: {}]   ;;  %s6111_s8 = inlined_call_operand.vmem [shape: f32[1,16], index: 8, kind: input, shape index: {}]   ;;  %s6112_s9 = inlined_call_operand.hbm [shape: bf16[2,16,16,16], index: 9, kind: output, shape index: {}]  }
   0x1   :  { %15 = vsyncpa [#allocation5], 0 }
   0x2   :  { %17 = vsyncpa [#allocation5 + $0x1], 0  ;;  %s4764_s30 = smov 0   ;;  %s4766_s10 = smov 0  }
   0x3   :  { %s4768_s11 = smov 0   ;;  %s4770_s12 = smov 0  }
   0x4   :  { %s4772_s13 = smov 0   ;;  %s4774_s14 = smov 0  }
   0x5 LB: > { %s3808_s15 = sadd.s32 4294967295, %s4706_s14   ;;  %s3809_s16 = sadd.s32 4294967294, %s4706_s14   ;;  %s4706_s14 = sphi %s4774_s14, %s23_s14   ;;  %s4702_s13 = sphi %s4772_s13, %s6222_s13   ;;  %s4698_s12 = sphi %s4770_s12, %s6221_s12   ;;  %s4694_s11 = sphi %s4768_s11, %s6220_s11   ;;  %s4690_s10 = sphi %s4766_s10, %s6219_s10   ;;  %s4686_s30 = sphi %s4764_s30, %s6218_s30  }
   0x6   : > { %s35_s17 = sadd.s32 1, %s4702_s13  ;;  %s238_s18 = sadd.s32 1, %s4694_s11 }
   0x7   : > { %p37_p0 = scmp.ge.s32.totalorder %s35_s17, 2  ;;  %p248_p1 = scmp.ne.s32.totalorder %s4694_s11, %s4690_s10 }
   0x8   : > { %p249_p2 = scmp.eq.s32.totalorder %s3808_s15, 1  ;;  %p254_p3 = scmp.ne.s32.totalorder %s4690_s10, %s4686_s30 }
   0x9   : > { %s6224_s17 = smov (%p37_p0, %s35_s17), 0  ;;  %p255_p5 = scmp.eq.s32.totalorder %s3809_s16, 1 }
   0xa   : > { %p4804_p4 = por %p249_p2, %p248_p1  ;;  %s233_s20 = ssub.s32 %s4702_s13, %s6224_s17 }
   0xb   : > { %p3810_p6 = scmp.ge.s32.totalorder %s4706_s14, 1  ;;  %p236_p7 = scmp.eq.s32.totalorder %s233_s20, 0 }
   0xc   : > { %p4811_p8 = por %p255_p5, %p254_p3  ;;  %p262_p9 = scmp.lt.s32.totalorder %s4706_s14, 3 }
   0xd   : > { %s4817_s22 = scalar_select %p236_p7, %s4694_s11, %s238_s18  }
   0xe   : > { %p263_p10 = pnand %p3810_p6, %p262_p9  ;;  %p4521_p11 = scmp.eq.s32.totalorder %s3808_s15, 0 }
   0xf   : > { %s279_s25 = sshll.u32 %s6106_s3, 4  ;;  %s4708_s26 = smov [#allocation3]   ;;  %s280_s25 = int_to_ptr.hbm [resolvable:$true] %s279_s25 }
  0x10   : > { %p4513_p12 = pneg %p263_p10  ;;  %s281_s27 = sshll.u32 %s4708_s26, 4  ;;  %s282_s27 = int_to_ptr.vmem [resolvable:$true] %s281_s27 }
  0x11   : > { %s4709_s28 = smov 64   ;;  %s4710_s29 = smov 4  }
  0x12   : > { %p4514_p13 = pnand %p4521_p11, %p4513_p12  ;;  %320 = sbr.rel (%p263_p10) target bundleno = 1215 (0x4bf), region = 56 }
  0x14   : > { %4516 = dma.hbm_to_vmem [thread:$0]  (!%p4514_p13), %s280_s25, 9216, %s282_s27, [#allocation4], %s4709_s28, %s4709_s28, %s4710_s29  }
  0x17   : > { %4677 = dma.done.wait (%p4521_p11), [#allocation4], 9216  }
  0x18   : > { %4679 = vsyncadd (%p4521_p11), [#allocation4], 4294958080  ;;  %p357_p0 = scmp.lt.s32.totalorder %s4698_s12, 1  ;;  %vm598_vm0 = vcmask 1041408   ;;  %v464_v0 = vld [vmem:[%s6104_s1] sm:$0x3] }
  0x19   : > { %v600_v1 = vsel %vm598_vm0, %v464_v0, 0  ;;  %vm549_vm1 = vcmask 31744   ;;  %v4425_v7 = vld [vmem:[#allocation3 + $0x78] sm:$0xff]  ;;  %v4424_v10 = vld [vmem:[#allocation3 + $0x70] sm:$0xff]  ;;  %v4423_v13 = vld [vmem:[#allocation3 + $0x68] sm:$0xff]  ;;  %v4711_v21 = vmov 0  }
  0x1a   : > { %s358_s15 = scalar_select %p357_p0, %s4698_s12, 1  ;;  %609 = vmatpush.bf16.msra.mxu0 %v600_v1  ;;  %v4433_v8 = vld [vmem:[#allocation3 + $0xb8] sm:$0xff]  ;;  %2392 = vmatpush.bf16.msra.mxu2 %v4425_v7  ;;  %v4432_v11 = vld [vmem:[#allocation3 + $0xb0] sm:$0xff]  ;;  %v4431_v14 = vld [vmem:[#allocation3 + $0xa8] sm:$0xff]  ;;  %378 = vst [vmem:[#allocation2 + $0xc] sm:$0xf] %v4711_v21 }
  0x1b   : > { %v4417_v9 = vld [vmem:[#allocation3 + $0x38] sm:$0xff]  ;;  %2481 = vmatpush.bf16.msra.mxu3 %v4433_v8  ;;  %v4416_v12 = vld [vmem:[#allocation3 + $0x30] sm:$0xff]  ;;  %v4415_v15 = vld [vmem:[#allocation3 + $0x28] sm:$0xff]  ;;  %375 = vst [vmem:[#allocation2] sm:$0xf] %v4711_v21  ;;  %vm1606_vm3 = vcmask 1046528  }
  0x1c   : > { %s4375_s16 = sshll.u32 %s358_s15, 7  ;;  %2303 = vmatpush.bf16.msra.mxu1 %v4417_v9  ;;  %v4422_v16 = vld [vmem:[#allocation3 + $0x60] sm:$0xff]  ;;  %v4421_v20 = vld [vmem:[#allocation3 + $0x58] sm:$0xff]  ;;  %v4420_v24 = vld [vmem:[#allocation3 + $0x50] sm:$0xff]  ;;  %376 = vst [vmem:[#allocation2 + $0x4] sm:$0xf] %v4711_v21 }
  0x1d   : > { %s4827_s23 = scalar_lea.vmem %s6103_s0, %s4375_s16  ;;  %v4430_v18 = vld [vmem:[#allocation3 + $0xa0] sm:$0xff]  ;;  %v4429_v22 = vld [vmem:[#allocation3 + $0x98] sm:$0xff]  ;;  %377 = vst [vmem:[#allocation2 + $0x8] sm:$0xf] %v4711_v21  ;;  %v4428_v25 = vld [vmem:[#allocation3 + $0x90] sm:$0xff]  ;;  %vm1079_vm4 = vcmask 1043456  }
  0x1e   : > { %v4376_v2 = vld [vmem:[%s4827_s23] sm:$0xff]  ;;  %v4377_v3 = vld [vmem:[%s4827_s23 + $0x8] sm:$0xff]  ;;  %v4378_v4 = vld [vmem:[%s4827_s23 + $0x10] sm:$0xff]  ;;  %2393 = vmatpush.bf16.msra.mxu2 %v4424_v10  ;;  %379 = vst [vmem:[#allocation2 + $0x10] sm:$0xf] %v4711_v21  ;;  %vm1086_vm9 = vcmask 1040384  }
  0x1f   : > { %3882 = vmatmul.msk.bf16.vlgmr.msra.gmra.mxu0 %vm549_vm1, %v4376_v2  ;;  %v4379_v5 = vld [vmem:[%s4827_s23 + $0x18] sm:$0xff]  ;;  %v4380_v6 = vld [vmem:[%s4827_s23 + $0x20] sm:$0xff]  ;;  %2482 = vmatpush.bf16.msra.mxu3 %v4432_v11  ;;  %v4381_v17 = vld [vmem:[%s4827_s23 + $0x28] sm:$0xff]  ;;  %380 = vst [vmem:[#allocation2 + $0x14] sm:$0xf] %v4711_v21  ;;  %s354_s25 = sand.u32 1, %s4690_s10  }
  0x20   : > { %2304 = vmatpush.bf16.msra.mxu1 %v4416_v12  ;;  %v4414_v19 = vld [vmem:[#allocation3 + $0x20] sm:$0xff]  ;;  %v4413_v23 = vld [vmem:[#allocation3 + $0x18] sm:$0xff]  ;;  %v4412_v26 = vld [vmem:[#allocation3 + $0x10] sm:$0xff]  ;;  %381 = vst [vmem:[#allocation2 + $0x18] sm:$0xf] %v4711_v21  ;;  %s3815_s27 = sshll.u32 %s354_s25, 7 }
  0x21   : > { %v4419_v27 = vld [vmem:[#allocation3 + $0x48] sm:$0xff]  ;;  %382 = vst [vmem:[#allocation2 + $0x1c] sm:$0xf] %v4711_v21  ;;  %v4418_v34 = vld [vmem:[#allocation3 + $0x40] sm:$0xff]  ;;  %v4382_v36 = vld [vmem:[%s4827_s23 + $0x30] sm:$0xff]  ;;  %vm3665_vm12 = vcmask 125952  }
  0x22   : > { %2394 = vmatpush.bf16.msra.mxu2 %v4423_v13  ;;  %v4427_v28 = vld [vmem:[#allocation3 + $0x88] sm:$0xff]  ;;  %383 = vst [vmem:[#allocation2 + $0x20] sm:$0xf] %v4711_v21  ;;  %v4426_v39 = vld [vmem:[#allocation3 + $0x80] sm:$0xff]  ;;  %vm1397_vm2 = vsmask.f32 7424 }
  0x23   : > { %2483 = vmatpush.bf16.msra.mxu3 %v4431_v14  ;;  %384 = vst [vmem:[#allocation2 + $0x24] sm:$0xf] %v4711_v21  ;;  %v4392_v29 = vld [vmem:[#allocation2] sm:$0xff]  ;;  %v4410_v42 = vld [vmem:[#allocation3] sm:$0xff]  ;;  %v4441_v49 = vld [vmem:[#allocation3 + $0xf8] sm:$0xff]  ;;  %s5876_s28 = scalar_lea.vmem [#allocation6], %s3815_s27 }
  0x24   : > { %2305 = vmatpush.bf16.msra.mxu1 %v4415_v15  ;;  %385 = vst [vmem:[#allocation2 + $0x28] sm:$0xf] %v4711_v21  ;;  %v1201_v30 = vld [vmem:[#allocation2 + $0x8] sm:$0xf]  ;;  %v1401_v32 = vshll.u32 %v4392_v29, 16  ;;  %v4411_v33 = vld [vmem:[#allocation3 + $0x8] sm:$0xff]  ;;  %2570 = vmatpush.bf16.msrb.mxu0 %v4441_v49 }
  0x25   : > { %386 = vst [vmem:[#allocation2 + $0x2c] sm:$0xf] %v4711_v21  ;;  %v1365_v31 = vunpack.c.l.b16 %v1201_v30  ;;  %v1399_v35 = vshrl.u32 %v4392_v29, 16  ;;  %v1607_v43 = vrot.slane %v4392_v29, 1  ;;  %v4383_v48 = vld [vmem:[%s4827_s23 + $0x38] sm:$0xff]  ;;  %v4449_v51 = vld [vmem:[#allocation3 + $0x138] sm:$0xff] }
  0x26   : > { %2395 = vmatpush.bf16.msra.mxu2 %v4422_v16  ;;  %387 = vst [vmem:[#allocation2 + $0x30] sm:$0xf] %v4711_v21  ;;  %v1403_v38 = vrot.slane %v1401_v32, 1  ;;  %v4896_v50 = vld [vmem:[%s6105_s2] ss:$0 sm:$0xff]  ;;  %s3714_s18 = sshll.u32 %s5876_s28, 4  ;;  %s3715_s18 = int_to_ptr.vmem [resolvable:$true] %s3714_s18 }
  0x27   : > { %2484 = vmatpush.bf16.msra.mxu3 %v4430_v18  ;;  %388 = vst [vmem:[#allocation2 + $0x34] sm:$0xf] %v4711_v21  ;;  %v1381_v37 = vpack.c.b16 %v1365_v31, %v1365_v31  ;;  %v4384_v52 = vld [vmem:[%s4827_s23 + $0x40] sm:$0xff]  ;;  %vm1080_vm5 = vsmask.f32 7938  ;;  %s4644_s29 = scalar_lea.hbm %s6112_s9, 256 }
  0x28   : > { %2306 = vmatpush.bf16.msra.mxu1 %v4414_v19  ;;  %389 = vst [vmem:[#allocation2 + $0x38] sm:$0xf] %v4711_v21  ;;  %v1404_v40 = vor.u32 %v1403_v38, %v1399_v35  ;;  %vm4914_vm6 = vmand %vm1079_vm4, %vm1080_vm5  ;;  %v1082_v63 = vld [vmem:[#allocation2 + $0xc] sm:$0xf]  ;;  %vm755_vm7 = vsmask.f32 256 }
  0x29   : > { %390 = vst [vmem:[#allocation2 + $0x3c] sm:$0xf] %v4711_v21  ;;  %v1406_v41 = vshll.u32 %v1381_v37, 16  ;;  %v1608_v44 = vrot.slane %v1381_v37, 1  ;;  %vm756_vm8 = vsmask.f32 4368  ;;  %vm4926_vm11 = vmand %vm1086_vm9, %vm755_vm7 }
  0x2a   : > { %2396 = vmatpush.bf16.msra.mxu2 %v4421_v20  ;;  %391 = vst [vmem:[#allocation2 + $0x40] sm:$0xf] %v4711_v21  ;;  %vm4921_vm10 = vmor %vm755_vm7, %vm756_vm8  ;;  %v1088_v12 = vld [vmem:[#allocation2 + $0x14] sm:$0x1] }
  0x2b   : > { %2485 = vmatpush.bf16.msra.mxu3 %v4429_v22  ;;  %392 = vst [vmem:[#allocation2 + $0x44] sm:$0xf] %v4711_v21  ;;  %v1408_v45 = vrot.slane %v1406_v41, 1  ;;  %v1609_v46 = vsel %vm1606_vm3, %v1607_v43, %v1608_v44  ;;  %v4386_v35 = vld [vmem:[%s4827_s23 + $0x50] sm:$0xff]  ;;  %v1095_v44 = vld [vmem:[#allocation2 + $0x20] sm:$0x1] }
  0x2c   : > { %2307 = vmatpush.bf16.msra.mxu1 %v4413_v23  ;;  %393 = vst [vmem:[#allocation2 + $0x48] sm:$0xf] %v4711_v21 }
  0x2d   : > { %394 = vst [vmem:[#allocation2 + $0x4c] sm:$0xf] %v4711_v21  ;;  %v1409_v47 = vsel %vm1397_vm2, %v1404_v40, %v1408_v45 }
  0x2e   : > { %2397 = vmatpush.bf16.msra.mxu2 %v4420_v24  ;;  %395 = vst [vmem:[#allocation2 + $0x50] sm:$0xf] %v4711_v21 }
  0x2f   : > { %3883 = vmatmul.msk.bf16.gmra.mxu0 %vm549_vm1, %v4377_v3  ;;  %2486 = vmatpush.bf16.msra.mxu3 %v4428_v25  ;;  %396 = vst [vmem:[#allocation2 + $0x54] sm:$0xf] %v4711_v21 }
  0x30   : > { %2308 = vmatpush.bf16.msra.mxu1 %v4412_v26  ;;  %397 = vst [vmem:[#allocation2 + $0x58] sm:$0xf] %v4711_v21  ;;  %v1091_v26 = vld [vmem:[#allocation2 + $0x18] sm:$0xf] }
  0x31   : > { %398 = vst [vmem:[#allocation2 + $0x5c] sm:$0xf] %v4711_v21 }
  0x32   : > { %2398 = vmatpush.bf16.msra.mxu2 %v4419_v27  ;;  %399 = vst [vmem:[#allocation2 + $0x60] sm:$0xf] %v4711_v21 }
  0x33   : > { %2487 = vmatpush.bf16.msra.mxu3 %v4427_v28  ;;  %400 = vst [vmem:[#allocation2 + $0x64] sm:$0xf] %v4711_v21 }
  0x34   : > { %2309 = vmatpush.bf16.msra.mxu1 %v4411_v33  ;;  %401 = vst [vmem:[#allocation2 + $0x68] sm:$0xf] %v4711_v21  ;;  %v4448_v33 = vld [vmem:[#allocation3 + $0x130] sm:$0xff] }
  0x35   : > { %402 = vst [vmem:[#allocation2 + $0x6c] sm:$0xf] %v4711_v21 }
  0x36   : > { %2399 = vmatpush.bf16.msra.mxu2 %v4418_v34  ;;  %403 = vst [vmem:[#allocation2 + $0x70] sm:$0xf] %v4711_v21 }
  0x37   : > { %2488 = vmatpush.bf16.msra.mxu3 %v4426_v39  ;;  %404 = vst [vmem:[#allocation2 + $0x74] sm:$0xf] %v4711_v21 }
  0x38   : > { %2310 = vmatpush.bf16.msra.mxu1 %v4410_v42  ;;  %405 = vst [vmem:[#allocation2 + $0x78] sm:$0xf] %v4711_v21 }
  0x39   : > { %2400 = vmatmul.bf16.vlgmr.msra.gmra.mxu2 %v1409_v47  ;;  %406 = vst [vmem:[#allocation2 + $0x7c] sm:$0xf] %v4711_v21 }
  0x3a   : > { %2489 = vmatmul.bf16.vlgmr.msra.gmra.mxu3 %v1609_v46  ;;  %407 = vst [vmem:[#allocation2 + $0x80] sm:$0xf] %v4711_v21 }
  0x3b   : > { %2311 = vmatmul.bf16.vlgmr.msra.gmra.mxu1 %v4392_v29  ;;  %408 = vst [vmem:[#allocation2 + $0x84] sm:$0xf] %v4711_v21 }
  0x3c   : > { %409 = vst [vmem:[#allocation2 + $0x88] sm:$0xf] %v4711_v21  ;;  %2659 = vmatpush.bf16.msrb.mxu1 %v4449_v51 }
  0x3d   : > { %410 = vst [vmem:[#allocation2 + $0x8c] sm:$0xf] %v4711_v21 }
  0x3e   : > { %411 = vst [vmem:[#allocation2 + $0x90] sm:$0xf] %v4711_v21 }
  0x3f   : > { %3884 = vmatmul.msk.bf16.gmra.mxu0 %vm549_vm1, %v4378_v4  ;;  %412 = vst [vmem:[#allocation2 + $0x94] sm:$0xf] %v4711_v21 }
  0x40   : > { %413 = vst [vmem:[#allocation2 + $0x98] sm:$0xf] %v4711_v21  ;;  %2660 = vmatpush.bf16.msrb.mxu1 %v4448_v33 }
  0x41   : > { %414 = vst [vmem:[#allocation2 + $0x9c] sm:$0xf] %v4711_v21 }
  0x42   : > { %415 = vst [vmem:[#allocation2 + $0xa0] sm:$0xf] %v4711_v21 }
  0x43   : > { %416 = vst [vmem:[#allocation2 + $0xa4] sm:$0xf] %v4711_v21 }
  0x44   : > { %417 = vst [vmem:[#allocation2 + $0xa8] sm:$0xf] %v4711_v21 }
  0x45   : > { %418 = vst [vmem:[#allocation2 + $0xac] sm:$0xf] %v4711_v21 }
  0x46   : > { %419 = vst [vmem:[#allocation2 + $0xb0] sm:$0xf] %v4711_v21 }
  0x47   : > { %420 = vst [vmem:[#allocation2 + $0xb4] sm:$0xf] %v4711_v21 }
  0x48   : > { %421 = vst [vmem:[#allocation2 + $0xb8] sm:$0xf] %v4711_v21 }
  0x49   : > { %422 = vst [vmem:[#allocation2 + $0xbc] sm:$0xf] %v4711_v21 }
  0x4a   : > { %423 = vst [vmem:[#allocation2 + $0xc0] sm:$0xf] %v4711_v21 }
  0x4b   : > { %424 = vst [vmem:[#allocation2 + $0xc4] sm:$0xf] %v4711_v21 }
  0x4c   : > { %425 = vst [vmem:[#allocation2 + $0xc8] sm:$0xf] %v4711_v21 }
  0x4d   : > { %426 = vst [vmem:[#allocation2 + $0xcc] sm:$0xf] %v4711_v21 }
  0x4e   : > { %427 = vst [vmem:[#allocation2 + $0xd0] sm:$0xf] %v4711_v21 }
  0x4f   : > { %3885 = vmatmul.msk.bf16.gmra.mxu0 %vm549_vm1, %v4379_v5  ;;  %428 = vst [vmem:[#allocation2 + $0xd4] sm:$0xf] %v4711_v21  ;;  %v4385_v5 = vld [vmem:[%s4827_s23 + $0x48] sm:$0xff] }
  0x50   : > { %v4440_v21 = vld [vmem:[#allocation3 + $0xf0] sm:$0xff] }
  0x51   : > { %2571 = vmatpush.bf16.msrb.mxu0 %v4440_v21 }
  0x5f   : > { %3886 = vmatmul.msk.bf16.gmra.mxu0 %vm549_vm1, %v4380_v6 }
  0x6f   : > { %3887 = vmatmul.msk.bf16.gmra.mxu0 %vm549_vm1, %v4381_v17 }
  0x7f   : > { %3888 = vmatmul.msk.bf16.gmra.mxu0 %vm549_vm1, %v4382_v36 }
  0x8f   : > { %3889 = vmatmul.msk.bf16.gmra.mxu0 %vm549_vm1, %v4383_v48 }
  0x9c   : > { %v611_v53 = vpop.f32.mrf.mxu0 }
  0x9d   : > { %v612_v54 = vadd.f32 %v4896_v50, %v611_v53 }
  0x9f   : > { %v691_v55 = vmax.f32 %v612_v54, 0.0  ;;  %3890 = vmatmul.msk.bf16.gmra.mxu0 %vm549_vm1, %v4384_v52 }
  0xa1   : > { %v723_v56 = vpack.c.bf16 %v691_v55, %v691_v55 }
  0xa3   : > { %v759_v57 = vshrl.u32 %v723_v56, 16  ;;  %v762_v60 = vshll.u32 %v723_v56, 16 }
  0xa4   : > { %v613_v58 = vpop.f32.mrf.mxu0 }
  0xa5   : > { %v761_v59 = vrot.slane %v759_v57, 7  ;;  %v614_v61 = vadd.f32 %v4896_v50, %v613_v58 }
  0xa7   : > { %v764_v0 = vor.u32 %v762_v60, %v761_v59  ;;  %v692_v1 = vmax.f32 %v614_v61, 0.0  ;;  %v765_v13 = vrot.slane %v761_v59, 4 }
  0xa9   : > { %v1083_v2 = vsel %vm4914_vm6, %v764_v0, %v1082_v63  ;;  %v724_v3 = vpack.c.bf16 %v692_v1, %v692_v1 }
  0xaa   : > { %1084 = vst [vmem:[#allocation2 + $0xc] sm:$0xf] %v1083_v2 }
  0xab   : > { %v767_v4 = vshrl.u32 %v724_v3, 16  ;;  %v770_v9 = vshll.u32 %v724_v3, 16  ;;  %v1098_v3 = vld [vmem:[#allocation2 + $0x24] sm:$0xf] }
  0xac   : > { %v616_v6 = vpop.f32.mrf.mxu0 }
  0xad   : > { %v769_v8 = vrot.slane %v767_v4, 7  ;;  %v617_v10 = vadd.f32 %v4896_v50, %v616_v6 }
  0xaf   : > { %v772_v14 = vor.u32 %v770_v9, %v769_v8  ;;  %v774_v15 = vrot.slane %v769_v8, 4  ;;  %v693_v16 = vmax.f32 %v617_v10, 0.0  ;;  %3891 = vmatmul.msk.bf16.gmra.mxu0 %vm549_vm1, %v4385_v5 }
  0xb1   : > { %v773_v17 = vsel %vm4921_vm10, %v765_v13, %v772_v14  ;;  %v1089_v18 = vsel %vm4926_vm11, %v774_v15, %v1088_v12  ;;  %v725_v19 = vpack.c.bf16 %v693_v16, %v693_v16  ;;  %v4387_v13 = vld [vmem:[%s4827_s23 + $0x58] sm:$0xff] }
  0xb2   : > { %1085 = vst [vmem:[#allocation2 + $0x10] sm:$0xf] %v773_v17 }
  0xb3   : > { %1090 = vst [vmem:[#allocation2 + $0x14] sm:$0x1] %v1089_v18  ;;  %v776_v20 = vshrl.u32 %v725_v19, 16  ;;  %v779_v24 = vshll.u32 %v725_v19, 16 }
  0xb4   : > { %v618_v22 = vpop.f32.mrf.mxu0 }
  0xb5   : > { %v778_v23 = vrot.slane %v776_v20, 7  ;;  %v619_v25 = vadd.f32 %v4896_v50, %v618_v22  ;;  %v1102_v22 = vld [vmem:[#allocation2 + $0x2c] sm:$0x1] }
  0xb7   : > { %v781_v27 = vor.u32 %v779_v24, %v778_v23  ;;  %v694_v28 = vmax.f32 %v619_v25, 0.0  ;;  %v782_v43 = vrot.slane %v778_v23, 4 }
  0xb9   : > { %v1092_v29 = vsel %vm4914_vm6, %v781_v27, %v1091_v26  ;;  %v726_v30 = vpack.c.bf16 %v694_v28, %v694_v28  ;;  %v4938_v31 = vld [vmem:[#allocation2 + $0xc] sm:$0xff] }
  0xba   : > { %1093 = vst [vmem:[#allocation2 + $0x18] sm:$0xf] %v1092_v29  ;;  %v1204_v32 = vld [vmem:[#allocation2 + $0x14] sm:$0xf]  ;;  %2316 = vmatmul.bf16.gmra.mxu1 %v4938_v31  ;;  %v1413_v38 = vshll.u32 %v4938_v31, 16  ;;  %v1610_v45 = vrot.slane %v4938_v31, 1 }
  0xbb   : > { %v784_v34 = vshrl.u32 %v726_v30, 16  ;;  %v1366_v36 = vunpack.c.l.b16 %v1204_v32  ;;  %v787_v40 = vshll.u32 %v726_v30, 16  ;;  %v1411_v46 = vshrl.u32 %v4938_v31, 16 }
  0xbc   : > { %v621_v37 = vpop.f32.mrf.mxu0  ;;  %v1415_v47 = vrot.slane %v1413_v38, 1 }
  0xbd   : > { %v786_v39 = vrot.slane %v784_v34, 7  ;;  %v622_v41 = vadd.f32 %v4896_v50, %v621_v37  ;;  %v1382_v42 = vpack.c.b16 %v1366_v36, %v1366_v36 }
  0xbe   : > { %v1416_v53 = vor.u32 %v1415_v47, %v1411_v46 }
  0xbf   : > { %v789_v48 = vor.u32 %v787_v40, %v786_v39  ;;  %v791_v49 = vrot.slane %v786_v39, 4  ;;  %v695_v51 = vmax.f32 %v622_v41, 0.0  ;;  %3892 = vmatmul.msk.bf16.gmra.mxu0 %vm549_vm1, %v4386_v35  ;;  %v1611_v52 = vrot.slane %v1382_v42, 1  ;;  %v4439_v39 = vld [vmem:[#allocation3 + $0xe8] sm:$0xff] }
  0xc0   : > { %v1418_v54 = vshll.u32 %v1382_v42, 16  ;;  %2572 = vmatpush.bf16.msrb.mxu0 %v4439_v39 }
  0xc1   : > { %v790_v55 = vsel %vm4921_vm10, %v782_v43, %v789_v48  ;;  %v1096_v56 = vsel %vm4926_vm11, %v791_v49, %v1095_v44  ;;  %v727_v57 = vpack.c.bf16 %v695_v51, %v695_v51  ;;  %v4952_v58 = vsel %vm1606_vm3, %v1610_v45, %v1611_v52  ;;  %v1105_v45 = vld [vmem:[#allocation2 + $0x30] sm:$0xf] }
  0xc2   : > { %1094 = vst [vmem:[#allocation2 + $0x1c] sm:$0xf] %v790_v55  ;;  %2494 = vmatmul.bf16.gmra.mxu3 %v4952_v58  ;;  %v1420_v59 = vrot.slane %v1418_v54, 1  ;;  %v4388_v55 = vld [vmem:[%s4827_s23 + $0x60] sm:$0xff] }
  0xc3   : > { %1097 = vst [vmem:[#allocation2 + $0x20] sm:$0x1] %v1096_v56  ;;  %v793_v60 = vshrl.u32 %v727_v57, 16  ;;  %v796_v1 = vshll.u32 %v727_v57, 16 }
  0xc4   : > { %v4956_v61 = vsel %vm1397_vm2, %v1416_v53, %v1420_v59  ;;  %v623_v63 = vpop.f32.mrf.mxu0  ;;  %v4447_v53 = vld [vmem:[#allocation3 + $0x128] sm:$0xff] }
  0xc5   : > { %v795_v0 = vrot.slane %v793_v60, 7  ;;  %2405 = vmatmul.bf16.gmra.mxu2 %v4956_v61  ;;  %v624_v2 = vadd.f32 %v4896_v50, %v623_v63  ;;  %2661 = vmatpush.bf16.msrb.mxu1 %v4447_v53 }
  0xc7   : > { %v798_v4 = vor.u32 %v796_v1, %v795_v0  ;;  %v696_v5 = vmax.f32 %v624_v2, 0.0  ;;  %v799_v21 = vrot.slane %v795_v0, 4 }
  0xc9   : > { %v1099_v6 = vsel %vm4914_vm6, %v798_v4, %v1098_v3  ;;  %v728_v8 = vpack.c.bf16 %v696_v5, %v696_v5  ;;  %v4962_v9 = vld [vmem:[#allocation2 + $0x18] sm:$0xff] }
  0xca   : > { %1100 = vst [vmem:[#allocation2 + $0x24] sm:$0xf] %v1099_v6  ;;  %v1207_v10 = vld [vmem:[#allocation2 + $0x20] sm:$0xf]  ;;  %2321 = vmatmul.bf16.gmra.mxu1 %v4962_v9  ;;  %v1425_v16 = vshll.u32 %v4962_v9, 16  ;;  %v1613_v23 = vrot.slane %v4962_v9, 1 }
  0xcb   : > { %v801_v12 = vshrl.u32 %v728_v8, 16  ;;  %v1367_v14 = vunpack.c.l.b16 %v1207_v10  ;;  %v804_v18 = vshll.u32 %v728_v8, 16  ;;  %v1423_v24 = vshrl.u32 %v4962_v9, 16  ;;  %v1109_v3 = vld [vmem:[#allocation2 + $0x38] sm:$0x1] }
  0xcc   : > { %v626_v15 = vpop.f32.mrf.mxu0  ;;  %v1427_v25 = vrot.slane %v1425_v16, 1 }
  0xcd   : > { %v803_v17 = vrot.slane %v801_v12, 7  ;;  %v627_v19 = vadd.f32 %v4896_v50, %v626_v15  ;;  %v1383_v20 = vpack.c.b16 %v1367_v14, %v1367_v14 }
  0xce   : > { %v1428_v30 = vor.u32 %v1427_v25, %v1423_v24 }
  0xcf   : > { %v806_v26 = vor.u32 %v804_v18, %v803_v17  ;;  %v808_v27 = vrot.slane %v803_v17, 4  ;;  %v697_v28 = vmax.f32 %v627_v19, 0.0  ;;  %3893 = vmatmul.msk.bf16.gmra.mxu0 %vm549_vm1, %v4387_v13  ;;  %v1614_v29 = vrot.slane %v1383_v20, 1 }
  0xd0   : > { %v1430_v32 = vshll.u32 %v1383_v20, 16 }
  0xd1   : > { %v807_v33 = vsel %vm4921_vm10, %v799_v21, %v806_v26  ;;  %v1103_v34 = vsel %vm4926_vm11, %v808_v27, %v1102_v22  ;;  %v729_v35 = vpack.c.bf16 %v697_v28, %v697_v28  ;;  %v4976_v36 = vsel %vm1606_vm3, %v1613_v23, %v1614_v29  ;;  %v1112_v27 = vld [vmem:[#allocation2 + $0x3c] sm:$0xf] }
  0xd2   : > { %6149 = vst [vmem:[#allocation9_spill] sm:$0xff] %v4976_v36  ;;  %2499 = vmatmul.bf16.gmra.mxu3 %v4976_v36  ;;  %v1432_v37 = vrot.slane %v1430_v32, 1 }
  0xd3   : > { %1101 = vst [vmem:[#allocation2 + $0x28] sm:$0xf] %v807_v33  ;;  %v810_v38 = vshrl.u32 %v729_v35, 16  ;;  %v813_v43 = vshll.u32 %v729_v35, 16 }
  0xd4   : > { %1104 = vst [vmem:[#allocation2 + $0x2c] sm:$0x1] %v1103_v34  ;;  %v4980_v40 = vsel %vm1397_vm2, %v1428_v30, %v1432_v37  ;;  %v628_v41 = vpop.f32.mrf.mxu0  ;;  %v4389_v37 = vld [vmem:[%s4827_s23 + $0x68] sm:$0xff] }
  0xd5   : > { %v812_v42 = vrot.slane %v810_v38, 7  ;;  %2410 = vmatmul.bf16.gmra.mxu2 %v4980_v40  ;;  %v629_v44 = vadd.f32 %v4896_v50, %v628_v41 }
  0xd7   : > { %v815_v46 = vor.u32 %v813_v43, %v812_v42  ;;  %v698_v47 = vmax.f32 %v629_v44, 0.0  ;;  %v816_v2 = vrot.slane %v812_v42, 4  ;;  %v4438_v42 = vld [vmem:[#allocation3 + $0xe0] sm:$0xff] }
  0xd8   : > { %2573 = vmatpush.bf16.msrb.mxu0 %v4438_v42 }
  0xd9   : > { %v1106_v48 = vsel %vm4914_vm6, %v815_v46, %v1105_v45  ;;  %v730_v49 = vpack.c.bf16 %v698_v47, %v698_v47 }
  0xda   : > { %v4986_v51 = vld [vmem:[#allocation2 + $0x24] sm:$0xff]  ;;  %1107 = vst [vmem:[#allocation2 + $0x30] sm:$0xf] %v1106_v48 }
  0xdb   : > { %v1210_v52 = vld [vmem:[#allocation2 + $0x2c] sm:$0xf]  ;;  %v818_v54 = vshrl.u32 %v730_v49, 16  ;;  %2326 = vmatmul.bf16.gmra.mxu1 %v4986_v51  ;;  %v1437_v59 = vshll.u32 %v4986_v51, 16  ;;  %v821_v63 = vshll.u32 %v730_v49, 16  ;;  %v1616_v4 = vrot.slane %v4986_v51, 1 }
  0xdc   : > { %v1368_v56 = vunpack.c.l.b16 %v1210_v52  ;;  %v631_v57 = vpop.f32.mrf.mxu0  ;;  %v1435_v5 = vshrl.u32 %v4986_v51, 16  ;;  %v1116_v48 = vld [vmem:[#allocation2 + $0x44] sm:$0x1] }
  0xdd   : > { %v820_v60 = vrot.slane %v818_v54, 7  ;;  %v632_v0 = vadd.f32 %v4896_v50, %v631_v57  ;;  %v1439_v6 = vrot.slane %v1437_v59, 1 }
  0xde   : > { %v1384_v1 = vpack.c.b16 %v1368_v56, %v1368_v56 }
  0xdf   : > { %v823_v8 = vor.u32 %v821_v63, %v820_v60  ;;  %v825_v10 = vrot.slane %v820_v60, 4  ;;  %v699_v12 = vmax.f32 %v632_v0, 0.0  ;;  %3894 = vmatmul.msk.bf16.gmra.mxu0 %vm549_vm1, %v4388_v55  ;;  %v1440_v14 = vor.u32 %v1439_v6, %v1435_v5  ;;  %v4437_v63 = vld [vmem:[#allocation3 + $0xd8] sm:$0xff] }
  0xe0   : > { %v1617_v13 = vrot.slane %v1384_v1, 1  ;;  %v1442_v15 = vshll.u32 %v1384_v1, 16  ;;  %2574 = vmatpush.bf16.msrb.mxu0 %v4437_v63 }
  0xe1   : > { %v824_v16 = vsel %vm4921_vm10, %v816_v2, %v823_v8  ;;  %v1110_v17 = vsel %vm4926_vm11, %v825_v10, %v1109_v3  ;;  %v731_v18 = vpack.c.bf16 %v699_v12, %v699_v12  ;;  %v4436_v10 = vld [vmem:[#allocation3 + $0xd0] sm:$0xff] }
  0xe2   : > { %v5000_v19 = vsel %vm1606_vm3, %v1616_v4, %v1617_v13  ;;  %1108 = vst [vmem:[#allocation2 + $0x34] sm:$0xf] %v824_v16  ;;  %v1444_v20 = vrot.slane %v1442_v15, 1  ;;  %v1119_v15 = vld [vmem:[#allocation2 + $0x48] sm:$0xf] }
  0xe3   : > { %6150 = vst [vmem:[#allocation10_spill] sm:$0xff] %v5000_v19  ;;  %2504 = vmatmul.bf16.gmra.mxu3 %v5000_v19  ;;  %v827_v21 = vshrl.u32 %v731_v18, 16  ;;  %v830_v25 = vshll.u32 %v731_v18, 16  ;;  %v4435_v18 = vld [vmem:[#allocation3 + $0xc8] sm:$0xff] }
  0xe4   : > { %1111 = vst [vmem:[#allocation2 + $0x38] sm:$0x1] %v1110_v17  ;;  %v5004_v22 = vsel %vm1397_vm2, %v1440_v14, %v1444_v20  ;;  %v633_v23 = vpop.f32.mrf.mxu0  ;;  %2575 = vmatpush.bf16.msrb.mxu0 %v4436_v10 }
  0xe5   : > { %v829_v24 = vrot.slane %v827_v21, 7  ;;  %2415 = vmatmul.bf16.gmra.mxu2 %v5004_v22  ;;  %v634_v26 = vadd.f32 %v4896_v50, %v633_v23 }
  0xe7   : > { %v832_v28 = vor.u32 %v830_v25, %v829_v24  ;;  %v700_v29 = vmax.f32 %v634_v26, 0.0  ;;  %v833_v47 = vrot.slane %v829_v24, 4  ;;  %v4446_v25 = vld [vmem:[#allocation3 + $0x120] sm:$0xff] }
  0xe8   : > { %2576 = vmatpush.bf16.msrb.mxu0 %v4435_v18  ;;  %2662 = vmatpush.bf16.msrb.mxu1 %v4446_v25 }
  0xe9   : > { %v1113_v30 = vsel %vm4914_vm6, %v832_v28, %v1112_v27  ;;  %v732_v32 = vpack.c.bf16 %v700_v29, %v700_v29  ;;  %v5010_v33 = vld [vmem:[#allocation2 + $0x30] sm:$0xff] }
  0xea   : > { %1114 = vst [vmem:[#allocation2 + $0x3c] sm:$0xf] %v1113_v30  ;;  %v1449_v41 = vshll.u32 %v5010_v33, 16  ;;  %v1619_v49 = vrot.slane %v5010_v33, 1  ;;  %v1447_v52 = vshrl.u32 %v5010_v33, 16  ;;  %v4390_v27 = vld [vmem:[%s4827_s23 + $0x70] sm:$0xff] }
  0xeb   : > { %v1213_v34 = vld [vmem:[#allocation2 + $0x38] sm:$0xf]  ;;  %v835_v35 = vshrl.u32 %v732_v32, 16  ;;  %2331 = vmatmul.bf16.gmra.mxu1 %v5010_v33  ;;  %v838_v44 = vshll.u32 %v732_v32, 16 }
  0xec   : > { %v1369_v38 = vunpack.c.l.b16 %v1213_v34  ;;  %v636_v39 = vpop.f32.mrf.mxu0  ;;  %v1451_v53 = vrot.slane %v1449_v41, 1  ;;  %v4434_v32 = vld [vmem:[#allocation3 + $0xc0] sm:$0xff]  ;;  %v1123_v41 = vld [vmem:[#allocation2 + $0x50] sm:$0x1] }
  0xed   : > { %v837_v43 = vrot.slane %v835_v35, 7  ;;  %v637_v45 = vadd.f32 %v4896_v50, %v636_v39  ;;  %2577 = vmatpush.bf16.msrb.mxu0 %v4434_v32  ;;  %v2401_v32 = vpop.f32.mrf.mxu2 }
  0xee   : > { %v1385_v46 = vpack.c.b16 %v1369_v38, %v1369_v38  ;;  %v1452_v59 = vor.u32 %v1451_v53, %v1447_v52 }
  0xef   : > { %v840_v54 = vor.u32 %v838_v44, %v837_v43  ;;  %v842_v55 = vrot.slane %v837_v43, 4  ;;  %v701_v56 = vmax.f32 %v637_v45, 0.0  ;;  %3895 = vmatmul.msk.bf16.gmra.mxu0 %vm549_vm1, %v4389_v37 }
  0xf0   : > { %v1620_v57 = vrot.slane %v1385_v46, 1  ;;  %v1454_v60 = vshll.u32 %v1385_v46, 16 }
  0xf1   : > { %v841_v0 = vsel %vm4921_vm10, %v833_v47, %v840_v54  ;;  %v1117_v1 = vsel %vm4926_vm11, %v842_v55, %v1116_v48  ;;  %v733_v2 = vpack.c.bf16 %v701_v56, %v701_v56 }
  0xf2   : > { %v5024_v3 = vsel %vm1606_vm3, %v1619_v49, %v1620_v57  ;;  %1115 = vst [vmem:[#allocation2 + $0x40] sm:$0xf] %v841_v0  ;;  %v1456_v4 = vrot.slane %v1454_v60, 1 }
  0xf3   : > { %6151 = vst [vmem:[#allocation11_spill] sm:$0xff] %v5024_v3  ;;  %2509 = vmatmul.bf16.gmra.mxu3 %v5024_v3  ;;  %v844_v5 = vshrl.u32 %v733_v2, 16  ;;  %v847_v13 = vshll.u32 %v733_v2, 16 }
  0xf4   : > { %1118 = vst [vmem:[#allocation2 + $0x44] sm:$0x1] %v1117_v1  ;;  %v5028_v6 = vsel %vm1397_vm2, %v1452_v59, %v1456_v4  ;;  %v638_v8 = vpop.f32.mrf.mxu0  ;;  %v1126_v4 = vld [vmem:[#allocation2 + $0x54] sm:$0xf] }
  0xf5   : > { %v846_v12 = vrot.slane %v844_v5, 7  ;;  %2420 = vmatmul.bf16.gmra.mxu2 %v5028_v6  ;;  %v639_v14 = vadd.f32 %v4896_v50, %v638_v8 }
  0xf7   : > { %v849_v16 = vor.u32 %v847_v13, %v846_v12  ;;  %v702_v17 = vmax.f32 %v639_v14, 0.0  ;;  %v850_v39 = vrot.slane %v846_v12, 4  ;;  %v5063_v14 = vld [vmem:[%s6107_s4] ss:$0 sm:$0xff] }
  0xf9   : > { %v1120_v20 = vsel %vm4914_vm6, %v849_v16, %v1119_v15  ;;  %v734_v21 = vpack.c.bf16 %v702_v17, %v702_v17  ;;  %v5034_v23 = vld [vmem:[#allocation2 + $0x3c] sm:$0xff] }
  0xfa   : > { %1121 = vst [vmem:[#allocation2 + $0x48] sm:$0xf] %v1120_v20  ;;  %v1461_v30 = vshll.u32 %v5034_v23, 16  ;;  %v1622_v42 = vrot.slane %v5034_v23, 1  ;;  %v1459_v43 = vshrl.u32 %v5034_v23, 16  ;;  %v4391_v17 = vld [vmem:[%s4827_s23 + $0x78] sm:$0xff]  ;;  %v2312_v20 = vpop.f32.mrf.mxu1 }
  0xfb   : > { %v1216_v24 = vld [vmem:[#allocation2 + $0x44] sm:$0xf]  ;;  %v852_v26 = vshrl.u32 %v734_v21, 16  ;;  %2336 = vmatmul.bf16.gmra.mxu1 %v5034_v23  ;;  %v855_v35 = vshll.u32 %v734_v21, 16 }
  0xfc   : > { %v1370_v28 = vunpack.c.l.b16 %v1216_v24  ;;  %v641_v29 = vpop.f32.mrf.mxu0  ;;  %v1463_v44 = vrot.slane %v1461_v30, 1 }
  0xfd   : > { %v854_v34 = vrot.slane %v852_v26, 7  ;;  %v642_v37 = vadd.f32 %v4896_v50, %v641_v29  ;;  %v2313_v26 = vadd.f32 %v5063_v14, %v2312_v20 }
  0xfe   : > { %v1386_v38 = vpack.c.b16 %v1370_v28, %v1370_v28  ;;  %v1464_v49 = vor.u32 %v1463_v44, %v1459_v43 }
  0xff   : > { %v857_v45 = vor.u32 %v855_v35, %v854_v34  ;;  %v859_v46 = vrot.slane %v854_v34, 4  ;;  %v703_v47 = vmax.f32 %v642_v37, 0.0  ;;  %3896 = vmatmul.msk.bf16.gmra.mxu0 %vm549_vm1, %v4390_v27  ;;  %v1130_v34 = vld [vmem:[#allocation2 + $0x5c] sm:$0x1] }
 0x100   : > { %v1623_v48 = vrot.slane %v1386_v38, 1  ;;  %v1466_v52 = vshll.u32 %v1386_v38, 16 }
 0x101   : > { %v858_v53 = vsel %vm4921_vm10, %v850_v39, %v857_v45  ;;  %v1124_v54 = vsel %vm4926_vm11, %v859_v46, %v1123_v41  ;;  %v735_v55 = vpack.c.bf16 %v703_v47, %v703_v47  ;;  %v2402_v39 = vadd.f32 %v2401_v32, %v2313_v26  ;;  %v2490_v45 = vpop.f32.mrf.mxu3 }
 0x102   : > { %v5048_v56 = vsel %vm1606_vm3, %v1622_v42, %v1623_v48  ;;  %1122 = vst [vmem:[#allocation2 + $0x4c] sm:$0xf] %v858_v53  ;;  %v1468_v57 = vrot.slane %v1466_v52, 1 }
 0x103   : > { %6152 = vst [vmem:[#allocation12_spill] sm:$0xff] %v5048_v56  ;;  %2514 = vmatmul.bf16.gmra.mxu3 %v5048_v56  ;;  %v861_v59 = vshrl.u32 %v735_v55, 16  ;;  %v864_v1 = vshll.u32 %v735_v55, 16  ;;  %v5073_v48 = vadd.f32 %v2490_v45, %v2402_v39 }
 0x104   : > { %1125 = vst [vmem:[#allocation2 + $0x50] sm:$0x1] %v1124_v54  ;;  %v5052_v60 = vsel %vm1397_vm2, %v1464_v49, %v1468_v57  ;;  %v643_v63 = vpop.f32.mrf.mxu0 }
 0x105   : > { %v863_v0 = vrot.slane %v861_v59, 7  ;;  %2425 = vmatmul.bf16.gmra.mxu2 %v5052_v60  ;;  %v644_v2 = vadd.f32 %v4896_v50, %v643_v63 }
 0x107   : > { %v866_v5 = vor.u32 %v864_v1, %v863_v0  ;;  %v704_v8 = vmax.f32 %v644_v2, 0.0  ;;  %v867_v21 = vrot.slane %v863_v0, 4 }
 0x109   : > { %v1127_v10 = vsel %vm4914_vm6, %v866_v5, %v1126_v4  ;;  %v736_v12 = vpack.c.bf16 %v704_v8, %v704_v8  ;;  %v5058_v13 = vld [vmem:[#allocation2 + $0x48] sm:$0xff]  ;;  %v1133_v4 = vld [vmem:[#allocation2 + $0x60] sm:$0xf] }
 0x10a   : > { %1128 = vst [vmem:[#allocation2 + $0x54] sm:$0xf] %v1127_v10  ;;  %v1473_v25 = vshll.u32 %v5058_v13, 16  ;;  %v1625_v35 = vrot.slane %v5058_v13, 1  ;;  %v1471_v37 = vshrl.u32 %v5058_v13, 16 }
 0x10b   : > { %v1219_v15 = vld [vmem:[#allocation2 + $0x50] sm:$0xf]  ;;  %v869_v16 = vshrl.u32 %v736_v12, 16  ;;  %2341 = vmatmul.bf16.gmra.mxu1 %v5058_v13  ;;  %v872_v28 = vshll.u32 %v736_v12, 16 }
 0x10c   : > { %v1371_v18 = vunpack.c.l.b16 %v1219_v15  ;;  %v646_v24 = vpop.f32.mrf.mxu0  ;;  %v1475_v38 = vrot.slane %v1473_v25, 1 }
 0x10d   : > { %v871_v27 = vrot.slane %v869_v16, 7  ;;  %v647_v29 = vadd.f32 %v4896_v50, %v646_v24 }
 0x10e   : > { %v1387_v30 = vpack.c.b16 %v1371_v18, %v1371_v18  ;;  %v1476_v46 = vor.u32 %v1475_v38, %v1471_v37 }
 0x10f   : > { %v874_v41 = vor.u32 %v872_v28, %v871_v27  ;;  %v876_v42 = vrot.slane %v871_v27, 4  ;;  %v705_v43 = vmax.f32 %v647_v29, 0.0  ;;  %3897 = vmatmul.msk.bf16.gmra.mxu0 %vm549_vm1, %v4391_v17  ;;  %v4445_v17 = vld [vmem:[#allocation3 + $0x118] sm:$0xff] }
 0x110   : > { %v1626_v44 = vrot.slane %v1387_v30, 1  ;;  %v1478_v47 = vshll.u32 %v1387_v30, 16  ;;  %2663 = vmatpush.bf16.msrb.mxu1 %v4445_v17  ;;  %v1137_v30 = vld [vmem:[#allocation2 + $0x68] sm:$0x1] }
 0x111   : > { %v875_v49 = vsel %vm4921_vm10, %v867_v21, %v874_v41  ;;  %v1131_v52 = vsel %vm4926_vm11, %v876_v42, %v1130_v34  ;;  %v737_v53 = vpack.c.bf16 %v705_v43, %v705_v43 }
 0x112   : > { %v5080_v54 = vsel %vm1606_vm3, %v1625_v35, %v1626_v44  ;;  %1129 = vst [vmem:[#allocation2 + $0x58] sm:$0xf] %v875_v49  ;;  %v1480_v55 = vrot.slane %v1478_v47, 1 }
 0x113   : > { %6153 = vst [vmem:[#allocation13_spill] sm:$0xff] %v5080_v54  ;;  %2519 = vmatmul.bf16.gmra.mxu3 %v5080_v54  ;;  %v878_v57 = vshrl.u32 %v737_v53, 16  ;;  %v881_v1 = vshll.u32 %v737_v53, 16  ;;  %v4465_v53 = vld [vmem:[#allocation3 + $0x1b8] sm:$0xff] }
 0x114   : > { %1132 = vst [vmem:[#allocation2 + $0x5c] sm:$0x1] %v1131_v52  ;;  %v5084_v59 = vsel %vm1397_vm2, %v1476_v46, %v1480_v55  ;;  %v648_v63 = vpop.f32.mrf.mxu0  ;;  %2837 = vmatpush.bf16.msrb.mxu3 %v4465_v53 }
 0x115   : > { %v880_v0 = vrot.slane %v878_v57, 7  ;;  %2430 = vmatmul.bf16.gmra.mxu2 %v5084_v59  ;;  %v649_v2 = vadd.f32 %v4896_v50, %v648_v63 }
 0x117   : > { %v883_v5 = vor.u32 %v881_v1, %v880_v0  ;;  %v706_v8 = vmax.f32 %v649_v2, 0.0  ;;  %v884_v29 = vrot.slane %v880_v0, 4  ;;  %v1140_v2 = vld [vmem:[#allocation2 + $0x6c] sm:$0xf] }
 0x119   : > { %v1134_v10 = vsel %vm4914_vm6, %v883_v5, %v1133_v4  ;;  %v738_v12 = vpack.c.bf16 %v706_v8, %v706_v8  ;;  %v5090_v15 = vld [vmem:[#allocation2 + $0x54] sm:$0xff] }
 0x11a   : > { %1135 = vst [vmem:[#allocation2 + $0x60] sm:$0xf] %v1134_v10  ;;  %v1485_v24 = vshll.u32 %v5090_v15, 16  ;;  %v1628_v32 = vrot.slane %v5090_v15, 1  ;;  %v1483_v34 = vshrl.u32 %v5090_v15, 16 }
 0x11b   : > { %v1222_v16 = vld [vmem:[#allocation2 + $0x5c] sm:$0xf]  ;;  %v886_v18 = vshrl.u32 %v738_v12, 16  ;;  %2346 = vmatmul.bf16.gmra.mxu1 %v5090_v15  ;;  %v889_v26 = vshll.u32 %v738_v12, 16 }
 0x11c   : > { %v1372_v20 = vunpack.c.l.b16 %v1222_v16  ;;  %v651_v21 = vpop.f32.mrf.mxu0  ;;  %v1487_v35 = vrot.slane %v1485_v24, 1 }
 0x11d   : > { %v888_v25 = vrot.slane %v886_v18, 7  ;;  %v652_v27 = vadd.f32 %v4896_v50, %v651_v21 }
 0x11e   : > { %v1388_v28 = vpack.c.b16 %v1372_v20, %v1372_v20  ;;  %v1488_v42 = vor.u32 %v1487_v35, %v1483_v34 }
 0x11f   : > { %v891_v37 = vor.u32 %v889_v26, %v888_v25  ;;  %v893_v38 = vrot.slane %v888_v25, 4  ;;  %v707_v39 = vmax.f32 %v652_v27, 0.0  ;;  %2578 = vmatmul.bf16.vlgmr.msrb.gmra.mxu0 %v4938_v31  ;;  %v4457_v31 = vld [vmem:[#allocation3 + $0x178] sm:$0xff] }
 0x120   : > { %v1629_v41 = vrot.slane %v1388_v28, 1  ;;  %v1490_v43 = vshll.u32 %v1388_v28, 16  ;;  %2748 = vmatpush.bf16.msrb.mxu2 %v4457_v31 }
 0x121   : > { %v892_v44 = vsel %vm4921_vm10, %v884_v29, %v891_v37  ;;  %v1138_v45 = vsel %vm4926_vm11, %v893_v38, %v1137_v30  ;;  %v739_v46 = vpack.c.bf16 %v707_v39, %v707_v39  ;;  %v1144_v29 = vld [vmem:[#allocation2 + $0x74] sm:$0x1] }
 0x122   : > { %v5103_v47 = vsel %vm1606_vm3, %v1628_v32, %v1629_v41  ;;  %1136 = vst [vmem:[#allocation2 + $0x64] sm:$0xf] %v892_v44  ;;  %v1492_v49 = vrot.slane %v1490_v43, 1  ;;  %v5121_v41 = vpop.f32.mrf.mxu1 }
 0x123   : > { %6154 = vst [vmem:[#allocation14_spill] sm:$0xff] %v5103_v47  ;;  %2524 = vmatmul.bf16.gmra.mxu3 %v5103_v47  ;;  %v895_v52 = vshrl.u32 %v739_v46, 16  ;;  %v898_v0 = vshll.u32 %v739_v46, 16 }
 0x124   : > { %1139 = vst [vmem:[#allocation2 + $0x68] sm:$0x1] %v1138_v45  ;;  %v5107_v55 = vsel %vm1397_vm2, %v1488_v42, %v1492_v49  ;;  %v653_v57 = vpop.f32.mrf.mxu0 }
 0x125   : > { %v897_v63 = vrot.slane %v895_v52, 7  ;;  %2435 = vmatmul.bf16.gmra.mxu2 %v5107_v55  ;;  %v654_v1 = vadd.f32 %v4896_v50, %v653_v57 }
 0x127   : > { %v900_v4 = vor.u32 %v898_v0, %v897_v63  ;;  %v708_v5 = vmax.f32 %v654_v1, 0.0  ;;  %v901_v28 = vrot.slane %v897_v63, 4  ;;  %v1147_v1 = vld [vmem:[#allocation2 + $0x78] sm:$0xf] }
 0x129   : > { %v1141_v8 = vsel %vm4914_vm6, %v900_v4, %v1140_v2  ;;  %v740_v10 = vpack.c.bf16 %v708_v5, %v708_v5  ;;  %v5113_v12 = vld [vmem:[#allocation2 + $0x60] sm:$0xff] }
 0x12a   : > { %1142 = vst [vmem:[#allocation2 + $0x6c] sm:$0xf] %v1141_v8  ;;  %v1497_v21 = vshll.u32 %v5113_v12, 16  ;;  %v1631_v30 = vrot.slane %v5113_v12, 1  ;;  %v1495_v32 = vshrl.u32 %v5113_v12, 16 }
 0x12b   : > { %v1225_v16 = vld [vmem:[#allocation2 + $0x68] sm:$0xf]  ;;  %v903_v17 = vshrl.u32 %v740_v10, 16  ;;  %2351 = vmatmul.bf16.gmra.mxu1 %v5113_v12  ;;  %v906_v25 = vshll.u32 %v740_v10, 16 }
 0x12c   : > { %v1373_v18 = vunpack.c.l.b16 %v1225_v16  ;;  %v656_v20 = vpop.f32.mrf.mxu0  ;;  %v1499_v34 = vrot.slane %v1497_v21, 1 }
 0x12d   : > { %v905_v24 = vrot.slane %v903_v17, 7  ;;  %v657_v26 = vadd.f32 %v4896_v50, %v656_v20 }
 0x12e   : > { %v1389_v27 = vpack.c.b16 %v1373_v18, %v1373_v18  ;;  %v1500_v42 = vor.u32 %v1499_v34, %v1495_v32  ;;  %v4444_v18 = vld [vmem:[#allocation3 + $0x110] sm:$0xff]  ;;  %v1151_v34 = vld [vmem:[#allocation2 + $0x80] sm:$0x1] }
 0x12f   : > { %v908_v35 = vor.u32 %v906_v25, %v905_v24  ;;  %v910_v37 = vrot.slane %v905_v24, 4  ;;  %v709_v38 = vmax.f32 %v657_v26, 0.0  ;;  %2583 = vmatmul.bf16.gmra.mxu0 %v4962_v9  ;;  %2664 = vmatpush.bf16.msrb.mxu1 %v4444_v18  ;;  %v5142_v26 = vpop.f32.mrf.mxu3 }
 0x130   : > { %v1632_v39 = vrot.slane %v1389_v27, 1  ;;  %v1502_v43 = vshll.u32 %v1389_v27, 16  ;;  %6156 = vst [vmem:[#allocation16_spill] sm:$0xff] %v5142_v26 }
 0x131   : > { %v909_v44 = vsel %vm4921_vm10, %v901_v28, %v908_v35  ;;  %v1145_v45 = vsel %vm4926_vm11, %v910_v37, %v1144_v29  ;;  %v741_v46 = vpack.c.bf16 %v709_v38, %v709_v38 }
 0x132   : > { %v5128_v49 = vsel %vm1606_vm3, %v1631_v30, %v1632_v39  ;;  %1143 = vst [vmem:[#allocation2 + $0x70] sm:$0xf] %v909_v44  ;;  %v1504_v52 = vrot.slane %v1502_v43, 1  ;;  %v5147_v44 = vpop.f32.mrf.mxu2 }
 0x133   : > { %6155 = vst [vmem:[#allocation15_spill] sm:$0xff] %v5128_v49  ;;  %2529 = vmatmul.bf16.gmra.mxu3 %v5128_v49  ;;  %v912_v9 = vshrl.u32 %v741_v46, 16  ;;  %v915_v63 = vshll.u32 %v741_v46, 16 }
 0x134   : > { %1146 = vst [vmem:[#allocation2 + $0x74] sm:$0x1] %v1145_v45  ;;  %v5132_v31 = vsel %vm1397_vm2, %v1500_v42, %v1504_v52  ;;  %v658_v53 = vpop.f32.mrf.mxu0 }
 0x135   : > { %v914_v57 = vrot.slane %v912_v9, 7  ;;  %2440 = vmatmul.bf16.gmra.mxu2 %v5132_v31  ;;  %v659_v0 = vadd.f32 %v4896_v50, %v658_v53  ;;  %6157 = vst [vmem:[#allocation17_spill] sm:$0xff] %v5147_v44 }
 0x137   : > { %v917_v2 = vor.u32 %v915_v63, %v914_v57  ;;  %v710_v4 = vmax.f32 %v659_v0, 0.0  ;;  %v2317_v5 = vpop.f32.mrf.mxu1  ;;  %v918_v32 = vrot.slane %v914_v57, 4 }
 0x139   : > { %v1148_v8 = vsel %vm4914_vm6, %v917_v2, %v1147_v1  ;;  %v742_v10 = vpack.c.bf16 %v710_v4, %v710_v4  ;;  %v5138_v16 = vld [vmem:[#allocation2 + $0x6c] sm:$0xff] }
 0x13a   : > { %1149 = vst [vmem:[#allocation2 + $0x78] sm:$0xf] %v1148_v8  ;;  %v1509_v25 = vshll.u32 %v5138_v16, 16  ;;  %v1507_v35 = vshrl.u32 %v5138_v16, 16  ;;  %v1634_v46 = vrot.slane %v5138_v16, 1  ;;  %v4456_v2 = vld [vmem:[#allocation3 + $0x170] sm:$0xff] }
 0x13b   : > { %v1228_v17 = vld [vmem:[#allocation2 + $0x74] sm:$0xf]  ;;  %v920_v20 = vshrl.u32 %v742_v10, 16  ;;  %2356 = vmatmul.bf16.gmra.mxu1 %v5138_v16  ;;  %v923_v28 = vshll.u32 %v742_v10, 16  ;;  %v4464_v4 = vld [vmem:[#allocation3 + $0x1b0] sm:$0xff]  ;;  %2749 = vmatpush.bf16.msrb.mxu2 %v4456_v2 }
 0x13c   : > { %v1374_v21 = vunpack.c.l.b16 %v1228_v17  ;;  %v661_v24 = vpop.f32.mrf.mxu0  ;;  %v1511_v37 = vrot.slane %v1509_v25, 1  ;;  %2838 = vmatpush.bf16.msrb.mxu3 %v4464_v4  ;;  %v2318_v25 = vadd.f32 %v5063_v14, %v2317_v5  ;;  %v1158_v2 = vld [vmem:[#allocation2 + $0x8c] sm:$0x1] }
 0x13d   : > { %v922_v27 = vrot.slane %v920_v20, 7  ;;  %v662_v29 = vadd.f32 %v4896_v50, %v661_v24  ;;  %v1154_v24 = vld [vmem:[#allocation2 + $0x84] sm:$0xf] }
 0x13e   : > { %v1390_v30 = vpack.c.b16 %v1374_v21, %v1374_v21  ;;  %v1512_v52 = vor.u32 %v1511_v37, %v1507_v35 }
 0x13f   : > { %v925_v38 = vor.u32 %v923_v28, %v922_v27  ;;  %v927_v39 = vrot.slane %v922_v27, 4  ;;  %v711_v42 = vmax.f32 %v662_v29, 0.0  ;;  %2588 = vmatmul.bf16.gmra.mxu0 %v4986_v51  ;;  %v2319_v45 = vpop.f32.mrf.mxu1 }
 0x140   : > { %v1635_v43 = vrot.slane %v1390_v30, 1  ;;  %v1514_v9 = vshll.u32 %v1390_v30, 16 }
 0x141   : > { %v926_v53 = vsel %vm4921_vm10, %v918_v32, %v925_v38  ;;  %v1152_v57 = vsel %vm4926_vm11, %v927_v39, %v1151_v34  ;;  %v743_v63 = vpack.c.bf16 %v711_v42, %v711_v42 }
 0x142   : > { %1150 = vst [vmem:[#allocation2 + $0x7c] sm:$0xf] %v926_v53  ;;  %v5155_v0 = vsel %vm1606_vm3, %v1634_v46, %v1635_v43  ;;  %v1516_v51 = vrot.slane %v1514_v9, 1  ;;  %v5175_v9 = vld [vmem:[%s6105_s2] ss:$0 sm:$0xff] }
 0x143   : > { %6158 = vst [vmem:[#allocation18_spill] sm:$0xff] %v5155_v0  ;;  %v929_v1 = vshrl.u32 %v743_v63, 16  ;;  %2534 = vmatmul.bf16.gmra.mxu3 %v5155_v0  ;;  %v932_v18 = vshll.u32 %v743_v63, 16 }
 0x144   : > { %1153 = vst [vmem:[#allocation2 + $0x80] sm:$0x1] %v1152_v57  ;;  %v5159_v8 = vsel %vm1397_vm2, %v1512_v52, %v1516_v51  ;;  %v663_v10 = vpop.f32.mrf.mxu0 }
 0x145   : > { %6159 = vst [vmem:[#allocation19_spill] sm:$0xff] %v5159_v8  ;;  %v931_v17 = vrot.slane %v929_v1, 7  ;;  %2445 = vmatmul.bf16.gmra.mxu2 %v5159_v8  ;;  %v664_v20 = vadd.f32 %v4896_v50, %v663_v10  ;;  %v2495_v21 = vpop.f32.mrf.mxu3  ;;  %v2320_v1 = vadd.f32 %v5063_v14, %v2319_v45 }
 0x147   : > { %v934_v27 = vor.u32 %v932_v18, %v931_v17  ;;  %v712_v28 = vmax.f32 %v664_v20, 0.0  ;;  %v2322_v30 = vpop.f32.mrf.mxu1  ;;  %v935_v51 = vrot.slane %v931_v17, 4 }
 0x148   : > { %v2406_v29 = vpop.f32.mrf.mxu2 }
 0x149   : > { %v1155_v32 = vsel %vm4914_vm6, %v934_v27, %v1154_v24  ;;  %v744_v34 = vpack.c.bf16 %v712_v28, %v712_v28  ;;  %v2407_v35 = vadd.f32 %v2406_v29, %v2318_v25  ;;  %v5166_v37 = vld [vmem:[#allocation2 + $0x78] sm:$0xff] }
 0x14a   : > { %1156 = vst [vmem:[#allocation2 + $0x84] sm:$0xf] %v1155_v32  ;;  %v1521_v5 = vshll.u32 %v5166_v37, 16  ;;  %v1519_v4 = vshrl.u32 %v5166_v37, 16  ;;  %v1637_v28 = vrot.slane %v5166_v37, 1 }
 0x14b   : > { %v1231_v38 = vld [vmem:[#allocation2 + $0x80] sm:$0xf]  ;;  %v937_v50 = vshrl.u32 %v744_v34, 16  ;;  %2361 = vmatmul.bf16.gmra.mxu1 %v5166_v37  ;;  %v5170_v43 = vadd.f32 %v2495_v21, %v2407_v35  ;;  %v940_v52 = vshll.u32 %v744_v34, 16 }
 0x14c   : > { %v1375_v39 = vunpack.c.l.b16 %v1231_v38  ;;  %v666_v42 = vpop.f32.mrf.mxu0  ;;  %v1523_v10 = vrot.slane %v1521_v5, 1 }
 0x14d   : > { %v939_v46 = vrot.slane %v937_v50, 7  ;;  %v667_v53 = vadd.f32 %v5175_v9, %v666_v42  ;;  %v2497_v57 = vpop.f32.mrf.mxu3 }
 0x14e   : > { %v1391_v63 = vpack.c.b16 %v1375_v39, %v1375_v39  ;;  %v1524_v29 = vor.u32 %v1523_v10, %v1519_v4 }
 0x14f   : > { %v942_v18 = vor.u32 %v940_v52, %v939_v46  ;;  %v944_v20 = vrot.slane %v939_v46, 4  ;;  %v713_v21 = vmax.f32 %v667_v53, 0.0  ;;  %2593 = vmatmul.bf16.gmra.mxu0 %v5010_v33  ;;  %v2324_v27 = vpop.f32.mrf.mxu1 }
 0x150   : > { %v1638_v24 = vrot.slane %v1391_v63, 1  ;;  %v2408_v25 = vpop.f32.mrf.mxu2  ;;  %v1526_v32 = vshll.u32 %v1391_v63, 16 }
 0x151   : > { %v943_v17 = vsel %vm4921_vm10, %v935_v51, %v942_v18  ;;  %v1159_v45 = vsel %vm4926_vm11, %v944_v20, %v1158_v2  ;;  %v745_v34 = vpack.c.bf16 %v713_v21, %v713_v21  ;;  %v2409_v35 = vadd.f32 %v2408_v25, %v2320_v1  ;;  %v1161_v51 = vld [vmem:[#allocation2 + $0x90] sm:$0xf] }
 0x152   : > { %1157 = vst [vmem:[#allocation2 + $0x88] sm:$0xf] %v943_v17  ;;  %v5187_v38 = vsel %vm1606_vm3, %v1637_v28, %v1638_v24  ;;  %v1528_v33 = vrot.slane %v1526_v32, 1  ;;  %v2323_v1 = vadd.f32 %v5063_v14, %v2322_v30  ;;  %v4443_v28 = vld [vmem:[#allocation3 + $0x108] sm:$0xff] }
 0x153   : > { %6160 = vst [vmem:[#allocation20_spill] sm:$0xff] %v5187_v38  ;;  %v946_v50 = vshrl.u32 %v745_v34, 16  ;;  %2539 = vmatmul.bf16.gmra.mxu3 %v5187_v38  ;;  %v5190_v39 = vadd.f32 %v2497_v57, %v2409_v35  ;;  %v949_v52 = vshll.u32 %v745_v34, 16  ;;  %2665 = vmatpush.bf16.msrb.mxu1 %v4443_v28 }
 0x154   : > { %1160 = vst [vmem:[#allocation2 + $0x8c] sm:$0x1] %v1159_v45  ;;  %v5193_v42 = vsel %vm1397_vm2, %v1524_v29, %v1528_v33  ;;  %v668_v5 = vpop.f32.mrf.mxu0 }
 0x155   : > { %6161 = vst [vmem:[#allocation21_spill] sm:$0xff] %v5193_v42  ;;  %v948_v46 = vrot.slane %v946_v50, 7  ;;  %2450 = vmatmul.bf16.gmra.mxu2 %v5193_v42  ;;  %v669_v53 = vadd.f32 %v5175_v9, %v668_v5  ;;  %v2500_v63 = vpop.f32.mrf.mxu3 }
 0x157   : > { %v951_v2 = vor.u32 %v949_v52, %v948_v46  ;;  %v714_v4 = vmax.f32 %v669_v53, 0.0  ;;  %v952_v52 = vrot.slane %v948_v46, 4  ;;  %v2325_v53 = vadd.f32 %v5063_v14, %v2324_v27 }
 0x158   : > { %v2411_v10 = vpop.f32.mrf.mxu2  ;;  %v2327_v18 = vpop.f32.mrf.mxu1 }
 0x159   : > { %v1162_v57 = vsel %vm4914_vm6, %v951_v2, %v1161_v51  ;;  %v746_v20 = vpack.c.bf16 %v714_v4, %v714_v4  ;;  %v2412_v21 = vadd.f32 %v2411_v10, %v2323_v1  ;;  %v5200_v24 = vld [vmem:[#allocation2 + $0x84] sm:$0xff]  ;;  %v1165_v51 = vld [vmem:[#allocation2 + $0x98] sm:$0x1] }
 0x15a   : > { %1163 = vst [vmem:[#allocation2 + $0x90] sm:$0xf] %v1162_v57  ;;  %v1533_v30 = vshll.u32 %v5200_v24, 16  ;;  %v1531_v1 = vshrl.u32 %v5200_v24, 16 }
 0x15b   : > { %v1234_v25 = vld [vmem:[#allocation2 + $0x8c] sm:$0xf]  ;;  %v954_v29 = vshrl.u32 %v746_v20, 16  ;;  %2366 = vmatmul.bf16.gmra.mxu1 %v5200_v24  ;;  %v5204_v45 = vadd.f32 %v2500_v63, %v2412_v21  ;;  %v957_v35 = vshll.u32 %v746_v20, 16  ;;  %v1640_v20 = vrot.slane %v5200_v24, 1 }
 0x15c   : > { %v1376_v32 = vunpack.c.l.b16 %v1234_v25  ;;  %v671_v17 = vpop.f32.mrf.mxu0  ;;  %v1535_v2 = vrot.slane %v1533_v30, 1 }
 0x15d   : > { %v956_v34 = vrot.slane %v954_v29, 7  ;;  %v672_v33 = vadd.f32 %v5175_v9, %v671_v17  ;;  %v2502_v50 = vpop.f32.mrf.mxu3 }
 0x15e   : > { %v1392_v5 = vpack.c.b16 %v1376_v32, %v1376_v32  ;;  %v1536_v28 = vor.u32 %v1535_v2, %v1531_v1 }
 0x15f   : > { %v959_v4 = vor.u32 %v957_v35, %v956_v34  ;;  %v961_v10 = vrot.slane %v956_v34, 4  ;;  %v715_v57 = vmax.f32 %v672_v33, 0.0  ;;  %2598 = vmatmul.bf16.gmra.mxu0 %v5034_v23  ;;  %v4455_v35 = vld [vmem:[#allocation3 + $0x168] sm:$0xff] }
 0x160   : > { %v1641_v63 = vrot.slane %v1392_v5, 1  ;;  %v2413_v21 = vpop.f32.mrf.mxu2  ;;  %v2329_v25 = vpop.f32.mrf.mxu1  ;;  %v1538_v29 = vshll.u32 %v1392_v5, 16  ;;  %v4463_v33 = vld [vmem:[#allocation3 + $0x1a8] sm:$0xff]  ;;  %2750 = vmatpush.bf16.msrb.mxu2 %v4455_v35 }
 0x161   : > { %v960_v46 = vsel %vm4921_vm10, %v952_v52, %v959_v4  ;;  %v1166_v27 = vsel %vm4926_vm11, %v961_v10, %v1165_v51  ;;  %v747_v32 = vpack.c.bf16 %v715_v57, %v715_v57  ;;  %v2414_v17 = vadd.f32 %v2413_v21, %v2325_v53  ;;  %2839 = vmatpush.bf16.msrb.mxu3 %v4463_v33  ;;  %v1168_v10 = vld [vmem:[#allocation2 + $0x9c] sm:$0xf] }
 0x162   : > { %1164 = vst [vmem:[#allocation2 + $0x94] sm:$0xf] %v960_v46  ;;  %v5216_v30 = vsel %vm1606_vm3, %v1640_v20, %v1641_v63  ;;  %v1540_v23 = vrot.slane %v1538_v29, 1  ;;  %v2328_v57 = vadd.f32 %v5063_v14, %v2327_v18 }
 0x163   : > { %6162 = vst [vmem:[#allocation22_spill] sm:$0xff] %v5216_v30  ;;  %v963_v34 = vshrl.u32 %v747_v32, 16  ;;  %2544 = vmatmul.bf16.gmra.mxu3 %v5216_v30  ;;  %v5219_v5 = vadd.f32 %v2502_v50, %v2414_v17  ;;  %v966_v2 = vshll.u32 %v747_v32, 16 }
 0x164   : > { %1167 = vst [vmem:[#allocation2 + $0x98] sm:$0x1] %v1166_v27  ;;  %v5222_v52 = vsel %vm1397_vm2, %v1536_v28, %v1540_v23  ;;  %v673_v1 = vpop.f32.mrf.mxu0 }
 0x165   : > { %6163 = vst [vmem:[#allocation23_spill] sm:$0xff] %v5222_v52  ;;  %v965_v51 = vrot.slane %v963_v34, 7  ;;  %2455 = vmatmul.bf16.gmra.mxu2 %v5222_v52  ;;  %v674_v53 = vadd.f32 %v5175_v9, %v673_v1 }
 0x166   : > { %v2505_v4 = vpop.f32.mrf.mxu3 }
 0x167   : > { %v968_v63 = vor.u32 %v966_v2, %v965_v51  ;;  %v716_v21 = vmax.f32 %v674_v53, 0.0 }
 0x168   : > { %v2416_v50 = vpop.f32.mrf.mxu2  ;;  %v2332_v20 = vpop.f32.mrf.mxu1 }
 0x169   : > { %v1169_v28 = vsel %vm4914_vm6, %v968_v63, %v1168_v10  ;;  %v748_v29 = vpack.c.bf16 %v716_v21, %v716_v21  ;;  %v2417_v46 = vadd.f32 %v2416_v50, %v2328_v57  ;;  %v5229_v27 = vld [vmem:[#allocation2 + $0x90] sm:$0xff]  ;;  %v969_v57 = vrot.slane %v965_v51, 4  ;;  %v1172_v21 = vld [vmem:[#allocation2 + $0xa4] sm:$0x1] }
 0x16a   : > { %1170 = vst [vmem:[#allocation2 + $0x9c] sm:$0xf] %v1169_v28  ;;  %v1545_v18 = vshll.u32 %v5229_v27, 16  ;;  %v2330_v63 = vadd.f32 %v5063_v14, %v2329_v25  ;;  %v1543_v50 = vshrl.u32 %v5229_v27, 16 }
 0x16b   : > { %v1237_v32 = vld [vmem:[#allocation2 + $0x98] sm:$0xf]  ;;  %v971_v17 = vshrl.u32 %v748_v29, 16  ;;  %2371 = vmatmul.bf16.gmra.mxu1 %v5229_v27  ;;  %v5233_v35 = vadd.f32 %v2505_v4, %v2417_v46  ;;  %v974_v1 = vshll.u32 %v748_v29, 16  ;;  %v1643_v29 = vrot.slane %v5229_v27, 1 }
 0x16c   : > { %v1377_v23 = vunpack.c.l.b16 %v1237_v32  ;;  %v676_v34 = vpop.f32.mrf.mxu0  ;;  %v1547_v28 = vrot.slane %v1545_v18, 1 }
 0x16d   : > { %v973_v33 = vrot.slane %v971_v17, 7  ;;  %v677_v2 = vadd.f32 %v5175_v9, %v676_v34 }
 0x16e   : > { %v2507_v53 = vpop.f32.mrf.mxu3  ;;  %v1393_v10 = vpack.c.b16 %v1377_v23, %v1377_v23  ;;  %v1548_v34 = vor.u32 %v1547_v28, %v1543_v50 }
 0x16f   : > { %v976_v30 = vor.u32 %v974_v1, %v973_v33  ;;  %v978_v32 = vrot.slane %v973_v33, 4  ;;  %v717_v52 = vmax.f32 %v677_v2, 0.0  ;;  %2603 = vmatmul.bf16.gmra.mxu0 %v5058_v13 }
 0x170   : > { %v1644_v4 = vrot.slane %v1393_v10, 1  ;;  %v2418_v46 = vpop.f32.mrf.mxu2  ;;  %v2334_v17 = vpop.f32.mrf.mxu1  ;;  %v1550_v38 = vshll.u32 %v1393_v10, 16 }
 0x171   : > { %v977_v51 = vsel %vm4921_vm10, %v969_v57, %v976_v30  ;;  %v1173_v25 = vsel %vm4926_vm11, %v978_v32, %v1172_v21  ;;  %v749_v23 = vpack.c.bf16 %v717_v52, %v717_v52  ;;  %v2419_v18 = vadd.f32 %v2418_v46, %v2330_v63  ;;  %v1175_v21 = vld [vmem:[#allocation2 + $0xa8] sm:$0xf] }
 0x172   : > { %1171 = vst [vmem:[#allocation2 + $0xa0] sm:$0xf] %v977_v51  ;;  %v5245_v33 = vsel %vm1606_vm3, %v1643_v29, %v1644_v4  ;;  %v1552_v13 = vrot.slane %v1550_v38, 1  ;;  %v2333_v38 = vadd.f32 %v5063_v14, %v2332_v20 }
 0x173   : > { %6164 = vst [vmem:[#allocation24_spill] sm:$0xff] %v5245_v33  ;;  %v980_v1 = vshrl.u32 %v749_v23, 16  ;;  %2549 = vmatmul.bf16.gmra.mxu3 %v5245_v33  ;;  %v5248_v2 = vadd.f32 %v2507_v53, %v2419_v18  ;;  %v983_v50 = vshll.u32 %v749_v23, 16  ;;  %v4442_v23 = vld [vmem:[#allocation3 + $0x100] sm:$0xff] }
 0x174   : > { %1174 = vst [vmem:[#allocation2 + $0xa4] sm:$0x1] %v1173_v25  ;;  %v5251_v10 = vsel %vm1397_vm2, %v1548_v34, %v1552_v13  ;;  %v678_v30 = vpop.f32.mrf.mxu0  ;;  %2666 = vmatpush.bf16.msrb.mxu1 %v4442_v23 }
 0x175   : > { %6165 = vst [vmem:[#allocation25_spill] sm:$0xff] %v5251_v10  ;;  %v982_v57 = vrot.slane %v980_v1, 7  ;;  %2460 = vmatmul.bf16.gmra.mxu2 %v5251_v10  ;;  %v679_v52 = vadd.f32 %v5175_v9, %v678_v30 }
 0x176   : > { %v2510_v63 = vpop.f32.mrf.mxu3 }
 0x177   : > { %v985_v28 = vor.u32 %v983_v50, %v982_v57  ;;  %v718_v32 = vmax.f32 %v679_v52, 0.0 }
 0x178   : > { %v2421_v4 = vpop.f32.mrf.mxu2  ;;  %v5256_v46 = vpop.f32.mrf.mxu1 }
 0x179   : > { %v1176_v53 = vsel %vm4914_vm6, %v985_v28, %v1175_v21  ;;  %v750_v29 = vpack.c.bf16 %v718_v32, %v718_v32  ;;  %v2422_v34 = vadd.f32 %v2421_v4, %v2333_v38  ;;  %v5260_v51 = vld [vmem:[#allocation2 + $0x9c] sm:$0xff]  ;;  %v986_v32 = vrot.slane %v982_v57, 4 }
 0x17a   : > { %1177 = vst [vmem:[#allocation2 + $0xa8] sm:$0xf] %v1176_v53  ;;  %v1557_v1 = vshll.u32 %v5260_v51, 16  ;;  %v2335_v4 = vadd.f32 %v5063_v14, %v2334_v17  ;;  %v1179_v53 = vld [vmem:[#allocation2 + $0xb0] sm:$0x1]  ;;  %v1555_v33 = vshrl.u32 %v5260_v51, 16 }
 0x17b   : > { %v1240_v25 = vld [vmem:[#allocation2 + $0xa4] sm:$0xf]  ;;  %v988_v18 = vshrl.u32 %v750_v29, 16  ;;  %2376 = vmatmul.bf16.gmra.mxu1 %v5260_v51  ;;  %v5264_v30 = vadd.f32 %v2510_v63, %v2422_v34  ;;  %v991_v52 = vshll.u32 %v750_v29, 16  ;;  %v1646_v23 = vrot.slane %v5260_v51, 1 }
 0x17c   : > { %v1378_v13 = vunpack.c.l.b16 %v1240_v25  ;;  %v681_v20 = vpop.f32.mrf.mxu0  ;;  %v1559_v10 = vrot.slane %v1557_v1, 1  ;;  %v4462_v25 = vld [vmem:[#allocation3 + $0x1a0] sm:$0xff] }
 0x17d   : > { %v990_v50 = vrot.slane %v988_v18, 7  ;;  %v682_v21 = vadd.f32 %v5175_v9, %v681_v20  ;;  %2840 = vmatpush.bf16.msrb.mxu3 %v4462_v25  ;;  %v1182_v25 = vld [vmem:[#allocation2 + $0xb4] sm:$0xf] }
 0x17e   : > { %v2512_v38 = vpop.f32.mrf.mxu3  ;;  %v1394_v28 = vpack.c.b16 %v1378_v13, %v1378_v13  ;;  %v1560_v18 = vor.u32 %v1559_v10, %v1555_v33  ;;  %v4454_v13 = vld [vmem:[#allocation3 + $0x160] sm:$0xff] }
 0x17f   : > { %v993_v42 = vor.u32 %v991_v52, %v990_v50  ;;  %v995_v0 = vrot.slane %v990_v50, 4  ;;  %v719_v26 = vmax.f32 %v682_v21, 0.0  ;;  %2608 = vmatmul.bf16.gmra.mxu0 %v5090_v15  ;;  %2751 = vmatpush.bf16.msrb.mxu2 %v4454_v13  ;;  %v4461_v21 = vld [vmem:[#allocation3 + $0x198] sm:$0xff] }
 0x180   : > { %v1647_v63 = vrot.slane %v1394_v28, 1  ;;  %v2423_v34 = vpop.f32.mrf.mxu2  ;;  %v5270_v29 = vpop.f32.mrf.mxu1  ;;  %v1562_v57 = vshll.u32 %v1394_v28, 16 }
 0x181   : > { %v994_v17 = vsel %vm4921_vm10, %v986_v32, %v993_v42  ;;  %v1180_v20 = vsel %vm4926_vm11, %v995_v0, %v1179_v53  ;;  %v751_v1 = vpack.c.bf16 %v719_v26, %v719_v26  ;;  %v2424_v50 = vadd.f32 %v2423_v34, %v2335_v4  ;;  %2841 = vmatpush.bf16.msrb.mxu3 %v4461_v21  ;;  %v4453_v26 = vld [vmem:[#allocation3 + $0x158] sm:$0xff]  ;;  %v4459_v21 = vld [vmem:[#allocation3 + $0x188] sm:$0xff] }
 0x182   : > { %1178 = vst [vmem:[#allocation2 + $0xac] sm:$0xf] %v994_v17  ;;  %v5278_v15 = vsel %vm1606_vm3, %v1646_v23, %v1647_v63  ;;  %v1564_v52 = vrot.slane %v1562_v57, 1  ;;  %v4460_v63 = vld [vmem:[#allocation3 + $0x190] sm:$0xff] }
 0x183   : > { %6166 = vst [vmem:[#allocation26_spill] sm:$0xff] %v5278_v15  ;;  %v997_v33 = vshrl.u32 %v751_v1, 16  ;;  %2554 = vmatmul.bf16.gmra.mxu3 %v5278_v15  ;;  %v5281_v10 = vadd.f32 %v2512_v38, %v2424_v50  ;;  %v1000_v32 = vshll.u32 %v751_v1, 16  ;;  %2752 = vmatpush.bf16.msrb.mxu2 %v4453_v26  ;;  %v2338_v38 = vadd.f32 %v5063_v14, %v5256_v46  ;;  %v4452_v17 = vld [vmem:[#allocation3 + $0x150] sm:$0xff]  ;;  %v4473_v46 = vld [vmem:[#allocation3 + $0x1f8] sm:$0xff] }
 0x184   : > { %1181 = vst [vmem:[#allocation2 + $0xb0] sm:$0x1] %v1180_v20  ;;  %v5284_v42 = vsel %vm1397_vm2, %v1560_v18, %v1564_v52  ;;  %v683_v28 = vpop.f32.mrf.mxu0  ;;  %v3376_v18 = vld [vmem:[%s6110_s7] sm:$0x3]  ;;  %2926 = vmatpush.bf16.msra.mxu0 %v4473_v46  ;;  %v4481_v15 = vld [vmem:[#allocation3 + $0x238] sm:$0xff]  ;;  %v2340_v46 = vadd.f32 %v5063_v14, %v5270_v29 }
 0x185   : > { %6167 = vst [vmem:[#allocation27_spill] sm:$0xff] %v5284_v42  ;;  %v999_v0 = vrot.slane %v997_v33, 7  ;;  %2465 = vmatmul.bf16.gmra.mxu2 %v5284_v42  ;;  %v684_v4 = vadd.f32 %v5175_v9, %v683_v28  ;;  %2842 = vmatpush.bf16.msrb.mxu3 %v4460_v63 }
 0x186   : > { %v2515_v53 = vpop.f32.mrf.mxu3  ;;  %3015 = vmatpush.bf16.msra.mxu1 %v4481_v15 }
 0x187   : > { %v1002_v34 = vor.u32 %v1000_v32, %v999_v0  ;;  %v720_v23 = vmax.f32 %v684_v4, 0.0  ;;  %2753 = vmatpush.bf16.msrb.mxu2 %v4452_v17  ;;  %v3510_v32 = vsel %vm598_vm0, %v3376_v18, 0  ;;  %v4451_v17 = vld [vmem:[#allocation3 + $0x148] sm:$0xff]  ;;  %v1003_v42 = vrot.slane %v999_v0, 4 }
 0x188   : > { %v2426_v57 = vpop.f32.mrf.mxu2  ;;  %v5293_v13 = vpop.f32.mrf.mxu1 }
 0x189   : > { %v1183_v20 = vsel %vm4914_vm6, %v1002_v34, %v1182_v25  ;;  %v752_v1 = vpack.c.bf16 %v720_v23, %v720_v23  ;;  %v2427_v50 = vadd.f32 %v2426_v57, %v2338_v38  ;;  %v5297_v52 = vld [vmem:[#allocation2 + $0xa8] sm:$0xff]  ;;  %2843 = vmatpush.bf16.msrb.mxu3 %v4459_v21 }
 0x18a   : > { %1184 = vst [vmem:[#allocation2 + $0xb4] sm:$0xf] %v1183_v20  ;;  %v1569_v63 = vshll.u32 %v5297_v52, 16  ;;  %v1567_v18 = vshrl.u32 %v5297_v52, 16 }
 0x18b   : > { %v1243_v33 = vld [vmem:[#allocation2 + $0xb0] sm:$0xf]  ;;  %v1005_v28 = vshrl.u32 %v752_v1, 16  ;;  %2381 = vmatmul.bf16.gmra.mxu1 %v5297_v52  ;;  %v5302_v25 = vadd.f32 %v2515_v53, %v2427_v50  ;;  %v1008_v34 = vshll.u32 %v752_v1, 16  ;;  %2754 = vmatpush.bf16.msrb.mxu2 %v4451_v17  ;;  %v4458_v50 = vld [vmem:[#allocation3 + $0x180] sm:$0xff] }
 0x18c   : > { %v1379_v26 = vunpack.c.l.b16 %v1243_v33  ;;  %v686_v4 = vpop.f32.mrf.mxu0  ;;  %v1186_v33 = vld [vmem:[#allocation2 + $0xbc] sm:$0x1]  ;;  %v1571_v8 = vrot.slane %v1569_v63, 1 }
 0x18d   : > { %v1007_v38 = vrot.slane %v1005_v28, 7  ;;  %v687_v23 = vadd.f32 %v5175_v9, %v686_v4  ;;  %v1649_v4 = vrot.slane %v5297_v52, 1  ;;  %2844 = vmatpush.bf16.msrb.mxu3 %v4458_v50 }
 0x18e   : > { %v2517_v57 = vpop.f32.mrf.mxu3  ;;  %v1395_v20 = vpack.c.b16 %v1379_v26, %v1379_v26  ;;  %v1572_v0 = vor.u32 %v1571_v8, %v1567_v18 }
 0x18f   : > { %v1010_v44 = vor.u32 %v1008_v34, %v1007_v38  ;;  %v1012_v21 = vrot.slane %v1007_v38, 4  ;;  %v721_v53 = vmax.f32 %v687_v23, 0.0  ;;  %2613 = vmatmul.bf16.gmra.mxu0 %v5113_v12  ;;  %v4450_v12 = vld [vmem:[#allocation3 + $0x140] sm:$0xff] }
 0x190   : > { %v1650_v1 = vrot.slane %v1395_v20, 1  ;;  %v2428_v28 = vpop.f32.mrf.mxu2  ;;  %v2344_v26 = vpop.f32.mrf.mxu1  ;;  %v1574_v49 = vshll.u32 %v1395_v20, 16  ;;  %2755 = vmatpush.bf16.msrb.mxu2 %v4450_v12 }
 0x191   : > { %v1011_v14 = vsel %vm4921_vm10, %v1003_v42, %v1010_v44  ;;  %v1187_v29 = vsel %vm4926_vm11, %v1012_v21, %v1186_v33  ;;  %v753_v63 = vpack.c.bf16 %v721_v53, %v721_v53  ;;  %v2429_v38 = vadd.f32 %v2428_v28, %v2340_v46  ;;  %3519 = vmatpush.bf16.msra.mxu3 %v3510_v32  ;;  %v5328_v32 = vld [vmem:[%s6107_s4] ss:$0 sm:$0xff] }
 0x192   : > { %1185 = vst [vmem:[#allocation2 + $0xb8] sm:$0xf] %v1011_v14  ;;  %v5315_v34 = vsel %vm1606_vm3, %v1649_v4, %v1650_v1  ;;  %v1576_v23 = vrot.slane %v1574_v49, 1  ;;  %v1189_v49 = vld [vmem:[#allocation2 + $0xc0] sm:$0xf] }
 0x193   : > { %1188 = vst [vmem:[#allocation2 + $0xbc] sm:$0x1] %v1187_v29  ;;  %v1014_v8 = vshrl.u32 %v753_v63, 16  ;;  %v1017_v20 = vshll.u32 %v753_v63, 16  ;;  %2559 = vmatmul.bf16.gmra.mxu3 %v5315_v34  ;;  %v5318_v44 = vadd.f32 %v2517_v57, %v2429_v38  ;;  %v2343_v57 = vadd.f32 %v5328_v32, %v5293_v13 }
 0x194   : > { %v5321_v15 = vsel %vm1397_vm2, %v1572_v0, %v1576_v23  ;;  %v688_v42 = vpop.f32.mrf.mxu0 }
 0x195   : > { %v1016_v17 = vrot.slane %v1014_v8, 7  ;;  %2470 = vmatmul.bf16.gmra.mxu2 %v5321_v15  ;;  %v689_v46 = vadd.f32 %v5175_v9, %v688_v42 }
 0x196   : > { %v2520_v33 = vpop.f32.mrf.mxu3 }
 0x197   : > { %v1019_v18 = vor.u32 %v1017_v20, %v1016_v17  ;;  %v722_v21 = vmax.f32 %v689_v46, 0.0  ;;  %v1020_v23 = vrot.slane %v1016_v17, 4  ;;  %v2345_v46 = vadd.f32 %v5328_v32, %v2344_v26 }
 0x198   : > { %v2431_v53 = vpop.f32.mrf.mxu2  ;;  %v2347_v1 = vpop.f32.mrf.mxu1 }
 0x199   : > { %v1190_v50 = vsel %vm4914_vm6, %v1019_v18, %v1189_v49  ;;  %v754_v28 = vpack.c.bf16 %v722_v21, %v722_v21  ;;  %v2432_v4 = vadd.f32 %v2431_v53, %v2343_v57  ;;  %v5334_v9 = vld [vmem:[#allocation2 + $0xb4] sm:$0xff]  ;;  %v1193_v49 = vld [vmem:[#allocation2 + $0xc8] sm:$0x1]  ;;  %v2348_v11 = vadd.f32 %v5328_v32, %v2347_v1 }
 0x19a   : > { %1191 = vst [vmem:[#allocation2 + $0xc0] sm:$0xf] %v1190_v50  ;;  %v1246_v0 = vld [vmem:[#allocation2 + $0xbc] sm:$0xf]  ;;  %v1581_v13 = vshll.u32 %v5334_v9, 16  ;;  %v1579_v57 = vshrl.u32 %v5334_v9, 16 }
 0x19b   : > { %v1022_v14 = vshrl.u32 %v754_v28, 16  ;;  %v1025_v29 = vshll.u32 %v754_v28, 16  ;;  %2386 = vmatmul.bf16.gmra.mxu1 %v5334_v9  ;;  %v1380_v63 = vunpack.c.l.b16 %v1246_v0  ;;  %v5338_v12 = vadd.f32 %v2520_v33, %v2432_v4 }
 0x19c   : > { %v2579_v38 = vpop.f32.mrf.mxu0  ;;  %v1583_v18 = vrot.slane %v1581_v13, 1  ;;  %v1652_v4 = vrot.slane %v5334_v9, 1 }
 0x19d   : > { %v1024_v8 = vrot.slane %v1022_v14, 7  ;;  %v5341_v20 = vadd.f32 %v2579_v38, %v5073_v48  ;;  %v1396_v42 = vpack.c.b16 %v1380_v63, %v1380_v63 }
 0x19e   : > { %v2522_v62 = vpop.f32.mrf.mxu3  ;;  %v1584_v0 = vor.u32 %v1583_v18, %v1579_v57 }
 0x19f   : > { %v1027_v21 = vor.u32 %v1025_v29, %v1024_v8  ;;  %v1029_v53 = vrot.slane %v1024_v8, 4  ;;  %2618 = vmatmul.bf16.gmra.mxu0 %v5138_v16  ;;  %v1653_v50 = vrot.slane %v1396_v42, 1  ;;  %v1586_v33 = vshll.u32 %v1396_v42, 16 }
 0x1a0   : > { %v2433_v28 = vpop.f32.mrf.mxu2  ;;  %v2349_v17 = vpop.f32.mrf.mxu1 }
 0x1a1   : > { %v1028_v48 = vsel %vm4921_vm10, %v1020_v23, %v1027_v21  ;;  %v1194_v26 = vsel %vm4926_vm11, %v1029_v53, %v1193_v49  ;;  %v2434_v14 = vadd.f32 %v2433_v28, %v2345_v46  ;;  %v5352_v29 = vsel %vm1606_vm3, %v1652_v4, %v1653_v50  ;;  %v4472_v46 = vld [vmem:[#allocation3 + $0x1f0] sm:$0xff]  ;;  %v4584_v28 = vld [vmem:[#allocation2 + $0x18] sm:$0xff] }
 0x1a2   : > { %1192 = vst [vmem:[#allocation2 + $0xc4] sm:$0xf] %v1028_v48  ;;  %v1588_v63 = vrot.slane %v1586_v33, 1  ;;  %2927 = vmatpush.bf16.msra.mxu0 %v4472_v46  ;;  %v4480_v21 = vld [vmem:[#allocation3 + $0x230] sm:$0xff]  ;;  %v2350_v53 = vadd.f32 %v5328_v32, %v2349_v17 }
 0x1a3   : > { %1195 = vst [vmem:[#allocation2 + $0xc8] sm:$0x1] %v1194_v26  ;;  %2564 = vmatmul.bf16.gmra.mxu3 %v5352_v29  ;;  %v5355_v16 = vadd.f32 %v2522_v62, %v2434_v14  ;;  %3016 = vmatpush.bf16.msra.mxu1 %v4480_v21 }
 0x1a4   : > { %v5358_v38 = vsel %vm1397_vm2, %v1584_v0, %v1588_v63  ;;  %v5360_v13 = vpop.f32.mrf.mxu0 }
 0x1a5   : > { %2475 = vmatmul.bf16.gmra.mxu2 %v5358_v38 }
 0x1a6   : > { %v2525_v7 = vpop.f32.mrf.mxu3 }
 0x1a8   : > { %v2436_v23 = vpop.f32.mrf.mxu2  ;;  %v2352_v8 = vpop.f32.mrf.mxu1 }
 0x1a9   : > { %v2437_v42 = vadd.f32 %v2436_v23, %v2348_v11  ;;  %v2353_v48 = vadd.f32 %v5328_v32, %v2352_v8  ;;  %v4585_v8 = vld [vmem:[#allocation2 + $0x24] sm:$0xff] }
 0x1ab   : > { %2667 = vmatmul.bf16.vlgmr.msrb.gmra.mxu1 %v4956_v61  ;;  %v5365_v49 = vadd.f32 %v2525_v7, %v2437_v42 }
 0x1ac   : > { %v2584_v62 = vpop.f32.mrf.mxu0 }
 0x1ad   : > { %v5368_v18 = vadd.f32 %v2584_v62, %v5170_v43 }
 0x1ae   : > { %v2527_v57 = vpop.f32.mrf.mxu3 }
 0x1af   : > { %2623 = vmatmul.bf16.gmra.mxu0 %v5166_v37 }
 0x1b0   : > { %v2438_v1 = vpop.f32.mrf.mxu2  ;;  %v2354_v50 = vpop.f32.mrf.mxu1 }
 0x1b1   : > { %v2439_v33 = vadd.f32 %v2438_v1, %v2350_v53 }
 0x1b3   : > { %2845 = vmatmul.bf16.vlgmr.msrb.gmra.mxu3 %v4584_v28  ;;  %v5372_v61 = vadd.f32 %v2527_v57, %v2439_v33 }
 0x1b4   : > { %v2586_v4 = vpop.f32.mrf.mxu0 }
 0x1b5   : > { %2756 = vmatmul.bf16.vlgmr.msrb.gmra.mxu2 %v4952_v58  ;;  %v5376_v43 = vadd.f32 %v2586_v4, %v5190_v39  ;;  %v2355_v58 = vadd.f32 %v5328_v32, %v2354_v50 }
 0x1b6   : > { %v2530_v0 = vpop.f32.mrf.mxu3 }
 0x1b8   : > { %v2441_v17 = vpop.f32.mrf.mxu2  ;;  %v2357_v26 = vpop.f32.mrf.mxu1 }
 0x1b9   : > { %v2442_v37 = vadd.f32 %v2441_v17, %v2353_v48  ;;  %v4479_v48 = vld [vmem:[#allocation3 + $0x228] sm:$0xff] }
 0x1ba   : > { %3017 = vmatpush.bf16.msra.mxu1 %v4479_v48 }
 0x1bb   : > { %2672 = vmatmul.bf16.gmra.mxu1 %v4980_v40  ;;  %v5380_v14 = vadd.f32 %v2530_v0, %v2442_v37 }
 0x1bc   : > { %v2589_v63 = vpop.f32.mrf.mxu0 }
 0x1bd   : > { %v5383_v11 = vadd.f32 %v2589_v63, %v5204_v45  ;;  %v2358_v45 = vadd.f32 %v5328_v32, %v2357_v26  ;;  %v4586_v63 = vld [vmem:[#allocation2 + $0x30] sm:$0xff] }
 0x1be   : > { %v2532_v7 = vpop.f32.mrf.mxu3 }
 0x1bf   : > { %2628 = vmatmul.bf16.gmra.mxu0 %v5200_v24  ;;  %v4471_v24 = vld [vmem:[#allocation3 + $0x1e8] sm:$0xff] }
 0x1c0   : > { %v2443_v39 = vpop.f32.mrf.mxu2  ;;  %v2359_v23 = vpop.f32.mrf.mxu1  ;;  %2928 = vmatpush.bf16.msra.mxu0 %v4471_v24 }
 0x1c1   : > { %v2444_v42 = vadd.f32 %v2443_v39, %v2355_v58 }
 0x1c3   : > { %2850 = vmatmul.bf16.gmra.mxu3 %v4585_v8  ;;  %v5387_v46 = vadd.f32 %v2532_v7, %v2444_v42 }
 0x1c4   : > { %v2591_v62 = vpop.f32.mrf.mxu0 }
 0x1c5   : > { %2761 = vmatmul.bf16.gmra.mxu2 %v4976_v36  ;;  %v5391_v57 = vadd.f32 %v2591_v62, %v5219_v5  ;;  %v2360_v5 = vadd.f32 %v5328_v32, %v2359_v23  ;;  %v6173_v36 = vld [vmem:[#allocation16_spill] sm:$0xff] }
 0x1c6   : > { %v2535_v21 = vpop.f32.mrf.mxu3 }
 0x1c8   : > { %v2446_v53 = vpop.f32.mrf.mxu2  ;;  %v2362_v1 = vpop.f32.mrf.mxu1 }
 0x1c9   : > { %v2447_v50 = vadd.f32 %v2446_v53, %v2358_v45  ;;  %v2363_v42 = vadd.f32 %v5328_v32, %v2362_v1  ;;  %v4587_v1 = vld [vmem:[#allocation2 + $0x3c] sm:$0xff] }
 0x1cb   : > { %2677 = vmatmul.bf16.gmra.mxu1 %v5004_v22  ;;  %v5395_v33 = vadd.f32 %v2535_v21, %v2447_v50 }
 0x1cc   : > { %v2594_v28 = vpop.f32.mrf.mxu0 }
 0x1cd   : > { %v5398_v4 = vadd.f32 %v2594_v28, %v5233_v35 }
 0x1ce   : > { %v2537_v0 = vpop.f32.mrf.mxu3 }
 0x1cf   : > { %2633 = vmatmul.bf16.gmra.mxu0 %v5229_v27 }
 0x1d0   : > { %v2448_v17 = vpop.f32.mrf.mxu2  ;;  %v2364_v26 = vpop.f32.mrf.mxu1 }
 0x1d1   : > { %v2449_v37 = vadd.f32 %v2448_v17, %v2360_v5  ;;  %v2365_v24 = vadd.f32 %v5328_v32, %v2364_v26 }
 0x1d3   : > { %2855 = vmatmul.bf16.gmra.mxu3 %v4586_v63  ;;  %v5402_v7 = vadd.f32 %v2537_v0, %v2449_v37 }
 0x1d4   : > { %v2596_v58 = vpop.f32.mrf.mxu0 }
 0x1d5   : > { %2766 = vmatmul.bf16.gmra.mxu2 %v5000_v19  ;;  %v5406_v35 = vadd.f32 %v2596_v58, %v5248_v2  ;;  %v6171_v19 = vld [vmem:[#allocation17_spill] sm:$0xff] }
 0x1d6   : > { %v2540_v39 = vpop.f32.mrf.mxu3 }
 0x1d8   : > { %v2451_v23 = vpop.f32.mrf.mxu2  ;;  %v2367_v8 = vpop.f32.mrf.mxu1 }
 0x1d9   : > { %v2452_v62 = vadd.f32 %v2451_v23, %v2363_v42  ;;  %v2368_v37 = vadd.f32 %v5328_v32, %v2367_v8 }
 0x1db   : > { %2682 = vmatmul.bf16.gmra.mxu1 %v5028_v6  ;;  %v5410_v21 = vadd.f32 %v2540_v39, %v2452_v62  ;;  %v4470_v39 = vld [vmem:[#allocation3 + $0x1e0] sm:$0xff] }
 0x1dc   : > { %v2599_v45 = vpop.f32.mrf.mxu0  ;;  %2929 = vmatpush.bf16.msra.mxu0 %v4470_v39 }
 0x1dd   : > { %v5413_v53 = vadd.f32 %v2599_v45, %v5264_v30 }
 0x1de   : > { %v2542_v50 = vpop.f32.mrf.mxu3 }
 0x1df   : > { %2638 = vmatmul.bf16.gmra.mxu0 %v5260_v51 }
 0x1e0   : > { %v2453_v2 = vpop.f32.mrf.mxu2  ;;  %v2369_v28 = vpop.f32.mrf.mxu1 }
 0x1e1   : > { %v2454_v0 = vadd.f32 %v2453_v2, %v2365_v24 }
 0x1e3   : > { %2860 = vmatmul.bf16.gmra.mxu3 %v4587_v1  ;;  %v5417_v48 = vadd.f32 %v2542_v50, %v2454_v0  ;;  %v4478_v50 = vld [vmem:[#allocation3 + $0x220] sm:$0xff]  ;;  %v4469_v0 = vld [vmem:[#allocation3 + $0x1d8] sm:$0xff]  ;;  %v4588_v1 = vld [vmem:[#allocation2 + $0x48] sm:$0xff] }
 0x1e4   : > { %v2601_v5 = vpop.f32.mrf.mxu0  ;;  %3018 = vmatpush.bf16.msra.mxu1 %v4478_v50  ;;  %2930 = vmatpush.bf16.msra.mxu0 %v4469_v0  ;;  %v4467_v50 = vld [vmem:[#allocation3 + $0x1c8] sm:$0xff] }
 0x1e5   : > { %2771 = vmatmul.bf16.gmra.mxu2 %v5024_v3  ;;  %v5421_v17 = vadd.f32 %v2601_v5, %v5281_v10  ;;  %v2370_v10 = vadd.f32 %v5328_v32, %v2369_v28 }
 0x1e6   : > { %v2545_v30 = vpop.f32.mrf.mxu3 }
 0x1e8   : > { %v2456_v63 = vpop.f32.mrf.mxu2  ;;  %v2372_v26 = vpop.f32.mrf.mxu1 }
 0x1e9   : > { %v2457_v58 = vadd.f32 %v2456_v63, %v2368_v37  ;;  %v4468_v37 = vld [vmem:[#allocation3 + $0x1d0] sm:$0xff]  ;;  %v2373_v63 = vadd.f32 %v5328_v32, %v2372_v26 }
 0x1ea   : > { %2931 = vmatpush.bf16.msra.mxu0 %v4468_v37  ;;  %v4589_v37 = vld [vmem:[#allocation2 + $0x54] sm:$0xff] }
 0x1eb   : > { %2687 = vmatmul.bf16.gmra.mxu1 %v5052_v60  ;;  %v5425_v42 = vadd.f32 %v2545_v30, %v2457_v58 }
 0x1ec   : > { %v2604_v23 = vpop.f32.mrf.mxu0 }
 0x1ed   : > { %v5428_v62 = vadd.f32 %v2604_v23, %v5302_v25 }
 0x1ee   : > { %v2547_v45 = vpop.f32.mrf.mxu3  ;;  %2932 = vmatpush.bf16.msra.mxu0 %v4467_v50 }
 0x1ef   : > { %2643 = vmatmul.bf16.gmra.mxu0 %v5297_v52 }
 0x1f0   : > { %v2458_v8 = vpop.f32.mrf.mxu2  ;;  %v2374_v24 = vpop.f32.mrf.mxu1 }
 0x1f1   : > { %v2459_v2 = vadd.f32 %v2458_v8, %v2370_v10  ;;  %v2375_v0 = vadd.f32 %v5328_v32, %v2374_v24 }
 0x1f3   : > { %2865 = vmatmul.bf16.gmra.mxu3 %v4588_v1  ;;  %v5432_v5 = vadd.f32 %v2547_v45, %v2459_v2 }
 0x1f4   : > { %v2606_v30 = vpop.f32.mrf.mxu0 }
 0x1f5   : > { %2776 = vmatmul.bf16.gmra.mxu2 %v5048_v56  ;;  %v5436_v25 = vadd.f32 %v2606_v30, %v5318_v44  ;;  %v4466_v44 = vld [vmem:[#allocation3 + $0x1c0] sm:$0xff] }
 0x1f6   : > { %v2550_v28 = vpop.f32.mrf.mxu3  ;;  %2933 = vmatpush.bf16.msra.mxu0 %v4466_v44  ;;  %v5455_v44 = vld [vmem:[#allocation2 + $0xc0] sm:$0xff] }
 0x1f8   : > { %v2461_v58 = vpop.f32.mrf.mxu2  ;;  %v2377_v39 = vpop.f32.mrf.mxu1 }
 0x1f9   : > { %v2462_v23 = vadd.f32 %v2461_v58, %v2373_v63 }
 0x1fb   : > { %2692 = vmatmul.bf16.gmra.mxu1 %v5084_v59  ;;  %v5440_v45 = vadd.f32 %v2550_v28, %v2462_v23  ;;  %v2378_v23 = vadd.f32 %v5328_v32, %v2377_v39 }
 0x1fc   : > { %v2609_v10 = vpop.f32.mrf.mxu0 }
 0x1fd   : > { %v5443_v8 = vadd.f32 %v2609_v10, %v5338_v12 }
 0x1fe   : > { %v2552_v2 = vpop.f32.mrf.mxu3 }
 0x1ff   : > { %2648 = vmatmul.bf16.gmra.mxu0 %v5334_v9 }
 0x200   : > { %v2463_v26 = vpop.f32.mrf.mxu2  ;;  %v2379_v1 = vpop.f32.mrf.mxu1 }
 0x201   : > { %v2464_v30 = vadd.f32 %v2463_v26, %v2375_v0 }
 0x203   : > { %2870 = vmatmul.bf16.gmra.mxu3 %v4589_v37  ;;  %v5447_v63 = vadd.f32 %v2552_v2, %v2464_v30  ;;  %v4477_v37 = vld [vmem:[#allocation3 + $0x218] sm:$0xff] }
 0x204   : > { %v2611_v28 = vpop.f32.mrf.mxu0  ;;  %3019 = vmatpush.bf16.msra.mxu1 %v4477_v37  ;;  %v4489_v37 = vld [vmem:[%s6108_s5 + $0x38] sm:$0xff] }
 0x205   : > { %2781 = vmatmul.bf16.gmra.mxu2 %v5080_v54  ;;  %v5451_v12 = vadd.f32 %v2611_v28, %v5355_v16  ;;  %v2380_v16 = vadd.f32 %v5328_v32, %v2379_v1 }
 0x206   : > { %v2555_v58 = vpop.f32.mrf.mxu3  ;;  %3220 = vmatpush.bf16.msra.mxu2 %v4489_v37 }
 0x208   : > { %v2466_v24 = vpop.f32.mrf.mxu2  ;;  %v2382_v50 = vpop.f32.mrf.mxu1 }
 0x209   : > { %v2467_v10 = vadd.f32 %v2466_v24, %v2378_v23  ;;  %v4590_v24 = vld [vmem:[#allocation2 + $0x60] sm:$0xff] }
 0x20b   : > { %2697 = vmatmul.bf16.gmra.mxu1 %v5107_v55  ;;  %v5457_v0 = vadd.f32 %v2555_v58, %v2467_v10 }
 0x20c   : > { %v2614_v2 = vpop.f32.mrf.mxu0 }
 0x20d   : > { %v5460_v26 = vadd.f32 %v2614_v2, %v5365_v49  ;;  %v2383_v2 = vadd.f32 %v5328_v32, %v2382_v50 }
 0x20e   : > { %v2557_v30 = vpop.f32.mrf.mxu3 }
 0x20f   : > { %2653 = vmatmul.bf16.gmra.mxu0 %v5455_v44 }
 0x210   : > { %v2468_v39 = vpop.f32.mrf.mxu2  ;;  %v2384_v28 = vpop.f32.mrf.mxu1 }
 0x211   : > { %v2469_v23 = vadd.f32 %v2468_v39, %v2380_v16 }
 0x213   : > { %2875 = vmatmul.bf16.gmra.mxu3 %v4590_v24  ;;  %v5464_v54 = vadd.f32 %v2557_v30, %v2469_v23  ;;  %v2385_v23 = vadd.f32 %v5328_v32, %v2384_v28 }
 0x214   : > { %v2616_v58 = vpop.f32.mrf.mxu0 }
 0x215   : > { %2786 = vmatmul.bf16.gmra.mxu2 %v5103_v47  ;;  %v5468_v49 = vadd.f32 %v2616_v58, %v5372_v61 }
 0x216   : > { %v2560_v10 = vpop.f32.mrf.mxu3 }
 0x218   : > { %v2471_v1 = vpop.f32.mrf.mxu2  ;;  %v2387_v56 = vpop.f32.mrf.mxu1 }
 0x219   : > { %v2472_v3 = vadd.f32 %v2471_v1, %v2383_v2  ;;  %v4591_v2 = vld [vmem:[#allocation2 + $0x6c] sm:$0xff]  ;;  %v2388_v28 = vadd.f32 %v5328_v32, %v2387_v56 }
 0x21b   : > { %2702 = vmatmul.bf16.gmra.mxu1 %v5132_v31  ;;  %v5475_v30 = vadd.f32 %v2560_v10, %v2472_v3  ;;  %v2315_v3 = vadd.f32 %v5328_v32, %v5121_v41  ;;  %v6169_v10 = vld [vmem:[#allocation15_spill] sm:$0xff] }
 0x21c   : > { %v2619_v16 = vpop.f32.mrf.mxu0 }
 0x21d   : > { %v5478_v39 = vadd.f32 %v2619_v16, %v5380_v14 }
 0x21e   : > { %v2562_v61 = vpop.f32.mrf.mxu3 }
 0x21f   : > { %6168 = vst [vmem:[#allocation28_spill] sm:$0xff] %v5478_v39  ;;  %2934 = vmatmul.bf16.vlgmr.msra.gmra.mxu0 %v4980_v40 }
 0x220   : > { %v2473_v50 = vpop.f32.mrf.mxu2  ;;  %v2389_v24 = vpop.f32.mrf.mxu1 }
 0x221   : > { %v2474_v58 = vadd.f32 %v2473_v50, %v2385_v23  ;;  %v2404_v23 = vadd.f32 %v6171_v19, %v2315_v3  ;;  %v2390_v39 = vadd.f32 %v5328_v32, %v2389_v24 }
 0x223   : > { %2880 = vmatmul.bf16.gmra.mxu3 %v4591_v2  ;;  %v5482_v1 = vadd.f32 %v2562_v61, %v2474_v58  ;;  %v6172_v58 = vld [vmem:[#allocation19_spill] sm:$0xff] }
 0x224   : > { %v2621_v47 = vpop.f32.mrf.mxu0 }
 0x225   : > { %2791 = vmatmul.bf16.gmra.mxu2 %v6169_v10  ;;  %v5488_v14 = vadd.f32 %v2621_v47, %v5387_v46  ;;  %v2493_v10 = vadd.f32 %v6173_v36, %v2404_v23 }
 0x226   : > { %v2565_v37 = vpop.f32.mrf.mxu3 }
 0x227   : > { %6170 = vst [vmem:[#allocation29_spill] sm:$0xff] %v5488_v14  ;;  %v4476_v14 = vld [vmem:[#allocation3 + $0x210] sm:$0xff]  ;;  %v2582_v56 = vadd.f32 %v5360_v13, %v2493_v10 }
 0x228   : > { %v2476_v40 = vpop.f32.mrf.mxu2  ;;  %v2668_v16 = vpop.f32.mrf.mxu1  ;;  %3020 = vmatpush.bf16.msra.mxu1 %v4476_v14  ;;  %v6175_v14 = vld [vmem:[#allocation21_spill] sm:$0xff] }
 0x229   : > { %v2477_v50 = vadd.f32 %v2476_v40, %v2388_v28  ;;  %v2669_v61 = vadd.f32 %v2668_v16, %v5341_v20  ;;  %v4592_v28 = vld [vmem:[#allocation2 + $0x78] sm:$0xff] }
 0x22b   : > { %2707 = vmatmul.bf16.gmra.mxu1 %v6172_v58  ;;  %v5494_v2 = vadd.f32 %v2565_v37, %v2477_v50 }
 0x22c   : > { %v2624_v41 = vpop.f32.mrf.mxu0 }
 0x22d   : > { %v5498_v47 = vadd.f32 %v2624_v41, %v5395_v33  ;;  %v6174_v33 = vld [vmem:[#allocation18_spill] sm:$0xff] }
 0x22e   : > { %v2567_v46 = vpop.f32.mrf.mxu3 }
 0x22f   : > { %2939 = vmatmul.bf16.gmra.mxu0 %v5004_v22 }
 0x230   : > { %v2478_v19 = vpop.f32.mrf.mxu2  ;;  %v2670_v20 = vpop.f32.mrf.mxu1 }
 0x231   : > { %v2479_v3 = vadd.f32 %v2478_v19, %v2390_v39  ;;  %v2671_v37 = vadd.f32 %v2670_v20, %v2582_v56  ;;  %v4488_v39 = vld [vmem:[%s6108_s5 + $0x30] sm:$0xff]  ;;  %v4593_v19 = vld [vmem:[#allocation2 + $0x84] sm:$0xff] }
 0x232   : > { %3221 = vmatpush.bf16.msra.mxu2 %v4488_v39 }
 0x233   : > { %2885 = vmatmul.bf16.gmra.mxu3 %v4592_v28  ;;  %v5503_v40 = vadd.f32 %v2567_v46, %v2479_v3  ;;  %v6176_v28 = vld [vmem:[#allocation20_spill] sm:$0xff] }
 0x234   : > { %v2626_v36 = vpop.f32.mrf.mxu0 }
 0x235   : > { %2796 = vmatmul.bf16.gmra.mxu2 %v6174_v33  ;;  %v5507_v16 = vadd.f32 %v2626_v36, %v5402_v7 }
 0x236   : > { %v2846_v13 = vpop.f32.mrf.mxu3 }
 0x238   : > { %v2757_v10 = vpop.f32.mrf.mxu2  ;;  %v2673_v32 = vpop.f32.mrf.mxu1 }
 0x239   : > { %v2758_v24 = vadd.f32 %v2757_v10, %v2669_v61  ;;  %v2674_v22 = vadd.f32 %v2673_v32, %v5368_v18 }
 0x23b   : > { %2712 = vmatmul.bf16.gmra.mxu1 %v6175_v14  ;;  %v5514_v23 = vadd.f32 %v2846_v13, %v2758_v24  ;;  %v6177_v24 = vld [vmem:[#allocation23_spill] sm:$0xff] }
 0x23c   : > { %v2629_v50 = vpop.f32.mrf.mxu0 }
 0x23d   : > { %v5517_v41 = vadd.f32 %v2629_v50, %v5410_v21 }
 0x23e   : > { %v2848_v7 = vpop.f32.mrf.mxu3 }
 0x23f   : > { %2944 = vmatmul.bf16.gmra.mxu0 %v5028_v6 }
 0x240   : > { %v2759_v46 = vpop.f32.mrf.mxu2  ;;  %v2675_v61 = vpop.f32.mrf.mxu1 }
 0x241   : > { %v2760_v56 = vadd.f32 %v2759_v46, %v2671_v37  ;;  %v2676_v18 = vadd.f32 %v2675_v61, %v5376_v43 }
 0x243   : > { %2890 = vmatmul.bf16.gmra.mxu3 %v4593_v19  ;;  %v5521_v20 = vadd.f32 %v2848_v7, %v2760_v56  ;;  %v4475_v7 = vld [vmem:[#allocation3 + $0x208] sm:$0xff] }
 0x244   : > { %v2631_v3 = vpop.f32.mrf.mxu0  ;;  %3021 = vmatpush.bf16.msra.mxu1 %v4475_v7  ;;  %v6178_v19 = vld [vmem:[#allocation22_spill] sm:$0xff] }
 0x245   : > { %2801 = vmatmul.bf16.gmra.mxu2 %v6176_v28  ;;  %v5525_v36 = vadd.f32 %v2631_v3, %v5417_v48 }
 0x246   : > { %v2851_v21 = vpop.f32.mrf.mxu3 }
 0x248   : > { %v2762_v13 = vpop.f32.mrf.mxu2  ;;  %v2678_v10 = vpop.f32.mrf.mxu1 }
 0x249   : > { %v2763_v32 = vadd.f32 %v2762_v13, %v2674_v22  ;;  %v2679_v6 = vadd.f32 %v2678_v10, %v5383_v11 }
 0x24b   : > { %2717 = vmatmul.bf16.gmra.mxu1 %v6177_v24  ;;  %v5529_v37 = vadd.f32 %v2851_v21, %v2763_v32 }
 0x24c   : > { %v2634_v43 = vpop.f32.mrf.mxu0 }
 0x24d   : > { %v5532_v39 = vadd.f32 %v2634_v43, %v5425_v42 }
 0x24e   : > { %v2853_v50 = vpop.f32.mrf.mxu3 }
 0x24f   : > { %2949 = vmatmul.bf16.gmra.mxu0 %v5052_v60 }
 0x250   : > { %v2764_v48 = vpop.f32.mrf.mxu2  ;;  %v2680_v46 = vpop.f32.mrf.mxu1 }
 0x251   : > { %v2765_v61 = vadd.f32 %v2764_v48, %v2676_v18  ;;  %v2681_v22 = vadd.f32 %v2680_v46, %v5391_v57  ;;  %v4487_v57 = vld [vmem:[%s6108_s5 + $0x28] sm:$0xff]  ;;  %v6179_v18 = vld [vmem:[#allocation25_spill] sm:$0xff] }
 0x252   : > { %3222 = vmatpush.bf16.msra.mxu2 %v4487_v57 }
 0x253   : > { %2895 = vmatmul.bf16.gmra.mxu3 %v5229_v27  ;;  %v5537_v11 = vadd.f32 %v2853_v50, %v2765_v61  ;;  %v6180_v61 = vld [vmem:[#allocation24_spill] sm:$0xff] }
 0x254   : > { %v2636_v56 = vpop.f32.mrf.mxu0 }
 0x255   : > { %2806 = vmatmul.bf16.gmra.mxu2 %v6178_v19  ;;  %v5541_v42 = vadd.f32 %v2636_v56, %v5432_v5 }
 0x256   : > { %v2856_v3 = vpop.f32.mrf.mxu3 }
 0x258   : > { %v2767_v21 = vpop.f32.mrf.mxu2  ;;  %v2683_v13 = vpop.f32.mrf.mxu1 }
 0x259   : > { %v2768_v60 = vadd.f32 %v2767_v21, %v2679_v6  ;;  %v2684_v10 = vadd.f32 %v2683_v13, %v5398_v4 }
 0x25b   : > { %2722 = vmatmul.bf16.gmra.mxu1 %v6179_v18  ;;  %v5548_v27 = vadd.f32 %v2856_v3, %v2768_v60  ;;  %v6181_v60 = vld [vmem:[#allocation27_spill] sm:$0xff] }
 0x25c   : > { %v2639_v32 = vpop.f32.mrf.mxu0 }
 0x25d   : > { %v5551_v43 = vadd.f32 %v2639_v32, %v5440_v45  ;;  %v4474_v32 = vld [vmem:[#allocation3 + $0x200] sm:$0xff] }
 0x25e   : > { %v2858_v5 = vpop.f32.mrf.mxu3  ;;  %3022 = vmatpush.bf16.msra.mxu1 %v4474_v32 }
 0x25f   : > { %2954 = vmatmul.bf16.gmra.mxu0 %v5084_v59 }
 0x260   : > { %v2769_v50 = vpop.f32.mrf.mxu2  ;;  %v2685_v6 = vpop.f32.mrf.mxu1 }
 0x261   : > { %v2770_v7 = vadd.f32 %v2769_v50, %v2681_v22  ;;  %v2686_v4 = vadd.f32 %v2685_v6, %v5406_v35 }
 0x263   : > { %2900 = vmatmul.bf16.gmra.mxu3 %v5260_v51  ;;  %v5556_v48 = vadd.f32 %v2858_v5, %v2770_v7  ;;  %v6182_v7 = vld [vmem:[#allocation26_spill] sm:$0xff] }
 0x264   : > { %v2641_v46 = vpop.f32.mrf.mxu0 }
 0x265   : > { %2811 = vmatmul.bf16.gmra.mxu2 %v6180_v61  ;;  %v5560_v56 = vadd.f32 %v2641_v46, %v5447_v63 }
 0x266   : > { %v2861_v45 = vpop.f32.mrf.mxu3 }
 0x268   : > { %v2772_v3 = vpop.f32.mrf.mxu2  ;;  %v2688_v21 = vpop.f32.mrf.mxu1 }
 0x269   : > { %v2773_v13 = vadd.f32 %v2772_v3, %v2684_v10  ;;  %v2689_v59 = vadd.f32 %v2688_v21, %v5413_v53 }
 0x26b   : > { %2727 = vmatmul.bf16.gmra.mxu1 %v6181_v60  ;;  %v5564_v22 = vadd.f32 %v2861_v45, %v2773_v13 }
 0x26c   : > { %v2644_v35 = vpop.f32.mrf.mxu0 }
 0x26d   : > { %v5567_v51 = vadd.f32 %v2644_v35, %v5457_v0 }
 0x26e   : > { %v2863_v57 = vpop.f32.mrf.mxu3 }
 0x26f   : > { %2959 = vmatmul.bf16.gmra.mxu0 %v5107_v55 }
 0x270   : > { %v2774_v63 = vpop.f32.mrf.mxu2  ;;  %v2690_v5 = vpop.f32.mrf.mxu1 }
 0x271   : > { %v2775_v50 = vadd.f32 %v2774_v63, %v2686_v4  ;;  %v5571_v10 = vadd.f32 %v2690_v5, %v5421_v17  ;;  %v4486_v17 = vld [vmem:[%s6108_s5 + $0x20] sm:$0xff]  ;;  %v1249_v63 = vld [vmem:[#allocation2 + $0xc8] sm:$0xf] }
 0x272   : > { %3223 = vmatpush.bf16.msra.mxu2 %v4486_v17 }
 0x273   : > { %2905 = vmatmul.bf16.gmra.mxu3 %v5297_v52  ;;  %v5574_v53 = vadd.f32 %v2863_v57, %v2775_v50 }
 0x274   : > { %v2646_v6 = vpop.f32.mrf.mxu0 }
 0x275   : > { %2816 = vmatmul.bf16.gmra.mxu2 %v6182_v7  ;;  %v5578_v0 = vadd.f32 %v2646_v6, %v5464_v54 }
 0x276   : > { %v2866_v46 = vpop.f32.mrf.mxu3 }
 0x278   : > { %v2777_v45 = vpop.f32.mrf.mxu2  ;;  %v2693_v55 = vpop.f32.mrf.mxu1 }
 0x279   : > { %v2778_v3 = vadd.f32 %v2777_v45, %v2689_v59  ;;  %v2694_v21 = vadd.f32 %v2693_v55, %v5428_v62 }
 0x27b   : > { %2732 = vmatmul.bf16.gmra.mxu1 %v5321_v15  ;;  %v5585_v52 = vadd.f32 %v2866_v46, %v2778_v3  ;;  %v1678_v46 = vunpack.c.l.b16 %v1249_v63  ;;  %v1683_v3 = vshll.u32 %v5455_v44, 16 }
 0x27c   : > { %v2649_v4 = vpop.f32.mrf.mxu0 }
 0x27d   : > { %v5588_v13 = vadd.f32 %v2649_v4, %v5475_v30  ;;  %v1681_v4 = vshrl.u32 %v5455_v44, 16 }
 0x27e   : > { %v5590_v54 = vpop.f32.mrf.mxu3 }
 0x27f   : > { %2964 = vmatmul.bf16.gmra.mxu0 %v5132_v31 }
 0x280   : > { %v5593_v59 = vpop.f32.mrf.mxu2  ;;  %v2695_v62 = vpop.f32.mrf.mxu1 }
 0x281   : > { %v5596_v35 = vadd.f32 %v2695_v62, %v5436_v25  ;;  %v1685_v62 = vrot.slane %v1683_v3, 1 }
 0x283   : > { %2910 = vmatmul.bf16.gmra.mxu3 %v5334_v9 }
 0x284   : > { %v2651_v57 = vpop.f32.mrf.mxu0 }
 0x285   : > { %2821 = vmatmul.bf16.gmra.mxu2 %v5315_v34  ;;  %v5601_v32 = vadd.f32 %v2651_v57, %v5482_v1  ;;  %v1679_v1 = vpack.c.b16 %v1678_v46, %v1678_v46 }
 0x286   : > { %v2871_v30 = vpop.f32.mrf.mxu3 }
 0x287   : > { %v1688_v57 = vshll.u32 %v1679_v1, 16 }
 0x288   : > { %v2782_v5 = vpop.f32.mrf.mxu2  ;;  %v2698_v50 = vpop.f32.mrf.mxu1 }
 0x289   : > { %v2783_v6 = vadd.f32 %v2782_v5, %v2694_v21  ;;  %v2699_v31 = vadd.f32 %v2698_v50, %v5443_v8  ;;  %v1690_v5 = vrot.slane %v1688_v57, 1 }
 0x28b   : > { %2737 = vmatmul.bf16.gmra.mxu1 %v5358_v38  ;;  %v5605_v25 = vadd.f32 %v2871_v30, %v2783_v6 }
 0x28c   : > { %v2654_v45 = vpop.f32.mrf.mxu0 }
 0x28d   : > { %v5608_v9 = vadd.f32 %v2654_v45, %v5494_v2  ;;  %v4485_v45 = vld [vmem:[%s6108_s5 + $0x18] sm:$0xff] }
 0x28e   : > { %v5610_v55 = vpop.f32.mrf.mxu3  ;;  %3224 = vmatpush.bf16.msra.mxu2 %v4485_v45 }
 0x28f   : > { %2969 = vmatmul.bf16.gmra.mxu0 %v6172_v58  ;;  %v1686_v58 = vor.u32 %v1685_v62, %v1681_v4 }
 0x290   : > { %v5614_v17 = vpop.f32.mrf.mxu2  ;;  %v2700_v21 = vpop.f32.mrf.mxu1 }
 0x291   : > { %v5617_v8 = vadd.f32 %v2700_v21, %v5451_v12  ;;  %v5630_v3 = vsel %vm1397_vm2, %v1686_v58, %v1690_v5  ;;  %v1694_v58 = vrot.slane %v1679_v1, 1 }
 0x293   : > { %2915 = vmatmul.bf16.gmra.mxu3 %v5455_v44 }
 0x294   : > { %v2656_v2 = vpop.f32.mrf.mxu0 }
 0x295   : > { %2826 = vmatmul.bf16.gmra.mxu2 %v5352_v29  ;;  %v5623_v30 = vadd.f32 %v2656_v2, %v5503_v40  ;;  %v1693_v2 = vrot.slane %v5455_v44, 1  ;;  %v6185_v44 = vld [vmem:[#allocation28_spill] sm:$0xff] }
 0x296   : > { %v2876_v63 = vpop.f32.mrf.mxu3 }
 0x298   : > { %v2787_v50 = vpop.f32.mrf.mxu2  ;;  %v2703_v6 = vpop.f32.mrf.mxu1 }
 0x299   : > { %v2788_v46 = vadd.f32 %v2787_v50, %v2699_v31  ;;  %v2704_v12 = vadd.f32 %v2703_v6, %v5460_v26  ;;  %v5641_v26 = vld [vmem:[#allocation2 + $0xcc] sm:$0xff] }
 0x29b   : > { %2742 = vmatmul.bf16.gmra.mxu1 %v5630_v3  ;;  %v5633_v40 = vadd.f32 %v2876_v63, %v2788_v46 }
 0x29c   : > { %v2935_v21 = vpop.f32.mrf.mxu0 }
 0x29d   : > { %v5636_v4 = vadd.f32 %v2935_v21, %v5514_v23  ;;  %v5651_v23 = vsel %vm1606_vm3, %v1693_v2, %v1694_v58  ;;  %v6186_v21 = vld [vmem:[#allocation9_spill] sm:$0xff] }
 0x29e   : > { %v5638_v62 = vpop.f32.mrf.mxu3 }
 0x29f   : > { %6183 = vst [vmem:[#allocation17_spill] sm:$0xff] %v5638_v62  ;;  %2974 = vmatmul.bf16.gmra.mxu0 %v6175_v14 }
 0x2a0   : > { %v5643_v31 = vpop.f32.mrf.mxu2  ;;  %v2705_v57 = vpop.f32.mrf.mxu1 }
 0x2a1   : > { %v5647_v5 = vadd.f32 %v2705_v57, %v5468_v49 }
 0x2a3   : > { %6184 = vst [vmem:[#allocation19_spill] sm:$0xff] %v5647_v5  ;;  %2920 = vmatmul.bf16.gmra.mxu3 %v5641_v26  ;;  %v6187_v5 = vld [vmem:[#allocation29_spill] sm:$0xff] }
 0x2a4   : > { %v2937_v63 = vpop.f32.mrf.mxu0 }
 0x2a5   : > { %2831 = vmatmul.bf16.gmra.mxu2 %v5651_v23  ;;  %v5655_v14 = vadd.f32 %v2937_v63, %v5521_v20 }
 0x2a6   : > { %v2881_v50 = vpop.f32.mrf.mxu3 }
 0x2a8   : > { %v2792_v6 = vpop.f32.mrf.mxu2  ;;  %v2708_v46 = vpop.f32.mrf.mxu1 }
 0x2a9   : > { %v2793_v45 = vadd.f32 %v2792_v6, %v2704_v12  ;;  %v2709_v1 = vadd.f32 %v2708_v46, %v6185_v44 }
 0x2ab   : > { %3023 = vmatmul.bf16.vlgmr.msra.gmra.mxu1 %v6186_v21  ;;  %v5659_v49 = vadd.f32 %v2881_v50, %v2793_v45  ;;  %v6188_v21 = vld [vmem:[#allocation10_spill] sm:$0xff] }
 0x2ac   : > { %v2940_v57 = vpop.f32.mrf.mxu0 }
 0x2ad   : > { %v5662_v2 = vadd.f32 %v2940_v57, %v5529_v37 }
 0x2ae   : > { %v5664_v58 = vpop.f32.mrf.mxu3 }
 0x2af   : > { %2979 = vmatmul.bf16.gmra.mxu0 %v6177_v24  ;;  %v4484_v24 = vld [vmem:[%s6108_s5 + $0x10] sm:$0xff] }
 0x2b0   : > { %v5667_v20 = vpop.f32.mrf.mxu2  ;;  %v2710_v63 = vpop.f32.mrf.mxu1  ;;  %3225 = vmatpush.bf16.msra.mxu2 %v4484_v24 }
 0x2b1   : > { %v5670_v62 = vadd.f32 %v2710_v63, %v6187_v5 }
 0x2b4   : > { %v2942_v12 = vpop.f32.mrf.mxu0 }
 0x2b5   : > { %v5673_v6 = vadd.f32 %v2942_v12, %v5537_v11 }
 0x2b6   : > { %v2886_v50 = vpop.f32.mrf.mxu3 }
 0x2b8   : > { %v2797_v46 = vpop.f32.mrf.mxu2  ;;  %v2713_v45 = vpop.f32.mrf.mxu1 }
 0x2b9   : > { %v2798_v44 = vadd.f32 %v2797_v46, %v2709_v1  ;;  %v2714_v37 = vadd.f32 %v2713_v45, %v5498_v47 }
 0x2bb   : > { %3028 = vmatmul.bf16.gmra.mxu1 %v6188_v21  ;;  %v5680_v57 = vadd.f32 %v2886_v50, %v2798_v44 }
 0x2bc   : > { %v2945_v5 = vpop.f32.mrf.mxu0 }
 0x2bd   : > { %6189 = vst [vmem:[#allocation16_spill] sm:$0xff] %v5680_v57  ;;  %v5683_v63 = vadd.f32 %v2945_v5, %v5548_v27  ;;  %v6191_v5 = vld [vmem:[#allocation11_spill] sm:$0xff] }
 0x2be   : > { %v5685_v11 = vpop.f32.mrf.mxu3 }
 0x2bf   : > { %6190 = vst [vmem:[#allocation18_spill] sm:$0xff] %v5685_v11  ;;  %2984 = vmatmul.bf16.gmra.mxu0 %v6179_v18 }
 0x2c0   : > { %v5688_v1 = vpop.f32.mrf.mxu2  ;;  %v2715_v47 = vpop.f32.mrf.mxu1 }
 0x2c1   : > { %v5691_v12 = vadd.f32 %v2715_v47, %v5507_v16 }
 0x2c4   : > { %v2947_v46 = vpop.f32.mrf.mxu0 }
 0x2c5   : > { %v5694_v45 = vadd.f32 %v2947_v46, %v5556_v48 }
 0x2c6   : > { %v2891_v50 = vpop.f32.mrf.mxu3 }
 0x2c8   : > { %v2802_v44 = vpop.f32.mrf.mxu2  ;;  %v2718_v24 = vpop.f32.mrf.mxu1 }
 0x2c9   : > { %v2803_v21 = vadd.f32 %v2802_v44, %v2714_v37  ;;  %v2719_v27 = vadd.f32 %v2718_v24, %v5517_v41 }
 0x2cb   : > { %3033 = vmatmul.bf16.gmra.mxu1 %v6191_v5  ;;  %v5698_v11 = vadd.f32 %v2891_v50, %v2803_v21  ;;  %v6193_v5 = vld [vmem:[#allocation12_spill] sm:$0xff] }
 0x2cc   : > { %v2950_v18 = vpop.f32.mrf.mxu0 }
 0x2cd   : > { %v5701_v57 = vadd.f32 %v2950_v18, %v5564_v22 }
 0x2ce   : > { %v5703_v16 = vpop.f32.mrf.mxu3 }
 0x2cf   : > { %2989 = vmatmul.bf16.gmra.mxu0 %v6181_v60  ;;  %v4483_v60 = vld [vmem:[%s6108_s5 + $0x8] sm:$0xff] }
 0x2d0   : > { %v5706_v48 = vpop.f32.mrf.mxu2  ;;  %v2720_v47 = vpop.f32.mrf.mxu1  ;;  %3226 = vmatpush.bf16.msra.mxu2 %v4483_v60 }
 0x2d1   : > { %v5709_v46 = vadd.f32 %v2720_v47, %v5525_v36 }
 0x2d3   : > { %6192 = vst [vmem:[#allocation21_spill] sm:$0xff] %v5709_v46 }
 0x2d4   : > { %v2952_v37 = vpop.f32.mrf.mxu0 }
 0x2d5   : > { %v5712_v41 = vadd.f32 %v2952_v37, %v5574_v53 }
 0x2d6   : > { %v2896_v50 = vpop.f32.mrf.mxu3 }
 0x2d8   : > { %v2807_v44 = vpop.f32.mrf.mxu2  ;;  %v2723_v24 = vpop.f32.mrf.mxu1 }
 0x2d9   : > { %v2808_v21 = vadd.f32 %v2807_v44, %v2719_v27  ;;  %v2724_v22 = vadd.f32 %v2723_v24, %v5532_v39 }
 0x2db   : > { %3038 = vmatmul.bf16.gmra.mxu1 %v6193_v5  ;;  %v5719_v18 = vadd.f32 %v2896_v50, %v2808_v21  ;;  %v6196_v5 = vld [vmem:[#allocation13_spill] sm:$0xff] }
 0x2de   : > { %v5721_v36 = vpop.f32.mrf.mxu3 }
 0x2df   : > { %6194 = vst [vmem:[#allocation20_spill] sm:$0xff] %v5721_v36  ;;  %2994 = vmatmul.bf16.gmra.mxu0 %v5321_v15 }
 0x2e0   : > { %v5724_v53 = vpop.f32.mrf.mxu2  ;;  %v2725_v47 = vpop.f32.mrf.mxu1 }
 0x2e1   : > { %v5727_v27 = vadd.f32 %v2725_v47, %v5541_v42 }
 0x2e3   : > { %6195 = vst [vmem:[#allocation23_spill] sm:$0xff] %v5727_v27 }
 0x2e6   : > { %v2901_v39 = vpop.f32.mrf.mxu3 }
 0x2e8   : > { %v2812_v37 = vpop.f32.mrf.mxu2  ;;  %v2728_v44 = vpop.f32.mrf.mxu1 }
 0x2e9   : > { %v2813_v24 = vadd.f32 %v2812_v37, %v2724_v22  ;;  %v2729_v46 = vadd.f32 %v2728_v44, %v5551_v43  ;;  %v1252_v37 = vld [vmem:[#allocation2 + $0xd4] sm:$0xf]  ;;  %v6199_v44 = vld [vmem:[#allocation14_spill] sm:$0xff] }
 0x2eb   : > { %3043 = vmatmul.bf16.gmra.mxu1 %v6196_v5  ;;  %v5731_v50 = vadd.f32 %v2901_v39, %v2813_v24  ;;  %v4482_v39 = vld [vmem:[%s6108_s5] sm:$0xff]  ;;  %v1704_v24 = vunpack.c.l.b16 %v1252_v37 }
 0x2ec   : > { %3227 = vmatpush.bf16.msra.mxu2 %v4482_v39 }
 0x2ee   : > { %v5733_v21 = vpop.f32.mrf.mxu3 }
 0x2ef   : > { %6197 = vst [vmem:[#allocation22_spill] sm:$0xff] %v5733_v21  ;;  %2999 = vmatmul.bf16.gmra.mxu0 %v5358_v38 }
 0x2f0   : > { %v5736_v15 = vpop.f32.mrf.mxu2  ;;  %v2730_v60 = vpop.f32.mrf.mxu1 }
 0x2f1   : > { %v5739_v42 = vadd.f32 %v2730_v60, %v5560_v56  ;;  %v1707_v60 = vshrl.u32 %v5641_v26, 16 }
 0x2f3   : > { %6198 = vst [vmem:[#allocation25_spill] sm:$0xff] %v5739_v42 }
 0x2f6   : > { %v2906_v47 = vpop.f32.mrf.mxu3 }
 0x2f8   : > { %v2817_v27 = vpop.f32.mrf.mxu2  ;;  %v2733_v36 = vpop.f32.mrf.mxu1 }
 0x2f9   : > { %v2818_v22 = vadd.f32 %v2817_v27, %v2729_v46  ;;  %v2734_v43 = vadd.f32 %v2733_v36, %v5567_v51  ;;  %v5753_v27 = vpack.c.b16 %v1704_v24, %v1704_v24  ;;  %v1709_v51 = vshll.u32 %v5641_v26, 16 }
 0x2fb   : > { %3048 = vmatmul.bf16.gmra.mxu1 %v6199_v44  ;;  %v5746_v38 = vadd.f32 %v2906_v47, %v2818_v22  ;;  %v1711_v39 = vrot.slane %v1709_v51, 1  ;;  %v1714_v47 = vshll.u32 %v5753_v27, 16 }
 0x2fd   : > { %6200 = vst [vmem:[#allocation24_spill] sm:$0xff] %v5746_v38 }
 0x2fe   : > { %v5748_v5 = vpop.f32.mrf.mxu3 }
 0x2ff   : > { %6201 = vst [vmem:[#allocation27_spill] sm:$0xff] %v5748_v5  ;;  %3004 = vmatmul.bf16.gmra.mxu0 %v5630_v3  ;;  %v1712_v3 = vor.u32 %v1711_v39, %v1707_v60  ;;  %v1716_v5 = vrot.slane %v1714_v47, 1  ;;  %v4490_v60 = vld [vmem:[%s4827_s23] sm:$0xff] }
 0x300   : > { %v5751_v56 = vpop.f32.mrf.mxu2  ;;  %v2735_v46 = vpop.f32.mrf.mxu1  ;;  %4354 = vmatmul.msk.bf16.vlgmr.msra.gmra.mxu3 %vm549_vm1, %v4490_v60 }
 0x301   : > { %6202 = vst [vmem:[#allocation26_spill] sm:$0xff] %v5751_v56  ;;  %v5757_v36 = vadd.f32 %v2735_v46, %v5578_v0  ;;  %v6204_v56 = vld [vmem:[#allocation15_spill] sm:$0xff]  ;;  %v1717_v0 = vsel %vm1397_vm2, %v1712_v3, %v1716_v5 }
 0x303   : > { %6203 = vst [vmem:[#allocation28_spill] sm:$0xff] %v5757_v36 }
 0x306   : > { %v2911_v22 = vpop.f32.mrf.mxu3 }
 0x308   : > { %v2822_v37 = vpop.f32.mrf.mxu2  ;;  %v2738_v44 = vpop.f32.mrf.mxu1 }
 0x309   : > { %v2823_v38 = vadd.f32 %v2822_v37, %v2734_v43  ;;  %v2739_v24 = vadd.f32 %v2738_v44, %v5588_v13  ;;  %v4491_v37 = vld [vmem:[%s4827_s23 + $0x8] sm:$0xff] }
 0x30b   : > { %3053 = vmatmul.bf16.gmra.mxu1 %v6204_v56  ;;  %v5763_v42 = vadd.f32 %v2911_v22, %v2823_v38 }
 0x30e   : > { %v5766_v46 = vpop.f32.mrf.mxu3 }
 0x30f   : > { %3009 = vmatmul.bf16.gmra.mxu0 %v1717_v0 }
 0x310   : > { %v5768_v51 = vpop.f32.mrf.mxu2  ;;  %v2740_v36 = vpop.f32.mrf.mxu1  ;;  %4355 = vmatmul.msk.bf16.gmra.mxu3 %vm549_vm1, %v4491_v37 }
 0x311   : > { %v5771_v21 = vadd.f32 %v2740_v36, %v5601_v32 }
 0x316   : > { %v2916_v13 = vpop.f32.mrf.mxu3 }
 0x318   : > { %v2827_v43 = vpop.f32.mrf.mxu2  ;;  %v2743_v56 = vpop.f32.mrf.mxu1 }
 0x319   : > { %v2828_v38 = vadd.f32 %v2827_v43, %v2739_v24  ;;  %v2744_v39 = vadd.f32 %v2743_v56, %v5608_v9  ;;  %v4492_v43 = vld [vmem:[%s4827_s23 + $0x10] sm:$0xff] }
 0x31b   : > { %3058 = vmatmul.bf16.gmra.mxu1 %v6174_v33  ;;  %v5777_v5 = vadd.f32 %v2916_v13, %v2828_v38  ;;  %v2955_v38 = vpop.f32.mrf.mxu0 }
 0x31e   : > { %v5779_v47 = vpop.f32.mrf.mxu3 }
 0x320   : > { %v5781_v22 = vpop.f32.mrf.mxu2  ;;  %v2745_v32 = vpop.f32.mrf.mxu1  ;;  %4356 = vmatmul.msk.bf16.gmra.mxu3 %vm549_vm1, %v4492_v43  ;;  %v4494_v43 = vld [vmem:[%s4827_s23 + $0x20] sm:$0xff] }
 0x321   : > { %v5784_v36 = vadd.f32 %v2745_v32, %v5623_v30 }
 0x326   : > { %v2921_v44 = vpop.f32.mrf.mxu3 }
 0x328   : > { %v2832_v3 = vpop.f32.mrf.mxu2  ;;  %v3024_v24 = vpop.f32.mrf.mxu1 }
 0x329   : > { %v2833_v9 = vadd.f32 %v2832_v3, %v2744_v39  ;;  %v3025_v33 = vadd.f32 %v3024_v24, %v5636_v4  ;;  %v2957_v39 = vpop.f32.mrf.mxu0  ;;  %v4493_v3 = vld [vmem:[%s4827_s23 + $0x18] sm:$0xff] }
 0x32b   : > { %v5788_v0 = vadd.f32 %v2921_v44, %v2833_v9  ;;  %3063 = vmatmul.bf16.gmra.mxu1 %v6176_v28  ;;  %v3104_v30 = vmax.f32 %v3025_v33, 0.0 }
 0x330   : > { %v3026_v60 = vpop.f32.mrf.mxu1  ;;  %4357 = vmatmul.msk.bf16.gmra.mxu3 %vm549_vm1, %v4493_v3 }
 0x331   : > { %v3027_v13 = vadd.f32 %v3026_v60, %v5655_v14  ;;  %v2960_v60 = vpop.f32.mrf.mxu0 }
 0x333   : > { %v3105_v56 = vmax.f32 %v3027_v13, 0.0 }
 0x335   : > { %v3136_v32 = vpack.c.bf16 %v3105_v56, %v3104_v30 }
 0x337   : > { %3228 = vmatmul.bf16.vlgmr.msra.gmra.mxu2 %v3136_v32 }
 0x338   : > { %v3029_v37 = vpop.f32.mrf.mxu1 }
 0x339   : > { %v3030_v28 = vadd.f32 %v3029_v37, %v5662_v2  ;;  %v2962_v30 = vpop.f32.mrf.mxu0 }
 0x33b   : > { %3068 = vmatmul.bf16.gmra.mxu1 %v6178_v19  ;;  %v3106_v14 = vmax.f32 %v3030_v28, 0.0 }
 0x340   : > { %v3031_v4 = vpop.f32.mrf.mxu1  ;;  %4358 = vmatmul.msk.bf16.gmra.mxu3 %vm549_vm1, %v4494_v43 }
 0x341   : > { %v3032_v44 = vadd.f32 %v3031_v4, %v5673_v6  ;;  %v2965_v28 = vpop.f32.mrf.mxu0 }
 0x343   : > { %v3107_v24 = vmax.f32 %v3032_v44, 0.0  ;;  %v4495_v44 = vld [vmem:[%s4827_s23 + $0x28] sm:$0xff] }
 0x345   : > { %v3137_v9 = vpack.c.bf16 %v3107_v24, %v3106_v14 }
 0x347   : > { %3233 = vmatmul.bf16.gmra.mxu2 %v3137_v9 }
 0x348   : > { %v3034_v33 = vpop.f32.mrf.mxu1 }
 0x349   : > { %v3035_v19 = vadd.f32 %v3034_v33, %v5683_v63  ;;  %v2967_v24 = vpop.f32.mrf.mxu0  ;;  %v2780_v33 = vadd.f32 %v5593_v59, %v5571_v10 }
 0x34b   : > { %3073 = vmatmul.bf16.gmra.mxu1 %v6180_v61  ;;  %v3108_v6 = vmax.f32 %v3035_v19, 0.0 }
 0x350   : > { %v3036_v13 = vpop.f32.mrf.mxu1  ;;  %4359 = vmatmul.msk.bf16.gmra.mxu3 %vm549_vm1, %v4495_v44 }
 0x351   : > { %v3037_v2 = vadd.f32 %v3036_v13, %v5694_v45 }
 0x353   : > { %v3109_v56 = vmax.f32 %v3037_v2, 0.0  ;;  %v2970_v2 = vpop.f32.mrf.mxu0 }
 0x355   : > { %v3138_v32 = vpack.c.bf16 %v3109_v56, %v3108_v6  ;;  %v4496_v6 = vld [vmem:[%s4827_s23 + $0x30] sm:$0xff] }
 0x357   : > { %3238 = vmatmul.bf16.gmra.mxu2 %v3138_v32 }
 0x358   : > { %v3039_v37 = vpop.f32.mrf.mxu1 }
 0x359   : > { %v3040_v61 = vadd.f32 %v3039_v37, %v5701_v57  ;;  %v2869_v57 = vadd.f32 %v5590_v54, %v2780_v33  ;;  %v2961_v54 = vadd.f32 %v2960_v60, %v5605_v25  ;;  %v2966_v25 = vadd.f32 %v2965_v28, %v5633_v40 }
 0x35b   : > { %3078 = vmatmul.bf16.gmra.mxu1 %v6182_v7  ;;  %v3110_v3 = vmax.f32 %v3040_v61, 0.0  ;;  %v2956_v7 = vadd.f32 %v2955_v38, %v5585_v52  ;;  %v2972_v52 = vpop.f32.mrf.mxu0 }
 0x360   : > { %v3041_v4 = vpop.f32.mrf.mxu1  ;;  %4360 = vmatmul.msk.bf16.gmra.mxu3 %vm549_vm1, %v4496_v6 }
 0x361   : > { %v3042_v63 = vadd.f32 %v3041_v4, %v5712_v41  ;;  %v2958_v41 = vadd.f32 %v2957_v39, %v2869_v57 }
 0x363   : > { %v3111_v45 = vmax.f32 %v3042_v63, 0.0  ;;  %v4497_v63 = vld [vmem:[%s4827_s23 + $0x38] sm:$0xff] }
 0x365   : > { %v3139_v14 = vpack.c.bf16 %v3111_v45, %v3110_v3  ;;  %v2975_v45 = vpop.f32.mrf.mxu0 }
 0x367   : > { %3243 = vmatmul.bf16.gmra.mxu2 %v3139_v14 }
 0x368   : > { %v3044_v9 = vpop.f32.mrf.mxu1 }
 0x369   : > { %v3045_v19 = vadd.f32 %v3044_v9, %v2956_v7  ;;  %v5829_v9 = vpop.f32.mrf.mxu3 }
 0x36b   : > { %3083 = vmatmul.bf16.gmra.mxu1 %v5315_v34  ;;  %v3112_v56 = vmax.f32 %v3045_v19, 0.0  ;;  %v2785_v34 = vadd.f32 %v5614_v17, %v5596_v35 }
 0x36d   : > { %v2874_v59 = vadd.f32 %v5610_v55, %v2785_v34  ;;  %v6205_v55 = vld [vmem:[#allocation17_spill] sm:$0xff] }
 0x36f   : > { %v2963_v38 = vadd.f32 %v2962_v30, %v2874_v59  ;;  %v2977_v30 = vpop.f32.mrf.mxu0  ;;  %v4499_v59 = vld [vmem:[%s4827_s23 + $0x48] sm:$0xff] }
 0x370   : > { %v3046_v13 = vpop.f32.mrf.mxu1  ;;  %4361 = vmatmul.msk.bf16.gmra.mxu3 %vm549_vm1, %v4497_v63 }
 0x371   : > { %v3047_v43 = vadd.f32 %v3046_v13, %v2958_v41  ;;  %v4498_v41 = vld [vmem:[%s4827_s23 + $0x40] sm:$0xff] }
 0x373   : > { %v3113_v32 = vmax.f32 %v3047_v43, 0.0  ;;  %v1719_v43 = vrot.slane %v5641_v26, 1 }
 0x375   : > { %v3140_v37 = vpack.c.bf16 %v3113_v32, %v3112_v56  ;;  %v2971_v32 = vadd.f32 %v2970_v2, %v5659_v49  ;;  %v2800_v49 = vadd.f32 %v5688_v1, %v5670_v62 }
 0x377   : > { %3248 = vmatmul.bf16.gmra.mxu2 %v3140_v37  ;;  %v2980_v56 = vpop.f32.mrf.mxu0 }
 0x378   : > { %v3049_v10 = vpop.f32.mrf.mxu1 }
 0x379   : > { %v3050_v39 = vadd.f32 %v3049_v10, %v2961_v54 }
 0x37b   : > { %3088 = vmatmul.bf16.gmra.mxu1 %v5352_v29  ;;  %v3114_v44 = vmax.f32 %v3050_v39, 0.0  ;;  %v2790_v29 = vadd.f32 %v5643_v31, %v5617_v8  ;;  %v1720_v8 = vrot.slane %v5753_v27, 1 }
 0x37d   : > { %v2879_v17 = vadd.f32 %v6205_v55, %v2790_v29  ;;  %v1721_v28 = vsel %vm1606_vm3, %v1719_v43, %v1720_v8 }
 0x37f   : > { %v2968_v60 = vadd.f32 %v2967_v24, %v2879_v17  ;;  %v6206_v24 = vld [vmem:[#allocation19_spill] sm:$0xff]  ;;  %v5848_v17 = vpop.f32.mrf.mxu2 }
 0x380   : > { %v3051_v61 = vpop.f32.mrf.mxu1  ;;  %4362 = vmatmul.msk.bf16.gmra.mxu3 %vm549_vm1, %v4498_v41  ;;  %v2795_v6 = vadd.f32 %v5667_v20, %v6206_v24 }
 0x381   : > { %v3052_v4 = vadd.f32 %v3051_v61, %v2963_v38  ;;  %v2982_v38 = vpop.f32.mrf.mxu0 }
 0x382   : > { %v2884_v26 = vadd.f32 %v5664_v58, %v2795_v6  ;;  %v6207_v58 = vld [vmem:[#allocation16_spill] sm:$0xff] }
 0x383   : > { %v3115_v3 = vmax.f32 %v3052_v4, 0.0  ;;  %v3521_v31 = vpop.f32.mrf.mxu3  ;;  %v2976_v2 = vadd.f32 %v2975_v45, %v6207_v58  ;;  %v5855_v45 = vld [vmem:[%s6111_s8] ss:$0 sm:$0xff] }
 0x384   : > { %v2973_v37 = vadd.f32 %v2972_v52, %v2884_v26  ;;  %v6208_v52 = vld [vmem:[#allocation18_spill] sm:$0xff]  ;;  %v3522_v43 = vadd.f32 %v5855_v45, %v3521_v31 }
 0x385   : > { %v3141_v14 = vpack.c.bf16 %v3115_v3, %v3114_v44  ;;  %v2889_v44 = vadd.f32 %v6208_v52, %v2800_v49 }
 0x387   : > { %3253 = vmatmul.bf16.gmra.mxu2 %v3141_v14  ;;  %v2978_v14 = vadd.f32 %v2977_v30, %v2889_v44  ;;  %v5860_v30 = vld [vmem:[%s6109_s6] ss:$0 sm:$0xff] }
 0x388   : > { %v3054_v35 = vpop.f32.mrf.mxu1 }
 0x389   : > { %v3055_v33 = vadd.f32 %v3054_v35, %v2966_v25  ;;  %v2985_v3 = vpop.f32.mrf.mxu0 }
 0x38b   : > { %3093 = vmatmul.bf16.gmra.mxu1 %v5651_v23  ;;  %v3116_v19 = vmax.f32 %v3055_v33, 0.0  ;;  %v3523_v10 = vpop.f32.mrf.mxu3 }
 0x390   : > { %v3056_v7 = vpop.f32.mrf.mxu1  ;;  %4363 = vmatmul.msk.bf16.gmra.mxu3 %vm549_vm1, %v4499_v59 }
 0x391   : > { %v3057_v57 = vadd.f32 %v3056_v7, %v2968_v60  ;;  %v4500_v60 = vld [vmem:[%s4827_s23 + $0x50] sm:$0xff]  ;;  %v2987_v1 = vpop.f32.mrf.mxu0 }
 0x393   : > { %v3117_v13 = vmax.f32 %v3057_v57, 0.0  ;;  %v3526_v20 = vpop.f32.mrf.mxu3 }
 0x394   : > { %v3527_v44 = vadd.f32 %v5855_v45, %v3526_v20 }
 0x395   : > { %v3142_v40 = vpack.c.bf16 %v3117_v13, %v3116_v19  ;;  %v2805_v19 = vadd.f32 %v5706_v48, %v5691_v12 }
 0x397   : > { %3258 = vmatmul.bf16.gmra.mxu2 %v3142_v40  ;;  %v2981_v40 = vadd.f32 %v2980_v56, %v5698_v11  ;;  %v3524_v56 = vadd.f32 %v5855_v45, %v3523_v10 }
 0x398   : > { %v3059_v23 = vpop.f32.mrf.mxu1 }
 0x399   : > { %v3060_v27 = vadd.f32 %v3059_v23, %v2971_v32  ;;  %v2894_v23 = vadd.f32 %v5703_v16, %v2805_v19  ;;  %v2990_v48 = vpop.f32.mrf.mxu0 }
 0x39b   : > { %3098 = vmatmul.bf16.gmra.mxu1 %v1721_v28  ;;  %v3118_v39 = vmax.f32 %v3060_v27, 0.0  ;;  %v5846_v29 = vpop.f32.mrf.mxu3  ;;  %v2983_v24 = vadd.f32 %v2982_v38, %v2894_v23 }
 0x3a0   : > { %v3061_v34 = vpop.f32.mrf.mxu1  ;;  %4364 = vmatmul.msk.bf16.gmra.mxu3 %vm549_vm1, %v4500_v60 }
 0x3a1   : > { %v3062_v54 = vadd.f32 %v3061_v34, %v2973_v37  ;;  %v4501_v34 = vld [vmem:[%s4827_s23 + $0x58] sm:$0xff]  ;;  %v2992_v52 = vpop.f32.mrf.mxu0 }
 0x3a3   : > { %v3119_v61 = vmax.f32 %v3062_v54, 0.0  ;;  %v5862_v57 = vpop.f32.mrf.mxu3 }
 0x3a5   : > { %v3143_v4 = vpack.c.bf16 %v3119_v61, %v3118_v39 }
 0x3a7   : > { %3263 = vmatmul.bf16.gmra.mxu2 %v3143_v4 }
 0x3a8   : > { %v3064_v63 = vpop.f32.mrf.mxu1 }
 0x3a9   : > { %v3065_v35 = vadd.f32 %v3064_v63, %v2976_v2  ;;  %v6209_v63 = vld [vmem:[#allocation21_spill] sm:$0xff] }
 0x3aa   : > { %v2810_v49 = vadd.f32 %v5724_v53, %v6209_v63 }
 0x3ab   : > { %v3120_v33 = vmax.f32 %v3065_v35, 0.0  ;;  %v5873_v26 = vpop.f32.mrf.mxu3  ;;  %v6210_v35 = vld [vmem:[#allocation20_spill] sm:$0xff] }
 0x3b0   : > { %v3066_v25 = vpop.f32.mrf.mxu1  ;;  %4365 = vmatmul.msk.bf16.gmra.mxu3 %vm549_vm1, %v4501_v34  ;;  %v2991_v34 = vadd.f32 %v2990_v48, %v5731_v50  ;;  %v3534_v48 = vadd.f32 %v5855_v45, %v5873_v26 }
 0x3b1   : > { %v3067_v55 = vadd.f32 %v3066_v25, %v2978_v14  ;;  %v2986_v14 = vadd.f32 %v2985_v3, %v5719_v18  ;;  %v2899_v25 = vadd.f32 %v6210_v35, %v2810_v49  ;;  %v2995_v3 = vpop.f32.mrf.mxu0 }
 0x3b3   : > { %v3121_v7 = vmax.f32 %v3067_v55, 0.0  ;;  %v5883_v61 = vpop.f32.mrf.mxu3  ;;  %v2988_v60 = vadd.f32 %v2987_v1, %v2899_v25  ;;  %v3529_v1 = vadd.f32 %v5855_v45, %v5846_v29 }
 0x3b5   : > { %v3144_v62 = vpack.c.bf16 %v3121_v7, %v3120_v33 }
 0x3b7   : > { %3268 = vmatmul.bf16.gmra.mxu2 %v3144_v62 }
 0x3b8   : > { %v3069_v41 = vpop.f32.mrf.mxu1 }
 0x3b9   : > { %v3070_v6 = vadd.f32 %v3069_v41, %v2981_v40 }
 0x3ba   : > { %v3229_v13 = vpop.f32.mrf.mxu2 }
 0x3bb   : > { %v3230_v8 = vadd.f32 %v5860_v30, %v3229_v13  ;;  %v3122_v54 = vmax.f32 %v3070_v6, 0.0  ;;  %v5893_v53 = vpop.f32.mrf.mxu3 }
 0x3bd   : > { %v3309_v28 = vmax.f32 %v3230_v8, 0.0 }
 0x3bf   : > { %v3601_v32 = vadd.f32 %v3522_v43, %v3309_v28  ;;  %v4502_v43 = vld [vmem:[%s4827_s23 + $0x60] sm:$0xff] }
 0x3c0   : > { %v3071_v12 = vpop.f32.mrf.mxu1  ;;  %4366 = vmatmul.msk.bf16.gmra.mxu3 %vm549_vm1, %v4502_v43 }
 0x3c1   : > { %v3633_v37 = vpack.c.bf16 %v3601_v32, %v3601_v32  ;;  %v3072_v31 = vadd.f32 %v3071_v12, %v2983_v24  ;;  %v6211_v32 = vld [vmem:[#allocation23_spill] sm:$0xff] }
 0x3c2   : > { %v3231_v27 = vpop.f32.mrf.mxu2  ;;  %v2815_v12 = vadd.f32 %v5736_v15, %v6211_v32 }
 0x3c3   : > { %3666 = vst.msk [vmem:[%s5876_s28] sm:$0xf] %vm3665_vm12, %v3633_v37  ;;  %v3123_v11 = vmax.f32 %v3072_v31, 0.0  ;;  %v3232_v16 = vadd.f32 %v5860_v30, %v3231_v27  ;;  %v5902_v24 = vpop.f32.mrf.mxu3  ;;  %v3532_v27 = vadd.f32 %v5855_v45, %v5862_v57 }
 0x3c5   : > { %v3145_v59 = vpack.c.bf16 %v3123_v11, %v3122_v54  ;;  %v3310_v38 = vmax.f32 %v3232_v16, 0.0  ;;  %v6212_v54 = vld [vmem:[#allocation22_spill] sm:$0xff] }
 0x3c6   : > { %v2904_v11 = vadd.f32 %v6212_v54, %v2815_v12 }
 0x3c7   : > { %v3602_v39 = vadd.f32 %v3524_v56, %v3310_v38  ;;  %3273 = vmatmul.bf16.gmra.mxu2 %v3145_v59  ;;  %v2997_v59 = vpop.f32.mrf.mxu0 }
 0x3c8   : > { %v3074_v4 = vpop.f32.mrf.mxu1  ;;  %v2993_v56 = vadd.f32 %v2992_v52, %v2904_v11 }
 0x3c9   : > { %v3634_v58 = vpack.c.bf16 %v3602_v39, %v3602_v39  ;;  %v3075_v33 = vadd.f32 %v3074_v4, %v2986_v14 }
 0x3ca   : > { %v3234_v2 = vpop.f32.mrf.mxu2 }
 0x3cb   : > { %3667 = vst.msk [vmem:[%s5876_s28 + $0x4] sm:$0xf] %vm3665_vm12, %v3634_v58  ;;  %v3235_v10 = vadd.f32 %v5860_v30, %v3234_v2  ;;  %v3124_v8 = vmax.f32 %v3075_v33, 0.0  ;;  %v5913_v39 = vpop.f32.mrf.mxu3  ;;  %v4503_v2 = vld [vmem:[%s4827_s23 + $0x68] sm:$0xff] }
 0x3cd   : > { %v3311_v55 = vmax.f32 %v3235_v10, 0.0 }
 0x3cf   : > { %v3603_v7 = vadd.f32 %v3527_v44, %v3311_v55  ;;  %v6213_v55 = vld [vmem:[#allocation25_spill] sm:$0xff] }
 0x3d0   : > { %v3076_v62 = vpop.f32.mrf.mxu1  ;;  %4367 = vmatmul.msk.bf16.gmra.mxu3 %vm549_vm1, %v4503_v2 }
 0x3d1   : > { %v3635_v41 = vpack.c.bf16 %v3603_v7, %v3603_v7  ;;  %v3077_v19 = vadd.f32 %v3076_v62, %v2988_v60  ;;  %v6214_v60 = vld [vmem:[#allocation26_spill] sm:$0xff]  ;;  %v3000_v7 = vpop.f32.mrf.mxu0 }
 0x3d2   : > { %v3236_v13 = vpop.f32.mrf.mxu2  ;;  %v2820_v33 = vadd.f32 %v6214_v60, %v6213_v55  ;;  %v4505_v60 = vld [vmem:[%s4827_s23 + $0x78] sm:$0xff] }
 0x3d3   : > { %3668 = vst.msk [vmem:[%s5876_s28 + $0x8] sm:$0xf] %vm3665_vm12, %v3635_v41  ;;  %v3125_v20 = vmax.f32 %v3077_v19, 0.0  ;;  %v3237_v18 = vadd.f32 %v5860_v30, %v3236_v13  ;;  %v5922_v35 = vpop.f32.mrf.mxu3  ;;  %v3537_v19 = vadd.f32 %v5855_v45, %v5883_v61  ;;  %v6215_v13 = vld [vmem:[#allocation24_spill] sm:$0xff] }
 0x3d4   : > { %v2996_v43 = vadd.f32 %v2995_v3, %v6215_v13 }
 0x3d5   : > { %v3146_v40 = vpack.c.bf16 %v3125_v20, %v3124_v8  ;;  %v3312_v23 = vmax.f32 %v3237_v18, 0.0  ;;  %v6216_v8 = vld [vmem:[#allocation27_spill] sm:$0xff] }
 0x3d6   : > { %v2909_v20 = vadd.f32 %v6216_v8, %v2820_v33 }
 0x3d7   : > { %v3604_v28 = vadd.f32 %v3529_v1, %v3312_v23  ;;  %3278 = vmatmul.bf16.gmra.mxu2 %v3146_v40 }
 0x3d8   : > { %v3079_v6 = vpop.f32.mrf.mxu1  ;;  %v2998_v1 = vadd.f32 %v2997_v59, %v2909_v20 }
 0x3d9   : > { %v3636_v37 = vpack.c.bf16 %v3604_v28, %v3604_v28  ;;  %v3080_v38 = vadd.f32 %v3079_v6, %v2991_v34  ;;  %v3539_v34 = vadd.f32 %v5855_v45, %v5893_v53 }
 0x3da   : > { %v3239_v31 = vpop.f32.mrf.mxu2 }
 0x3db   : > { %3669 = vst.msk [vmem:[%s5876_s28 + $0xc] sm:$0xf] %vm3665_vm12, %v3636_v37  ;;  %v3240_v29 = vadd.f32 %v5860_v30, %v3239_v31  ;;  %v3126_v57 = vmax.f32 %v3080_v38, 0.0  ;;  %v5933_v28 = vpop.f32.mrf.mxu3  ;;  %v4504_v31 = vld [vmem:[%s4827_s23 + $0x70] sm:$0xff]  ;;  %s4506_s23 = sshll.u32 %s4698_s12, 7  ;;  %s3699_s12 = scalar_lea.sflag [#allocation5], %s354_s25 }
 0x3dc   : > { %v6217_v38 = vld [vmem:[#allocation28_spill] sm:$0xff]  ;;  %s3713_s16 = scalar_lea.hbm %s6112_s9, %s4506_s23 }
 0x3dd   : > { %v3313_v16 = vmax.f32 %v3240_v29, 0.0  ;;  %s3716_s20 = sshll.u32 %s3713_s16, 4  ;;  %s3717_s20 = int_to_ptr.hbm [resolvable:$true] %s3716_s20 }
 0x3de   : > { %s4638_s24 = sshra.s32 %s3717_s20, 4  ;;  %s4639_s24 = int_to_ptr.hbm [resolvable:$true] %s4638_s24 }
 0x3df   : > { %v3605_v15 = vadd.f32 %v3532_v27, %v3313_v16  ;;  %v3002_v27 = vpop.f32.mrf.mxu0  ;;  %s4640_s26 = scalar_lea.hbm %s4639_s24, 128  ;;  %p4645_p5 = scmp.lt.s32.totalorder %s4639_s24, %s6112_s9 }
 0x3e0   : > { %v3081_v4 = vpop.f32.mrf.mxu1  ;;  %4368 = vmatmul.msk.bf16.gmra.mxu3 %vm549_vm1, %v4504_v31  ;;  %p4641_p1 = scmp.ne.s32.totalorder %s4639_s24, %s4640_s26  ;;  %p4646_p6 = scmp.lt.s32.totalorder %s4644_s29, %s4640_s26 }
 0x3e1   : > { %v3637_v63 = vpack.c.bf16 %v3605_v15, %v3605_v15  ;;  %v3082_v49 = vadd.f32 %v3081_v4, %v2993_v56  ;;  %v2825_v15 = vadd.f32 %v5768_v51, %v6217_v38 }
 0x3e2   : > { %v3241_v58 = vpop.f32.mrf.mxu2  ;;  %p4642_p2 = pnand %p4641_p1, %p4804_p4  ;;  %p4647_p7 = por %p4646_p6, %p4645_p5 }
 0x3e3   : > { %3670 = vst.msk [vmem:[%s5876_s28 + $0x10] sm:$0xf] %vm3665_vm12, %v3637_v63  ;;  %v3127_v44 = vmax.f32 %v3082_v49, 0.0  ;;  %v3242_v50 = vadd.f32 %v5860_v30, %v3241_v58  ;;  %v5942_v56 = vpop.f32.mrf.mxu3  ;;  %v3542_v49 = vadd.f32 %v5855_v45, %v5902_v24  ;;  %v3001_v58 = vadd.f32 %v3000_v7, %v5763_v42 }
 0x3e4   : > { %v2914_v2 = vadd.f32 %v5766_v46, %v2825_v15  ;;  %v3544_v46 = vadd.f32 %v5855_v45, %v5913_v39  ;;  %v3552_v15 = vadd.f32 %v5855_v45, %v5942_v56  ;;  %p4643_p3 = pneg %p4642_p2 }
 0x3e5   : > { %v3147_v52 = vpack.c.bf16 %v3127_v44, %v3126_v57  ;;  %v3314_v10 = vmax.f32 %v3242_v50, 0.0 }
 0x3e6   : > { %v3003_v50 = vadd.f32 %v3002_v27, %v2914_v2  ;;  %p4648_p9 = pnand %p4647_p7, %p4643_p3 }
 0x3e7   : > { %v3606_v14 = vadd.f32 %v3534_v48, %v3314_v10  ;;  %3283 = vmatmul.bf16.gmra.mxu2 %v3147_v52  ;;  %v3005_v57 = vpop.f32.mrf.mxu0 }
 0x3e8   : > { %v3084_v25 = vpop.f32.mrf.mxu1 }
 0x3e9   : > { %v3638_v62 = vpack.c.bf16 %v3606_v14, %v3606_v14  ;;  %v3085_v40 = vadd.f32 %v3084_v25, %v2996_v43  ;;  %v2830_v43 = vadd.f32 %v5781_v22, %v5771_v21 }
 0x3ea   : > { %v3244_v41 = vpop.f32.mrf.mxu2 }
 0x3eb   : > { %3671 = vst.msk [vmem:[%s5876_s28 + $0x14] sm:$0xf] %vm3665_vm12, %v3638_v62  ;;  %v3245_v26 = vadd.f32 %v5860_v30, %v3244_v41  ;;  %v3128_v61 = vmax.f32 %v3085_v40, 0.0  ;;  %v5953_v52 = vpop.f32.mrf.mxu3  ;;  %v2919_v40 = vadd.f32 %v5779_v47, %v2830_v43 }
 0x3ed   : > { %v3315_v18 = vmax.f32 %v3245_v26, 0.0 }
 0x3ef   : > { %v3607_v23 = vadd.f32 %v3537_v19, %v3315_v18  ;;  %v3007_v41 = vpop.f32.mrf.mxu0  ;;  %v3547_v18 = vadd.f32 %v5855_v45, %v5922_v35 }
 0x3f0   : > { %v3086_v6 = vpop.f32.mrf.mxu1  ;;  %4369 = vmatmul.msk.bf16.gmra.mxu3 %vm549_vm1, %v4505_v60 }
 0x3f1   : > { %v3639_v32 = vpack.c.bf16 %v3607_v23, %v3607_v23  ;;  %v3087_v12 = vadd.f32 %v3086_v6, %v2998_v1  ;;  %v3006_v1 = vadd.f32 %v3005_v57, %v5777_v5  ;;  %v3008_v6 = vadd.f32 %v3007_v41, %v2919_v40 }
 0x3f2   : > { %v3246_v37 = vpop.f32.mrf.mxu2  ;;  %v3549_v5 = vadd.f32 %v5855_v45, %v5933_v28 }
 0x3f3   : > { %3672 = vst.msk [vmem:[%s5876_s28 + $0x18] sm:$0xf] %vm3665_vm12, %v3639_v32  ;;  %v3129_v29 = vmax.f32 %v3087_v12, 0.0  ;;  %v3247_v3 = vadd.f32 %v5860_v30, %v3246_v37  ;;  %v3556_v13 = vpop.f32.mrf.mxu3 }
 0x3f5   : > { %v3148_v54 = vpack.c.bf16 %v3129_v29, %v3128_v61  ;;  %v3316_v11 = vmax.f32 %v3247_v3, 0.0 }
 0x3f7   : > { %v3608_v16 = vadd.f32 %v3539_v34, %v3316_v11  ;;  %3288 = vmatmul.bf16.gmra.mxu2 %v3148_v54  ;;  %v3010_v21 = vpop.f32.mrf.mxu0 }
 0x3f8   : > { %v3089_v59 = vpop.f32.mrf.mxu1 }
 0x3f9   : > { %v3640_v4 = vpack.c.bf16 %v3608_v16, %v3608_v16  ;;  %v3090_v48 = vadd.f32 %v3089_v59, %v3001_v58  ;;  %v2835_v16 = vadd.f32 %v5848_v17, %v5784_v36 }
 0x3fa   : > { %v3249_v63 = vpop.f32.mrf.mxu2 }
 0x3fb   : > { %3673 = vst.msk [vmem:[%s5876_s28 + $0x1c] sm:$0xf] %vm3665_vm12, %v3640_v4  ;;  %v3250_v53 = vadd.f32 %v5860_v30, %v3249_v63  ;;  %v3130_v24 = vmax.f32 %v3090_v48, 0.0  ;;  %v3558_v61 = vpop.f32.mrf.mxu3 }
 0x3fd   : > { %v3317_v44 = vmax.f32 %v3250_v53, 0.0  ;;  %v3011_v53 = vadd.f32 %v3010_v21, %v5788_v0 }
 0x3ff   : > { %v3609_v51 = vadd.f32 %v3542_v49, %v3317_v44  ;;  %v3012_v63 = vpop.f32.mrf.mxu0  ;;  %v2924_v49 = vadd.f32 %v5829_v9, %v2835_v16  ;;  %v3554_v9 = vadd.f32 %v5855_v45, %v5953_v52 }
 0x400   : > { %v3091_v10 = vpop.f32.mrf.mxu1 }
 0x401   : > { %v3641_v14 = vpack.c.bf16 %v3609_v51, %v3609_v51  ;;  %v3092_v25 = vadd.f32 %v3091_v10, %v3003_v50  ;;  %v3013_v2 = vadd.f32 %v3012_v63, %v2924_v49 }
 0x402   : > { %v3251_v55 = vpop.f32.mrf.mxu2 }
 0x403   : > { %3674 = vst.msk [vmem:[%s5876_s28 + $0x20] sm:$0xf] %vm3665_vm12, %v3641_v14  ;;  %v3131_v33 = vmax.f32 %v3092_v25, 0.0  ;;  %v3252_v42 = vadd.f32 %v5860_v30, %v3251_v55  ;;  %v3561_v28 = vpop.f32.mrf.mxu3 }
 0x405   : > { %v3149_v7 = vpack.c.bf16 %v3131_v33, %v3130_v24  ;;  %v3318_v62 = vmax.f32 %v3252_v42, 0.0  ;;  %v3557_v33 = vadd.f32 %v5855_v45, %v3556_v13  ;;  %v3562_v13 = vadd.f32 %v5855_v45, %v3561_v28 }
 0x407   : > { %v3610_v19 = vadd.f32 %v3544_v46, %v3318_v62  ;;  %3293 = vmatmul.bf16.gmra.mxu2 %v3149_v7 }
 0x408   : > { %v3094_v26 = vpop.f32.mrf.mxu1 }
 0x409   : > { %v3642_v8 = vpack.c.bf16 %v3610_v19, %v3610_v19  ;;  %v3095_v32 = vadd.f32 %v3094_v26, %v3006_v1  ;;  %v3559_v26 = vadd.f32 %v5855_v45, %v3558_v61 }
 0x40a   : > { %v3254_v20 = vpop.f32.mrf.mxu2 }
 0x40b   : > { %3675 = vst.msk [vmem:[%s5876_s28 + $0x24] sm:$0xf] %vm3665_vm12, %v3642_v8  ;;  %v3255_v39 = vadd.f32 %v5860_v30, %v3254_v20  ;;  %v3132_v29 = vmax.f32 %v3095_v32, 0.0  ;;  %v3563_v25 = vpop.f32.mrf.mxu3 }
 0x40c   : > { %v3564_v21 = vadd.f32 %v5855_v45, %v3563_v25 }
 0x40d   : > { %v3319_v23 = vmax.f32 %v3255_v39, 0.0 }
 0x40f   : > { %v3611_v12 = vadd.f32 %v3547_v18, %v3319_v23 }
 0x410   : > { %v3096_v37 = vpop.f32.mrf.mxu1 }
 0x411   : > { %v3643_v22 = vpack.c.bf16 %v3611_v12, %v3611_v12  ;;  %v3097_v31 = vadd.f32 %v3096_v37, %v3008_v6 }
 0x412   : > { %v3256_v27 = vpop.f32.mrf.mxu2 }
 0x413   : > { %3676 = vst.msk [vmem:[%s5876_s28 + $0x28] sm:$0xf] %vm3665_vm12, %v3643_v22  ;;  %v3133_v35 = vmax.f32 %v3097_v31, 0.0  ;;  %v3257_v3 = vadd.f32 %v5860_v30, %v3256_v27  ;;  %v3566_v62 = vpop.f32.mrf.mxu3 }
 0x415   : > { %v3150_v47 = vpack.c.bf16 %v3133_v35, %v3132_v29  ;;  %v3320_v34 = vmax.f32 %v3257_v3, 0.0  ;;  %v3567_v29 = vadd.f32 %v5855_v45, %v3566_v62 }
 0x417   : > { %v3612_v54 = vadd.f32 %v3549_v5, %v3320_v34  ;;  %3298 = vmatmul.bf16.gmra.mxu2 %v3150_v47 }
 0x418   : > { %v3099_v11 = vpop.f32.mrf.mxu1 }
 0x419   : > { %v3644_v59 = vpack.c.bf16 %v3612_v54, %v3612_v54  ;;  %v3100_v57 = vadd.f32 %v3099_v11, %v3011_v53 }
 0x41a   : > { %v3259_v38 = vpop.f32.mrf.mxu2 }
 0x41b   : > { %3677 = vst.msk [vmem:[%s5876_s28 + $0x2c] sm:$0xf] %vm3665_vm12, %v3644_v59  ;;  %v3260_v4 = vadd.f32 %v5860_v30, %v3259_v38  ;;  %v3134_v51 = vmax.f32 %v3100_v57, 0.0  ;;  %v3568_v39 = vpop.f32.mrf.mxu3 }
 0x41c   : > { %v3569_v16 = vadd.f32 %v5855_v45, %v3568_v39 }
 0x41d   : > { %v3321_v58 = vmax.f32 %v3260_v4, 0.0 }
 0x41f   : > { %v3613_v36 = vadd.f32 %v3552_v15, %v3321_v58 }
 0x420   : > { %v3101_v17 = vpop.f32.mrf.mxu1 }
 0x421   : > { %v3645_v44 = vpack.c.bf16 %v3613_v36, %v3613_v36  ;;  %v3102_v50 = vadd.f32 %v3101_v17, %v3013_v2 }
 0x422   : > { %v3261_v48 = vpop.f32.mrf.mxu2 }
 0x423   : > { %3678 = vst.msk [vmem:[%s5876_s28 + $0x30] sm:$0xf] %vm3665_vm12, %v3645_v44  ;;  %v3135_v56 = vmax.f32 %v3102_v50, 0.0  ;;  %v3262_v10 = vadd.f32 %v5860_v30, %v3261_v48  ;;  %v3571_v37 = vpop.f32.mrf.mxu3 }
 0x424   : > { %v3572_v28 = vadd.f32 %v5855_v45, %v3571_v37 }
 0x425   : > { %v3151_v0 = vpack.c.bf16 %v3135_v56, %v3134_v51  ;;  %v3322_v14 = vmax.f32 %v3262_v10, 0.0 }
 0x427   : > { %v3614_v55 = vadd.f32 %v3554_v9, %v3322_v14  ;;  %3303 = vmatmul.bf16.gmra.mxu2 %v3151_v0 }
 0x429   : > { %v3646_v60 = vpack.c.bf16 %v3614_v55, %v3614_v55 }
 0x42a   : > { %v3264_v24 = vpop.f32.mrf.mxu2 }
 0x42b   : > { %3679 = vst.msk [vmem:[%s5876_s28 + $0x34] sm:$0xf] %vm3665_vm12, %v3646_v60  ;;  %v3265_v42 = vadd.f32 %v5860_v30, %v3264_v24  ;;  %v3573_v5 = vpop.f32.mrf.mxu3 }
 0x42c   : > { %v3574_v44 = vadd.f32 %v5855_v45, %v3573_v5 }
 0x42d   : > { %v3323_v46 = vmax.f32 %v3265_v42, 0.0 }
 0x42f   : > { %v3615_v7 = vadd.f32 %v3557_v33, %v3323_v46 }
 0x431   : > { %v3647_v41 = vpack.c.bf16 %v3615_v7, %v3615_v7 }
 0x432   : > { %v3266_v52 = vpop.f32.mrf.mxu2 }
 0x433   : > { %3680 = vst.msk [vmem:[%s5876_s28 + $0x38] sm:$0xf] %vm3665_vm12, %v3647_v41  ;;  %v3267_v19 = vadd.f32 %v5860_v30, %v3266_v52  ;;  %v3576_v15 = vpop.f32.mrf.mxu3 }
 0x434   : > { %v3577_v10 = vadd.f32 %v5855_v45, %v3576_v15 }
 0x435   : > { %v3324_v43 = vmax.f32 %v3267_v19, 0.0 }
 0x437   : > { %v3616_v8 = vadd.f32 %v3559_v26, %v3324_v43 }
 0x439   : > { %v3648_v20 = vpack.c.bf16 %v3616_v8, %v3616_v8 }
 0x43a   : > { %v3269_v18 = vpop.f32.mrf.mxu2 }
 0x43b   : > { %3681 = vst.msk [vmem:[%s5876_s28 + $0x3c] sm:$0xf] %vm3665_vm12, %v3648_v20  ;;  %v3270_v1 = vadd.f32 %v5860_v30, %v3269_v18  ;;  %v3578_v36 = vpop.f32.mrf.mxu3 }
 0x43c   : > { %v3579_v33 = vadd.f32 %v5855_v45, %v3578_v36 }
 0x43d   : > { %v3325_v40 = vmax.f32 %v3270_v1, 0.0 }
 0x43f   : > { %v3617_v23 = vadd.f32 %v3562_v13, %v3325_v40 }
 0x441   : > { %v3649_v6 = vpack.c.bf16 %v3617_v23, %v3617_v23 }
 0x442   : > { %v3271_v32 = vpop.f32.mrf.mxu2 }
 0x443   : > { %3682 = vst.msk [vmem:[%s5876_s28 + $0x40] sm:$0xf] %vm3665_vm12, %v3649_v6  ;;  %v3272_v12 = vadd.f32 %v5860_v30, %v3271_v32  ;;  %v3581_v0 = vpop.f32.mrf.mxu3 }
 0x444   : > { %v3582_v52 = vadd.f32 %v5855_v45, %v3581_v0 }
 0x445   : > { %v3326_v22 = vmax.f32 %v3272_v12, 0.0 }
 0x447   : > { %v3618_v31 = vadd.f32 %v3564_v21, %v3326_v22 }
 0x449   : > { %v3650_v27 = vpack.c.bf16 %v3618_v31, %v3618_v31 }
 0x44a   : > { %v3274_v61 = vpop.f32.mrf.mxu2 }
 0x44b   : > { %3683 = vst.msk [vmem:[%s5876_s28 + $0x44] sm:$0xf] %vm3665_vm12, %v3650_v27  ;;  %v3275_v35 = vadd.f32 %v5860_v30, %v3274_v61  ;;  %v3583_v46 = vpop.f32.mrf.mxu3 }
 0x44c   : > { %v3584_v13 = vadd.f32 %v5855_v45, %v3583_v46 }
 0x44d   : > { %v3327_v3 = vmax.f32 %v3275_v35, 0.0 }
 0x44f   : > { %v3619_v47 = vadd.f32 %v3567_v29, %v3327_v3 }
 0x451   : > { %v3651_v34 = vpack.c.bf16 %v3619_v47, %v3619_v47 }
 0x452   : > { %v3276_v54 = vpop.f32.mrf.mxu2 }
 0x453   : > { %3684 = vst.msk [vmem:[%s5876_s28 + $0x48] sm:$0xf] %vm3665_vm12, %v3651_v34  ;;  %v3277_v11 = vadd.f32 %v5860_v30, %v3276_v54  ;;  %v3586_v8 = vpop.f32.mrf.mxu3 }
 0x454   : > { %v3587_v12 = vadd.f32 %v5855_v45, %v3586_v8 }
 0x455   : > { %v3328_v59 = vmax.f32 %v3277_v11, 0.0 }
 0x457   : > { %v3620_v38 = vadd.f32 %v3569_v16, %v3328_v59 }
 0x459   : > { %v3652_v4 = vpack.c.bf16 %v3620_v38, %v3620_v38 }
 0x45a   : > { %v3279_v63 = vpop.f32.mrf.mxu2 }
 0x45b   : > { %3685 = vst.msk [vmem:[%s5876_s28 + $0x4c] sm:$0xf] %vm3665_vm12, %v3652_v4  ;;  %v3280_v49 = vadd.f32 %v5860_v30, %v3279_v63  ;;  %v3588_v32 = vpop.f32.mrf.mxu3 }
 0x45c   : > { %v3589_v35 = vadd.f32 %v5855_v45, %v3588_v32 }
 0x45d   : > { %v3329_v53 = vmax.f32 %v3280_v49, 0.0 }
 0x45f   : > { %v3621_v58 = vadd.f32 %v3572_v28, %v3329_v53 }
 0x461   : > { %v3653_v2 = vpack.c.bf16 %v3621_v58, %v3621_v58 }
 0x462   : > { %v3281_v57 = vpop.f32.mrf.mxu2 }
 0x463   : > { %3686 = vst.msk [vmem:[%s5876_s28 + $0x50] sm:$0xf] %vm3665_vm12, %v3653_v2  ;;  %v3282_v17 = vadd.f32 %v5860_v30, %v3281_v57  ;;  %v3591_v29 = vpop.f32.mrf.mxu3 }
 0x464   : > { %v3592_v54 = vadd.f32 %v5855_v45, %v3591_v29 }
 0x465   : > { %v3330_v50 = vmax.f32 %v3282_v17, 0.0 }
 0x467   : > { %v3622_v48 = vadd.f32 %v3574_v44, %v3330_v50 }
 0x469   : > { %v3654_v51 = vpack.c.bf16 %v3622_v48, %v3622_v48 }
 0x46a   : > { %v3284_v56 = vpop.f32.mrf.mxu2 }
 0x46b   : > { %3687 = vst.msk [vmem:[%s5876_s28 + $0x54] sm:$0xf] %vm3665_vm12, %v3654_v51  ;;  %v3285_v9 = vadd.f32 %v5860_v30, %v3284_v56  ;;  %v3593_v59 = vpop.f32.mrf.mxu3 }
 0x46c   : > { %v3594_v28 = vadd.f32 %v5855_v45, %v3593_v59 }
 0x46d   : > { %v3331_v14 = vmax.f32 %v3285_v9, 0.0 }
 0x46f   : > { %v3623_v25 = vadd.f32 %v3577_v10, %v3331_v14 }
 0x471   : > { %v3655_v55 = vpack.c.bf16 %v3623_v25, %v3623_v25 }
 0x472   : > { %v3286_v60 = vpop.f32.mrf.mxu2 }
 0x473   : > { %3688 = vst.msk [vmem:[%s5876_s28 + $0x58] sm:$0xf] %vm3665_vm12, %v3655_v55  ;;  %v3287_v24 = vadd.f32 %v5860_v30, %v3286_v60  ;;  %v3596_v58 = vpop.f32.mrf.mxu3 }
 0x474   : > { %v3597_v36 = vadd.f32 %v5855_v45, %v3596_v58 }
 0x475   : > { %v3332_v42 = vmax.f32 %v3287_v24, 0.0 }
 0x477   : > { %v3624_v7 = vadd.f32 %v3579_v33, %v3332_v42 }
 0x479   : > { %v3656_v62 = vpack.c.bf16 %v3624_v7, %v3624_v7 }
 0x47a   : > { %v3289_v41 = vpop.f32.mrf.mxu2 }
 0x47b   : > { %3689 = vst.msk [vmem:[%s5876_s28 + $0x5c] sm:$0xf] %vm3665_vm12, %v3656_v62  ;;  %v3290_v19 = vadd.f32 %v5860_v30, %v3289_v41  ;;  %v3598_v51 = vpop.f32.mrf.mxu3 }
 0x47c   : > { %v3599_v9 = vadd.f32 %v5855_v45, %v3598_v51 }
 0x47d   : > { %v3333_v26 = vmax.f32 %v3290_v19, 0.0 }
 0x47f   : > { %v3625_v43 = vadd.f32 %v3582_v52, %v3333_v26 }
 0x481   : > { %v3657_v20 = vpack.c.bf16 %v3625_v43, %v3625_v43 }
 0x482   : > { %v3291_v18 = vpop.f32.mrf.mxu2 }
 0x483   : > { %3690 = vst.msk [vmem:[%s5876_s28 + $0x60] sm:$0xf] %vm3665_vm12, %v3657_v20  ;;  %v3292_v39 = vadd.f32 %v5860_v30, %v3291_v18 }
 0x485   : > { %v3334_v1 = vmax.f32 %v3292_v39, 0.0 }
 0x487   : > { %v3626_v40 = vadd.f32 %v3584_v13, %v3334_v1 }
 0x489   : > { %v3658_v23 = vpack.c.bf16 %v3626_v40, %v3626_v40 }
 0x48a   : > { %v3294_v6 = vpop.f32.mrf.mxu2 }
 0x48b   : > { %3691 = vst.msk [vmem:[%s5876_s28 + $0x64] sm:$0xf] %vm3665_vm12, %v3658_v23  ;;  %v3295_v37 = vadd.f32 %v5860_v30, %v3294_v6 }
 0x48d   : > { %v3335_v21 = vmax.f32 %v3295_v37, 0.0 }
 0x48f   : > { %v3627_v22 = vadd.f32 %v3587_v12, %v3335_v21 }
 0x491   : > { %v3659_v31 = vpack.c.bf16 %v3627_v22, %v3627_v22 }
 0x492   : > { %v3296_v27 = vpop.f32.mrf.mxu2 }
 0x493   : > { %3692 = vst.msk [vmem:[%s5876_s28 + $0x68] sm:$0xf] %vm3665_vm12, %v3659_v31  ;;  %v3297_v61 = vadd.f32 %v5860_v30, %v3296_v27 }
 0x495   : > { %v3336_v3 = vmax.f32 %v3297_v61, 0.0 }
 0x497   : > { %v3628_v5 = vadd.f32 %v3589_v35, %v3336_v3 }
 0x499   : > { %v3660_v47 = vpack.c.bf16 %v3628_v5, %v3628_v5 }
 0x49a   : > { %v3299_v34 = vpop.f32.mrf.mxu2 }
 0x49b   : > { %3693 = vst.msk [vmem:[%s5876_s28 + $0x6c] sm:$0xf] %vm3665_vm12, %v3660_v47  ;;  %v3300_v11 = vadd.f32 %v5860_v30, %v3299_v34 }
 0x49d   : > { %v3337_v16 = vmax.f32 %v3300_v11, 0.0 }
 0x49f   : > { %v3629_v38 = vadd.f32 %v3592_v54, %v3337_v16 }
 0x4a1   : > { %v3661_v15 = vpack.c.bf16 %v3629_v38, %v3629_v38 }
 0x4a2   : > { %v3301_v4 = vpop.f32.mrf.mxu2 }
 0x4a3   : > { %3694 = vst.msk [vmem:[%s5876_s28 + $0x70] sm:$0xf] %vm3665_vm12, %v3661_v15  ;;  %v3302_v63 = vadd.f32 %v5860_v30, %v3301_v4 }
 0x4a5   : > { %v3338_v49 = vmax.f32 %v3302_v63, 0.0 }
 0x4a7   : > { %v3630_v53 = vadd.f32 %v3594_v28, %v3338_v49 }
 0x4a9   : > { %v3662_v2 = vpack.c.bf16 %v3630_v53, %v3630_v53 }
 0x4aa   : > { %v3304_v57 = vpop.f32.mrf.mxu2 }
 0x4ab   : > { %3695 = vst.msk [vmem:[%s5876_s28 + $0x74] sm:$0xf] %vm3665_vm12, %v3662_v2  ;;  %v3305_v17 = vadd.f32 %v5860_v30, %v3304_v57 }
 0x4ad   : > { %v3339_v44 = vmax.f32 %v3305_v17, 0.0 }
 0x4af   : > { %v3631_v50 = vadd.f32 %v3597_v36, %v3339_v44 }
 0x4b1   : > { %v3663_v48 = vpack.c.bf16 %v3631_v50, %v3631_v50 }
 0x4b2   : > { %v3306_v56 = vpop.f32.mrf.mxu2 }
 0x4b3   : > { %3696 = vst.msk [vmem:[%s5876_s28 + $0x78] sm:$0xf] %vm3665_vm12, %v3663_v48  ;;  %v3307_v10 = vadd.f32 %v5860_v30, %v3306_v56 }
 0x4b5   : > { %v3340_v0 = vmax.f32 %v3307_v10, 0.0 }
 0x4b7   : > { %v3632_v14 = vadd.f32 %v3599_v9, %v3340_v0 }
 0x4b9   : > { %v3664_v25 = vpack.c.bf16 %v3632_v14, %v3632_v14 }
 0x4bb   : > { %3697 = vst.msk [vmem:[%s5876_s28 + $0x7c] sm:$0xf] %vm3665_vm12, %v3664_v25 }
 0x4bc   : > { %4651 = shalt.err (!%p4648_p9)
}
 0x4bd   : > { %s4712_s25 = smov 64   ;;  %s4713_s28 = smov 4  }
 0x4be   : > { %4511 = dma.vmem_to_hbm [thread:$0]  (%p4804_p4), %s3715_s18, 2048, %s3717_s20, %s3699_s12, %s4712_s25, %s4712_s25, %s4713_s28  }
 0x4bf PF: > { %p4523_p10 = scmp.ge.s32.totalorder %s4706_s14, 2  ;;  %s3731_s27 = sand.u32 1, %s4686_s30  }
 0x4c0   : > { %s3732_s23 = scalar_lea.sflag [#allocation5], %s3731_s27 }
 0x4c1   : > { %p4518_p11 = pnand %p4523_p10, %p4811_p8 }
 0x4c3   : > { %p4519_p12 = pneg %p4518_p11 }
 0x4c5   : > { %4681 = dma.done.wait (%p4519_p12), %s3732_s23, 2048  }
 0x4c6   : > { %4683 = vsyncadd (%p4519_p12), %s3732_s23, 4294965248  ;;  %s23_s14 = sadd.s32 1, %s4706_s14   ;;  %s6218_s30 = smov %s4690_s10 }
 0x4c7   : > { %p20_p13 = scmp.ge.s32.totalorder %s23_s14, 4   ;;  %s6219_s10 = smov %s4694_s11 }
 0x4c8   : > { %s6220_s11 = smov %s4817_s22  ;;  %s6221_s12 = smov %s4702_s13 }
 0x4c9   : > { %s6222_s13 = smov %s6224_s17  ;;  %22 = sbr.rel (!%p20_p13) target bundleno = 5 (0x5), region = 104 }
 0x4ce   :  { %3738 = vsyncpa [#allocation4], 1 }
 0x4cf   :  { %3740 = vsyncpa [#allocation4 + $0x1], 1 }
 0x4d0   :  { %3741 = vsyncpa [#allocation5], 1 }
 0x4d1   :  { %3743 = vsyncpa [#allocation5 + $0x1], 1 }

// kernel: tpu_custom_call.1
= control target key start
LH: loop header
LB: loop body
LE: loop exit
PB: predicated region body
PF: predicated region fallthrough
CT: control target
= control target key end

     0   :  { %14 = vsyncpa [#allocation4], 0  ;;  %s6103_s0 = inlined_call_operand.vmem [shape: bf16[2,16,16,4], index: 0, kind: input, shape index: {}]   ;;  %s6104_s1 = inlined_call_operand.vmem [shape: bf16[4,128], index: 1, kind: input, shape index: {}]   ;;  %s6105_s2 = inlined_call_operand.vmem [shape: f32[1,128], index: 2, kind: input, shape index: {}]   ;;  %s6106_s3 = inlined_call_operand.hbm [shape: bf16[1152,128], index: 3, kind: input, shape index: {}]   ;;  %s6107_s4 = inlined_call_operand.vmem [shape: f32[1,128], index: 4, kind: input, shape index: {}]   ;;  %s6108_s5 = inlined_call_operand.vmem [shape: bf16[128,16], index: 5, kind: input, shape index: {}]   ;;  %s6109_s6 = inlined_call_operand.vmem [shape: f32[1,16], index: 6, kind: input, shape index: {}]   ;;  %s6110_s7 = inlined_call_operand.vmem [shape: bf16[4,16], index: 7, kind: input, shape index: {}]   ;;  %s6111_s8 = inlined_call_operand.vmem [shape: f32[1,16], index: 8, kind: input, shape index: {}]   ;;  %s6112_s9 = inlined_call_operand.hbm [shape: bf16[2,16,16,16], index: 9, kind: output, shape index: {}]  }
   0x1   :  { %15 = vsyncpa [#allocation5], 0 }
   0x2   :  { %17 = vsyncpa [#allocation5 + $0x1], 0  ;;  %s4764_s30 = smov 0   ;;  %s4766_s10 = smov 0  }
   0x3   :  { %s4768_s11 = smov 0   ;;  %s4770_s12 = smov 0  }
   0x4   :  { %s4772_s13 = smov 0   ;;  %s4774_s14 = smov 0  }
   0x5 LB: > { %s3808_s15 = sadd.s32 4294967295, %s4706_s14   ;;  %s3809_s16 = sadd.s32 4294967294, %s4706_s14   ;;  %s4706_s14 = sphi %s4774_s14, %s23_s14   ;;  %s4702_s13 = sphi %s4772_s13, %s6222_s13   ;;  %s4698_s12 = sphi %s4770_s12, %s6221_s12   ;;  %s4694_s11 = sphi %s4768_s11, %s6220_s11   ;;  %s4690_s10 = sphi %s4766_s10, %s6219_s10   ;;  %s4686_s30 = sphi %s4764_s30, %s6218_s30  }
   0x6   : > { %s35_s17 = sadd.s32 1, %s4702_s13  ;;  %s238_s18 = sadd.s32 1, %s4694_s11 }
   0x7   : > { %p37_p0 = scmp.ge.s32.totalorder %s35_s17, 2  ;;  %p248_p1 = scmp.ne.s32.totalorder %s4694_s11, %s4690_s10 }
   0x8   : > { %p249_p2 = scmp.eq.s32.totalorder %s3808_s15, 1  ;;  %p254_p3 = scmp.ne.s32.totalorder %s4690_s10, %s4686_s30 }
   0x9   : > { %s6224_s17 = smov (%p37_p0, %s35_s17), 0  ;;  %p255_p5 = scmp.eq.s32.totalorder %s3809_s16, 1 }
   0xa   : > { %p4804_p4 = por %p249_p2, %p248_p1  ;;  %s233_s20 = ssub.s32 %s4702_s13, %s6224_s17 }
   0xb   : > { %p3810_p6 = scmp.ge.s32.totalorder %s4706_s14, 1  ;;  %p236_p7 = scmp.eq.s32.totalorder %s233_s20, 0 }
   0xc   : > { %p4811_p8 = por %p255_p5, %p254_p3  ;;  %p262_p9 = scmp.lt.s32.totalorder %s4706_s14, 3 }
   0xd   : > { %s4817_s22 = scalar_select %p236_p7, %s4694_s11, %s238_s18  }
   0xe   : > { %p263_p10 = pnand %p3810_p6, %p262_p9  ;;  %p4521_p11 = scmp.eq.s32.totalorder %s3808_s15, 0 }
   0xf   : > { %s279_s25 = sshll.u32 %s6106_s3, 4  ;;  %s4708_s26 = smov [#allocation3]   ;;  %s280_s25 = int_to_ptr.hbm [resolvable:$true] %s279_s25 }
  0x10   : > { %p4513_p12 = pneg %p263_p10  ;;  %s281_s27 = sshll.u32 %s4708_s26, 4  ;;  %s282_s27 = int_to_ptr.vmem [resolvable:$true] %s281_s27 }
  0x11   : > { %s4709_s28 = smov 64   ;;  %s4710_s29 = smov 4  }
  0x12   : > { %p4514_p13 = pnand %p4521_p11, %p4513_p12  ;;  %320 = sbr.rel (%p263_p10) target bundleno = 1215 (0x4bf), region = 56 }
  0x14   : > { %4516 = dma.hbm_to_vmem [thread:$0]  (!%p4514_p13), %s280_s25, 9216, %s282_s27, [#allocation4], %s4709_s28, %s4709_s28, %s4710_s29  }
  0x17   : > { %4677 = dma.done.wait (%p4521_p11), [#allocation4], 9216  }
  0x18   : > { %4679 = vsyncadd (%p4521_p11), [#allocation4], 4294958080  ;;  %p357_p0 = scmp.lt.s32.totalorder %s4698_s12, 1  ;;  %vm598_vm0 = vcmask 1041408   ;;  %v464_v0 = vld [vmem:[%s6104_s1] sm:$0x3] }
  0x19   : > { %v600_v1 = vsel %vm598_vm0, %v464_v0, 0  ;;  %vm549_vm1 = vcmask 31744   ;;  %v4425_v7 = vld [vmem:[#allocation3 + $0x78] sm:$0xff]  ;;  %v4424_v10 = vld [vmem:[#allocation3 + $0x70] sm:$0xff]  ;;  %v4423_v13 = vld [vmem:[#allocation3 + $0x68] sm:$0xff]  ;;  %v4711_v21 = vmov 0  }
  0x1a   : > { %s358_s15 = scalar_select %p357_p0, %s4698_s12, 1  ;;  %609 = vmatpush.bf16.msra.mxu0 %v600_v1  ;;  %v4433_v8 = vld [vmem:[#allocation3 + $0xb8] sm:$0xff]  ;;  %2392 = vmatpush.bf16.msra.mxu2 %v4425_v7  ;;  %v4432_v11 = vld [vmem:[#allocation3 + $0xb0] sm:$0xff]  ;;  %v4431_v14 = vld [vmem:[#allocation3 + $0xa8] sm:$0xff]  ;;  %378 = vst [vmem:[#allocation2 + $0xc] sm:$0xf] %v4711_v21 }
  0x1b   : > { %v4417_v9 = vld [vmem:[#allocation3 + $0x38] sm:$0xff]  ;;  %2481 = vmatpush.bf16.msra.mxu3 %v4433_v8  ;;  %v4416_v12 = vld [vmem:[#allocation3 + $0x30] sm:$0xff]  ;;  %v4415_v15 = vld [vmem:[#allocation3 + $0x28] sm:$0xff]  ;;  %375 = vst [vmem:[#allocation2] sm:$0xf] %v4711_v21  ;;  %vm1606_vm3 = vcmask 1046528  }
  0x1c   : > { %s4375_s16 = sshll.u32 %s358_s15, 7  ;;  %2303 = vmatpush.bf16.msra.mxu1 %v4417_v9  ;;  %v4422_v16 = vld [vmem:[#allocation3 + $0x60] sm:$0xff]  ;;  %v4421_v20 = vld [vmem:[#allocation3 + $0x58] sm:$0xff]  ;;  %v4420_v24 = vld [vmem:[#allocation3 + $0x50] sm:$0xff]  ;;  %376 = vst [vmem:[#allocation2 + $0x4] sm:$0xf] %v4711_v21 }
  0x1d   : > { %s4827_s23 = scalar_lea.vmem %s6103_s0, %s4375_s16  ;;  %v4430_v18 = vld [vmem:[#allocation3 + $0xa0] sm:$0xff]  ;;  %v4429_v22 = vld [vmem:[#allocation3 + $0x98] sm:$0xff]  ;;  %377 = vst [vmem:[#allocation2 + $0x8] sm:$0xf] %v4711_v21  ;;  %v4428_v25 = vld [vmem:[#allocation3 + $0x90] sm:$0xff]  ;;  %vm1079_vm4 = vcmask 1043456  }
  0x1e   : > { %v4376_v2 = vld [vmem:[%s4827_s23] sm:$0xff]  ;;  %v4377_v3 = vld [vmem:[%s4827_s23 + $0x8] sm:$0xff]  ;;  %v4378_v4 = vld [vmem:[%s4827_s23 + $0x10] sm:$0xff]  ;;  %2393 = vmatpush.bf16.msra.mxu2 %v4424_v10  ;;  %379 = vst [vmem:[#allocation2 + $0x10] sm:$0xf] %v4711_v21  ;;  %vm1086_vm9 = vcmask 1040384  }
  0x1f   : > { %3882 = vmatmul.msk.bf16.vlgmr.msra.gmra.mxu0 %vm549_vm1, %v4376_v2  ;;  %v4379_v5 = vld [vmem:[%s4827_s23 + $0x18] sm:$0xff]  ;;  %v4380_v6 = vld [vmem:[%s4827_s23 + $0x20] sm:$0xff]  ;;  %2482 = vmatpush.bf16.msra.mxu3 %v4432_v11  ;;  %v4381_v17 = vld [vmem:[%s4827_s23 + $0x28] sm:$0xff]  ;;  %380 = vst [vmem:[#allocation2 + $0x14] sm:$0xf] %v4711_v21  ;;  %s354_s25 = sand.u32 1, %s4690_s10  }
  0x20   : > { %2304 = vmatpush.bf16.msra.mxu1 %v4416_v12  ;;  %v4414_v19 = vld [vmem:[#allocation3 + $0x20] sm:$0xff]  ;;  %v4413_v23 = vld [vmem:[#allocation3 + $0x18] sm:$0xff]  ;;  %v4412_v26 = vld [vmem:[#allocation3 + $0x10] sm:$0xff]  ;;  %381 = vst [vmem:[#allocation2 + $0x18] sm:$0xf] %v4711_v21  ;;  %s3815_s27 = sshll.u32 %s354_s25, 7 }
  0x21   : > { %v4419_v27 = vld [vmem:[#allocation3 + $0x48] sm:$0xff]  ;;  %382 = vst [vmem:[#allocation2 + $0x1c] sm:$0xf] %v4711_v21  ;;  %v4418_v34 = vld [vmem:[#allocation3 + $0x40] sm:$0xff]  ;;  %v4382_v36 = vld [vmem:[%s4827_s23 + $0x30] sm:$0xff]  ;;  %vm3665_vm12 = vcmask 125952  }
  0x22   : > { %2394 = vmatpush.bf16.msra.mxu2 %v4423_v13  ;;  %v4427_v28 = vld [vmem:[#allocation3 + $0x88] sm:$0xff]  ;;  %383 = vst [vmem:[#allocation2 + $0x20] sm:$0xf] %v4711_v21  ;;  %v4426_v39 = vld [vmem:[#allocation3 + $0x80] sm:$0xff]  ;;  %vm1397_vm2 = vsmask.f32 7424 }
  0x23   : > { %2483 = vmatpush.bf16.msra.mxu3 %v4431_v14  ;;  %384 = vst [vmem:[#allocation2 + $0x24] sm:$0xf] %v4711_v21  ;;  %v4392_v29 = vld [vmem:[#allocation2] sm:$0xff]  ;;  %v4410_v42 = vld [vmem:[#allocation3] sm:$0xff]  ;;  %v4441_v49 = vld [vmem:[#allocation3 + $0xf8] sm:$0xff]  ;;  %s5876_s28 = scalar_lea.vmem [#allocation6], %s3815_s27 }
  0x24   : > { %2305 = vmatpush.bf16.msra.mxu1 %v4415_v15  ;;  %385 = vst [vmem:[#allocation2 + $0x28] sm:$0xf] %v4711_v21  ;;  %v1201_v30 = vld [vmem:[#allocation2 + $0x8] sm:$0xf]  ;;  %v1401_v32 = vshll.u32 %v4392_v29, 16  ;;  %v4411_v33 = vld [vmem:[#allocation3 + $0x8] sm:$0xff]  ;;  %2570 = vmatpush.bf16.msrb.mxu0 %v4441_v49 }
  0x25   : > { %386 = vst [vmem:[#allocation2 + $0x2c] sm:$0xf] %v4711_v21  ;;  %v1365_v31 = vunpack.c.l.b16 %v1201_v30  ;;  %v1399_v35 = vshrl.u32 %v4392_v29, 16  ;;  %v1607_v43 = vrot.slane %v4392_v29, 1  ;;  %v4383_v48 = vld [vmem:[%s4827_s23 + $0x38] sm:$0xff]  ;;  %v4449_v51 = vld [vmem:[#allocation3 + $0x138] sm:$0xff] }
  0x26   : > { %2395 = vmatpush.bf16.msra.mxu2 %v4422_v16  ;;  %387 = vst [vmem:[#allocation2 + $0x30] sm:$0xf] %v4711_v21  ;;  %v1403_v38 = vrot.slane %v1401_v32, 1  ;;  %v4896_v50 = vld [vmem:[%s6105_s2] ss:$0 sm:$0xff]  ;;  %s3714_s18 = sshll.u32 %s5876_s28, 4  ;;  %s3715_s18 = int_to_ptr.vmem [resolvable:$true] %s3714_s18 }
  0x27   : > { %2484 = vmatpush.bf16.msra.mxu3 %v4430_v18  ;;  %388 = vst [vmem:[#allocation2 + $0x34] sm:$0xf] %v4711_v21  ;;  %v1381_v37 = vpack.c.b16 %v1365_v31, %v1365_v31  ;;  %v4384_v52 = vld [vmem:[%s4827_s23 + $0x40] sm:$0xff]  ;;  %vm1080_vm5 = vsmask.f32 7938  ;;  %s4644_s29 = scalar_lea.hbm %s6112_s9, 256 }
  0x28   : > { %2306 = vmatpush.bf16.msra.mxu1 %v4414_v19  ;;  %389 = vst [vmem:[#allocation2 + $0x38] sm:$0xf] %v4711_v21  ;;  %v1404_v40 = vor.u32 %v1403_v38, %v1399_v35  ;;  %vm4914_vm6 = vmand %vm1079_vm4, %vm1080_vm5  ;;  %v1082_v63 = vld [vmem:[#allocation2 + $0xc] sm:$0xf]  ;;  %vm755_vm7 = vsmask.f32 256 }
  0x29   : > { %390 = vst [vmem:[#allocation2 + $0x3c] sm:$0xf] %v4711_v21  ;;  %v1406_v41 = vshll.u32 %v1381_v37, 16  ;;  %v1608_v44 = vrot.slane %v1381_v37, 1  ;;  %vm756_vm8 = vsmask.f32 4368  ;;  %vm4926_vm11 = vmand %vm1086_vm9, %vm755_vm7 }
  0x2a   : > { %2396 = vmatpush.bf16.msra.mxu2 %v4421_v20  ;;  %391 = vst [vmem:[#allocation2 + $0x40] sm:$0xf] %v4711_v21  ;;  %vm4921_vm10 = vmor %vm755_vm7, %vm756_vm8  ;;  %v1088_v12 = vld [vmem:[#allocation2 + $0x14] sm:$0x1] }
  0x2b   : > { %2485 = vmatpush.bf16.msra.mxu3 %v4429_v22  ;;  %392 = vst [vmem:[#allocation2 + $0x44] sm:$0xf] %v4711_v21  ;;  %v1408_v45 = vrot.slane %v1406_v41, 1  ;;  %v1609_v46 = vsel %vm1606_vm3, %v1607_v43, %v1608_v44  ;;  %v4386_v35 = vld [vmem:[%s4827_s23 + $0x50] sm:$0xff]  ;;  %v1095_v44 = vld [vmem:[#allocation2 + $0x20] sm:$0x1] }
  0x2c   : > { %2307 = vmatpush.bf16.msra.mxu1 %v4413_v23  ;;  %393 = vst [vmem:[#allocation2 + $0x48] sm:$0xf] %v4711_v21 }
  0x2d   : > { %394 = vst [vmem:[#allocation2 + $0x4c] sm:$0xf] %v4711_v21  ;;  %v1409_v47 = vsel %vm1397_vm2, %v1404_v40, %v1408_v45 }
  0x2e   : > { %2397 = vmatpush.bf16.msra.mxu2 %v4420_v24  ;;  %395 = vst [vmem:[#allocation2 + $0x50] sm:$0xf] %v4711_v21 }
  0x2f   : > { %3883 = vmatmul.msk.bf16.gmra.mxu0 %vm549_vm1, %v4377_v3  ;;  %2486 = vmatpush.bf16.msra.mxu3 %v4428_v25  ;;  %396 = vst [vmem:[#allocation2 + $0x54] sm:$0xf] %v4711_v21 }
  0x30   : > { %2308 = vmatpush.bf16.msra.mxu1 %v4412_v26  ;;  %397 = vst [vmem:[#allocation2 + $0x58] sm:$0xf] %v4711_v21  ;;  %v1091_v26 = vld [vmem:[#allocation2 + $0x18] sm:$0xf] }
  0x31   : > { %398 = vst [vmem:[#allocation2 + $0x5c] sm:$0xf] %v4711_v21 }
  0x32   : > { %2398 = vmatpush.bf16.msra.mxu2 %v4419_v27  ;;  %399 = vst [vmem:[#allocation2 + $0x60] sm:$0xf] %v4711_v21 }
  0x33   : > { %2487 = vmatpush.bf16.msra.mxu3 %v4427_v28  ;;  %400 = vst [vmem:[#allocation2 + $0x64] sm:$0xf] %v4711_v21 }
  0x34   : > { %2309 = vmatpush.bf16.msra.mxu1 %v4411_v33  ;;  %401 = vst [vmem:[#allocation2 + $0x68] sm:$0xf] %v4711_v21  ;;  %v4448_v33 = vld [vmem:[#allocation3 + $0x130] sm:$0xff] }
  0x35   : > { %402 = vst [vmem:[#allocation2 + $0x6c] sm:$0xf] %v4711_v21 }
  0x36   : > { %2399 = vmatpush.bf16.msra.mxu2 %v4418_v34  ;;  %403 = vst [vmem:[#allocation2 + $0x70] sm:$0xf] %v4711_v21 }
  0x37   : > { %2488 = vmatpush.bf16.msra.mxu3 %v4426_v39  ;;  %404 = vst [vmem:[#allocation2 + $0x74] sm:$0xf] %v4711_v21 }
  0x38   : > { %2310 = vmatpush.bf16.msra.mxu1 %v4410_v42  ;;  %405 = vst [vmem:[#allocation2 + $0x78] sm:$0xf] %v4711_v21 }
  0x39   : > { %2400 = vmatmul.bf16.vlgmr.msra.gmra.mxu2 %v1409_v47  ;;  %406 = vst [vmem:[#allocation2 + $0x7c] sm:$0xf] %v4711_v21 }
  0x3a   : > { %2489 = vmatmul.bf16.vlgmr.msra.gmra.mxu3 %v1609_v46  ;;  %407 = vst [vmem:[#allocation2 + $0x80] sm:$0xf] %v4711_v21 }
  0x3b   : > { %2311 = vmatmul.bf16.vlgmr.msra.gmra.mxu1 %v4392_v29  ;;  %408 = vst [vmem:[#allocation2 + $0x84] sm:$0xf] %v4711_v21 }
  0x3c   : > { %409 = vst [vmem:[#allocation2 + $0x88] sm:$0xf] %v4711_v21  ;;  %2659 = vmatpush.bf16.msrb.mxu1 %v4449_v51 }
  0x3d   : > { %410 = vst [vmem:[#allocation2 + $0x8c] sm:$0xf] %v4711_v21 }
  0x3e   : > { %411 = vst [vmem:[#allocation2 + $0x90] sm:$0xf] %v4711_v21 }
  0x3f   : > { %3884 = vmatmul.msk.bf16.gmra.mxu0 %vm549_vm1, %v4378_v4  ;;  %412 = vst [vmem:[#allocation2 + $0x94] sm:$0xf] %v4711_v21 }
  0x40   : > { %413 = vst [vmem:[#allocation2 + $0x98] sm:$0xf] %v4711_v21  ;;  %2660 = vmatpush.bf16.msrb.mxu1 %v4448_v33 }
  0x41   : > { %414 = vst [vmem:[#allocation2 + $0x9c] sm:$0xf] %v4711_v21 }
  0x42   : > { %415 = vst [vmem:[#allocation2 + $0xa0] sm:$0xf] %v4711_v21 }
  0x43   : > { %416 = vst [vmem:[#allocation2 + $0xa4] sm:$0xf] %v4711_v21 }
  0x44   : > { %417 = vst [vmem:[#allocation2 + $0xa8] sm:$0xf] %v4711_v21 }
  0x45   : > { %418 = vst [vmem:[#allocation2 + $0xac] sm:$0xf] %v4711_v21 }
  0x46   : > { %419 = vst [vmem:[#allocation2 + $0xb0] sm:$0xf] %v4711_v21 }
  0x47   : > { %420 = vst [vmem:[#allocation2 + $0xb4] sm:$0xf] %v4711_v21 }
  0x48   : > { %421 = vst [vmem:[#allocation2 + $0xb8] sm:$0xf] %v4711_v21 }
  0x49   : > { %422 = vst [vmem:[#allocation2 + $0xbc] sm:$0xf] %v4711_v21 }
  0x4a   : > { %423 = vst [vmem:[#allocation2 + $0xc0] sm:$0xf] %v4711_v21 }
  0x4b   : > { %424 = vst [vmem:[#allocation2 + $0xc4] sm:$0xf] %v4711_v21 }
  0x4c   : > { %425 = vst [vmem:[#allocation2 + $0xc8] sm:$0xf] %v4711_v21 }
  0x4d   : > { %426 = vst [vmem:[#allocation2 + $0xcc] sm:$0xf] %v4711_v21 }
  0x4e   : > { %427 = vst [vmem:[#allocation2 + $0xd0] sm:$0xf] %v4711_v21 }
  0x4f   : > { %3885 = vmatmul.msk.bf16.gmra.mxu0 %vm549_vm1, %v4379_v5  ;;  %428 = vst [vmem:[#allocation2 + $0xd4] sm:$0xf] %v4711_v21  ;;  %v4385_v5 = vld [vmem:[%s4827_s23 + $0x48] sm:$0xff] }
  0x50   : > { %v4440_v21 = vld [vmem:[#allocation3 + $0xf0] sm:$0xff] }
  0x51   : > { %2571 = vmatpush.bf16.msrb.mxu0 %v4440_v21 }
  0x5f   : > { %3886 = vmatmul.msk.bf16.gmra.mxu0 %vm549_vm1, %v4380_v6 }
  0x6f   : > { %3887 = vmatmul.msk.bf16.gmra.mxu0 %vm549_vm1, %v4381_v17 }
  0x7f   : > { %3888 = vmatmul.msk.bf16.gmra.mxu0 %vm549_vm1, %v4382_v36 }
  0x8f   : > { %3889 = vmatmul.msk.bf16.gmra.mxu0 %vm549_vm1, %v4383_v48 }
  0x9c   : > { %v611_v53 = vpop.f32.mrf.mxu0 }
  0x9d   : > { %v612_v54 = vadd.f32 %v4896_v50, %v611_v53 }
  0x9f   : > { %v691_v55 = vmax.f32 %v612_v54, 0.0  ;;  %3890 = vmatmul.msk.bf16.gmra.mxu0 %vm549_vm1, %v4384_v52 }
  0xa1   : > { %v723_v56 = vpack.c.bf16 %v691_v55, %v691_v55 }
  0xa3   : > { %v759_v57 = vshrl.u32 %v723_v56, 16  ;;  %v762_v60 = vshll.u32 %v723_v56, 16 }
  0xa4   : > { %v613_v58 = vpop.f32.mrf.mxu0 }
  0xa5   : > { %v761_v59 = vrot.slane %v759_v57, 7  ;;  %v614_v61 = vadd.f32 %v4896_v50, %v613_v58 }
  0xa7   : > { %v764_v0 = vor.u32 %v762_v60, %v761_v59  ;;  %v692_v1 = vmax.f32 %v614_v61, 0.0  ;;  %v765_v13 = vrot.slane %v761_v59, 4 }
  0xa9   : > { %v1083_v2 = vsel %vm4914_vm6, %v764_v0, %v1082_v63  ;;  %v724_v3 = vpack.c.bf16 %v692_v1, %v692_v1 }
  0xaa   : > { %1084 = vst [vmem:[#allocation2 + $0xc] sm:$0xf] %v1083_v2 }
  0xab   : > { %v767_v4 = vshrl.u32 %v724_v3, 16  ;;  %v770_v9 = vshll.u32 %v724_v3, 16  ;;  %v1098_v3 = vld [vmem:[#allocation2 + $0x24] sm:$0xf] }
  0xac   : > { %v616_v6 = vpop.f32.mrf.mxu0 }
  0xad   : > { %v769_v8 = vrot.slane %v767_v4, 7  ;;  %v617_v10 = vadd.f32 %v4896_v50, %v616_v6 }
  0xaf   : > { %v772_v14 = vor.u32 %v770_v9, %v769_v8  ;;  %v774_v15 = vrot.slane %v769_v8, 4  ;;  %v693_v16 = vmax.f32 %v617_v10, 0.0  ;;  %3891 = vmatmul.msk.bf16.gmra.mxu0 %vm549_vm1, %v4385_v5 }
  0xb1   : > { %v773_v17 = vsel %vm4921_vm10, %v765_v13, %v772_v14  ;;  %v1089_v18 = vsel %vm4926_vm11, %v774_v15, %v1088_v12  ;;  %v725_v19 = vpack.c.bf16 %v693_v16, %v693_v16  ;;  %v4387_v13 = vld [vmem:[%s4827_s23 + $0x58] sm:$0xff] }
  0xb2   : > { %1085 = vst [vmem:[#allocation2 + $0x10] sm:$0xf] %v773_v17 }
  0xb3   : > { %1090 = vst [vmem:[#allocation2 + $0x14] sm:$0x1] %v1089_v18  ;;  %v776_v20 = vshrl.u32 %v725_v19, 16  ;;  %v779_v24 = vshll.u32 %v725_v19, 16 }
  0xb4   : > { %v618_v22 = vpop.f32.mrf.mxu0 }
  0xb5   : > { %v778_v23 = vrot.slane %v776_v20, 7  ;;  %v619_v25 = vadd.f32 %v4896_v50, %v618_v22  ;;  %v1102_v22 = vld [vmem:[#allocation2 + $0x2c] sm:$0x1] }
  0xb7   : > { %v781_v27 = vor.u32 %v779_v24, %v778_v23  ;;  %v694_v28 = vmax.f32 %v619_v25, 0.0  ;;  %v782_v43 = vrot.slane %v778_v23, 4 }
  0xb9   : > { %v1092_v29 = vsel %vm4914_vm6, %v781_v27, %v1091_v26  ;;  %v726_v30 = vpack.c.bf16 %v694_v28, %v694_v28  ;;  %v4938_v31 = vld [vmem:[#allocation2 + $0xc] sm:$0xff] }
  0xba   : > { %1093 = vst [vmem:[#allocation2 + $0x18] sm:$0xf] %v1092_v29  ;;  %v1204_v32 = vld [vmem:[#allocation2 + $0x14] sm:$0xf]  ;;  %2316 = vmatmul.bf16.gmra.mxu1 %v4938_v31  ;;  %v1413_v38 = vshll.u32 %v4938_v31, 16  ;;  %v1610_v45 = vrot.slane %v4938_v31, 1 }
  0xbb   : > { %v784_v34 = vshrl.u32 %v726_v30, 16  ;;  %v1366_v36 = vunpack.c.l.b16 %v1204_v32  ;;  %v787_v40 = vshll.u32 %v726_v30, 16  ;;  %v1411_v46 = vshrl.u32 %v4938_v31, 16 }
  0xbc   : > { %v621_v37 = vpop.f32.mrf.mxu0  ;;  %v1415_v47 = vrot.slane %v1413_v38, 1 }
  0xbd   : > { %v786_v39 = vrot.slane %v784_v34, 7  ;;  %v622_v41 = vadd.f32 %v4896_v50, %v621_v37  ;;  %v1382_v42 = vpack.c.b16 %v1366_v36, %v1366_v36 }
  0xbe   : > { %v1416_v53 = vor.u32 %v1415_v47, %v1411_v46 }
  0xbf   : > { %v789_v48 = vor.u32 %v787_v40, %v786_v39  ;;  %v791_v49 = vrot.slane %v786_v39, 4  ;;  %v695_v51 = vmax.f32 %v622_v41, 0.0  ;;  %3892 = vmatmul.msk.bf16.gmra.mxu0 %vm549_vm1, %v4386_v35  ;;  %v1611_v52 = vrot.slane %v1382_v42, 1  ;;  %v4439_v39 = vld [vmem:[#allocation3 + $0xe8] sm:$0xff] }
  0xc0   : > { %v1418_v54 = vshll.u32 %v1382_v42, 16  ;;  %2572 = vmatpush.bf16.msrb.mxu0 %v4439_v39 }
  0xc1   : > { %v790_v55 = vsel %vm4921_vm10, %v782_v43, %v789_v48  ;;  %v1096_v56 = vsel %vm4926_vm11, %v791_v49, %v1095_v44  ;;  %v727_v57 = vpack.c.bf16 %v695_v51, %v695_v51  ;;  %v4952_v58 = vsel %vm1606_vm3, %v1610_v45, %v1611_v52  ;;  %v1105_v45 = vld [vmem:[#allocation2 + $0x30] sm:$0xf] }
  0xc2   : > { %1094 = vst [vmem:[#allocation2 + $0x1c] sm:$0xf] %v790_v55  ;;  %2494 = vmatmul.bf16.gmra.mxu3 %v4952_v58  ;;  %v1420_v59 = vrot.slane %v1418_v54, 1  ;;  %v4388_v55 = vld [vmem:[%s4827_s23 + $0x60] sm:$0xff] }
  0xc3   : > { %1097 = vst [vmem:[#allocation2 + $0x20] sm:$0x1] %v1096_v56  ;;  %v793_v60 = vshrl.u32 %v727_v57, 16  ;;  %v796_v1 = vshll.u32 %v727_v57, 16 }
  0xc4   : > { %v4956_v61 = vsel %vm1397_vm2, %v1416_v53, %v1420_v59  ;;  %v623_v63 = vpop.f32.mrf.mxu0  ;;  %v4447_v53 = vld [vmem:[#allocation3 + $0x128] sm:$0xff] }
  0xc5   : > { %v795_v0 = vrot.slane %v793_v60, 7  ;;  %2405 = vmatmul.bf16.gmra.mxu2 %v4956_v61  ;;  %v624_v2 = vadd.f32 %v4896_v50, %v623_v63  ;;  %2661 = vmatpush.bf16.msrb.mxu1 %v4447_v53 }
  0xc7   : > { %v798_v4 = vor.u32 %v796_v1, %v795_v0  ;;  %v696_v5 = vmax.f32 %v624_v2, 0.0  ;;  %v799_v21 = vrot.slane %v795_v0, 4 }
  0xc9   : > { %v1099_v6 = vsel %vm4914_vm6, %v798_v4, %v1098_v3  ;;  %v728_v8 = vpack.c.bf16 %v696_v5, %v696_v5  ;;  %v4962_v9 = vld [vmem:[#allocation2 + $0x18] sm:$0xff] }
  0xca   : > { %1100 = vst [vmem:[#allocation2 + $0x24] sm:$0xf] %v1099_v6  ;;  %v1207_v10 = vld [vmem:[#allocation2 + $0x20] sm:$0xf]  ;;  %2321 = vmatmul.bf16.gmra.mxu1 %v4962_v9  ;;  %v1425_v16 = vshll.u32 %v4962_v9, 16  ;;  %v1613_v23 = vrot.slane %v4962_v9, 1 }
  0xcb   : > { %v801_v12 = vshrl.u32 %v728_v8, 16  ;;  %v1367_v14 = vunpack.c.l.b16 %v1207_v10  ;;  %v804_v18 = vshll.u32 %v728_v8, 16  ;;  %v1423_v24 = vshrl.u32 %v4962_v9, 16  ;;  %v1109_v3 = vld [vmem:[#allocation2 + $0x38] sm:$0x1] }
  0xcc   : > { %v626_v15 = vpop.f32.mrf.mxu0  ;;  %v1427_v25 = vrot.slane %v1425_v16, 1 }
  0xcd   : > { %v803_v17 = vrot.slane %v801_v12, 7  ;;  %v627_v19 = vadd.f32 %v4896_v50, %v626_v15  ;;  %v1383_v20 = vpack.c.b16 %v1367_v14, %v1367_v14 }
  0xce   : > { %v1428_v30 = vor.u32 %v1427_v25, %v1423_v24 }
  0xcf   : > { %v806_v26 = vor.u32 %v804_v18, %v803_v17  ;;  %v808_v27 = vrot.slane %v803_v17, 4  ;;  %v697_v28 = vmax.f32 %v627_v19, 0.0  ;;  %3893 = vmatmul.msk.bf16.gmra.mxu0 %vm549_vm1, %v4387_v13  ;;  %v1614_v29 = vrot.slane %v1383_v20, 1 }
  0xd0   : > { %v1430_v32 = vshll.u32 %v1383_v20, 16 }
  0xd1   : > { %v807_v33 = vsel %vm4921_vm10, %v799_v21, %v806_v26  ;;  %v1103_v34 = vsel %vm4926_vm11, %v808_v27, %v1102_v22  ;;  %v729_v35 = vpack.c.bf16 %v697_v28, %v697_v28  ;;  %v4976_v36 = vsel %vm1606_vm3, %v1613_v23, %v1614_v29  ;;  %v1112_v27 = vld [vmem:[#allocation2 + $0x3c] sm:$0xf] }
  0xd2   : > { %6149 = vst [vmem:[#allocation9_spill] sm:$0xff] %v4976_v36  ;;  %2499 = vmatmul.bf16.gmra.mxu3 %v4976_v36  ;;  %v1432_v37 = vrot.slane %v1430_v32, 1 }
  0xd3   : > { %1101 = vst [vmem:[#allocation2 + $0x28] sm:$0xf] %v807_v33  ;;  %v810_v38 = vshrl.u32 %v729_v35, 16  ;;  %v813_v43 = vshll.u32 %v729_v35, 16 }
  0xd4   : > { %1104 = vst [vmem:[#allocation2 + $0x2c] sm:$0x1] %v1103_v34  ;;  %v4980_v40 = vsel %vm1397_vm2, %v1428_v30, %v1432_v37  ;;  %v628_v41 = vpop.f32.mrf.mxu0  ;;  %v4389_v37 = vld [vmem:[%s4827_s23 + $0x68] sm:$0xff] }
  0xd5   : > { %v812_v42 = vrot.slane %v810_v38, 7  ;;  %2410 = vmatmul.bf16.gmra.mxu2 %v4980_v40  ;;  %v629_v44 = vadd.f32 %v4896_v50, %v628_v41 }
  0xd7   : > { %v815_v46 = vor.u32 %v813_v43, %v812_v42  ;;  %v698_v47 = vmax.f32 %v629_v44, 0.0  ;;  %v816_v2 = vrot.slane %v812_v42, 4  ;;  %v4438_v42 = vld [vmem:[#allocation3 + $0xe0] sm:$0xff] }
  0xd8   : > { %2573 = vmatpush.bf16.msrb.mxu0 %v4438_v42 }
  0xd9   : > { %v1106_v48 = vsel %vm4914_vm6, %v815_v46, %v1105_v45  ;;  %v730_v49 = vpack.c.bf16 %v698_v47, %v698_v47 }
  0xda   : > { %v4986_v51 = vld [vmem:[#allocation2 + $0x24] sm:$0xff]  ;;  %1107 = vst [vmem:[#allocation2 + $0x30] sm:$0xf] %v1106_v48 }
  0xdb   : > { %v1210_v52 = vld [vmem:[#allocation2 + $0x2c] sm:$0xf]  ;;  %v818_v54 = vshrl.u32 %v730_v49, 16  ;;  %2326 = vmatmul.bf16.gmra.mxu1 %v4986_v51  ;;  %v1437_v59 = vshll.u32 %v4986_v51, 16  ;;  %v821_v63 = vshll.u32 %v730_v49, 16  ;;  %v1616_v4 = vrot.slane %v4986_v51, 1 }
  0xdc   : > { %v1368_v56 = vunpack.c.l.b16 %v1210_v52  ;;  %v631_v57 = vpop.f32.mrf.mxu0  ;;  %v1435_v5 = vshrl.u32 %v4986_v51, 16  ;;  %v1116_v48 = vld [vmem:[#allocation2 + $0x44] sm:$0x1] }
  0xdd   : > { %v820_v60 = vrot.slane %v818_v54, 7  ;;  %v632_v0 = vadd.f32 %v4896_v50, %v631_v57  ;;  %v1439_v6 = vrot.slane %v1437_v59, 1 }
  0xde   : > { %v1384_v1 = vpack.c.b16 %v1368_v56, %v1368_v56 }
  0xdf   : > { %v823_v8 = vor.u32 %v821_v63, %v820_v60  ;;  %v825_v10 = vrot.slane %v820_v60, 4  ;;  %v699_v12 = vmax.f32 %v632_v0, 0.0  ;;  %3894 = vmatmul.msk.bf16.gmra.mxu0 %vm549_vm1, %v4388_v55  ;;  %v1440_v14 = vor.u32 %v1439_v6, %v1435_v5  ;;  %v4437_v63 = vld [vmem:[#allocation3 + $0xd8] sm:$0xff] }
  0xe0   : > { %v1617_v13 = vrot.slane %v1384_v1, 1  ;;  %v1442_v15 = vshll.u32 %v1384_v1, 16  ;;  %2574 = vmatpush.bf16.msrb.mxu0 %v4437_v63 }
  0xe1   : > { %v824_v16 = vsel %vm4921_vm10, %v816_v2, %v823_v8  ;;  %v1110_v17 = vsel %vm4926_vm11, %v825_v10, %v1109_v3  ;;  %v731_v18 = vpack.c.bf16 %v699_v12, %v699_v12  ;;  %v4436_v10 = vld [vmem:[#allocation3 + $0xd0] sm:$0xff] }
  0xe2   : > { %v5000_v19 = vsel %vm1606_vm3, %v1616_v4, %v1617_v13  ;;  %1108 = vst [vmem:[#allocation2 + $0x34] sm:$0xf] %v824_v16  ;;  %v1444_v20 = vrot.slane %v1442_v15, 1  ;;  %v1119_v15 = vld [vmem:[#allocation2 + $0x48] sm:$0xf] }
  0xe3   : > { %6150 = vst [vmem:[#allocation10_spill] sm:$0xff] %v5000_v19  ;;  %2504 = vmatmul.bf16.gmra.mxu3 %v5000_v19  ;;  %v827_v21 = vshrl.u32 %v731_v18, 16  ;;  %v830_v25 = vshll.u32 %v731_v18, 16  ;;  %v4435_v18 = vld [vmem:[#allocation3 + $0xc8] sm:$0xff] }
  0xe4   : > { %1111 = vst [vmem:[#allocation2 + $0x38] sm:$0x1] %v1110_v17  ;;  %v5004_v22 = vsel %vm1397_vm2, %v1440_v14, %v1444_v20  ;;  %v633_v23 = vpop.f32.mrf.mxu0  ;;  %2575 = vmatpush.bf16.msrb.mxu0 %v4436_v10 }
  0xe5   : > { %v829_v24 = vrot.slane %v827_v21, 7  ;;  %2415 = vmatmul.bf16.gmra.mxu2 %v5004_v22  ;;  %v634_v26 = vadd.f32 %v4896_v50, %v633_v23 }
  0xe7   : > { %v832_v28 = vor.u32 %v830_v25, %v829_v24  ;;  %v700_v29 = vmax.f32 %v634_v26, 0.0  ;;  %v833_v47 = vrot.slane %v829_v24, 4  ;;  %v4446_v25 = vld [vmem:[#allocation3 + $0x120] sm:$0xff] }
  0xe8   : > { %2576 = vmatpush.bf16.msrb.mxu0 %v4435_v18  ;;  %2662 = vmatpush.bf16.msrb.mxu1 %v4446_v25 }
  0xe9   : > { %v1113_v30 = vsel %vm4914_vm6, %v832_v28, %v1112_v27  ;;  %v732_v32 = vpack.c.bf16 %v700_v29, %v700_v29  ;;  %v5010_v33 = vld [vmem:[#allocation2 + $0x30] sm:$0xff] }
  0xea   : > { %1114 = vst [vmem:[#allocation2 + $0x3c] sm:$0xf] %v1113_v30  ;;  %v1449_v41 = vshll.u32 %v5010_v33, 16  ;;  %v1619_v49 = vrot.slane %v5010_v33, 1  ;;  %v1447_v52 = vshrl.u32 %v5010_v33, 16  ;;  %v4390_v27 = vld [vmem:[%s4827_s23 + $0x70] sm:$0xff] }
  0xeb   : > { %v1213_v34 = vld [vmem:[#allocation2 + $0x38] sm:$0xf]  ;;  %v835_v35 = vshrl.u32 %v732_v32, 16  ;;  %2331 = vmatmul.bf16.gmra.mxu1 %v5010_v33  ;;  %v838_v44 = vshll.u32 %v732_v32, 16 }
  0xec   : > { %v1369_v38 = vunpack.c.l.b16 %v1213_v34  ;;  %v636_v39 = vpop.f32.mrf.mxu0  ;;  %v1451_v53 = vrot.slane %v1449_v41, 1  ;;  %v4434_v32 = vld [vmem:[#allocation3 + $0xc0] sm:$0xff]  ;;  %v1123_v41 = vld [vmem:[#allocation2 + $0x50] sm:$0x1] }
  0xed   : > { %v837_v43 = vrot.slane %v835_v35, 7  ;;  %v637_v45 = vadd.f32 %v4896_v50, %v636_v39  ;;  %2577 = vmatpush.bf16.msrb.mxu0 %v4434_v32  ;;  %v2401_v32 = vpop.f32.mrf.mxu2 }
  0xee   : > { %v1385_v46 = vpack.c.b16 %v1369_v38, %v1369_v38  ;;  %v1452_v59 = vor.u32 %v1451_v53, %v1447_v52 }
  0xef   : > { %v840_v54 = vor.u32 %v838_v44, %v837_v43  ;;  %v842_v55 = vrot.slane %v837_v43, 4  ;;  %v701_v56 = vmax.f32 %v637_v45, 0.0  ;;  %3895 = vmatmul.msk.bf16.gmra.mxu0 %vm549_vm1, %v4389_v37 }
  0xf0   : > { %v1620_v57 = vrot.slane %v1385_v46, 1  ;;  %v1454_v60 = vshll.u32 %v1385_v46, 16 }
  0xf1   : > { %v841_v0 = vsel %vm4921_vm10, %v833_v47, %v840_v54  ;;  %v1117_v1 = vsel %vm4926_vm11, %v842_v55, %v1116_v48  ;;  %v733_v2 = vpack.c.bf16 %v701_v56, %v701_v56 }
  0xf2   : > { %v5024_v3 = vsel %vm1606_vm3, %v1619_v49, %v1620_v57  ;;  %1115 = vst [vmem:[#allocation2 + $0x40] sm:$0xf] %v841_v0  ;;  %v1456_v4 = vrot.slane %v1454_v60, 1 }
  0xf3   : > { %6151 = vst [vmem:[#allocation11_spill] sm:$0xff] %v5024_v3  ;;  %2509 = vmatmul.bf16.gmra.mxu3 %v5024_v3  ;;  %v844_v5 = vshrl.u32 %v733_v2, 16  ;;  %v847_v13 = vshll.u32 %v733_v2, 16 }
  0xf4   : > { %1118 = vst [vmem:[#allocation2 + $0x44] sm:$0x1] %v1117_v1  ;;  %v5028_v6 = vsel %vm1397_vm2, %v1452_v59, %v1456_v4  ;;  %v638_v8 = vpop.f32.mrf.mxu0  ;;  %v1126_v4 = vld [vmem:[#allocation2 + $0x54] sm:$0xf] }
  0xf5   : > { %v846_v12 = vrot.slane %v844_v5, 7  ;;  %2420 = vmatmul.bf16.gmra.mxu2 %v5028_v6  ;;  %v639_v14 = vadd.f32 %v4896_v50, %v638_v8 }
  0xf7   : > { %v849_v16 = vor.u32 %v847_v13, %v846_v12  ;;  %v702_v17 = vmax.f32 %v639_v14, 0.0  ;;  %v850_v39 = vrot.slane %v846_v12, 4  ;;  %v5063_v14 = vld [vmem:[%s6107_s4] ss:$0 sm:$0xff] }
  0xf9   : > { %v1120_v20 = vsel %vm4914_vm6, %v849_v16, %v1119_v15  ;;  %v734_v21 = vpack.c.bf16 %v702_v17, %v702_v17  ;;  %v5034_v23 = vld [vmem:[#allocation2 + $0x3c] sm:$0xff] }
  0xfa   : > { %1121 = vst [vmem:[#allocation2 + $0x48] sm:$0xf] %v1120_v20  ;;  %v1461_v30 = vshll.u32 %v5034_v23, 16  ;;  %v1622_v42 = vrot.slane %v5034_v23, 1  ;;  %v1459_v43 = vshrl.u32 %v5034_v23, 16  ;;  %v4391_v17 = vld [vmem:[%s4827_s23 + $0x78] sm:$0xff]  ;;  %v2312_v20 = vpop.f32.mrf.mxu1 }
  0xfb   : > { %v1216_v24 = vld [vmem:[#allocation2 + $0x44] sm:$0xf]  ;;  %v852_v26 = vshrl.u32 %v734_v21, 16  ;;  %2336 = vmatmul.bf16.gmra.mxu1 %v5034_v23  ;;  %v855_v35 = vshll.u32 %v734_v21, 16 }
  0xfc   : > { %v1370_v28 = vunpack.c.l.b16 %v1216_v24  ;;  %v641_v29 = vpop.f32.mrf.mxu0  ;;  %v1463_v44 = vrot.slane %v1461_v30, 1 }
  0xfd   : > { %v854_v34 = vrot.slane %v852_v26, 7  ;;  %v642_v37 = vadd.f32 %v4896_v50, %v641_v29  ;;  %v2313_v26 = vadd.f32 %v5063_v14, %v2312_v20 }
  0xfe   : > { %v1386_v38 = vpack.c.b16 %v1370_v28, %v1370_v28  ;;  %v1464_v49 = vor.u32 %v1463_v44, %v1459_v43 }
  0xff   : > { %v857_v45 = vor.u32 %v855_v35, %v854_v34  ;;  %v859_v46 = vrot.slane %v854_v34, 4  ;;  %v703_v47 = vmax.f32 %v642_v37, 0.0  ;;  %3896 = vmatmul.msk.bf16.gmra.mxu0 %vm549_vm1, %v4390_v27  ;;  %v1130_v34 = vld [vmem:[#allocation2 + $0x5c] sm:$0x1] }
 0x100   : > { %v1623_v48 = vrot.slane %v1386_v38, 1  ;;  %v1466_v52 = vshll.u32 %v1386_v38, 16 }
 0x101   : > { %v858_v53 = vsel %vm4921_vm10, %v850_v39, %v857_v45  ;;  %v1124_v54 = vsel %vm4926_vm11, %v859_v46, %v1123_v41  ;;  %v735_v55 = vpack.c.bf16 %v703_v47, %v703_v47  ;;  %v2402_v39 = vadd.f32 %v2401_v32, %v2313_v26  ;;  %v2490_v45 = vpop.f32.mrf.mxu3 }
 0x102   : > { %v5048_v56 = vsel %vm1606_vm3, %v1622_v42, %v1623_v48  ;;  %1122 = vst [vmem:[#allocation2 + $0x4c] sm:$0xf] %v858_v53  ;;  %v1468_v57 = vrot.slane %v1466_v52, 1 }
 0x103   : > { %6152 = vst [vmem:[#allocation12_spill] sm:$0xff] %v5048_v56  ;;  %2514 = vmatmul.bf16.gmra.mxu3 %v5048_v56  ;;  %v861_v59 = vshrl.u32 %v735_v55, 16  ;;  %v864_v1 = vshll.u32 %v735_v55, 16  ;;  %v5073_v48 = vadd.f32 %v2490_v45, %v2402_v39 }
 0x104   : > { %1125 = vst [vmem:[#allocation2 + $0x50] sm:$0x1] %v1124_v54  ;;  %v5052_v60 = vsel %vm1397_vm2, %v1464_v49, %v1468_v57  ;;  %v643_v63 = vpop.f32.mrf.mxu0 }
 0x105   : > { %v863_v0 = vrot.slane %v861_v59, 7  ;;  %2425 = vmatmul.bf16.gmra.mxu2 %v5052_v60  ;;  %v644_v2 = vadd.f32 %v4896_v50, %v643_v63 }
 0x107   : > { %v866_v5 = vor.u32 %v864_v1, %v863_v0  ;;  %v704_v8 = vmax.f32 %v644_v2, 0.0  ;;  %v867_v21 = vrot.slane %v863_v0, 4 }
 0x109   : > { %v1127_v10 = vsel %vm4914_vm6, %v866_v5, %v1126_v4  ;;  %v736_v12 = vpack.c.bf16 %v704_v8, %v704_v8  ;;  %v5058_v13 = vld [vmem:[#allocation2 + $0x48] sm:$0xff]  ;;  %v1133_v4 = vld [vmem:[#allocation2 + $0x60] sm:$0xf] }
 0x10a   : > { %1128 = vst [vmem:[#allocation2 + $0x54] sm:$0xf] %v1127_v10  ;;  %v1473_v25 = vshll.u32 %v5058_v13, 16  ;;  %v1625_v35 = vrot.slane %v5058_v13, 1  ;;  %v1471_v37 = vshrl.u32 %v5058_v13, 16 }
 0x10b   : > { %v1219_v15 = vld [vmem:[#allocation2 + $0x50] sm:$0xf]  ;;  %v869_v16 = vshrl.u32 %v736_v12, 16  ;;  %2341 = vmatmul.bf16.gmra.mxu1 %v5058_v13  ;;  %v872_v28 = vshll.u32 %v736_v12, 16 }
 0x10c   : > { %v1371_v18 = vunpack.c.l.b16 %v1219_v15  ;;  %v646_v24 = vpop.f32.mrf.mxu0  ;;  %v1475_v38 = vrot.slane %v1473_v25, 1 }
 0x10d   : > { %v871_v27 = vrot.slane %v869_v16, 7  ;;  %v647_v29 = vadd.f32 %v4896_v50, %v646_v24 }
 0x10e   : > { %v1387_v30 = vpack.c.b16 %v1371_v18, %v1371_v18  ;;  %v1476_v46 = vor.u32 %v1475_v38, %v1471_v37 }
 0x10f   : > { %v874_v41 = vor.u32 %v872_v28, %v871_v27  ;;  %v876_v42 = vrot.slane %v871_v27, 4  ;;  %v705_v43 = vmax.f32 %v647_v29, 0.0  ;;  %3897 = vmatmul.msk.bf16.gmra.mxu0 %vm549_vm1, %v4391_v17  ;;  %v4445_v17 = vld [vmem:[#allocation3 + $0x118] sm:$0xff] }
 0x110   : > { %v1626_v44 = vrot.slane %v1387_v30, 1  ;;  %v1478_v47 = vshll.u32 %v1387_v30, 16  ;;  %2663 = vmatpush.bf16.msrb.mxu1 %v4445_v17  ;;  %v1137_v30 = vld [vmem:[#allocation2 + $0x68] sm:$0x1] }
 0x111   : > { %v875_v49 = vsel %vm4921_vm10, %v867_v21, %v874_v41  ;;  %v1131_v52 = vsel %vm4926_vm11, %v876_v42, %v1130_v34  ;;  %v737_v53 = vpack.c.bf16 %v705_v43, %v705_v43 }
 0x112   : > { %v5080_v54 = vsel %vm1606_vm3, %v1625_v35, %v1626_v44  ;;  %1129 = vst [vmem:[#allocation2 + $0x58] sm:$0xf] %v875_v49  ;;  %v1480_v55 = vrot.slane %v1478_v47, 1 }
 0x113   : > { %6153 = vst [vmem:[#allocation13_spill] sm:$0xff] %v5080_v54  ;;  %2519 = vmatmul.bf16.gmra.mxu3 %v5080_v54  ;;  %v878_v57 = vshrl.u32 %v737_v53, 16  ;;  %v881_v1 = vshll.u32 %v737_v53, 16  ;;  %v4465_v53 = vld [vmem:[#allocation3 + $0x1b8] sm:$0xff] }
 0x114   : > { %1132 = vst [vmem:[#allocation2 + $0x5c] sm:$0x1] %v1131_v52  ;;  %v5084_v59 = vsel %vm1397_vm2, %v1476_v46, %v1480_v55  ;;  %v648_v63 = vpop.f32.mrf.mxu0  ;;  %2837 = vmatpush.bf16.msrb.mxu3 %v4465_v53 }
 0x115   : > { %v880_v0 = vrot.slane %v878_v57, 7  ;;  %2430 = vmatmul.bf16.gmra.mxu2 %v5084_v59  ;;  %v649_v2 = vadd.f32 %v4896_v50, %v648_v63 }
 0x117   : > { %v883_v5 = vor.u32 %v881_v1, %v880_v0  ;;  %v706_v8 = vmax.f32 %v649_v2, 0.0  ;;  %v884_v29 = vrot.slane %v880_v0, 4  ;;  %v1140_v2 = vld [vmem:[#allocation2 + $0x6c] sm:$0xf] }
 0x119   : > { %v1134_v10 = vsel %vm4914_vm6, %v883_v5, %v1133_v4  ;;  %v738_v12 = vpack.c.bf16 %v706_v8, %v706_v8  ;;  %v5090_v15 = vld [vmem:[#allocation2 + $0x54] sm:$0xff] }
 0x11a   : > { %1135 = vst [vmem:[#allocation2 + $0x60] sm:$0xf] %v1134_v10  ;;  %v1485_v24 = vshll.u32 %v5090_v15, 16  ;;  %v1628_v32 = vrot.slane %v5090_v15, 1  ;;  %v1483_v34 = vshrl.u32 %v5090_v15, 16 }
 0x11b   : > { %v1222_v16 = vld [vmem:[#allocation2 + $0x5c] sm:$0xf]  ;;  %v886_v18 = vshrl.u32 %v738_v12, 16  ;;  %2346 = vmatmul.bf16.gmra.mxu1 %v5090_v15  ;;  %v889_v26 = vshll.u32 %v738_v12, 16 }
 0x11c   : > { %v1372_v20 = vunpack.c.l.b16 %v1222_v16  ;;  %v651_v21 = vpop.f32.mrf.mxu0  ;;  %v1487_v35 = vrot.slane %v1485_v24, 1 }
 0x11d   : > { %v888_v25 = vrot.slane %v886_v18, 7  ;;  %v652_v27 = vadd.f32 %v4896_v50, %v651_v21 }
 0x11e   : > { %v1388_v28 = vpack.c.b16 %v1372_v20, %v1372_v20  ;;  %v1488_v42 = vor.u32 %v1487_v35, %v1483_v34 }
 0x11f   : > { %v891_v37 = vor.u32 %v889_v26, %v888_v25  ;;  %v893_v38 = vrot.slane %v888_v25, 4  ;;  %v707_v39 = vmax.f32 %v652_v27, 0.0  ;;  %2578 = vmatmul.bf16.vlgmr.msrb.gmra.mxu0 %v4938_v31  ;;  %v4457_v31 = vld [vmem:[#allocation3 + $0x178] sm:$0xff] }
 0x120   : > { %v1629_v41 = vrot.slane %v1388_v28, 1  ;;  %v1490_v43 = vshll.u32 %v1388_v28, 16  ;;  %2748 = vmatpush.bf16.msrb.mxu2 %v4457_v31 }
 0x121   : > { %v892_v44 = vsel %vm4921_vm10, %v884_v29, %v891_v37  ;;  %v1138_v45 = vsel %vm4926_vm11, %v893_v38, %v1137_v30  ;;  %v739_v46 = vpack.c.bf16 %v707_v39, %v707_v39  ;;  %v1144_v29 = vld [vmem:[#allocation2 + $0x74] sm:$0x1] }
 0x122   : > { %v5103_v47 = vsel %vm1606_vm3, %v1628_v32, %v1629_v41  ;;  %1136 = vst [vmem:[#allocation2 + $0x64] sm:$0xf] %v892_v44  ;;  %v1492_v49 = vrot.slane %v1490_v43, 1  ;;  %v5121_v41 = vpop.f32.mrf.mxu1 }
 0x123   : > { %6154 = vst [vmem:[#allocation14_spill] sm:$0xff] %v5103_v47  ;;  %2524 = vmatmul.bf16.gmra.mxu3 %v5103_v47  ;;  %v895_v52 = vshrl.u32 %v739_v46, 16  ;;  %v898_v0 = vshll.u32 %v739_v46, 16 }
 0x124   : > { %1139 = vst [vmem:[#allocation2 + $0x68] sm:$0x1] %v1138_v45  ;;  %v5107_v55 = vsel %vm1397_vm2, %v1488_v42, %v1492_v49  ;;  %v653_v57 = vpop.f32.mrf.mxu0 }
 0x125   : > { %v897_v63 = vrot.slane %v895_v52, 7  ;;  %2435 = vmatmul.bf16.gmra.mxu2 %v5107_v55  ;;  %v654_v1 = vadd.f32 %v4896_v50, %v653_v57 }
 0x127   : > { %v900_v4 = vor.u32 %v898_v0, %v897_v63  ;;  %v708_v5 = vmax.f32 %v654_v1, 0.0  ;;  %v901_v28 = vrot.slane %v897_v63, 4  ;;  %v1147_v1 = vld [vmem:[#allocation2 + $0x78] sm:$0xf] }
 0x129   : > { %v1141_v8 = vsel %vm4914_vm6, %v900_v4, %v1140_v2  ;;  %v740_v10 = vpack.c.bf16 %v708_v5, %v708_v5  ;;  %v5113_v12 = vld [vmem:[#allocation2 + $0x60] sm:$0xff] }
 0x12a   : > { %1142 = vst [vmem:[#allocation2 + $0x6c] sm:$0xf] %v1141_v8  ;;  %v1497_v21 = vshll.u32 %v5113_v12, 16  ;;  %v1631_v30 = vrot.slane %v5113_v12, 1  ;;  %v1495_v32 = vshrl.u32 %v5113_v12, 16 }
 0x12b   : > { %v1225_v16 = vld [vmem:[#allocation2 + $0x68] sm:$0xf]  ;;  %v903_v17 = vshrl.u32 %v740_v10, 16  ;;  %2351 = vmatmul.bf16.gmra.mxu1 %v5113_v12  ;;  %v906_v25 = vshll.u32 %v740_v10, 16 }
 0x12c   : > { %v1373_v18 = vunpack.c.l.b16 %v1225_v16  ;;  %v656_v20 = vpop.f32.mrf.mxu0  ;;  %v1499_v34 = vrot.slane %v1497_v21, 1 }
 0x12d   : > { %v905_v24 = vrot.slane %v903_v17, 7  ;;  %v657_v26 = vadd.f32 %v4896_v50, %v656_v20 }
 0x12e   : > { %v1389_v27 = vpack.c.b16 %v1373_v18, %v1373_v18  ;;  %v1500_v42 = vor.u32 %v1499_v34, %v1495_v32  ;;  %v4444_v18 = vld [vmem:[#allocation3 + $0x110] sm:$0xff]  ;;  %v1151_v34 = vld [vmem:[#allocation2 + $0x80] sm:$0x1] }
 0x12f   : > { %v908_v35 = vor.u32 %v906_v25, %v905_v24  ;;  %v910_v37 = vrot.slane %v905_v24, 4  ;;  %v709_v38 = vmax.f32 %v657_v26, 0.0  ;;  %2583 = vmatmul.bf16.gmra.mxu0 %v4962_v9  ;;  %2664 = vmatpush.bf16.msrb.mxu1 %v4444_v18  ;;  %v5142_v26 = vpop.f32.mrf.mxu3 }
 0x130   : > { %v1632_v39 = vrot.slane %v1389_v27, 1  ;;  %v1502_v43 = vshll.u32 %v1389_v27, 16  ;;  %6156 = vst [vmem:[#allocation16_spill] sm:$0xff] %v5142_v26 }
 0x131   : > { %v909_v44 = vsel %vm4921_vm10, %v901_v28, %v908_v35  ;;  %v1145_v45 = vsel %vm4926_vm11, %v910_v37, %v1144_v29  ;;  %v741_v46 = vpack.c.bf16 %v709_v38, %v709_v38 }
 0x132   : > { %v5128_v49 = vsel %vm1606_vm3, %v1631_v30, %v1632_v39  ;;  %1143 = vst [vmem:[#allocation2 + $0x70] sm:$0xf] %v909_v44  ;;  %v1504_v52 = vrot.slane %v1502_v43, 1  ;;  %v5147_v44 = vpop.f32.mrf.mxu2 }
 0x133   : > { %6155 = vst [vmem:[#allocation15_spill] sm:$0xff] %v5128_v49  ;;  %2529 = vmatmul.bf16.gmra.mxu3 %v5128_v49  ;;  %v912_v9 = vshrl.u32 %v741_v46, 16  ;;  %v915_v63 = vshll.u32 %v741_v46, 16 }
 0x134   : > { %1146 = vst [vmem:[#allocation2 + $0x74] sm:$0x1] %v1145_v45  ;;  %v5132_v31 = vsel %vm1397_vm2, %v1500_v42, %v1504_v52  ;;  %v658_v53 = vpop.f32.mrf.mxu0 }
 0x135   : > { %v914_v57 = vrot.slane %v912_v9, 7  ;;  %2440 = vmatmul.bf16.gmra.mxu2 %v5132_v31  ;;  %v659_v0 = vadd.f32 %v4896_v50, %v658_v53  ;;  %6157 = vst [vmem:[#allocation17_spill] sm:$0xff] %v5147_v44 }
 0x137   : > { %v917_v2 = vor.u32 %v915_v63, %v914_v57  ;;  %v710_v4 = vmax.f32 %v659_v0, 0.0  ;;  %v2317_v5 = vpop.f32.mrf.mxu1  ;;  %v918_v32 = vrot.slane %v914_v57, 4 }
 0x139   : > { %v1148_v8 = vsel %vm4914_vm6, %v917_v2, %v1147_v1  ;;  %v742_v10 = vpack.c.bf16 %v710_v4, %v710_v4  ;;  %v5138_v16 = vld [vmem:[#allocation2 + $0x6c] sm:$0xff] }
 0x13a   : > { %1149 = vst [vmem:[#allocation2 + $0x78] sm:$0xf] %v1148_v8  ;;  %v1509_v25 = vshll.u32 %v5138_v16, 16  ;;  %v1507_v35 = vshrl.u32 %v5138_v16, 16  ;;  %v1634_v46 = vrot.slane %v5138_v16, 1  ;;  %v4456_v2 = vld [vmem:[#allocation3 + $0x170] sm:$0xff] }
 0x13b   : > { %v1228_v17 = vld [vmem:[#allocation2 + $0x74] sm:$0xf]  ;;  %v920_v20 = vshrl.u32 %v742_v10, 16  ;;  %2356 = vmatmul.bf16.gmra.mxu1 %v5138_v16  ;;  %v923_v28 = vshll.u32 %v742_v10, 16  ;;  %v4464_v4 = vld [vmem:[#allocation3 + $0x1b0] sm:$0xff]  ;;  %2749 = vmatpush.bf16.msrb.mxu2 %v4456_v2 }
 0x13c   : > { %v1374_v21 = vunpack.c.l.b16 %v1228_v17  ;;  %v661_v24 = vpop.f32.mrf.mxu0  ;;  %v1511_v37 = vrot.slane %v1509_v25, 1  ;;  %2838 = vmatpush.bf16.msrb.mxu3 %v4464_v4  ;;  %v2318_v25 = vadd.f32 %v5063_v14, %v2317_v5  ;;  %v1158_v2 = vld [vmem:[#allocation2 + $0x8c] sm:$0x1] }
 0x13d   : > { %v922_v27 = vrot.slane %v920_v20, 7  ;;  %v662_v29 = vadd.f32 %v4896_v50, %v661_v24  ;;  %v1154_v24 = vld [vmem:[#allocation2 + $0x84] sm:$0xf] }
 0x13e   : > { %v1390_v30 = vpack.c.b16 %v1374_v21, %v1374_v21  ;;  %v1512_v52 = vor.u32 %v1511_v37, %v1507_v35 }
 0x13f   : > { %v925_v38 = vor.u32 %v923_v28, %v922_v27  ;;  %v927_v39 = vrot.slane %v922_v27, 4  ;;  %v711_v42 = vmax.f32 %v662_v29, 0.0  ;;  %2588 = vmatmul.bf16.gmra.mxu0 %v4986_v51  ;;  %v2319_v45 = vpop.f32.mrf.mxu1 }
 0x140   : > { %v1635_v43 = vrot.slane %v1390_v30, 1  ;;  %v1514_v9 = vshll.u32 %v1390_v30, 16 }
 0x141   : > { %v926_v53 = vsel %vm4921_vm10, %v918_v32, %v925_v38  ;;  %v1152_v57 = vsel %vm4926_vm11, %v927_v39, %v1151_v34  ;;  %v743_v63 = vpack.c.bf16 %v711_v42, %v711_v42 }
 0x142   : > { %1150 = vst [vmem:[#allocation2 + $0x7c] sm:$0xf] %v926_v53  ;;  %v5155_v0 = vsel %vm1606_vm3, %v1634_v46, %v1635_v43  ;;  %v1516_v51 = vrot.slane %v1514_v9, 1  ;;  %v5175_v9 = vld [vmem:[%s6105_s2] ss:$0 sm:$0xff] }
 0x143   : > { %6158 = vst [vmem:[#allocation18_spill] sm:$0xff] %v5155_v0  ;;  %v929_v1 = vshrl.u32 %v743_v63, 16  ;;  %2534 = vmatmul.bf16.gmra.mxu3 %v5155_v0  ;;  %v932_v18 = vshll.u32 %v743_v63, 16 }
 0x144   : > { %1153 = vst [vmem:[#allocation2 + $0x80] sm:$0x1] %v1152_v57  ;;  %v5159_v8 = vsel %vm1397_vm2, %v1512_v52, %v1516_v51  ;;  %v663_v10 = vpop.f32.mrf.mxu0 }
 0x145   : > { %6159 = vst [vmem:[#allocation19_spill] sm:$0xff] %v5159_v8  ;;  %v931_v17 = vrot.slane %v929_v1, 7  ;;  %2445 = vmatmul.bf16.gmra.mxu2 %v5159_v8  ;;  %v664_v20 = vadd.f32 %v4896_v50, %v663_v10  ;;  %v2495_v21 = vpop.f32.mrf.mxu3  ;;  %v2320_v1 = vadd.f32 %v5063_v14, %v2319_v45 }
 0x147   : > { %v934_v27 = vor.u32 %v932_v18, %v931_v17  ;;  %v712_v28 = vmax.f32 %v664_v20, 0.0  ;;  %v2322_v30 = vpop.f32.mrf.mxu1  ;;  %v935_v51 = vrot.slane %v931_v17, 4 }
 0x148   : > { %v2406_v29 = vpop.f32.mrf.mxu2 }
 0x149   : > { %v1155_v32 = vsel %vm4914_vm6, %v934_v27, %v1154_v24  ;;  %v744_v34 = vpack.c.bf16 %v712_v28, %v712_v28  ;;  %v2407_v35 = vadd.f32 %v2406_v29, %v2318_v25  ;;  %v5166_v37 = vld [vmem:[#allocation2 + $0x78] sm:$0xff] }
 0x14a   : > { %1156 = vst [vmem:[#allocation2 + $0x84] sm:$0xf] %v1155_v32  ;;  %v1521_v5 = vshll.u32 %v5166_v37, 16  ;;  %v1519_v4 = vshrl.u32 %v5166_v37, 16  ;;  %v1637_v28 = vrot.slane %v5166_v37, 1 }
 0x14b   : > { %v1231_v38 = vld [vmem:[#allocation2 + $0x80] sm:$0xf]  ;;  %v937_v50 = vshrl.u32 %v744_v34, 16  ;;  %2361 = vmatmul.bf16.gmra.mxu1 %v5166_v37  ;;  %v5170_v43 = vadd.f32 %v2495_v21, %v2407_v35  ;;  %v940_v52 = vshll.u32 %v744_v34, 16 }
 0x14c   : > { %v1375_v39 = vunpack.c.l.b16 %v1231_v38  ;;  %v666_v42 = vpop.f32.mrf.mxu0  ;;  %v1523_v10 = vrot.slane %v1521_v5, 1 }
 0x14d   : > { %v939_v46 = vrot.slane %v937_v50, 7  ;;  %v667_v53 = vadd.f32 %v5175_v9, %v666_v42  ;;  %v2497_v57 = vpop.f32.mrf.mxu3 }
 0x14e   : > { %v1391_v63 = vpack.c.b16 %v1375_v39, %v1375_v39  ;;  %v1524_v29 = vor.u32 %v1523_v10, %v1519_v4 }
 0x14f   : > { %v942_v18 = vor.u32 %v940_v52, %v939_v46  ;;  %v944_v20 = vrot.slane %v939_v46, 4  ;;  %v713_v21 = vmax.f32 %v667_v53, 0.0  ;;  %2593 = vmatmul.bf16.gmra.mxu0 %v5010_v33  ;;  %v2324_v27 = vpop.f32.mrf.mxu1 }
 0x150   : > { %v1638_v24 = vrot.slane %v1391_v63, 1  ;;  %v2408_v25 = vpop.f32.mrf.mxu2  ;;  %v1526_v32 = vshll.u32 %v1391_v63, 16 }
 0x151   : > { %v943_v17 = vsel %vm4921_vm10, %v935_v51, %v942_v18  ;;  %v1159_v45 = vsel %vm4926_vm11, %v944_v20, %v1158_v2  ;;  %v745_v34 = vpack.c.bf16 %v713_v21, %v713_v21  ;;  %v2409_v35 = vadd.f32 %v2408_v25, %v2320_v1  ;;  %v1161_v51 = vld [vmem:[#allocation2 + $0x90] sm:$0xf] }
 0x152   : > { %1157 = vst [vmem:[#allocation2 + $0x88] sm:$0xf] %v943_v17  ;;  %v5187_v38 = vsel %vm1606_vm3, %v1637_v28, %v1638_v24  ;;  %v1528_v33 = vrot.slane %v1526_v32, 1  ;;  %v2323_v1 = vadd.f32 %v5063_v14, %v2322_v30  ;;  %v4443_v28 = vld [vmem:[#allocation3 + $0x108] sm:$0xff] }
 0x153   : > { %6160 = vst [vmem:[#allocation20_spill] sm:$0xff] %v5187_v38  ;;  %v946_v50 = vshrl.u32 %v745_v34, 16  ;;  %2539 = vmatmul.bf16.gmra.mxu3 %v5187_v38  ;;  %v5190_v39 = vadd.f32 %v2497_v57, %v2409_v35  ;;  %v949_v52 = vshll.u32 %v745_v34, 16  ;;  %2665 = vmatpush.bf16.msrb.mxu1 %v4443_v28 }
 0x154   : > { %1160 = vst [vmem:[#allocation2 + $0x8c] sm:$0x1] %v1159_v45  ;;  %v5193_v42 = vsel %vm1397_vm2, %v1524_v29, %v1528_v33  ;;  %v668_v5 = vpop.f32.mrf.mxu0 }
 0x155   : > { %6161 = vst [vmem:[#allocation21_spill] sm:$0xff] %v5193_v42  ;;  %v948_v46 = vrot.slane %v946_v50, 7  ;;  %2450 = vmatmul.bf16.gmra.mxu2 %v5193_v42  ;;  %v669_v53 = vadd.f32 %v5175_v9, %v668_v5  ;;  %v2500_v63 = vpop.f32.mrf.mxu3 }
 0x157   : > { %v951_v2 = vor.u32 %v949_v52, %v948_v46  ;;  %v714_v4 = vmax.f32 %v669_v53, 0.0  ;;  %v952_v52 = vrot.slane %v948_v46, 4  ;;  %v2325_v53 = vadd.f32 %v5063_v14, %v2324_v27 }
 0x158   : > { %v2411_v10 = vpop.f32.mrf.mxu2  ;;  %v2327_v18 = vpop.f32.mrf.mxu1 }
 0x159   : > { %v1162_v57 = vsel %vm4914_vm6, %v951_v2, %v1161_v51  ;;  %v746_v20 = vpack.c.bf16 %v714_v4, %v714_v4  ;;  %v2412_v21 = vadd.f32 %v2411_v10, %v2323_v1  ;;  %v5200_v24 = vld [vmem:[#allocation2 + $0x84] sm:$0xff]  ;;  %v1165_v51 = vld [vmem:[#allocation2 + $0x98] sm:$0x1] }
 0x15a   : > { %1163 = vst [vmem:[#allocation2 + $0x90] sm:$0xf] %v1162_v57  ;;  %v1533_v30 = vshll.u32 %v5200_v24, 16  ;;  %v1531_v1 = vshrl.u32 %v5200_v24, 16 }
 0x15b   : > { %v1234_v25 = vld [vmem:[#allocation2 + $0x8c] sm:$0xf]  ;;  %v954_v29 = vshrl.u32 %v746_v20, 16  ;;  %2366 = vmatmul.bf16.gmra.mxu1 %v5200_v24  ;;  %v5204_v45 = vadd.f32 %v2500_v63, %v2412_v21  ;;  %v957_v35 = vshll.u32 %v746_v20, 16  ;;  %v1640_v20 = vrot.slane %v5200_v24, 1 }
 0x15c   : > { %v1376_v32 = vunpack.c.l.b16 %v1234_v25  ;;  %v671_v17 = vpop.f32.mrf.mxu0  ;;  %v1535_v2 = vrot.slane %v1533_v30, 1 }
 0x15d   : > { %v956_v34 = vrot.slane %v954_v29, 7  ;;  %v672_v33 = vadd.f32 %v5175_v9, %v671_v17  ;;  %v2502_v50 = vpop.f32.mrf.mxu3 }
 0x15e   : > { %v1392_v5 = vpack.c.b16 %v1376_v32, %v1376_v32  ;;  %v1536_v28 = vor.u32 %v1535_v2, %v1531_v1 }
 0x15f   : > { %v959_v4 = vor.u32 %v957_v35, %v956_v34  ;;  %v961_v10 = vrot.slane %v956_v34, 4  ;;  %v715_v57 = vmax.f32 %v672_v33, 0.0  ;;  %2598 = vmatmul.bf16.gmra.mxu0 %v5034_v23  ;;  %v4455_v35 = vld [vmem:[#allocation3 + $0x168] sm:$0xff] }
 0x160   : > { %v1641_v63 = vrot.slane %v1392_v5, 1  ;;  %v2413_v21 = vpop.f32.mrf.mxu2  ;;  %v2329_v25 = vpop.f32.mrf.mxu1  ;;  %v1538_v29 = vshll.u32 %v1392_v5, 16  ;;  %v4463_v33 = vld [vmem:[#allocation3 + $0x1a8] sm:$0xff]  ;;  %2750 = vmatpush.bf16.msrb.mxu2 %v4455_v35 }
 0x161   : > { %v960_v46 = vsel %vm4921_vm10, %v952_v52, %v959_v4  ;;  %v1166_v27 = vsel %vm4926_vm11, %v961_v10, %v1165_v51  ;;  %v747_v32 = vpack.c.bf16 %v715_v57, %v715_v57  ;;  %v2414_v17 = vadd.f32 %v2413_v21, %v2325_v53  ;;  %2839 = vmatpush.bf16.msrb.mxu3 %v4463_v33  ;;  %v1168_v10 = vld [vmem:[#allocation2 + $0x9c] sm:$0xf] }
 0x162   : > { %1164 = vst [vmem:[#allocation2 + $0x94] sm:$0xf] %v960_v46  ;;  %v5216_v30 = vsel %vm1606_vm3, %v1640_v20, %v1641_v63  ;;  %v1540_v23 = vrot.slane %v1538_v29, 1  ;;  %v2328_v57 = vadd.f32 %v5063_v14, %v2327_v18 }
 0x163   : > { %6162 = vst [vmem:[#allocation22_spill] sm:$0xff] %v5216_v30  ;;  %v963_v34 = vshrl.u32 %v747_v32, 16  ;;  %2544 = vmatmul.bf16.gmra.mxu3 %v5216_v30  ;;  %v5219_v5 = vadd.f32 %v2502_v50, %v2414_v17  ;;  %v966_v2 = vshll.u32 %v747_v32, 16 }
 0x164   : > { %1167 = vst [vmem:[#allocation2 + $0x98] sm:$0x1] %v1166_v27  ;;  %v5222_v52 = vsel %vm1397_vm2, %v1536_v28, %v1540_v23  ;;  %v673_v1 = vpop.f32.mrf.mxu0 }
 0x165   : > { %6163 = vst [vmem:[#allocation23_spill] sm:$0xff] %v5222_v52  ;;  %v965_v51 = vrot.slane %v963_v34, 7  ;;  %2455 = vmatmul.bf16.gmra.mxu2 %v5222_v52  ;;  %v674_v53 = vadd.f32 %v5175_v9, %v673_v1 }
 0x166   : > { %v2505_v4 = vpop.f32.mrf.mxu3 }
 0x167   : > { %v968_v63 = vor.u32 %v966_v2, %v965_v51  ;;  %v716_v21 = vmax.f32 %v674_v53, 0.0 }
 0x168   : > { %v2416_v50 = vpop.f32.mrf.mxu2  ;;  %v2332_v20 = vpop.f32.mrf.mxu1 }
 0x169   : > { %v1169_v28 = vsel %vm4914_vm6, %v968_v63, %v1168_v10  ;;  %v748_v29 = vpack.c.bf16 %v716_v21, %v716_v21  ;;  %v2417_v46 = vadd.f32 %v2416_v50, %v2328_v57  ;;  %v5229_v27 = vld [vmem:[#allocation2 + $0x90] sm:$0xff]  ;;  %v969_v57 = vrot.slane %v965_v51, 4  ;;  %v1172_v21 = vld [vmem:[#allocation2 + $0xa4] sm:$0x1] }
 0x16a   : > { %1170 = vst [vmem:[#allocation2 + $0x9c] sm:$0xf] %v1169_v28  ;;  %v1545_v18 = vshll.u32 %v5229_v27, 16  ;;  %v2330_v63 = vadd.f32 %v5063_v14, %v2329_v25  ;;  %v1543_v50 = vshrl.u32 %v5229_v27, 16 }
 0x16b   : > { %v1237_v32 = vld [vmem:[#allocation2 + $0x98] sm:$0xf]  ;;  %v971_v17 = vshrl.u32 %v748_v29, 16  ;;  %2371 = vmatmul.bf16.gmra.mxu1 %v5229_v27  ;;  %v5233_v35 = vadd.f32 %v2505_v4, %v2417_v46  ;;  %v974_v1 = vshll.u32 %v748_v29, 16  ;;  %v1643_v29 = vrot.slane %v5229_v27, 1 }
 0x16c   : > { %v1377_v23 = vunpack.c.l.b16 %v1237_v32  ;;  %v676_v34 = vpop.f32.mrf.mxu0  ;;  %v1547_v28 = vrot.slane %v1545_v18, 1 }
 0x16d   : > { %v973_v33 = vrot.slane %v971_v17, 7  ;;  %v677_v2 = vadd.f32 %v5175_v9, %v676_v34 }
 0x16e   : > { %v2507_v53 = vpop.f32.mrf.mxu3  ;;  %v1393_v10 = vpack.c.b16 %v1377_v23, %v1377_v23  ;;  %v1548_v34 = vor.u32 %v1547_v28, %v1543_v50 }
 0x16f   : > { %v976_v30 = vor.u32 %v974_v1, %v973_v33  ;;  %v978_v32 = vrot.slane %v973_v33, 4  ;;  %v717_v52 = vmax.f32 %v677_v2, 0.0  ;;  %2603 = vmatmul.bf16.gmra.mxu0 %v5058_v13 }
 0x170   : > { %v1644_v4 = vrot.slane %v1393_v10, 1  ;;  %v2418_v46 = vpop.f32.mrf.mxu2  ;;  %v2334_v17 = vpop.f32.mrf.mxu1  ;;  %v1550_v38 = vshll.u32 %v1393_v10, 16 }
 0x171   : > { %v977_v51 = vsel %vm4921_vm10, %v969_v57, %v976_v30  ;;  %v1173_v25 = vsel %vm4926_vm11, %v978_v32, %v1172_v21  ;;  %v749_v23 = vpack.c.bf16 %v717_v52, %v717_v52  ;;  %v2419_v18 = vadd.f32 %v2418_v46, %v2330_v63  ;;  %v1175_v21 = vld [vmem:[#allocation2 + $0xa8] sm:$0xf] }
 0x172   : > { %1171 = vst [vmem:[#allocation2 + $0xa0] sm:$0xf] %v977_v51  ;;  %v5245_v33 = vsel %vm1606_vm3, %v1643_v29, %v1644_v4  ;;  %v1552_v13 = vrot.slane %v1550_v38, 1  ;;  %v2333_v38 = vadd.f32 %v5063_v14, %v2332_v20 }
 0x173   : > { %6164 = vst [vmem:[#allocation24_spill] sm:$0xff] %v5245_v33  ;;  %v980_v1 = vshrl.u32 %v749_v23, 16  ;;  %2549 = vmatmul.bf16.gmra.mxu3 %v5245_v33  ;;  %v5248_v2 = vadd.f32 %v2507_v53, %v2419_v18  ;;  %v983_v50 = vshll.u32 %v749_v23, 16  ;;  %v4442_v23 = vld [vmem:[#allocation3 + $0x100] sm:$0xff] }
 0x174   : > { %1174 = vst [vmem:[#allocation2 + $0xa4] sm:$0x1] %v1173_v25  ;;  %v5251_v10 = vsel %vm1397_vm2, %v1548_v34, %v1552_v13  ;;  %v678_v30 = vpop.f32.mrf.mxu0  ;;  %2666 = vmatpush.bf16.msrb.mxu1 %v4442_v23 }
 0x175   : > { %6165 = vst [vmem:[#allocation25_spill] sm:$0xff] %v5251_v10  ;;  %v982_v57 = vrot.slane %v980_v1, 7  ;;  %2460 = vmatmul.bf16.gmra.mxu2 %v5251_v10  ;;  %v679_v52 = vadd.f32 %v5175_v9, %v678_v30 }
 0x176   : > { %v2510_v63 = vpop.f32.mrf.mxu3 }
 0x177   : > { %v985_v28 = vor.u32 %v983_v50, %v982_v57  ;;  %v718_v32 = vmax.f32 %v679_v52, 0.0 }
 0x178   : > { %v2421_v4 = vpop.f32.mrf.mxu2  ;;  %v5256_v46 = vpop.f32.mrf.mxu1 }
 0x179   : > { %v1176_v53 = vsel %vm4914_vm6, %v985_v28, %v1175_v21  ;;  %v750_v29 = vpack.c.bf16 %v718_v32, %v718_v32  ;;  %v2422_v34 = vadd.f32 %v2421_v4, %v2333_v38  ;;  %v5260_v51 = vld [vmem:[#allocation2 + $0x9c] sm:$0xff]  ;;  %v986_v32 = vrot.slane %v982_v57, 4 }
 0x17a   : > { %1177 = vst [vmem:[#allocation2 + $0xa8] sm:$0xf] %v1176_v53  ;;  %v1557_v1 = vshll.u32 %v5260_v51, 16  ;;  %v2335_v4 = vadd.f32 %v5063_v14, %v2334_v17  ;;  %v1179_v53 = vld [vmem:[#allocation2 + $0xb0] sm:$0x1]  ;;  %v1555_v33 = vshrl.u32 %v5260_v51, 16 }
 0x17b   : > { %v1240_v25 = vld [vmem:[#allocation2 + $0xa4] sm:$0xf]  ;;  %v988_v18 = vshrl.u32 %v750_v29, 16  ;;  %2376 = vmatmul.bf16.gmra.mxu1 %v5260_v51  ;;  %v5264_v30 = vadd.f32 %v2510_v63, %v2422_v34  ;;  %v991_v52 = vshll.u32 %v750_v29, 16  ;;  %v1646_v23 = vrot.slane %v5260_v51, 1 }
 0x17c   : > { %v1378_v13 = vunpack.c.l.b16 %v1240_v25  ;;  %v681_v20 = vpop.f32.mrf.mxu0  ;;  %v1559_v10 = vrot.slane %v1557_v1, 1  ;;  %v4462_v25 = vld [vmem:[#allocation3 + $0x1a0] sm:$0xff] }
 0x17d   : > { %v990_v50 = vrot.slane %v988_v18, 7  ;;  %v682_v21 = vadd.f32 %v5175_v9, %v681_v20  ;;  %2840 = vmatpush.bf16.msrb.mxu3 %v4462_v25  ;;  %v1182_v25 = vld [vmem:[#allocation2 + $0xb4] sm:$0xf] }
 0x17e   : > { %v2512_v38 = vpop.f32.mrf.mxu3  ;;  %v1394_v28 = vpack.c.b16 %v1378_v13, %v1378_v13  ;;  %v1560_v18 = vor.u32 %v1559_v10, %v1555_v33  ;;  %v4454_v13 = vld [vmem:[#allocation3 + $0x160] sm:$0xff] }
 0x17f   : > { %v993_v42 = vor.u32 %v991_v52, %v990_v50  ;;  %v995_v0 = vrot.slane %v990_v50, 4  ;;  %v719_v26 = vmax.f32 %v682_v21, 0.0  ;;  %2608 = vmatmul.bf16.gmra.mxu0 %v5090_v15  ;;  %2751 = vmatpush.bf16.msrb.mxu2 %v4454_v13  ;;  %v4461_v21 = vld [vmem:[#allocation3 + $0x198] sm:$0xff] }
 0x180   : > { %v1647_v63 = vrot.slane %v1394_v28, 1  ;;  %v2423_v34 = vpop.f32.mrf.mxu2  ;;  %v5270_v29 = vpop.f32.mrf.mxu1  ;;  %v1562_v57 = vshll.u32 %v1394_v28, 16 }
 0x181   : > { %v994_v17 = vsel %vm4921_vm10, %v986_v32, %v993_v42  ;;  %v1180_v20 = vsel %vm4926_vm11, %v995_v0, %v1179_v53  ;;  %v751_v1 = vpack.c.bf16 %v719_v26, %v719_v26  ;;  %v2424_v50 = vadd.f32 %v2423_v34, %v2335_v4  ;;  %2841 = vmatpush.bf16.msrb.mxu3 %v4461_v21  ;;  %v4453_v26 = vld [vmem:[#allocation3 + $0x158] sm:$0xff]  ;;  %v4459_v21 = vld [vmem:[#allocation3 + $0x188] sm:$0xff] }
 0x182   : > { %1178 = vst [vmem:[#allocation2 + $0xac] sm:$0xf] %v994_v17  ;;  %v5278_v15 = vsel %vm1606_vm3, %v1646_v23, %v1647_v63  ;;  %v1564_v52 = vrot.slane %v1562_v57, 1  ;;  %v4460_v63 = vld [vmem:[#allocation3 + $0x190] sm:$0xff] }
 0x183   : > { %6166 = vst [vmem:[#allocation26_spill] sm:$0xff] %v5278_v15  ;;  %v997_v33 = vshrl.u32 %v751_v1, 16  ;;  %2554 = vmatmul.bf16.gmra.mxu3 %v5278_v15  ;;  %v5281_v10 = vadd.f32 %v2512_v38, %v2424_v50  ;;  %v1000_v32 = vshll.u32 %v751_v1, 16  ;;  %2752 = vmatpush.bf16.msrb.mxu2 %v4453_v26  ;;  %v2338_v38 = vadd.f32 %v5063_v14, %v5256_v46  ;;  %v4452_v17 = vld [vmem:[#allocation3 + $0x150] sm:$0xff]  ;;  %v4473_v46 = vld [vmem:[#allocation3 + $0x1f8] sm:$0xff] }
 0x184   : > { %1181 = vst [vmem:[#allocation2 + $0xb0] sm:$0x1] %v1180_v20  ;;  %v5284_v42 = vsel %vm1397_vm2, %v1560_v18, %v1564_v52  ;;  %v683_v28 = vpop.f32.mrf.mxu0  ;;  %v3376_v18 = vld [vmem:[%s6110_s7] sm:$0x3]  ;;  %2926 = vmatpush.bf16.msra.mxu0 %v4473_v46  ;;  %v4481_v15 = vld [vmem:[#allocation3 + $0x238] sm:$0xff]  ;;  %v2340_v46 = vadd.f32 %v5063_v14, %v5270_v29 }
 0x185   : > { %6167 = vst [vmem:[#allocation27_spill] sm:$0xff] %v5284_v42  ;;  %v999_v0 = vrot.slane %v997_v33, 7  ;;  %2465 = vmatmul.bf16.gmra.mxu2 %v5284_v42  ;;  %v684_v4 = vadd.f32 %v5175_v9, %v683_v28  ;;  %2842 = vmatpush.bf16.msrb.mxu3 %v4460_v63 }
 0x186   : > { %v2515_v53 = vpop.f32.mrf.mxu3  ;;  %3015 = vmatpush.bf16.msra.mxu1 %v4481_v15 }
 0x187   : > { %v1002_v34 = vor.u32 %v1000_v32, %v999_v0  ;;  %v720_v23 = vmax.f32 %v684_v4, 0.0  ;;  %2753 = vmatpush.bf16.msrb.mxu2 %v4452_v17  ;;  %v3510_v32 = vsel %vm598_vm0, %v3376_v18, 0  ;;  %v4451_v17 = vld [vmem:[#allocation3 + $0x148] sm:$0xff]  ;;  %v1003_v42 = vrot.slane %v999_v0, 4 }
 0x188   : > { %v2426_v57 = vpop.f32.mrf.mxu2  ;;  %v5293_v13 = vpop.f32.mrf.mxu1 }
 0x189   : > { %v1183_v20 = vsel %vm4914_vm6, %v1002_v34, %v1182_v25  ;;  %v752_v1 = vpack.c.bf16 %v720_v23, %v720_v23  ;;  %v2427_v50 = vadd.f32 %v2426_v57, %v2338_v38  ;;  %v5297_v52 = vld [vmem:[#allocation2 + $0xa8] sm:$0xff]  ;;  %2843 = vmatpush.bf16.msrb.mxu3 %v4459_v21 }
 0x18a   : > { %1184 = vst [vmem:[#allocation2 + $0xb4] sm:$0xf] %v1183_v20  ;;  %v1569_v63 = vshll.u32 %v5297_v52, 16  ;;  %v1567_v18 = vshrl.u32 %v5297_v52, 16 }
 0x18b   : > { %v1243_v33 = vld [vmem:[#allocation2 + $0xb0] sm:$0xf]  ;;  %v1005_v28 = vshrl.u32 %v752_v1, 16  ;;  %2381 = vmatmul.bf16.gmra.mxu1 %v5297_v52  ;;  %v5302_v25 = vadd.f32 %v2515_v53, %v2427_v50  ;;  %v1008_v34 = vshll.u32 %v752_v1, 16  ;;  %2754 = vmatpush.bf16.msrb.mxu2 %v4451_v17  ;;  %v4458_v50 = vld [vmem:[#allocation3 + $0x180] sm:$0xff] }
 0x18c   : > { %v1379_v26 = vunpack.c.l.b16 %v1243_v33  ;;  %v686_v4 = vpop.f32.mrf.mxu0  ;;  %v1186_v33 = vld [vmem:[#allocation2 + $0xbc] sm:$0x1]  ;;  %v1571_v8 = vrot.slane %v1569_v63, 1 }
 0x18d   : > { %v1007_v38 = vrot.slane %v1005_v28, 7  ;;  %v687_v23 = vadd.f32 %v5175_v9, %v686_v4  ;;  %v1649_v4 = vrot.slane %v5297_v52, 1  ;;  %2844 = vmatpush.bf16.msrb.mxu3 %v4458_v50 }
 0x18e   : > { %v2517_v57 = vpop.f32.mrf.mxu3  ;;  %v1395_v20 = vpack.c.b16 %v1379_v26, %v1379_v26  ;;  %v1572_v0 = vor.u32 %v1571_v8, %v1567_v18 }
 0x18f   : > { %v1010_v44 = vor.u32 %v1008_v34, %v1007_v38  ;;  %v1012_v21 = vrot.slane %v1007_v38, 4  ;;  %v721_v53 = vmax.f32 %v687_v23, 0.0  ;;  %2613 = vmatmul.bf16.gmra.mxu0 %v5113_v12  ;;  %v4450_v12 = vld [vmem:[#allocation3 + $0x140] sm:$0xff] }
 0x190   : > { %v1650_v1 = vrot.slane %v1395_v20, 1  ;;  %v2428_v28 = vpop.f32.mrf.mxu2  ;;  %v2344_v26 = vpop.f32.mrf.mxu1  ;;  %v1574_v49 = vshll.u32 %v1395_v20, 16  ;;  %2755 = vmatpush.bf16.msrb.mxu2 %v4450_v12 }
 0x191   : > { %v1011_v14 = vsel %vm4921_vm10, %v1003_v42, %v1010_v44  ;;  %v1187_v29 = vsel %vm4926_vm11, %v1012_v21, %v1186_v33  ;;  %v753_v63 = vpack.c.bf16 %v721_v53, %v721_v53  ;;  %v2429_v38 = vadd.f32 %v2428_v28, %v2340_v46  ;;  %3519 = vmatpush.bf16.msra.mxu3 %v3510_v32  ;;  %v5328_v32 = vld [vmem:[%s6107_s4] ss:$0 sm:$0xff] }
 0x192   : > { %1185 = vst [vmem:[#allocation2 + $0xb8] sm:$0xf] %v1011_v14  ;;  %v5315_v34 = vsel %vm1606_vm3, %v1649_v4, %v1650_v1  ;;  %v1576_v23 = vrot.slane %v1574_v49, 1  ;;  %v1189_v49 = vld [vmem:[#allocation2 + $0xc0] sm:$0xf] }
 0x193   : > { %1188 = vst [vmem:[#allocation2 + $0xbc] sm:$0x1] %v1187_v29  ;;  %v1014_v8 = vshrl.u32 %v753_v63, 16  ;;  %v1017_v20 = vshll.u32 %v753_v63, 16  ;;  %2559 = vmatmul.bf16.gmra.mxu3 %v5315_v34  ;;  %v5318_v44 = vadd.f32 %v2517_v57, %v2429_v38  ;;  %v2343_v57 = vadd.f32 %v5328_v32, %v5293_v13 }
 0x194   : > { %v5321_v15 = vsel %vm1397_vm2, %v1572_v0, %v1576_v23  ;;  %v688_v42 = vpop.f32.mrf.mxu0 }
 0x195   : > { %v1016_v17 = vrot.slane %v1014_v8, 7  ;;  %2470 = vmatmul.bf16.gmra.mxu2 %v5321_v15  ;;  %v689_v46 = vadd.f32 %v5175_v9, %v688_v42 }
 0x196   : > { %v2520_v33 = vpop.f32.mrf.mxu3 }
 0x197   : > { %v1019_v18 = vor.u32 %v1017_v20, %v1016_v17  ;;  %v722_v21 = vmax.f32 %v689_v46, 0.0  ;;  %v1020_v23 = vrot.slane %v1016_v17, 4  ;;  %v2345_v46 = vadd.f32 %v5328_v32, %v2344_v26 }
 0x198   : > { %v2431_v53 = vpop.f32.mrf.mxu2  ;;  %v2347_v1 = vpop.f32.mrf.mxu1 }
 0x199   : > { %v1190_v50 = vsel %vm4914_vm6, %v1019_v18, %v1189_v49  ;;  %v754_v28 = vpack.c.bf16 %v722_v21, %v722_v21  ;;  %v2432_v4 = vadd.f32 %v2431_v53, %v2343_v57  ;;  %v5334_v9 = vld [vmem:[#allocation2 + $0xb4] sm:$0xff]  ;;  %v1193_v49 = vld [vmem:[#allocation2 + $0xc8] sm:$0x1]  ;;  %v2348_v11 = vadd.f32 %v5328_v32, %v2347_v1 }
 0x19a   : > { %1191 = vst [vmem:[#allocation2 + $0xc0] sm:$0xf] %v1190_v50  ;;  %v1246_v0 = vld [vmem:[#allocation2 + $0xbc] sm:$0xf]  ;;  %v1581_v13 = vshll.u32 %v5334_v9, 16  ;;  %v1579_v57 = vshrl.u32 %v5334_v9, 16 }
 0x19b   : > { %v1022_v14 = vshrl.u32 %v754_v28, 16  ;;  %v1025_v29 = vshll.u32 %v754_v28, 16  ;;  %2386 = vmatmul.bf16.gmra.mxu1 %v5334_v9  ;;  %v1380_v63 = vunpack.c.l.b16 %v1246_v0  ;;  %v5338_v12 = vadd.f32 %v2520_v33, %v2432_v4 }
 0x19c   : > { %v2579_v38 = vpop.f32.mrf.mxu0  ;;  %v1583_v18 = vrot.slane %v1581_v13, 1  ;;  %v1652_v4 = vrot.slane %v5334_v9, 1 }
 0x19d   : > { %v1024_v8 = vrot.slane %v1022_v14, 7  ;;  %v5341_v20 = vadd.f32 %v2579_v38, %v5073_v48  ;;  %v1396_v42 = vpack.c.b16 %v1380_v63, %v1380_v63 }
 0x19e   : > { %v2522_v62 = vpop.f32.mrf.mxu3  ;;  %v1584_v0 = vor.u32 %v1583_v18, %v1579_v57 }
 0x19f   : > { %v1027_v21 = vor.u32 %v1025_v29, %v1024_v8  ;;  %v1029_v53 = vrot.slane %v1024_v8, 4  ;;  %2618 = vmatmul.bf16.gmra.mxu0 %v5138_v16  ;;  %v1653_v50 = vrot.slane %v1396_v42, 1  ;;  %v1586_v33 = vshll.u32 %v1396_v42, 16 }
 0x1a0   : > { %v2433_v28 = vpop.f32.mrf.mxu2  ;;  %v2349_v17 = vpop.f32.mrf.mxu1 }
 0x1a1   : > { %v1028_v48 = vsel %vm4921_vm10, %v1020_v23, %v1027_v21  ;;  %v1194_v26 = vsel %vm4926_vm11, %v1029_v53, %v1193_v49  ;;  %v2434_v14 = vadd.f32 %v2433_v28, %v2345_v46  ;;  %v5352_v29 = vsel %vm1606_vm3, %v1652_v4, %v1653_v50  ;;  %v4472_v46 = vld [vmem:[#allocation3 + $0x1f0] sm:$0xff]  ;;  %v4584_v28 = vld [vmem:[#allocation2 + $0x18] sm:$0xff] }
 0x1a2   : > { %1192 = vst [vmem:[#allocation2 + $0xc4] sm:$0xf] %v1028_v48  ;;  %v1588_v63 = vrot.slane %v1586_v33, 1  ;;  %2927 = vmatpush.bf16.msra.mxu0 %v4472_v46  ;;  %v4480_v21 = vld [vmem:[#allocation3 + $0x230] sm:$0xff]  ;;  %v2350_v53 = vadd.f32 %v5328_v32, %v2349_v17 }
 0x1a3   : > { %1195 = vst [vmem:[#allocation2 + $0xc8] sm:$0x1] %v1194_v26  ;;  %2564 = vmatmul.bf16.gmra.mxu3 %v5352_v29  ;;  %v5355_v16 = vadd.f32 %v2522_v62, %v2434_v14  ;;  %3016 = vmatpush.bf16.msra.mxu1 %v4480_v21 }
 0x1a4   : > { %v5358_v38 = vsel %vm1397_vm2, %v1584_v0, %v1588_v63  ;;  %v5360_v13 = vpop.f32.mrf.mxu0 }
 0x1a5   : > { %2475 = vmatmul.bf16.gmra.mxu2 %v5358_v38 }
 0x1a6   : > { %v2525_v7 = vpop.f32.mrf.mxu3 }
 0x1a8   : > { %v2436_v23 = vpop.f32.mrf.mxu2  ;;  %v2352_v8 = vpop.f32.mrf.mxu1 }
 0x1a9   : > { %v2437_v42 = vadd.f32 %v2436_v23, %v2348_v11  ;;  %v2353_v48 = vadd.f32 %v5328_v32, %v2352_v8  ;;  %v4585_v8 = vld [vmem:[#allocation2 + $0x24] sm:$0xff] }
 0x1ab   : > { %2667 = vmatmul.bf16.vlgmr.msrb.gmra.mxu1 %v4956_v61  ;;  %v5365_v49 = vadd.f32 %v2525_v7, %v2437_v42 }
 0x1ac   : > { %v2584_v62 = vpop.f32.mrf.mxu0 }
 0x1ad   : > { %v5368_v18 = vadd.f32 %v2584_v62, %v5170_v43 }
 0x1ae   : > { %v2527_v57 = vpop.f32.mrf.mxu3 }
 0x1af   : > { %2623 = vmatmul.bf16.gmra.mxu0 %v5166_v37 }
 0x1b0   : > { %v2438_v1 = vpop.f32.mrf.mxu2  ;;  %v2354_v50 = vpop.f32.mrf.mxu1 }
 0x1b1   : > { %v2439_v33 = vadd.f32 %v2438_v1, %v2350_v53 }
 0x1b3   : > { %2845 = vmatmul.bf16.vlgmr.msrb.gmra.mxu3 %v4584_v28  ;;  %v5372_v61 = vadd.f32 %v2527_v57, %v2439_v33 }
 0x1b4   : > { %v2586_v4 = vpop.f32.mrf.mxu0 }
 0x1b5   : > { %2756 = vmatmul.bf16.vlgmr.msrb.gmra.mxu2 %v4952_v58  ;;  %v5376_v43 = vadd.f32 %v2586_v4, %v5190_v39  ;;  %v2355_v58 = vadd.f32 %v5328_v32, %v2354_v50 }
 0x1b6   : > { %v2530_v0 = vpop.f32.mrf.mxu3 }
 0x1b8   : > { %v2441_v17 = vpop.f32.mrf.mxu2  ;;  %v2357_v26 = vpop.f32.mrf.mxu1 }
 0x1b9   : > { %v2442_v37 = vadd.f32 %v2441_v17, %v2353_v48  ;;  %v4479_v48 = vld [vmem:[#allocation3 + $0x228] sm:$0xff] }
 0x1ba   : > { %3017 = vmatpush.bf16.msra.mxu1 %v4479_v48 }
 0x1bb   : > { %2672 = vmatmul.bf16.gmra.mxu1 %v4980_v40  ;;  %v5380_v14 = vadd.f32 %v2530_v0, %v2442_v37 }
 0x1bc   : > { %v2589_v63 = vpop.f32.mrf.mxu0 }
 0x1bd   : > { %v5383_v11 = vadd.f32 %v2589_v63, %v5204_v45  ;;  %v2358_v45 = vadd.f32 %v5328_v32, %v2357_v26  ;;  %v4586_v63 = vld [vmem:[#allocation2 + $0x30] sm:$0xff] }
 0x1be   : > { %v2532_v7 = vpop.f32.mrf.mxu3 }
 0x1bf   : > { %2628 = vmatmul.bf16.gmra.mxu0 %v5200_v24  ;;  %v4471_v24 = vld [vmem:[#allocation3 + $0x1e8] sm:$0xff] }
 0x1c0   : > { %v2443_v39 = vpop.f32.mrf.mxu2  ;;  %v2359_v23 = vpop.f32.mrf.mxu1  ;;  %2928 = vmatpush.bf16.msra.mxu0 %v4471_v24 }
 0x1c1   : > { %v2444_v42 = vadd.f32 %v2443_v39, %v2355_v58 }
 0x1c3   : > { %2850 = vmatmul.bf16.gmra.mxu3 %v4585_v8  ;;  %v5387_v46 = vadd.f32 %v2532_v7, %v2444_v42 }
 0x1c4   : > { %v2591_v62 = vpop.f32.mrf.mxu0 }
 0x1c5   : > { %2761 = vmatmul.bf16.gmra.mxu2 %v4976_v36  ;;  %v5391_v57 = vadd.f32 %v2591_v62, %v5219_v5  ;;  %v2360_v5 = vadd.f32 %v5328_v32, %v2359_v23  ;;  %v6173_v36 = vld [vmem:[#allocation16_spill] sm:$0xff] }
 0x1c6   : > { %v2535_v21 = vpop.f32.mrf.mxu3 }
 0x1c8   : > { %v2446_v53 = vpop.f32.mrf.mxu2  ;;  %v2362_v1 = vpop.f32.mrf.mxu1 }
 0x1c9   : > { %v2447_v50 = vadd.f32 %v2446_v53, %v2358_v45  ;;  %v2363_v42 = vadd.f32 %v5328_v32, %v2362_v1  ;;  %v4587_v1 = vld [vmem:[#allocation2 + $0x3c] sm:$0xff] }
 0x1cb   : > { %2677 = vmatmul.bf16.gmra.mxu1 %v5004_v22  ;;  %v5395_v33 = vadd.f32 %v2535_v21, %v2447_v50 }
 0x1cc   : > { %v2594_v28 = vpop.f32.mrf.mxu0 }
 0x1cd   : > { %v5398_v4 = vadd.f32 %v2594_v28, %v5233_v35 }
 0x1ce   : > { %v2537_v0 = vpop.f32.mrf.mxu3 }
 0x1cf   : > { %2633 = vmatmul.bf16.gmra.mxu0 %v5229_v27 }
 0x1d0   : > { %v2448_v17 = vpop.f32.mrf.mxu2  ;;  %v2364_v26 = vpop.f32.mrf.mxu1 }
 0x1d1   : > { %v2449_v37 = vadd.f32 %v2448_v17, %v2360_v5  ;;  %v2365_v24 = vadd.f32 %v5328_v32, %v2364_v26 }
 0x1d3   : > { %2855 = vmatmul.bf16.gmra.mxu3 %v4586_v63  ;;  %v5402_v7 = vadd.f32 %v2537_v0, %v2449_v37 }
 0x1d4   : > { %v2596_v58 = vpop.f32.mrf.mxu0 }
 0x1d5   : > { %2766 = vmatmul.bf16.gmra.mxu2 %v5000_v19  ;;  %v5406_v35 = vadd.f32 %v2596_v58, %v5248_v2  ;;  %v6171_v19 = vld [vmem:[#allocation17_spill] sm:$0xff] }
 0x1d6   : > { %v2540_v39 = vpop.f32.mrf.mxu3 }
 0x1d8   : > { %v2451_v23 = vpop.f32.mrf.mxu2  ;;  %v2367_v8 = vpop.f32.mrf.mxu1 }
 0x1d9   : > { %v2452_v62 = vadd.f32 %v2451_v23, %v2363_v42  ;;  %v2368_v37 = vadd.f32 %v5328_v32, %v2367_v8 }
 0x1db   : > { %2682 = vmatmul.bf16.gmra.mxu1 %v5028_v6  ;;  %v5410_v21 = vadd.f32 %v2540_v39, %v2452_v62  ;;  %v4470_v39 = vld [vmem:[#allocation3 + $0x1e0] sm:$0xff] }
 0x1dc   : > { %v2599_v45 = vpop.f32.mrf.mxu0  ;;  %2929 = vmatpush.bf16.msra.mxu0 %v4470_v39 }
 0x1dd   : > { %v5413_v53 = vadd.f32 %v2599_v45, %v5264_v30 }
 0x1de   : > { %v2542_v50 = vpop.f32.mrf.mxu3 }
 0x1df   : > { %2638 = vmatmul.bf16.gmra.mxu0 %v5260_v51 }
 0x1e0   : > { %v2453_v2 = vpop.f32.mrf.mxu2  ;;  %v2369_v28 = vpop.f32.mrf.mxu1 }
 0x1e1   : > { %v2454_v0 = vadd.f32 %v2453_v2, %v2365_v24 }
 0x1e3   : > { %2860 = vmatmul.bf16.gmra.mxu3 %v4587_v1  ;;  %v5417_v48 = vadd.f32 %v2542_v50, %v2454_v0  ;;  %v4478_v50 = vld [vmem:[#allocation3 + $0x220] sm:$0xff]  ;;  %v4469_v0 = vld [vmem:[#allocation3 + $0x1d8] sm:$0xff]  ;;  %v4588_v1 = vld [vmem:[#allocation2 + $0x48] sm:$0xff] }
 0x1e4   : > { %v2601_v5 = vpop.f32.mrf.mxu0  ;;  %3018 = vmatpush.bf16.msra.mxu1 %v4478_v50  ;;  %2930 = vmatpush.bf16.msra.mxu0 %v4469_v0  ;;  %v4467_v50 = vld [vmem:[#allocation3 + $0x1c8] sm:$0xff] }
 0x1e5   : > { %2771 = vmatmul.bf16.gmra.mxu2 %v5024_v3  ;;  %v5421_v17 = vadd.f32 %v2601_v5, %v5281_v10  ;;  %v2370_v10 = vadd.f32 %v5328_v32, %v2369_v28 }
 0x1e6   : > { %v2545_v30 = vpop.f32.mrf.mxu3 }
 0x1e8   : > { %v2456_v63 = vpop.f32.mrf.mxu2  ;;  %v2372_v26 = vpop.f32.mrf.mxu1 }
 0x1e9   : > { %v2457_v58 = vadd.f32 %v2456_v63, %v2368_v37  ;;  %v4468_v37 = vld [vmem:[#allocation3 + $0x1d0] sm:$0xff]  ;;  %v2373_v63 = vadd.f32 %v5328_v32, %v2372_v26 }
 0x1ea   : > { %2931 = vmatpush.bf16.msra.mxu0 %v4468_v37  ;;  %v4589_v37 = vld [vmem:[#allocation2 + $0x54] sm:$0xff] }
 0x1eb   : > { %2687 = vmatmul.bf16.gmra.mxu1 %v5052_v60  ;;  %v5425_v42 = vadd.f32 %v2545_v30, %v2457_v58 }
 0x1ec   : > { %v2604_v23 = vpop.f32.mrf.mxu0 }
 0x1ed   : > { %v5428_v62 = vadd.f32 %v2604_v23, %v5302_v25 }
 0x1ee   : > { %v2547_v45 = vpop.f32.mrf.mxu3  ;;  %2932 = vmatpush.bf16.msra.mxu0 %v4467_v50 }
 0x1ef   : > { %2643 = vmatmul.bf16.gmra.mxu0 %v5297_v52 }
 0x1f0   : > { %v2458_v8 = vpop.f32.mrf.mxu2  ;;  %v2374_v24 = vpop.f32.mrf.mxu1 }
 0x1f1   : > { %v2459_v2 = vadd.f32 %v2458_v8, %v2370_v10  ;;  %v2375_v0 = vadd.f32 %v5328_v32, %v2374_v24 }
 0x1f3   : > { %2865 = vmatmul.bf16.gmra.mxu3 %v4588_v1  ;;  %v5432_v5 = vadd.f32 %v2547_v45, %v2459_v2 }
 0x1f4   : > { %v2606_v30 = vpop.f32.mrf.mxu0 }
 0x1f5   : > { %2776 = vmatmul.bf16.gmra.mxu2 %v5048_v56  ;;  %v5436_v25 = vadd.f32 %v2606_v30, %v5318_v44  ;;  %v4466_v44 = vld [vmem:[#allocation3 + $0x1c0] sm:$0xff] }
 0x1f6   : > { %v2550_v28 = vpop.f32.mrf.mxu3  ;;  %2933 = vmatpush.bf16.msra.mxu0 %v4466_v44  ;;  %v5455_v44 = vld [vmem:[#allocation2 + $0xc0] sm:$0xff] }
 0x1f8   : > { %v2461_v58 = vpop.f32.mrf.mxu2  ;;  %v2377_v39 = vpop.f32.mrf.mxu1 }
 0x1f9   : > { %v2462_v23 = vadd.f32 %v2461_v58, %v2373_v63 }
 0x1fb   : > { %2692 = vmatmul.bf16.gmra.mxu1 %v5084_v59  ;;  %v5440_v45 = vadd.f32 %v2550_v28, %v2462_v23  ;;  %v2378_v23 = vadd.f32 %v5328_v32, %v2377_v39 }
 0x1fc   : > { %v2609_v10 = vpop.f32.mrf.mxu0 }
 0x1fd   : > { %v5443_v8 = vadd.f32 %v2609_v10, %v5338_v12 }
 0x1fe   : > { %v2552_v2 = vpop.f32.mrf.mxu3 }
 0x1ff   : > { %2648 = vmatmul.bf16.gmra.mxu0 %v5334_v9 }
 0x200   : > { %v2463_v26 = vpop.f32.mrf.mxu2  ;;  %v2379_v1 = vpop.f32.mrf.mxu1 }
 0x201   : > { %v2464_v30 = vadd.f32 %v2463_v26, %v2375_v0 }
 0x203   : > { %2870 = vmatmul.bf16.gmra.mxu3 %v4589_v37  ;;  %v5447_v63 = vadd.f32 %v2552_v2, %v2464_v30  ;;  %v4477_v37 = vld [vmem:[#allocation3 + $0x218] sm:$0xff] }
 0x204   : > { %v2611_v28 = vpop.f32.mrf.mxu0  ;;  %3019 = vmatpush.bf16.msra.mxu1 %v4477_v37  ;;  %v4489_v37 = vld [vmem:[%s6108_s5 + $0x38] sm:$0xff] }
 0x205   : > { %2781 = vmatmul.bf16.gmra.mxu2 %v5080_v54  ;;  %v5451_v12 = vadd.f32 %v2611_v28, %v5355_v16  ;;  %v2380_v16 = vadd.f32 %v5328_v32, %v2379_v1 }
 0x206   : > { %v2555_v58 = vpop.f32.mrf.mxu3  ;;  %3220 = vmatpush.bf16.msra.mxu2 %v4489_v37 }
 0x208   : > { %v2466_v24 = vpop.f32.mrf.mxu2  ;;  %v2382_v50 = vpop.f32.mrf.mxu1 }
 0x209   : > { %v2467_v10 = vadd.f32 %v2466_v24, %v2378_v23  ;;  %v4590_v24 = vld [vmem:[#allocation2 + $0x60] sm:$0xff] }
 0x20b   : > { %2697 = vmatmul.bf16.gmra.mxu1 %v5107_v55  ;;  %v5457_v0 = vadd.f32 %v2555_v58, %v2467_v10 }
 0x20c   : > { %v2614_v2 = vpop.f32.mrf.mxu0 }
 0x20d   : > { %v5460_v26 = vadd.f32 %v2614_v2, %v5365_v49  ;;  %v2383_v2 = vadd.f32 %v5328_v32, %v2382_v50 }
 0x20e   : > { %v2557_v30 = vpop.f32.mrf.mxu3 }
 0x20f   : > { %2653 = vmatmul.bf16.gmra.mxu0 %v5455_v44 }
 0x210   : > { %v2468_v39 = vpop.f32.mrf.mxu2  ;;  %v2384_v28 = vpop.f32.mrf.mxu1 }
 0x211   : > { %v2469_v23 = vadd.f32 %v2468_v39, %v2380_v16 }
 0x213   : > { %2875 = vmatmul.bf16.gmra.mxu3 %v4590_v24  ;;  %v5464_v54 = vadd.f32 %v2557_v30, %v2469_v23  ;;  %v2385_v23 = vadd.f32 %v5328_v32, %v2384_v28 }
 0x214   : > { %v2616_v58 = vpop.f32.mrf.mxu0 }
 0x215   : > { %2786 = vmatmul.bf16.gmra.mxu2 %v5103_v47  ;;  %v5468_v49 = vadd.f32 %v2616_v58, %v5372_v61 }
 0x216   : > { %v2560_v10 = vpop.f32.mrf.mxu3 }
 0x218   : > { %v2471_v1 = vpop.f32.mrf.mxu2  ;;  %v2387_v56 = vpop.f32.mrf.mxu1 }
 0x219   : > { %v2472_v3 = vadd.f32 %v2471_v1, %v2383_v2  ;;  %v4591_v2 = vld [vmem:[#allocation2 + $0x6c] sm:$0xff]  ;;  %v2388_v28 = vadd.f32 %v5328_v32, %v2387_v56 }
 0x21b   : > { %2702 = vmatmul.bf16.gmra.mxu1 %v5132_v31  ;;  %v5475_v30 = vadd.f32 %v2560_v10, %v2472_v3  ;;  %v2315_v3 = vadd.f32 %v5328_v32, %v5121_v41  ;;  %v6169_v10 = vld [vmem:[#allocation15_spill] sm:$0xff] }
 0x21c   : > { %v2619_v16 = vpop.f32.mrf.mxu0 }
 0x21d   : > { %v5478_v39 = vadd.f32 %v2619_v16, %v5380_v14 }
 0x21e   : > { %v2562_v61 = vpop.f32.mrf.mxu3 }
 0x21f   : > { %6168 = vst [vmem:[#allocation28_spill] sm:$0xff] %v5478_v39  ;;  %2934 = vmatmul.bf16.vlgmr.msra.gmra.mxu0 %v4980_v40 }
 0x220   : > { %v2473_v50 = vpop.f32.mrf.mxu2  ;;  %v2389_v24 = vpop.f32.mrf.mxu1 }
 0x221   : > { %v2474_v58 = vadd.f32 %v2473_v50, %v2385_v23  ;;  %v2404_v23 = vadd.f32 %v6171_v19, %v2315_v3  ;;  %v2390_v39 = vadd.f32 %v5328_v32, %v2389_v24 }
 0x223   : > { %2880 = vmatmul.bf16.gmra.mxu3 %v4591_v2  ;;  %v5482_v1 = vadd.f32 %v2562_v61, %v2474_v58  ;;  %v6172_v58 = vld [vmem:[#allocation19_spill] sm:$0xff] }
 0x224   : > { %v2621_v47 = vpop.f32.mrf.mxu0 }
 0x225   : > { %2791 = vmatmul.bf16.gmra.mxu2 %v6169_v10  ;;  %v5488_v14 = vadd.f32 %v2621_v47, %v5387_v46  ;;  %v2493_v10 = vadd.f32 %v6173_v36, %v2404_v23 }
 0x226   : > { %v2565_v37 = vpop.f32.mrf.mxu3 }
 0x227   : > { %6170 = vst [vmem:[#allocation29_spill] sm:$0xff] %v5488_v14  ;;  %v4476_v14 = vld [vmem:[#allocation3 + $0x210] sm:$0xff]  ;;  %v2582_v56 = vadd.f32 %v5360_v13, %v2493_v10 }
 0x228   : > { %v2476_v40 = vpop.f32.mrf.mxu2  ;;  %v2668_v16 = vpop.f32.mrf.mxu1  ;;  %3020 = vmatpush.bf16.msra.mxu1 %v4476_v14  ;;  %v6175_v14 = vld [vmem:[#allocation21_spill] sm:$0xff] }
 0x229   : > { %v2477_v50 = vadd.f32 %v2476_v40, %v2388_v28  ;;  %v2669_v61 = vadd.f32 %v2668_v16, %v5341_v20  ;;  %v4592_v28 = vld [vmem:[#allocation2 + $0x78] sm:$0xff] }
 0x22b   : > { %2707 = vmatmul.bf16.gmra.mxu1 %v6172_v58  ;;  %v5494_v2 = vadd.f32 %v2565_v37, %v2477_v50 }
 0x22c   : > { %v2624_v41 = vpop.f32.mrf.mxu0 }
 0x22d   : > { %v5498_v47 = vadd.f32 %v2624_v41, %v5395_v33  ;;  %v6174_v33 = vld [vmem:[#allocation18_spill] sm:$0xff] }
 0x22e   : > { %v2567_v46 = vpop.f32.mrf.mxu3 }
 0x22f   : > { %2939 = vmatmul.bf16.gmra.mxu0 %v5004_v22 }
 0x230   : > { %v2478_v19 = vpop.f32.mrf.mxu2  ;;  %v2670_v20 = vpop.f32.mrf.mxu1 }
 0x231   : > { %v2479_v3 = vadd.f32 %v2478_v19, %v2390_v39  ;;  %v2671_v37 = vadd.f32 %v2670_v20, %v2582_v56  ;;  %v4488_v39 = vld [vmem:[%s6108_s5 + $0x30] sm:$0xff]  ;;  %v4593_v19 = vld [vmem:[#allocation2 + $0x84] sm:$0xff] }
 0x232   : > { %3221 = vmatpush.bf16.msra.mxu2 %v4488_v39 }
 0x233   : > { %2885 = vmatmul.bf16.gmra.mxu3 %v4592_v28  ;;  %v5503_v40 = vadd.f32 %v2567_v46, %v2479_v3  ;;  %v6176_v28 = vld [vmem:[#allocation20_spill] sm:$0xff] }
 0x234   : > { %v2626_v36 = vpop.f32.mrf.mxu0 }
 0x235   : > { %2796 = vmatmul.bf16.gmra.mxu2 %v6174_v33  ;;  %v5507_v16 = vadd.f32 %v2626_v36, %v5402_v7 }
 0x236   : > { %v2846_v13 = vpop.f32.mrf.mxu3 }
 0x238   : > { %v2757_v10 = vpop.f32.mrf.mxu2  ;;  %v2673_v32 = vpop.f32.mrf.mxu1 }
 0x239   : > { %v2758_v24 = vadd.f32 %v2757_v10, %v2669_v61  ;;  %v2674_v22 = vadd.f32 %v2673_v32, %v5368_v18 }
 0x23b   : > { %2712 = vmatmul.bf16.gmra.mxu1 %v6175_v14  ;;  %v5514_v23 = vadd.f32 %v2846_v13, %v2758_v24  ;;  %v6177_v24 = vld [vmem:[#allocation23_spill] sm:$0xff] }
 0x23c   : > { %v2629_v50 = vpop.f32.mrf.mxu0 }
 0x23d   : > { %v5517_v41 = vadd.f32 %v2629_v50, %v5410_v21 }
 0x23e   : > { %v2848_v7 = vpop.f32.mrf.mxu3 }
 0x23f   : > { %2944 = vmatmul.bf16.gmra.mxu0 %v5028_v6 }
 0x240   : > { %v2759_v46 = vpop.f32.mrf.mxu2  ;;  %v2675_v61 = vpop.f32.mrf.mxu1 }
 0x241   : > { %v2760_v56 = vadd.f32 %v2759_v46, %v2671_v37  ;;  %v2676_v18 = vadd.f32 %v2675_v61, %v5376_v43 }
 0x243   : > { %2890 = vmatmul.bf16.gmra.mxu3 %v4593_v19  ;;  %v5521_v20 = vadd.f32 %v2848_v7, %v2760_v56  ;;  %v4475_v7 = vld [vmem:[#allocation3 + $0x208] sm:$0xff] }
 0x244   : > { %v2631_v3 = vpop.f32.mrf.mxu0  ;;  %3021 = vmatpush.bf16.msra.mxu1 %v4475_v7  ;;  %v6178_v19 = vld [vmem:[#allocation22_spill] sm:$0xff] }
 0x245   : > { %2801 = vmatmul.bf16.gmra.mxu2 %v6176_v28  ;;  %v5525_v36 = vadd.f32 %v2631_v3, %v5417_v48 }
 0x246   : > { %v2851_v21 = vpop.f32.mrf.mxu3 }
 0x248   : > { %v2762_v13 = vpop.f32.mrf.mxu2  ;;  %v2678_v10 = vpop.f32.mrf.mxu1 }
 0x249   : > { %v2763_v32 = vadd.f32 %v2762_v13, %v2674_v22  ;;  %v2679_v6 = vadd.f32 %v2678_v10, %v5383_v11 }
 0x24b   : > { %2717 = vmatmul.bf16.gmra.mxu1 %v6177_v24  ;;  %v5529_v37 = vadd.f32 %v2851_v21, %v2763_v32 }
 0x24c   : > { %v2634_v43 = vpop.f32.mrf.mxu0 }
 0x24d   : > { %v5532_v39 = vadd.f32 %v2634_v43, %v5425_v42 }
 0x24e   : > { %v2853_v50 = vpop.f32.mrf.mxu3 }
 0x24f   : > { %2949 = vmatmul.bf16.gmra.mxu0 %v5052_v60 }
 0x250   : > { %v2764_v48 = vpop.f32.mrf.mxu2  ;;  %v2680_v46 = vpop.f32.mrf.mxu1 }
 0x251   : > { %v2765_v61 = vadd.f32 %v2764_v48, %v2676_v18  ;;  %v2681_v22 = vadd.f32 %v2680_v46, %v5391_v57  ;;  %v4487_v57 = vld [vmem:[%s6108_s5 + $0x28] sm:$0xff]  ;;  %v6179_v18 = vld [vmem:[#allocation25_spill] sm:$0xff] }
 0x252   : > { %3222 = vmatpush.bf16.msra.mxu2 %v4487_v57 }
 0x253   : > { %2895 = vmatmul.bf16.gmra.mxu3 %v5229_v27  ;;  %v5537_v11 = vadd.f32 %v2853_v50, %v2765_v61  ;;  %v6180_v61 = vld [vmem:[#allocation24_spill] sm:$0xff] }
 0x254   : > { %v2636_v56 = vpop.f32.mrf.mxu0 }
 0x255   : > { %2806 = vmatmul.bf16.gmra.mxu2 %v6178_v19  ;;  %v5541_v42 = vadd.f32 %v2636_v56, %v5432_v5 }
 0x256   : > { %v2856_v3 = vpop.f32.mrf.mxu3 }
 0x258   : > { %v2767_v21 = vpop.f32.mrf.mxu2  ;;  %v2683_v13 = vpop.f32.mrf.mxu1 }
 0x259   : > { %v2768_v60 = vadd.f32 %v2767_v21, %v2679_v6  ;;  %v2684_v10 = vadd.f32 %v2683_v13, %v5398_v4 }
 0x25b   : > { %2722 = vmatmul.bf16.gmra.mxu1 %v6179_v18  ;;  %v5548_v27 = vadd.f32 %v2856_v3, %v2768_v60  ;;  %v6181_v60 = vld [vmem:[#allocation27_spill] sm:$0xff] }
 0x25c   : > { %v2639_v32 = vpop.f32.mrf.mxu0 }
 0x25d   : > { %v5551_v43 = vadd.f32 %v2639_v32, %v5440_v45  ;;  %v4474_v32 = vld [vmem:[#allocation3 + $0x200] sm:$0xff] }
 0x25e   : > { %v2858_v5 = vpop.f32.mrf.mxu3  ;;  %3022 = vmatpush.bf16.msra.mxu1 %v4474_v32 }
 0x25f   : > { %2954 = vmatmul.bf16.gmra.mxu0 %v5084_v59 }
 0x260   : > { %v2769_v50 = vpop.f32.mrf.mxu2  ;;  %v2685_v6 = vpop.f32.mrf.mxu1 }
 0x261   : > { %v2770_v7 = vadd.f32 %v2769_v50, %v2681_v22  ;;  %v2686_v4 = vadd.f32 %v2685_v6, %v5406_v35 }
 0x263   : > { %2900 = vmatmul.bf16.gmra.mxu3 %v5260_v51  ;;  %v5556_v48 = vadd.f32 %v2858_v5, %v2770_v7  ;;  %v6182_v7 = vld [vmem:[#allocation26_spill] sm:$0xff] }
 0x264   : > { %v2641_v46 = vpop.f32.mrf.mxu0 }
 0x265   : > { %2811 = vmatmul.bf16.gmra.mxu2 %v6180_v61  ;;  %v5560_v56 = vadd.f32 %v2641_v46, %v5447_v63 }
 0x266   : > { %v2861_v45 = vpop.f32.mrf.mxu3 }
 0x268   : > { %v2772_v3 = vpop.f32.mrf.mxu2  ;;  %v2688_v21 = vpop.f32.mrf.mxu1 }
 0x269   : > { %v2773_v13 = vadd.f32 %v2772_v3, %v2684_v10  ;;  %v2689_v59 = vadd.f32 %v2688_v21, %v5413_v53 }
 0x26b   : > { %2727 = vmatmul.bf16.gmra.mxu1 %v6181_v60  ;;  %v5564_v22 = vadd.f32 %v2861_v45, %v2773_v13 }
 0x26c   : > { %v2644_v35 = vpop.f32.mrf.mxu0 }
 0x26d   : > { %v5567_v51 = vadd.f32 %v2644_v35, %v5457_v0 }
 0x26e   : > { %v2863_v57 = vpop.f32.mrf.mxu3 }
 0x26f   : > { %2959 = vmatmul.bf16.gmra.mxu0 %v5107_v55 }
 0x270   : > { %v2774_v63 = vpop.f32.mrf.mxu2  ;;  %v2690_v5 = vpop.f32.mrf.mxu1 }
 0x271   : > { %v2775_v50 = vadd.f32 %v2774_v63, %v2686_v4  ;;  %v5571_v10 = vadd.f32 %v2690_v5, %v5421_v17  ;;  %v4486_v17 = vld [vmem:[%s6108_s5 + $0x20] sm:$0xff]  ;;  %v1249_v63 = vld [vmem:[#allocation2 + $0xc8] sm:$0xf] }
 0x272   : > { %3223 = vmatpush.bf16.msra.mxu2 %v4486_v17 }
 0x273   : > { %2905 = vmatmul.bf16.gmra.mxu3 %v5297_v52  ;;  %v5574_v53 = vadd.f32 %v2863_v57, %v2775_v50 }
 0x274   : > { %v2646_v6 = vpop.f32.mrf.mxu0 }
 0x275   : > { %2816 = vmatmul.bf16.gmra.mxu2 %v6182_v7  ;;  %v5578_v0 = vadd.f32 %v2646_v6, %v5464_v54 }
 0x276   : > { %v2866_v46 = vpop.f32.mrf.mxu3 }
 0x278   : > { %v2777_v45 = vpop.f32.mrf.mxu2  ;;  %v2693_v55 = vpop.f32.mrf.mxu1 }
 0x279   : > { %v2778_v3 = vadd.f32 %v2777_v45, %v2689_v59  ;;  %v2694_v21 = vadd.f32 %v2693_v55, %v5428_v62 }
 0x27b   : > { %2732 = vmatmul.bf16.gmra.mxu1 %v5321_v15  ;;  %v5585_v52 = vadd.f32 %v2866_v46, %v2778_v3  ;;  %v1678_v46 = vunpack.c.l.b16 %v1249_v63  ;;  %v1683_v3 = vshll.u32 %v5455_v44, 16 }
 0x27c   : > { %v2649_v4 = vpop.f32.mrf.mxu0 }
 0x27d   : > { %v5588_v13 = vadd.f32 %v2649_v4, %v5475_v30  ;;  %v1681_v4 = vshrl.u32 %v5455_v44, 16 }
 0x27e   : > { %v5590_v54 = vpop.f32.mrf.mxu3 }
 0x27f   : > { %2964 = vmatmul.bf16.gmra.mxu0 %v5132_v31 }
 0x280   : > { %v5593_v59 = vpop.f32.mrf.mxu2  ;;  %v2695_v62 = vpop.f32.mrf.mxu1 }
 0x281   : > { %v5596_v35 = vadd.f32 %v2695_v62, %v5436_v25  ;;  %v1685_v62 = vrot.slane %v1683_v3, 1 }
 0x283   : > { %2910 = vmatmul.bf16.gmra.mxu3 %v5334_v9 }
 0x284   : > { %v2651_v57 = vpop.f32.mrf.mxu0 }
 0x285   : > { %2821 = vmatmul.bf16.gmra.mxu2 %v5315_v34  ;;  %v5601_v32 = vadd.f32 %v2651_v57, %v5482_v1  ;;  %v1679_v1 = vpack.c.b16 %v1678_v46, %v1678_v46 }
 0x286   : > { %v2871_v30 = vpop.f32.mrf.mxu3 }
 0x287   : > { %v1688_v57 = vshll.u32 %v1679_v1, 16 }
 0x288   : > { %v2782_v5 = vpop.f32.mrf.mxu2  ;;  %v2698_v50 = vpop.f32.mrf.mxu1 }
 0x289   : > { %v2783_v6 = vadd.f32 %v2782_v5, %v2694_v21  ;;  %v2699_v31 = vadd.f32 %v2698_v50, %v5443_v8  ;;  %v1690_v5 = vrot.slane %v1688_v57, 1 }
 0x28b   : > { %2737 = vmatmul.bf16.gmra.mxu1 %v5358_v38  ;;  %v5605_v25 = vadd.f32 %v2871_v30, %v2783_v6 }
 0x28c   : > { %v2654_v45 = vpop.f32.mrf.mxu0 }
 0x28d   : > { %v5608_v9 = vadd.f32 %v2654_v45, %v5494_v2  ;;  %v4485_v45 = vld [vmem:[%s6108_s5 + $0x18] sm:$0xff] }
 0x28e   : > { %v5610_v55 = vpop.f32.mrf.mxu3  ;;  %3224 = vmatpush.bf16.msra.mxu2 %v4485_v45 }
 0x28f   : > { %2969 = vmatmul.bf16.gmra.mxu0 %v6172_v58  ;;  %v1686_v58 = vor.u32 %v1685_v62, %v1681_v4 }
 0x290   : > { %v5614_v17 = vpop.f32.mrf.mxu2  ;;  %v2700_v21 = vpop.f32.mrf.mxu1 }
 0x291   : > { %v5617_v8 = vadd.f32 %v2700_v21, %v5451_v12  ;;  %v5630_v3 = vsel %vm1397_vm2, %v1686_v58, %v1690_v5  ;;  %v1694_v58 = vrot.slane %v1679_v1, 1 }
 0x293   : > { %2915 = vmatmul.bf16.gmra.mxu3 %v5455_v44 }
 0x294   : > { %v2656_v2 = vpop.f32.mrf.mxu0 }
 0x295   : > { %2826 = vmatmul.bf16.gmra.mxu2 %v5352_v29  ;;  %v5623_v30 = vadd.f32 %v2656_v2, %v5503_v40  ;;  %v1693_v2 = vrot.slane %v5455_v44, 1  ;;  %v6185_v44 = vld [vmem:[#allocation28_spill] sm:$0xff] }
 0x296   : > { %v2876_v63 = vpop.f32.mrf.mxu3 }
 0x298   : > { %v2787_v50 = vpop.f32.mrf.mxu2  ;;  %v2703_v6 = vpop.f32.mrf.mxu1 }
 0x299   : > { %v2788_v46 = vadd.f32 %v2787_v50, %v2699_v31  ;;  %v2704_v12 = vadd.f32 %v2703_v6, %v5460_v26  ;;  %v5641_v26 = vld [vmem:[#allocation2 + $0xcc] sm:$0xff] }
 0x29b   : > { %2742 = vmatmul.bf16.gmra.mxu1 %v5630_v3  ;;  %v5633_v40 = vadd.f32 %v2876_v63, %v2788_v46 }
 0x29c   : > { %v2935_v21 = vpop.f32.mrf.mxu0 }
 0x29d   : > { %v5636_v4 = vadd.f32 %v2935_v21, %v5514_v23  ;;  %v5651_v23 = vsel %vm1606_vm3, %v1693_v2, %v1694_v58  ;;  %v6186_v21 = vld [vmem:[#allocation9_spill] sm:$0xff] }
 0x29e   : > { %v5638_v62 = vpop.f32.mrf.mxu3 }
 0x29f   : > { %6183 = vst [vmem:[#allocation17_spill] sm:$0xff] %v5638_v62  ;;  %2974 = vmatmul.bf16.gmra.mxu0 %v6175_v14 }
 0x2a0   : > { %v5643_v31 = vpop.f32.mrf.mxu2  ;;  %v2705_v57 = vpop.f32.mrf.mxu1 }
 0x2a1   : > { %v5647_v5 = vadd.f32 %v2705_v57, %v5468_v49 }
 0x2a3   : > { %6184 = vst [vmem:[#allocation19_spill] sm:$0xff] %v5647_v5  ;;  %2920 = vmatmul.bf16.gmra.mxu3 %v5641_v26  ;;  %v6187_v5 = vld [vmem:[#allocation29_spill] sm:$0xff] }
 0x2a4   : > { %v2937_v63 = vpop.f32.mrf.mxu0 }
 0x2a5   : > { %2831 = vmatmul.bf16.gmra.mxu2 %v5651_v23  ;;  %v5655_v14 = vadd.f32 %v2937_v63, %v5521_v20 }
 0x2a6   : > { %v2881_v50 = vpop.f32.mrf.mxu3 }
 0x2a8   : > { %v2792_v6 = vpop.f32.mrf.mxu2  ;;  %v2708_v46 = vpop.f32.mrf.mxu1 }
 0x2a9   : > { %v2793_v45 = vadd.f32 %v2792_v6, %v2704_v12  ;;  %v2709_v1 = vadd.f32 %v2708_v46, %v6185_v44 }
 0x2ab   : > { %3023 = vmatmul.bf16.vlgmr.msra.gmra.mxu1 %v6186_v21  ;;  %v5659_v49 = vadd.f32 %v2881_v50, %v2793_v45  ;;  %v6188_v21 = vld [vmem:[#allocation10_spill] sm:$0xff] }
 0x2ac   : > { %v2940_v57 = vpop.f32.mrf.mxu0 }
 0x2ad   : > { %v5662_v2 = vadd.f32 %v2940_v57, %v5529_v37 }
 0x2ae   : > { %v5664_v58 = vpop.f32.mrf.mxu3 }
 0x2af   : > { %2979 = vmatmul.bf16.gmra.mxu0 %v6177_v24  ;;  %v4484_v24 = vld [vmem:[%s6108_s5 + $0x10] sm:$0xff] }
 0x2b0   : > { %v5667_v20 = vpop.f32.mrf.mxu2  ;;  %v2710_v63 = vpop.f32.mrf.mxu1  ;;  %3225 = vmatpush.bf16.msra.mxu2 %v4484_v24 }
 0x2b1   : > { %v5670_v62 = vadd.f32 %v2710_v63, %v6187_v5 }
 0x2b4   : > { %v2942_v12 = vpop.f32.mrf.mxu0 }
 0x2b5   : > { %v5673_v6 = vadd.f32 %v2942_v12, %v5537_v11 }
 0x2b6   : > { %v2886_v50 = vpop.f32.mrf.mxu3 }
 0x2b8   : > { %v2797_v46 = vpop.f32.mrf.mxu2  ;;  %v2713_v45 = vpop.f32.mrf.mxu1 }
 0x2b9   : > { %v2798_v44 = vadd.f32 %v2797_v46, %v2709_v1  ;;  %v2714_v37 = vadd.f32 %v2713_v45, %v5498_v47 }
 0x2bb   : > { %3028 = vmatmul.bf16.gmra.mxu1 %v6188_v21  ;;  %v5680_v57 = vadd.f32 %v2886_v50, %v2798_v44 }
 0x2bc   : > { %v2945_v5 = vpop.f32.mrf.mxu0 }
 0x2bd   : > { %6189 = vst [vmem:[#allocation16_spill] sm:$0xff] %v5680_v57  ;;  %v5683_v63 = vadd.f32 %v2945_v5, %v5548_v27  ;;  %v6191_v5 = vld [vmem:[#allocation11_spill] sm:$0xff] }
 0x2be   : > { %v5685_v11 = vpop.f32.mrf.mxu3 }
 0x2bf   : > { %6190 = vst [vmem:[#allocation18_spill] sm:$0xff] %v5685_v11  ;;  %2984 = vmatmul.bf16.gmra.mxu0 %v6179_v18 }
 0x2c0   : > { %v5688_v1 = vpop.f32.mrf.mxu2  ;;  %v2715_v47 = vpop.f32.mrf.mxu1 }
 0x2c1   : > { %v5691_v12 = vadd.f32 %v2715_v47, %v5507_v16 }
 0x2c4   : > { %v2947_v46 = vpop.f32.mrf.mxu0 }
 0x2c5   : > { %v5694_v45 = vadd.f32 %v2947_v46, %v5556_v48 }
 0x2c6   : > { %v2891_v50 = vpop.f32.mrf.mxu3 }
 0x2c8   : > { %v2802_v44 = vpop.f32.mrf.mxu2  ;;  %v2718_v24 = vpop.f32.mrf.mxu1 }
 0x2c9   : > { %v2803_v21 = vadd.f32 %v2802_v44, %v2714_v37  ;;  %v2719_v27 = vadd.f32 %v2718_v24, %v5517_v41 }
 0x2cb   : > { %3033 = vmatmul.bf16.gmra.mxu1 %v6191_v5  ;;  %v5698_v11 = vadd.f32 %v2891_v50, %v2803_v21  ;;  %v6193_v5 = vld [vmem:[#allocation12_spill] sm:$0xff] }
 0x2cc   : > { %v2950_v18 = vpop.f32.mrf.mxu0 }
 0x2cd   : > { %v5701_v57 = vadd.f32 %v2950_v18, %v5564_v22 }
 0x2ce   : > { %v5703_v16 = vpop.f32.mrf.mxu3 }
 0x2cf   : > { %2989 = vmatmul.bf16.gmra.mxu0 %v6181_v60  ;;  %v4483_v60 = vld [vmem:[%s6108_s5 + $0x8] sm:$0xff] }
 0x2d0   : > { %v5706_v48 = vpop.f32.mrf.mxu2  ;;  %v2720_v47 = vpop.f32.mrf.mxu1  ;;  %3226 = vmatpush.bf16.msra.mxu2 %v4483_v60 }
 0x2d1   : > { %v5709_v46 = vadd.f32 %v2720_v47, %v5525_v36 }
 0x2d3   : > { %6192 = vst [vmem:[#allocation21_spill] sm:$0xff] %v5709_v46 }
 0x2d4   : > { %v2952_v37 = vpop.f32.mrf.mxu0 }
 0x2d5   : > { %v5712_v41 = vadd.f32 %v2952_v37, %v5574_v53 }
 0x2d6   : > { %v2896_v50 = vpop.f32.mrf.mxu3 }
 0x2d8   : > { %v2807_v44 = vpop.f32.mrf.mxu2  ;;  %v2723_v24 = vpop.f32.mrf.mxu1 }
 0x2d9   : > { %v2808_v21 = vadd.f32 %v2807_v44, %v2719_v27  ;;  %v2724_v22 = vadd.f32 %v2723_v24, %v5532_v39 }
 0x2db   : > { %3038 = vmatmul.bf16.gmra.mxu1 %v6193_v5  ;;  %v5719_v18 = vadd.f32 %v2896_v50, %v2808_v21  ;;  %v6196_v5 = vld [vmem:[#allocation13_spill] sm:$0xff] }
 0x2de   : > { %v5721_v36 = vpop.f32.mrf.mxu3 }
 0x2df   : > { %6194 = vst [vmem:[#allocation20_spill] sm:$0xff] %v5721_v36  ;;  %2994 = vmatmul.bf16.gmra.mxu0 %v5321_v15 }
 0x2e0   : > { %v5724_v53 = vpop.f32.mrf.mxu2  ;;  %v2725_v47 = vpop.f32.mrf.mxu1 }
 0x2e1   : > { %v5727_v27 = vadd.f32 %v2725_v47, %v5541_v42 }
 0x2e3   : > { %6195 = vst [vmem:[#allocation23_spill] sm:$0xff] %v5727_v27 }
 0x2e6   : > { %v2901_v39 = vpop.f32.mrf.mxu3 }
 0x2e8   : > { %v2812_v37 = vpop.f32.mrf.mxu2  ;;  %v2728_v44 = vpop.f32.mrf.mxu1 }
 0x2e9   : > { %v2813_v24 = vadd.f32 %v2812_v37, %v2724_v22  ;;  %v2729_v46 = vadd.f32 %v2728_v44, %v5551_v43  ;;  %v1252_v37 = vld [vmem:[#allocation2 + $0xd4] sm:$0xf]  ;;  %v6199_v44 = vld [vmem:[#allocation14_spill] sm:$0xff] }
 0x2eb   : > { %3043 = vmatmul.bf16.gmra.mxu1 %v6196_v5  ;;  %v5731_v50 = vadd.f32 %v2901_v39, %v2813_v24  ;;  %v4482_v39 = vld [vmem:[%s6108_s5] sm:$0xff]  ;;  %v1704_v24 = vunpack.c.l.b16 %v1252_v37 }
 0x2ec   : > { %3227 = vmatpush.bf16.msra.mxu2 %v4482_v39 }
 0x2ee   : > { %v5733_v21 = vpop.f32.mrf.mxu3 }
 0x2ef   : > { %6197 = vst [vmem:[#allocation22_spill] sm:$0xff] %v5733_v21  ;;  %2999 = vmatmul.bf16.gmra.mxu0 %v5358_v38 }
 0x2f0   : > { %v5736_v15 = vpop.f32.mrf.mxu2  ;;  %v2730_v60 = vpop.f32.mrf.mxu1 }
 0x2f1   : > { %v5739_v42 = vadd.f32 %v2730_v60, %v5560_v56  ;;  %v1707_v60 = vshrl.u32 %v5641_v26, 16 }
 0x2f3   : > { %6198 = vst [vmem:[#allocation25_spill] sm:$0xff] %v5739_v42 }
 0x2f6   : > { %v2906_v47 = vpop.f32.mrf.mxu3 }
 0x2f8   : > { %v2817_v27 = vpop.f32.mrf.mxu2  ;;  %v2733_v36 = vpop.f32.mrf.mxu1 }
 0x2f9   : > { %v2818_v22 = vadd.f32 %v2817_v27, %v2729_v46  ;;  %v2734_v43 = vadd.f32 %v2733_v36, %v5567_v51  ;;  %v5753_v27 = vpack.c.b16 %v1704_v24, %v1704_v24  ;;  %v1709_v51 = vshll.u32 %v5641_v26, 16 }
 0x2fb   : > { %3048 = vmatmul.bf16.gmra.mxu1 %v6199_v44  ;;  %v5746_v38 = vadd.f32 %v2906_v47, %v2818_v22  ;;  %v1711_v39 = vrot.slane %v1709_v51, 1  ;;  %v1714_v47 = vshll.u32 %v5753_v27, 16 }
 0x2fd   : > { %6200 = vst [vmem:[#allocation24_spill] sm:$0xff] %v5746_v38 }
 0x2fe   : > { %v5748_v5 = vpop.f32.mrf.mxu3 }
 0x2ff   : > { %6201 = vst [vmem:[#allocation27_spill] sm:$0xff] %v5748_v5  ;;  %3004 = vmatmul.bf16.gmra.mxu0 %v5630_v3  ;;  %v1712_v3 = vor.u32 %v1711_v39, %v1707_v60  ;;  %v1716_v5 = vrot.slane %v1714_v47, 1  ;;  %v4490_v60 = vld [vmem:[%s4827_s23] sm:$0xff] }
 0x300   : > { %v5751_v56 = vpop.f32.mrf.mxu2  ;;  %v2735_v46 = vpop.f32.mrf.mxu1  ;;  %4354 = vmatmul.msk.bf16.vlgmr.msra.gmra.mxu3 %vm549_vm1, %v4490_v60 }
 0x301   : > { %6202 = vst [vmem:[#allocation26_spill] sm:$0xff] %v5751_v56  ;;  %v5757_v36 = vadd.f32 %v2735_v46, %v5578_v0  ;;  %v6204_v56 = vld [vmem:[#allocation15_spill] sm:$0xff]  ;;  %v1717_v0 = vsel %vm1397_vm2, %v1712_v3, %v1716_v5 }
 0x303   : > { %6203 = vst [vmem:[#allocation28_spill] sm:$0xff] %v5757_v36 }
 0x306   : > { %v2911_v22 = vpop.f32.mrf.mxu3 }
 0x308   : > { %v2822_v37 = vpop.f32.mrf.mxu2  ;;  %v2738_v44 = vpop.f32.mrf.mxu1 }
 0x309   : > { %v2823_v38 = vadd.f32 %v2822_v37, %v2734_v43  ;;  %v2739_v24 = vadd.f32 %v2738_v44, %v5588_v13  ;;  %v4491_v37 = vld [vmem:[%s4827_s23 + $0x8] sm:$0xff] }
 0x30b   : > { %3053 = vmatmul.bf16.gmra.mxu1 %v6204_v56  ;;  %v5763_v42 = vadd.f32 %v2911_v22, %v2823_v38 }
 0x30e   : > { %v5766_v46 = vpop.f32.mrf.mxu3 }
 0x30f   : > { %3009 = vmatmul.bf16.gmra.mxu0 %v1717_v0 }
 0x310   : > { %v5768_v51 = vpop.f32.mrf.mxu2  ;;  %v2740_v36 = vpop.f32.mrf.mxu1  ;;  %4355 = vmatmul.msk.bf16.gmra.mxu3 %vm549_vm1, %v4491_v37 }
 0x311   : > { %v5771_v21 = vadd.f32 %v2740_v36, %v5601_v32 }
 0x316   : > { %v2916_v13 = vpop.f32.mrf.mxu3 }
 0x318   : > { %v2827_v43 = vpop.f32.mrf.mxu2  ;;  %v2743_v56 = vpop.f32.mrf.mxu1 }
 0x319   : > { %v2828_v38 = vadd.f32 %v2827_v43, %v2739_v24  ;;  %v2744_v39 = vadd.f32 %v2743_v56, %v5608_v9  ;;  %v4492_v43 = vld [vmem:[%s4827_s23 + $0x10] sm:$0xff] }
 0x31b   : > { %3058 = vmatmul.bf16.gmra.mxu1 %v6174_v33  ;;  %v5777_v5 = vadd.f32 %v2916_v13, %v2828_v38  ;;  %v2955_v38 = vpop.f32.mrf.mxu0 }
 0x31e   : > { %v5779_v47 = vpop.f32.mrf.mxu3 }
 0x320   : > { %v5781_v22 = vpop.f32.mrf.mxu2  ;;  %v2745_v32 = vpop.f32.mrf.mxu1  ;;  %4356 = vmatmul.msk.bf16.gmra.mxu3 %vm549_vm1, %v4492_v43  ;;  %v4494_v43 = vld [vmem:[%s4827_s23 + $0x20] sm:$0xff] }
 0x321   : > { %v5784_v36 = vadd.f32 %v2745_v32, %v5623_v30 }
 0x326   : > { %v2921_v44 = vpop.f32.mrf.mxu3 }
 0x328   : > { %v2832_v3 = vpop.f32.mrf.mxu2  ;;  %v3024_v24 = vpop.f32.mrf.mxu1 }
 0x329   : > { %v2833_v9 = vadd.f32 %v2832_v3, %v2744_v39  ;;  %v3025_v33 = vadd.f32 %v3024_v24, %v5636_v4  ;;  %v2957_v39 = vpop.f32.mrf.mxu0  ;;  %v4493_v3 = vld [vmem:[%s4827_s23 + $0x18] sm:$0xff] }
 0x32b   : > { %v5788_v0 = vadd.f32 %v2921_v44, %v2833_v9  ;;  %3063 = vmatmul.bf16.gmra.mxu1 %v6176_v28  ;;  %v3104_v30 = vmax.f32 %v3025_v33, 0.0 }
 0x330   : > { %v3026_v60 = vpop.f32.mrf.mxu1  ;;  %4357 = vmatmul.msk.bf16.gmra.mxu3 %vm549_vm1, %v4493_v3 }
 0x331   : > { %v3027_v13 = vadd.f32 %v3026_v60, %v5655_v14  ;;  %v2960_v60 = vpop.f32.mrf.mxu0 }
 0x333   : > { %v3105_v56 = vmax.f32 %v3027_v13, 0.0 }
 0x335   : > { %v3136_v32 = vpack.c.bf16 %v3105_v56, %v3104_v30 }
 0x337   : > { %3228 = vmatmul.bf16.vlgmr.msra.gmra.mxu2 %v3136_v32 }
 0x338   : > { %v3029_v37 = vpop.f32.mrf.mxu1 }
 0x339   : > { %v3030_v28 = vadd.f32 %v3029_v37, %v5662_v2  ;;  %v2962_v30 = vpop.f32.mrf.mxu0 }
 0x33b   : > { %3068 = vmatmul.bf16.gmra.mxu1 %v6178_v19  ;;  %v3106_v14 = vmax.f32 %v3030_v28, 0.0 }
 0x340   : > { %v3031_v4 = vpop.f32.mrf.mxu1  ;;  %4358 = vmatmul.msk.bf16.gmra.mxu3 %vm549_vm1, %v4494_v43 }
 0x341   : > { %v3032_v44 = vadd.f32 %v3031_v4, %v5673_v6  ;;  %v2965_v28 = vpop.f32.mrf.mxu0 }
 0x343   : > { %v3107_v24 = vmax.f32 %v3032_v44, 0.0  ;;  %v4495_v44 = vld [vmem:[%s4827_s23 + $0x28] sm:$0xff] }
 0x345   : > { %v3137_v9 = vpack.c.bf16 %v3107_v24, %v3106_v14 }
 0x347   : > { %3233 = vmatmul.bf16.gmra.mxu2 %v3137_v9 }
 0x348   : > { %v3034_v33 = vpop.f32.mrf.mxu1 }
 0x349   : > { %v3035_v19 = vadd.f32 %v3034_v33, %v5683_v63  ;;  %v2967_v24 = vpop.f32.mrf.mxu0  ;;  %v2780_v33 = vadd.f32 %v5593_v59, %v5571_v10 }
 0x34b   : > { %3073 = vmatmul.bf16.gmra.mxu1 %v6180_v61  ;;  %v3108_v6 = vmax.f32 %v3035_v19, 0.0 }
 0x350   : > { %v3036_v13 = vpop.f32.mrf.mxu1  ;;  %4359 = vmatmul.msk.bf16.gmra.mxu3 %vm549_vm1, %v4495_v44 }
 0x351   : > { %v3037_v2 = vadd.f32 %v3036_v13, %v5694_v45 }
 0x353   : > { %v3109_v56 = vmax.f32 %v3037_v2, 0.0  ;;  %v2970_v2 = vpop.f32.mrf.mxu0 }
 0x355   : > { %v3138_v32 = vpack.c.bf16 %v3109_v56, %v3108_v6  ;;  %v4496_v6 = vld [vmem:[%s4827_s23 + $0x30] sm:$0xff] }
 0x357   : > { %3238 = vmatmul.bf16.gmra.mxu2 %v3138_v32 }
 0x358   : > { %v3039_v37 = vpop.f32.mrf.mxu1 }
 0x359   : > { %v3040_v61 = vadd.f32 %v3039_v37, %v5701_v57  ;;  %v2869_v57 = vadd.f32 %v5590_v54, %v2780_v33  ;;  %v2961_v54 = vadd.f32 %v2960_v60, %v5605_v25  ;;  %v2966_v25 = vadd.f32 %v2965_v28, %v5633_v40 }
 0x35b   : > { %3078 = vmatmul.bf16.gmra.mxu1 %v6182_v7  ;;  %v3110_v3 = vmax.f32 %v3040_v61, 0.0  ;;  %v2956_v7 = vadd.f32 %v2955_v38, %v5585_v52  ;;  %v2972_v52 = vpop.f32.mrf.mxu0 }
 0x360   : > { %v3041_v4 = vpop.f32.mrf.mxu1  ;;  %4360 = vmatmul.msk.bf16.gmra.mxu3 %vm549_vm1, %v4496_v6 }
 0x361   : > { %v3042_v63 = vadd.f32 %v3041_v4, %v5712_v41  ;;  %v2958_v41 = vadd.f32 %v2957_v39, %v2869_v57 }
 0x363   : > { %v3111_v45 = vmax.f32 %v3042_v63, 0.0  ;;  %v4497_v63 = vld [vmem:[%s4827_s23 + $0x38] sm:$0xff] }
 0x365   : > { %v3139_v14 = vpack.c.bf16 %v3111_v45, %v3110_v3  ;;  %v2975_v45 = vpop.f32.mrf.mxu0 }
 0x367   : > { %3243 = vmatmul.bf16.gmra.mxu2 %v3139_v14 }
 0x368   : > { %v3044_v9 = vpop.f32.mrf.mxu1 }
 0x369   : > { %v3045_v19 = vadd.f32 %v3044_v9, %v2956_v7  ;;  %v5829_v9 = vpop.f32.mrf.mxu3 }
 0x36b   : > { %3083 = vmatmul.bf16.gmra.mxu1 %v5315_v34  ;;  %v3112_v56 = vmax.f32 %v3045_v19, 0.0  ;;  %v2785_v34 = vadd.f32 %v5614_v17, %v5596_v35 }
 0x36d   : > { %v2874_v59 = vadd.f32 %v5610_v55, %v2785_v34  ;;  %v6205_v55 = vld [vmem:[#allocation17_spill] sm:$0xff] }
 0x36f   : > { %v2963_v38 = vadd.f32 %v2962_v30, %v2874_v59  ;;  %v2977_v30 = vpop.f32.mrf.mxu0  ;;  %v4499_v59 = vld [vmem:[%s4827_s23 + $0x48] sm:$0xff] }
 0x370   : > { %v3046_v13 = vpop.f32.mrf.mxu1  ;;  %4361 = vmatmul.msk.bf16.gmra.mxu3 %vm549_vm1, %v4497_v63 }
 0x371   : > { %v3047_v43 = vadd.f32 %v3046_v13, %v2958_v41  ;;  %v4498_v41 = vld [vmem:[%s4827_s23 + $0x40] sm:$0xff] }
 0x373   : > { %v3113_v32 = vmax.f32 %v3047_v43, 0.0  ;;  %v1719_v43 = vrot.slane %v5641_v26, 1 }
 0x375   : > { %v3140_v37 = vpack.c.bf16 %v3113_v32, %v3112_v56  ;;  %v2971_v32 = vadd.f32 %v2970_v2, %v5659_v49  ;;  %v2800_v49 = vadd.f32 %v5688_v1, %v5670_v62 }
 0x377   : > { %3248 = vmatmul.bf16.gmra.mxu2 %v3140_v37  ;;  %v2980_v56 = vpop.f32.mrf.mxu0 }
 0x378   : > { %v3049_v10 = vpop.f32.mrf.mxu1 }
 0x379   : > { %v3050_v39 = vadd.f32 %v3049_v10, %v2961_v54 }
 0x37b   : > { %3088 = vmatmul.bf16.gmra.mxu1 %v5352_v29  ;;  %v3114_v44 = vmax.f32 %v3050_v39, 0.0  ;;  %v2790_v29 = vadd.f32 %v5643_v31, %v5617_v8  ;;  %v1720_v8 = vrot.slane %v5753_v27, 1 }
 0x37d   : > { %v2879_v17 = vadd.f32 %v6205_v55, %v2790_v29  ;;  %v1721_v28 = vsel %vm1606_vm3, %v1719_v43, %v1720_v8 }
 0x37f   : > { %v2968_v60 = vadd.f32 %v2967_v24, %v2879_v17  ;;  %v6206_v24 = vld [vmem:[#allocation19_spill] sm:$0xff]  ;;  %v5848_v17 = vpop.f32.mrf.mxu2 }
 0x380   : > { %v3051_v61 = vpop.f32.mrf.mxu1  ;;  %4362 = vmatmul.msk.bf16.gmra.mxu3 %vm549_vm1, %v4498_v41  ;;  %v2795_v6 = vadd.f32 %v5667_v20, %v6206_v24 }
 0x381   : > { %v3052_v4 = vadd.f32 %v3051_v61, %v2963_v38  ;;  %v2982_v38 = vpop.f32.mrf.mxu0 }
 0x382   : > { %v2884_v26 = vadd.f32 %v5664_v58, %v2795_v6  ;;  %v6207_v58 = vld [vmem:[#allocation16_spill] sm:$0xff] }
 0x383   : > { %v3115_v3 = vmax.f32 %v3052_v4, 0.0  ;;  %v3521_v31 = vpop.f32.mrf.mxu3  ;;  %v2976_v2 = vadd.f32 %v2975_v45, %v6207_v58  ;;  %v5855_v45 = vld [vmem:[%s6111_s8] ss:$0 sm:$0xff] }
 0x384   : > { %v2973_v37 = vadd.f32 %v2972_v52, %v2884_v26  ;;  %v6208_v52 = vld [vmem:[#allocation18_spill] sm:$0xff]  ;;  %v3522_v43 = vadd.f32 %v5855_v45, %v3521_v31 }
 0x385   : > { %v3141_v14 = vpack.c.bf16 %v3115_v3, %v3114_v44  ;;  %v2889_v44 = vadd.f32 %v6208_v52, %v2800_v49 }
 0x387   : > { %3253 = vmatmul.bf16.gmra.mxu2 %v3141_v14  ;;  %v2978_v14 = vadd.f32 %v2977_v30, %v2889_v44  ;;  %v5860_v30 = vld [vmem:[%s6109_s6] ss:$0 sm:$0xff] }
 0x388   : > { %v3054_v35 = vpop.f32.mrf.mxu1 }
 0x389   : > { %v3055_v33 = vadd.f32 %v3054_v35, %v2966_v25  ;;  %v2985_v3 = vpop.f32.mrf.mxu0 }
 0x38b   : > { %3093 = vmatmul.bf16.gmra.mxu1 %v5651_v23  ;;  %v3116_v19 = vmax.f32 %v3055_v33, 0.0  ;;  %v3523_v10 = vpop.f32.mrf.mxu3 }
 0x390   : > { %v3056_v7 = vpop.f32.mrf.mxu1  ;;  %4363 = vmatmul.msk.bf16.gmra.mxu3 %vm549_vm1, %v4499_v59 }
 0x391   : > { %v3057_v57 = vadd.f32 %v3056_v7, %v2968_v60  ;;  %v4500_v60 = vld [vmem:[%s4827_s23 + $0x50] sm:$0xff]  ;;  %v2987_v1 = vpop.f32.mrf.mxu0 }
 0x393   : > { %v3117_v13 = vmax.f32 %v3057_v57, 0.0  ;;  %v3526_v20 = vpop.f32.mrf.mxu3 }
 0x394   : > { %v3527_v44 = vadd.f32 %v5855_v45, %v3526_v20 }
 0x395   : > { %v3142_v40 = vpack.c.bf16 %v3117_v13, %v3116_v19  ;;  %v2805_v19 = vadd.f32 %v5706_v48, %v5691_v12 }
 0x397   : > { %3258 = vmatmul.bf16.gmra.mxu2 %v3142_v40  ;;  %v2981_v40 = vadd.f32 %v2980_v56, %v5698_v11  ;;  %v3524_v56 = vadd.f32 %v5855_v45, %v3523_v10 }
 0x398   : > { %v3059_v23 = vpop.f32.mrf.mxu1 }
 0x399   : > { %v3060_v27 = vadd.f32 %v3059_v23, %v2971_v32  ;;  %v2894_v23 = vadd.f32 %v5703_v16, %v2805_v19  ;;  %v2990_v48 = vpop.f32.mrf.mxu0 }
 0x39b   : > { %3098 = vmatmul.bf16.gmra.mxu1 %v1721_v28  ;;  %v3118_v39 = vmax.f32 %v3060_v27, 0.0  ;;  %v5846_v29 = vpop.f32.mrf.mxu3  ;;  %v2983_v24 = vadd.f32 %v2982_v38, %v2894_v23 }
 0x3a0   : > { %v3061_v34 = vpop.f32.mrf.mxu1  ;;  %4364 = vmatmul.msk.bf16.gmra.mxu3 %vm549_vm1, %v4500_v60 }
 0x3a1   : > { %v3062_v54 = vadd.f32 %v3061_v34, %v2973_v37  ;;  %v4501_v34 = vld [vmem:[%s4827_s23 + $0x58] sm:$0xff]  ;;  %v2992_v52 = vpop.f32.mrf.mxu0 }
 0x3a3   : > { %v3119_v61 = vmax.f32 %v3062_v54, 0.0  ;;  %v5862_v57 = vpop.f32.mrf.mxu3 }
 0x3a5   : > { %v3143_v4 = vpack.c.bf16 %v3119_v61, %v3118_v39 }
 0x3a7   : > { %3263 = vmatmul.bf16.gmra.mxu2 %v3143_v4 }
 0x3a8   : > { %v3064_v63 = vpop.f32.mrf.mxu1 }
 0x3a9   : > { %v3065_v35 = vadd.f32 %v3064_v63, %v2976_v2  ;;  %v6209_v63 = vld [vmem:[#allocation21_spill] sm:$0xff] }
 0x3aa   : > { %v2810_v49 = vadd.f32 %v5724_v53, %v6209_v63 }
 0x3ab   : > { %v3120_v33 = vmax.f32 %v3065_v35, 0.0  ;;  %v5873_v26 = vpop.f32.mrf.mxu3  ;;  %v6210_v35 = vld [vmem:[#allocation20_spill] sm:$0xff] }
 0x3b0   : > { %v3066_v25 = vpop.f32.mrf.mxu1  ;;  %4365 = vmatmul.msk.bf16.gmra.mxu3 %vm549_vm1, %v4501_v34  ;;  %v2991_v34 = vadd.f32 %v2990_v48, %v5731_v50  ;;  %v3534_v48 = vadd.f32 %v5855_v45, %v5873_v26 }
 0x3b1   : > { %v3067_v55 = vadd.f32 %v3066_v25, %v2978_v14  ;;  %v2986_v14 = vadd.f32 %v2985_v3, %v5719_v18  ;;  %v2899_v25 = vadd.f32 %v6210_v35, %v2810_v49  ;;  %v2995_v3 = vpop.f32.mrf.mxu0 }
 0x3b3   : > { %v3121_v7 = vmax.f32 %v3067_v55, 0.0  ;;  %v5883_v61 = vpop.f32.mrf.mxu3  ;;  %v2988_v60 = vadd.f32 %v2987_v1, %v2899_v25  ;;  %v3529_v1 = vadd.f32 %v5855_v45, %v5846_v29 }
 0x3b5   : > { %v3144_v62 = vpack.c.bf16 %v3121_v7, %v3120_v33 }
 0x3b7   : > { %3268 = vmatmul.bf16.gmra.mxu2 %v3144_v62 }
 0x3b8   : > { %v3069_v41 = vpop.f32.mrf.mxu1 }
 0x3b9   : > { %v3070_v6 = vadd.f32 %v3069_v41, %v2981_v40 }
 0x3ba   : > { %v3229_v13 = vpop.f32.mrf.mxu2 }
 0x3bb   : > { %v3230_v8 = vadd.f32 %v5860_v30, %v3229_v13  ;;  %v3122_v54 = vmax.f32 %v3070_v6, 0.0  ;;  %v5893_v53 = vpop.f32.mrf.mxu3 }
 0x3bd   : > { %v3309_v28 = vmax.f32 %v3230_v8, 0.0 }
 0x3bf   : > { %v3601_v32 = vadd.f32 %v3522_v43, %v3309_v28  ;;  %v4502_v43 = vld [vmem:[%s4827_s23 + $0x60] sm:$0xff] }
 0x3c0   : > { %v3071_v12 = vpop.f32.mrf.mxu1  ;;  %4366 = vmatmul.msk.bf16.gmra.mxu3 %vm549_vm1, %v4502_v43 }
 0x3c1   : > { %v3633_v37 = vpack.c.bf16 %v3601_v32, %v3601_v32  ;;  %v3072_v31 = vadd.f32 %v3071_v12, %v2983_v24  ;;  %v6211_v32 = vld [vmem:[#allocation23_spill] sm:$0xff] }
 0x3c2   : > { %v3231_v27 = vpop.f32.mrf.mxu2  ;;  %v2815_v12 = vadd.f32 %v5736_v15, %v6211_v32 }
 0x3c3   : > { %3666 = vst.msk [vmem:[%s5876_s28] sm:$0xf] %vm3665_vm12, %v3633_v37  ;;  %v3123_v11 = vmax.f32 %v3072_v31, 0.0  ;;  %v3232_v16 = vadd.f32 %v5860_v30, %v3231_v27  ;;  %v5902_v24 = vpop.f32.mrf.mxu3  ;;  %v3532_v27 = vadd.f32 %v5855_v45, %v5862_v57 }
 0x3c5   : > { %v3145_v59 = vpack.c.bf16 %v3123_v11, %v3122_v54  ;;  %v3310_v38 = vmax.f32 %v3232_v16, 0.0  ;;  %v6212_v54 = vld [vmem:[#allocation22_spill] sm:$0xff] }
 0x3c6   : > { %v2904_v11 = vadd.f32 %v6212_v54, %v2815_v12 }
 0x3c7   : > { %v3602_v39 = vadd.f32 %v3524_v56, %v3310_v38  ;;  %3273 = vmatmul.bf16.gmra.mxu2 %v3145_v59  ;;  %v2997_v59 = vpop.f32.mrf.mxu0 }
 0x3c8   : > { %v3074_v4 = vpop.f32.mrf.mxu1  ;;  %v2993_v56 = vadd.f32 %v2992_v52, %v2904_v11 }
 0x3c9   : > { %v3634_v58 = vpack.c.bf16 %v3602_v39, %v3602_v39  ;;  %v3075_v33 = vadd.f32 %v3074_v4, %v2986_v14 }
 0x3ca   : > { %v3234_v2 = vpop.f32.mrf.mxu2 }
 0x3cb   : > { %3667 = vst.msk [vmem:[%s5876_s28 + $0x4] sm:$0xf] %vm3665_vm12, %v3634_v58  ;;  %v3235_v10 = vadd.f32 %v5860_v30, %v3234_v2  ;;  %v3124_v8 = vmax.f32 %v3075_v33, 0.0  ;;  %v5913_v39 = vpop.f32.mrf.mxu3  ;;  %v4503_v2 = vld [vmem:[%s4827_s23 + $0x68] sm:$0xff] }
 0x3cd   : > { %v3311_v55 = vmax.f32 %v3235_v10, 0.0 }
 0x3cf   : > { %v3603_v7 = vadd.f32 %v3527_v44, %v3311_v55  ;;  %v6213_v55 = vld [vmem:[#allocation25_spill] sm:$0xff] }
 0x3d0   : > { %v3076_v62 = vpop.f32.mrf.mxu1  ;;  %4367 = vmatmul.msk.bf16.gmra.mxu3 %vm549_vm1, %v4503_v2 }
 0x3d1   : > { %v3635_v41 = vpack.c.bf16 %v3603_v7, %v3603_v7  ;;  %v3077_v19 = vadd.f32 %v3076_v62, %v2988_v60  ;;  %v6214_v60 = vld [vmem:[#allocation26_spill] sm:$0xff]  ;;  %v3000_v7 = vpop.f32.mrf.mxu0 }
 0x3d2   : > { %v3236_v13 = vpop.f32.mrf.mxu2  ;;  %v2820_v33 = vadd.f32 %v6214_v60, %v6213_v55  ;;  %v4505_v60 = vld [vmem:[%s4827_s23 + $0x78] sm:$0xff] }
 0x3d3   : > { %3668 = vst.msk [vmem:[%s5876_s28 + $0x8] sm:$0xf] %vm3665_vm12, %v3635_v41  ;;  %v3125_v20 = vmax.f32 %v3077_v19, 0.0  ;;  %v3237_v18 = vadd.f32 %v5860_v30, %v3236_v13  ;;  %v5922_v35 = vpop.f32.mrf.mxu3  ;;  %v3537_v19 = vadd.f32 %v5855_v45, %v5883_v61  ;;  %v6215_v13 = vld [vmem:[#allocation24_spill] sm:$0xff] }
 0x3d4   : > { %v2996_v43 = vadd.f32 %v2995_v3, %v6215_v13 }
 0x3d5   : > { %v3146_v40 = vpack.c.bf16 %v3125_v20, %v3124_v8  ;;  %v3312_v23 = vmax.f32 %v3237_v18, 0.0  ;;  %v6216_v8 = vld [vmem:[#allocation27_spill] sm:$0xff] }
 0x3d6   : > { %v2909_v20 = vadd.f32 %v6216_v8, %v2820_v33 }
 0x3d7   : > { %v3604_v28 = vadd.f32 %v3529_v1, %v3312_v23  ;;  %3278 = vmatmul.bf16.gmra.mxu2 %v3146_v40 }
 0x3d8   : > { %v3079_v6 = vpop.f32.mrf.mxu1  ;;  %v2998_v1 = vadd.f32 %v2997_v59, %v2909_v20 }
 0x3d9   : > { %v3636_v37 = vpack.c.bf16 %v3604_v28, %v3604_v28  ;;  %v3080_v38 = vadd.f32 %v3079_v6, %v2991_v34  ;;  %v3539_v34 = vadd.f32 %v5855_v45, %v5893_v53 }
 0x3da   : > { %v3239_v31 = vpop.f32.mrf.mxu2 }
 0x3db   : > { %3669 = vst.msk [vmem:[%s5876_s28 + $0xc] sm:$0xf] %vm3665_vm12, %v3636_v37  ;;  %v3240_v29 = vadd.f32 %v5860_v30, %v3239_v31  ;;  %v3126_v57 = vmax.f32 %v3080_v38, 0.0  ;;  %v5933_v28 = vpop.f32.mrf.mxu3  ;;  %v4504_v31 = vld [vmem:[%s4827_s23 + $0x70] sm:$0xff]  ;;  %s4506_s23 = sshll.u32 %s4698_s12, 7  ;;  %s3699_s12 = scalar_lea.sflag [#allocation5], %s354_s25 }
 0x3dc   : > { %v6217_v38 = vld [vmem:[#allocation28_spill] sm:$0xff]  ;;  %s3713_s16 = scalar_lea.hbm %s6112_s9, %s4506_s23 }
 0x3dd   : > { %v3313_v16 = vmax.f32 %v3240_v29, 0.0  ;;  %s3716_s20 = sshll.u32 %s3713_s16, 4  ;;  %s3717_s20 = int_to_ptr.hbm [resolvable:$true] %s3716_s20 }
 0x3de   : > { %s4638_s24 = sshra.s32 %s3717_s20, 4  ;;  %s4639_s24 = int_to_ptr.hbm [resolvable:$true] %s4638_s24 }
 0x3df   : > { %v3605_v15 = vadd.f32 %v3532_v27, %v3313_v16  ;;  %v3002_v27 = vpop.f32.mrf.mxu0  ;;  %s4640_s26 = scalar_lea.hbm %s4639_s24, 128  ;;  %p4645_p5 = scmp.lt.s32.totalorder %s4639_s24, %s6112_s9 }
 0x3e0   : > { %v3081_v4 = vpop.f32.mrf.mxu1  ;;  %4368 = vmatmul.msk.bf16.gmra.mxu3 %vm549_vm1, %v4504_v31  ;;  %p4641_p1 = scmp.ne.s32.totalorder %s4639_s24, %s4640_s26  ;;  %p4646_p6 = scmp.lt.s32.totalorder %s4644_s29, %s4640_s26 }
 0x3e1   : > { %v3637_v63 = vpack.c.bf16 %v3605_v15, %v3605_v15  ;;  %v3082_v49 = vadd.f32 %v3081_v4, %v2993_v56  ;;  %v2825_v15 = vadd.f32 %v5768_v51, %v6217_v38 }
 0x3e2   : > { %v3241_v58 = vpop.f32.mrf.mxu2  ;;  %p4642_p2 = pnand %p4641_p1, %p4804_p4  ;;  %p4647_p7 = por %p4646_p6, %p4645_p5 }
 0x3e3   : > { %3670 = vst.msk [vmem:[%s5876_s28 + $0x10] sm:$0xf] %vm3665_vm12, %v3637_v63  ;;  %v3127_v44 = vmax.f32 %v3082_v49, 0.0  ;;  %v3242_v50 = vadd.f32 %v5860_v30, %v3241_v58  ;;  %v5942_v56 = vpop.f32.mrf.mxu3  ;;  %v3542_v49 = vadd.f32 %v5855_v45, %v5902_v24  ;;  %v3001_v58 = vadd.f32 %v3000_v7, %v5763_v42 }
 0x3e4   : > { %v2914_v2 = vadd.f32 %v5766_v46, %v2825_v15  ;;  %v3544_v46 = vadd.f32 %v5855_v45, %v5913_v39  ;;  %v3552_v15 = vadd.f32 %v5855_v45, %v5942_v56  ;;  %p4643_p3 = pneg %p4642_p2 }
 0x3e5   : > { %v3147_v52 = vpack.c.bf16 %v3127_v44, %v3126_v57  ;;  %v3314_v10 = vmax.f32 %v3242_v50, 0.0 }
 0x3e6   : > { %v3003_v50 = vadd.f32 %v3002_v27, %v2914_v2  ;;  %p4648_p9 = pnand %p4647_p7, %p4643_p3 }
 0x3e7   : > { %v3606_v14 = vadd.f32 %v3534_v48, %v3314_v10  ;;  %3283 = vmatmul.bf16.gmra.mxu2 %v3147_v52  ;;  %v3005_v57 = vpop.f32.mrf.mxu0 }
 0x3e8   : > { %v3084_v25 = vpop.f32.mrf.mxu1 }
 0x3e9   : > { %v3638_v62 = vpack.c.bf16 %v3606_v14, %v3606_v14  ;;  %v3085_v40 = vadd.f32 %v3084_v25, %v2996_v43  ;;  %v2830_v43 = vadd.f32 %v5781_v22, %v5771_v21 }
 0x3ea   : > { %v3244_v41 = vpop.f32.mrf.mxu2 }
 0x3eb   : > { %3671 = vst.msk [vmem:[%s5876_s28 + $0x14] sm:$0xf] %vm3665_vm12, %v3638_v62  ;;  %v3245_v26 = vadd.f32 %v5860_v30, %v3244_v41  ;;  %v3128_v61 = vmax.f32 %v3085_v40, 0.0  ;;  %v5953_v52 = vpop.f32.mrf.mxu3  ;;  %v2919_v40 = vadd.f32 %v5779_v47, %v2830_v43 }
 0x3ed   : > { %v3315_v18 = vmax.f32 %v3245_v26, 0.0 }
 0x3ef   : > { %v3607_v23 = vadd.f32 %v3537_v19, %v3315_v18  ;;  %v3007_v41 = vpop.f32.mrf.mxu0  ;;  %v3547_v18 = vadd.f32 %v5855_v45, %v5922_v35 }
 0x3f0   : > { %v3086_v6 = vpop.f32.mrf.mxu1  ;;  %4369 = vmatmul.msk.bf16.gmra.mxu3 %vm549_vm1, %v4505_v60 }
 0x3f1   : > { %v3639_v32 = vpack.c.bf16 %v3607_v23, %v3607_v23  ;;  %v3087_v12 = vadd.f32 %v3086_v6, %v2998_v1  ;;  %v3006_v1 = vadd.f32 %v3005_v57, %v5777_v5  ;;  %v3008_v6 = vadd.f32 %v3007_v41, %v2919_v40 }
 0x3f2   : > { %v3246_v37 = vpop.f32.mrf.mxu2  ;;  %v3549_v5 = vadd.f32 %v5855_v45, %v5933_v28 }
 0x3f3   : > { %3672 = vst.msk [vmem:[%s5876_s28 + $0x18] sm:$0xf] %vm3665_vm12, %v3639_v32  ;;  %v3129_v29 = vmax.f32 %v3087_v12, 0.0  ;;  %v3247_v3 = vadd.f32 %v5860_v30, %v3246_v37  ;;  %v3556_v13 = vpop.f32.mrf.mxu3 }
 0x3f5   : > { %v3148_v54 = vpack.c.bf16 %v3129_v29, %v3128_v61  ;;  %v3316_v11 = vmax.f32 %v3247_v3, 0.0 }
 0x3f7   : > { %v3608_v16 = vadd.f32 %v3539_v34, %v3316_v11  ;;  %3288 = vmatmul.bf16.gmra.mxu2 %v3148_v54  ;;  %v3010_v21 = vpop.f32.mrf.mxu0 }
 0x3f8   : > { %v3089_v59 = vpop.f32.mrf.mxu1 }
 0x3f9   : > { %v3640_v4 = vpack.c.bf16 %v3608_v16, %v3608_v16  ;;  %v3090_v48 = vadd.f32 %v3089_v59, %v3001_v58  ;;  %v2835_v16 = vadd.f32 %v5848_v17, %v5784_v36 }
 0x3fa   : > { %v3249_v63 = vpop.f32.mrf.mxu2 }
 0x3fb   : > { %3673 = vst.msk [vmem:[%s5876_s28 + $0x1c] sm:$0xf] %vm3665_vm12, %v3640_v4  ;;  %v3250_v53 = vadd.f32 %v5860_v30, %v3249_v63  ;;  %v3130_v24 = vmax.f32 %v3090_v48, 0.0  ;;  %v3558_v61 = vpop.f32.mrf.mxu3 }
 0x3fd   : > { %v3317_v44 = vmax.f32 %v3250_v53, 0.0  ;;  %v3011_v53 = vadd.f32 %v3010_v21, %v5788_v0 }
 0x3ff   : > { %v3609_v51 = vadd.f32 %v3542_v49, %v3317_v44  ;;  %v3012_v63 = vpop.f32.mrf.mxu0  ;;  %v2924_v49 = vadd.f32 %v5829_v9, %v2835_v16  ;;  %v3554_v9 = vadd.f32 %v5855_v45, %v5953_v52 }
 0x400   : > { %v3091_v10 = vpop.f32.mrf.mxu1 }
 0x401   : > { %v3641_v14 = vpack.c.bf16 %v3609_v51, %v3609_v51  ;;  %v3092_v25 = vadd.f32 %v3091_v10, %v3003_v50  ;;  %v3013_v2 = vadd.f32 %v3012_v63, %v2924_v49 }
 0x402   : > { %v3251_v55 = vpop.f32.mrf.mxu2 }
 0x403   : > { %3674 = vst.msk [vmem:[%s5876_s28 + $0x20] sm:$0xf] %vm3665_vm12, %v3641_v14  ;;  %v3131_v33 = vmax.f32 %v3092_v25, 0.0  ;;  %v3252_v42 = vadd.f32 %v5860_v30, %v3251_v55  ;;  %v3561_v28 = vpop.f32.mrf.mxu3 }
 0x405   : > { %v3149_v7 = vpack.c.bf16 %v3131_v33, %v3130_v24  ;;  %v3318_v62 = vmax.f32 %v3252_v42, 0.0  ;;  %v3557_v33 = vadd.f32 %v5855_v45, %v3556_v13  ;;  %v3562_v13 = vadd.f32 %v5855_v45, %v3561_v28 }
 0x407   : > { %v3610_v19 = vadd.f32 %v3544_v46, %v3318_v62  ;;  %3293 = vmatmul.bf16.gmra.mxu2 %v3149_v7 }
 0x408   : > { %v3094_v26 = vpop.f32.mrf.mxu1 }
 0x409   : > { %v3642_v8 = vpack.c.bf16 %v3610_v19, %v3610_v19  ;;  %v3095_v32 = vadd.f32 %v3094_v26, %v3006_v1  ;;  %v3559_v26 = vadd.f32 %v5855_v45, %v3558_v61 }
 0x40a   : > { %v3254_v20 = vpop.f32.mrf.mxu2 }
 0x40b   : > { %3675 = vst.msk [vmem:[%s5876_s28 + $0x24] sm:$0xf] %vm3665_vm12, %v3642_v8  ;;  %v3255_v39 = vadd.f32 %v5860_v30, %v3254_v20  ;;  %v3132_v29 = vmax.f32 %v3095_v32, 0.0  ;;  %v3563_v25 = vpop.f32.mrf.mxu3 }
 0x40c   : > { %v3564_v21 = vadd.f32 %v5855_v45, %v3563_v25 }
 0x40d   : > { %v3319_v23 = vmax.f32 %v3255_v39, 0.0 }
 0x40f   : > { %v3611_v12 = vadd.f32 %v3547_v18, %v3319_v23 }
 0x410   : > { %v3096_v37 = vpop.f32.mrf.mxu1 }
 0x411   : > { %v3643_v22 = vpack.c.bf16 %v3611_v12, %v3611_v12  ;;  %v3097_v31 = vadd.f32 %v3096_v37, %v3008_v6 }
 0x412   : > { %v3256_v27 = vpop.f32.mrf.mxu2 }
 0x413   : > { %3676 = vst.msk [vmem:[%s5876_s28 + $0x28] sm:$0xf] %vm3665_vm12, %v3643_v22  ;;  %v3133_v35 = vmax.f32 %v3097_v31, 0.0  ;;  %v3257_v3 = vadd.f32 %v5860_v30, %v3256_v27  ;;  %v3566_v62 = vpop.f32.mrf.mxu3 }
 0x415   : > { %v3150_v47 = vpack.c.bf16 %v3133_v35, %v3132_v29  ;;  %v3320_v34 = vmax.f32 %v3257_v3, 0.0  ;;  %v3567_v29 = vadd.f32 %v5855_v45, %v3566_v62 }
 0x417   : > { %v3612_v54 = vadd.f32 %v3549_v5, %v3320_v34  ;;  %3298 = vmatmul.bf16.gmra.mxu2 %v3150_v47 }
 0x418   : > { %v3099_v11 = vpop.f32.mrf.mxu1 }
 0x419   : > { %v3644_v59 = vpack.c.bf16 %v3612_v54, %v3612_v54  ;;  %v3100_v57 = vadd.f32 %v3099_v11, %v3011_v53 }
 0x41a   : > { %v3259_v38 = vpop.f32.mrf.mxu2 }
 0x41b   : > { %3677 = vst.msk [vmem:[%s5876_s28 + $0x2c] sm:$0xf] %vm3665_vm12, %v3644_v59  ;;  %v3260_v4 = vadd.f32 %v5860_v30, %v3259_v38  ;;  %v3134_v51 = vmax.f32 %v3100_v57, 0.0  ;;  %v3568_v39 = vpop.f32.mrf.mxu3 }
 0x41c   : > { %v3569_v16 = vadd.f32 %v5855_v45, %v3568_v39 }
 0x41d   : > { %v3321_v58 = vmax.f32 %v3260_v4, 0.0 }
 0x41f   : > { %v3613_v36 = vadd.f32 %v3552_v15, %v3321_v58 }
 0x420   : > { %v3101_v17 = vpop.f32.mrf.mxu1 }
 0x421   : > { %v3645_v44 = vpack.c.bf16 %v3613_v36, %v3613_v36  ;;  %v3102_v50 = vadd.f32 %v3101_v17, %v3013_v2 }
 0x422   : > { %v3261_v48 = vpop.f32.mrf.mxu2 }
 0x423   : > { %3678 = vst.msk [vmem:[%s5876_s28 + $0x30] sm:$0xf] %vm3665_vm12, %v3645_v44  ;;  %v3135_v56 = vmax.f32 %v3102_v50, 0.0  ;;  %v3262_v10 = vadd.f32 %v5860_v30, %v3261_v48  ;;  %v3571_v37 = vpop.f32.mrf.mxu3 }
 0x424   : > { %v3572_v28 = vadd.f32 %v5855_v45, %v3571_v37 }
 0x425   : > { %v3151_v0 = vpack.c.bf16 %v3135_v56, %v3134_v51  ;;  %v3322_v14 = vmax.f32 %v3262_v10, 0.0 }
 0x427   : > { %v3614_v55 = vadd.f32 %v3554_v9, %v3322_v14  ;;  %3303 = vmatmul.bf16.gmra.mxu2 %v3151_v0 }
 0x429   : > { %v3646_v60 = vpack.c.bf16 %v3614_v55, %v3614_v55 }
 0x42a   : > { %v3264_v24 = vpop.f32.mrf.mxu2 }
 0x42b   : > { %3679 = vst.msk [vmem:[%s5876_s28 + $0x34] sm:$0xf] %vm3665_vm12, %v3646_v60  ;;  %v3265_v42 = vadd.f32 %v5860_v30, %v3264_v24  ;;  %v3573_v5 = vpop.f32.mrf.mxu3 }
 0x42c   : > { %v3574_v44 = vadd.f32 %v5855_v45, %v3573_v5 }
 0x42d   : > { %v3323_v46 = vmax.f32 %v3265_v42, 0.0 }
 0x42f   : > { %v3615_v7 = vadd.f32 %v3557_v33, %v3323_v46 }
 0x431   : > { %v3647_v41 = vpack.c.bf16 %v3615_v7, %v3615_v7 }
 0x432   : > { %v3266_v52 = vpop.f32.mrf.mxu2 }
 0x433   : > { %3680 = vst.msk [vmem:[%s5876_s28 + $0x38] sm:$0xf] %vm3665_vm12, %v3647_v41  ;;  %v3267_v19 = vadd.f32 %v5860_v30, %v3266_v52  ;;  %v3576_v15 = vpop.f32.mrf.mxu3 }
 0x434   : > { %v3577_v10 = vadd.f32 %v5855_v45, %v3576_v15 }
 0x435   : > { %v3324_v43 = vmax.f32 %v3267_v19, 0.0 }
 0x437   : > { %v3616_v8 = vadd.f32 %v3559_v26, %v3324_v43 }
 0x439   : > { %v3648_v20 = vpack.c.bf16 %v3616_v8, %v3616_v8 }
 0x43a   : > { %v3269_v18 = vpop.f32.mrf.mxu2 }
 0x43b   : > { %3681 = vst.msk [vmem:[%s5876_s28 + $0x3c] sm:$0xf] %vm3665_vm12, %v3648_v20  ;;  %v3270_v1 = vadd.f32 %v5860_v30, %v3269_v18  ;;  %v3578_v36 = vpop.f32.mrf.mxu3 }
 0x43c   : > { %v3579_v33 = vadd.f32 %v5855_v45, %v3578_v36 }
 0x43d   : > { %v3325_v40 = vmax.f32 %v3270_v1, 0.0 }
 0x43f   : > { %v3617_v23 = vadd.f32 %v3562_v13, %v3325_v40 }
 0x441   : > { %v3649_v6 = vpack.c.bf16 %v3617_v23, %v3617_v23 }
 0x442   : > { %v3271_v32 = vpop.f32.mrf.mxu2 }
 0x443   : > { %3682 = vst.msk [vmem:[%s5876_s28 + $0x40] sm:$0xf] %vm3665_vm12, %v3649_v6  ;;  %v3272_v12 = vadd.f32 %v5860_v30, %v3271_v32  ;;  %v3581_v0 = vpop.f32.mrf.mxu3 }
 0x444   : > { %v3582_v52 = vadd.f32 %v5855_v45, %v3581_v0 }
 0x445   : > { %v3326_v22 = vmax.f32 %v3272_v12, 0.0 }
 0x447   : > { %v3618_v31 = vadd.f32 %v3564_v21, %v3326_v22 }
 0x449   : > { %v3650_v27 = vpack.c.bf16 %v3618_v31, %v3618_v31 }
 0x44a   : > { %v3274_v61 = vpop.f32.mrf.mxu2 }
 0x44b   : > { %3683 = vst.msk [vmem:[%s5876_s28 + $0x44] sm:$0xf] %vm3665_vm12, %v3650_v27  ;;  %v3275_v35 = vadd.f32 %v5860_v30, %v3274_v61  ;;  %v3583_v46 = vpop.f32.mrf.mxu3 }
 0x44c   : > { %v3584_v13 = vadd.f32 %v5855_v45, %v3583_v46 }
 0x44d   : > { %v3327_v3 = vmax.f32 %v3275_v35, 0.0 }
 0x44f   : > { %v3619_v47 = vadd.f32 %v3567_v29, %v3327_v3 }
 0x451   : > { %v3651_v34 = vpack.c.bf16 %v3619_v47, %v3619_v47 }
 0x452   : > { %v3276_v54 = vpop.f32.mrf.mxu2 }
 0x453   : > { %3684 = vst.msk [vmem:[%s5876_s28 + $0x48] sm:$0xf] %vm3665_vm12, %v3651_v34  ;;  %v3277_v11 = vadd.f32 %v5860_v30, %v3276_v54  ;;  %v3586_v8 = vpop.f32.mrf.mxu3 }
 0x454   : > { %v3587_v12 = vadd.f32 %v5855_v45, %v3586_v8 }
 0x455   : > { %v3328_v59 = vmax.f32 %v3277_v11, 0.0 }
 0x457   : > { %v3620_v38 = vadd.f32 %v3569_v16, %v3328_v59 }
 0x459   : > { %v3652_v4 = vpack.c.bf16 %v3620_v38, %v3620_v38 }
 0x45a   : > { %v3279_v63 = vpop.f32.mrf.mxu2 }
 0x45b   : > { %3685 = vst.msk [vmem:[%s5876_s28 + $0x4c] sm:$0xf] %vm3665_vm12, %v3652_v4  ;;  %v3280_v49 = vadd.f32 %v5860_v30, %v3279_v63  ;;  %v3588_v32 = vpop.f32.mrf.mxu3 }
 0x45c   : > { %v3589_v35 = vadd.f32 %v5855_v45, %v3588_v32 }
 0x45d   : > { %v3329_v53 = vmax.f32 %v3280_v49, 0.0 }
 0x45f   : > { %v3621_v58 = vadd.f32 %v3572_v28, %v3329_v53 }
 0x461   : > { %v3653_v2 = vpack.c.bf16 %v3621_v58, %v3621_v58 }
 0x462   : > { %v3281_v57 = vpop.f32.mrf.mxu2 }
 0x463   : > { %3686 = vst.msk [vmem:[%s5876_s28 + $0x50] sm:$0xf] %vm3665_vm12, %v3653_v2  ;;  %v3282_v17 = vadd.f32 %v5860_v30, %v3281_v57  ;;  %v3591_v29 = vpop.f32.mrf.mxu3 }
 0x464   : > { %v3592_v54 = vadd.f32 %v5855_v45, %v3591_v29 }
 0x465   : > { %v3330_v50 = vmax.f32 %v3282_v17, 0.0 }
 0x467   : > { %v3622_v48 = vadd.f32 %v3574_v44, %v3330_v50 }
 0x469   : > { %v3654_v51 = vpack.c.bf16 %v3622_v48, %v3622_v48 }
 0x46a   : > { %v3284_v56 = vpop.f32.mrf.mxu2 }
 0x46b   : > { %3687 = vst.msk [vmem:[%s5876_s28 + $0x54] sm:$0xf] %vm3665_vm12, %v3654_v51  ;;  %v3285_v9 = vadd.f32 %v5860_v30, %v3284_v56  ;;  %v3593_v59 = vpop.f32.mrf.mxu3 }
 0x46c   : > { %v3594_v28 = vadd.f32 %v5855_v45, %v3593_v59 }
 0x46d   : > { %v3331_v14 = vmax.f32 %v3285_v9, 0.0 }
 0x46f   : > { %v3623_v25 = vadd.f32 %v3577_v10, %v3331_v14 }
 0x471   : > { %v3655_v55 = vpack.c.bf16 %v3623_v25, %v3623_v25 }
 0x472   : > { %v3286_v60 = vpop.f32.mrf.mxu2 }
 0x473   : > { %3688 = vst.msk [vmem:[%s5876_s28 + $0x58] sm:$0xf] %vm3665_vm12, %v3655_v55  ;;  %v3287_v24 = vadd.f32 %v5860_v30, %v3286_v60  ;;  %v3596_v58 = vpop.f32.mrf.mxu3 }
 0x474   : > { %v3597_v36 = vadd.f32 %v5855_v45, %v3596_v58 }
 0x475   : > { %v3332_v42 = vmax.f32 %v3287_v24, 0.0 }
 0x477   : > { %v3624_v7 = vadd.f32 %v3579_v33, %v3332_v42 }
 0x479   : > { %v3656_v62 = vpack.c.bf16 %v3624_v7, %v3624_v7 }
 0x47a   : > { %v3289_v41 = vpop.f32.mrf.mxu2 }
 0x47b   : > { %3689 = vst.msk [vmem:[%s5876_s28 + $0x5c] sm:$0xf] %vm3665_vm12, %v3656_v62  ;;  %v3290_v19 = vadd.f32 %v5860_v30, %v3289_v41  ;;  %v3598_v51 = vpop.f32.mrf.mxu3 }
 0x47c   : > { %v3599_v9 = vadd.f32 %v5855_v45, %v3598_v51 }
 0x47d   : > { %v3333_v26 = vmax.f32 %v3290_v19, 0.0 }
 0x47f   : > { %v3625_v43 = vadd.f32 %v3582_v52, %v3333_v26 }
 0x481   : > { %v3657_v20 = vpack.c.bf16 %v3625_v43, %v3625_v43 }
 0x482   : > { %v3291_v18 = vpop.f32.mrf.mxu2 }
 0x483   : > { %3690 = vst.msk [vmem:[%s5876_s28 + $0x60] sm:$0xf] %vm3665_vm12, %v3657_v20  ;;  %v3292_v39 = vadd.f32 %v5860_v30, %v3291_v18 }
 0x485   : > { %v3334_v1 = vmax.f32 %v3292_v39, 0.0 }
 0x487   : > { %v3626_v40 = vadd.f32 %v3584_v13, %v3334_v1 }
 0x489   : > { %v3658_v23 = vpack.c.bf16 %v3626_v40, %v3626_v40 }
 0x48a   : > { %v3294_v6 = vpop.f32.mrf.mxu2 }
 0x48b   : > { %3691 = vst.msk [vmem:[%s5876_s28 + $0x64] sm:$0xf] %vm3665_vm12, %v3658_v23  ;;  %v3295_v37 = vadd.f32 %v5860_v30, %v3294_v6 }
 0x48d   : > { %v3335_v21 = vmax.f32 %v3295_v37, 0.0 }
 0x48f   : > { %v3627_v22 = vadd.f32 %v3587_v12, %v3335_v21 }
 0x491   : > { %v3659_v31 = vpack.c.bf16 %v3627_v22, %v3627_v22 }
 0x492   : > { %v3296_v27 = vpop.f32.mrf.mxu2 }
 0x493   : > { %3692 = vst.msk [vmem:[%s5876_s28 + $0x68] sm:$0xf] %vm3665_vm12, %v3659_v31  ;;  %v3297_v61 = vadd.f32 %v5860_v30, %v3296_v27 }
 0x495   : > { %v3336_v3 = vmax.f32 %v3297_v61, 0.0 }
 0x497   : > { %v3628_v5 = vadd.f32 %v3589_v35, %v3336_v3 }
 0x499   : > { %v3660_v47 = vpack.c.bf16 %v3628_v5, %v3628_v5 }
 0x49a   : > { %v3299_v34 = vpop.f32.mrf.mxu2 }
 0x49b   : > { %3693 = vst.msk [vmem:[%s5876_s28 + $0x6c] sm:$0xf] %vm3665_vm12, %v3660_v47  ;;  %v3300_v11 = vadd.f32 %v5860_v30, %v3299_v34 }
 0x49d   : > { %v3337_v16 = vmax.f32 %v3300_v11, 0.0 }
 0x49f   : > { %v3629_v38 = vadd.f32 %v3592_v54, %v3337_v16 }
 0x4a1   : > { %v3661_v15 = vpack.c.bf16 %v3629_v38, %v3629_v38 }
 0x4a2   : > { %v3301_v4 = vpop.f32.mrf.mxu2 }
 0x4a3   : > { %3694 = vst.msk [vmem:[%s5876_s28 + $0x70] sm:$0xf] %vm3665_vm12, %v3661_v15  ;;  %v3302_v63 = vadd.f32 %v5860_v30, %v3301_v4 }
 0x4a5   : > { %v3338_v49 = vmax.f32 %v3302_v63, 0.0 }
 0x4a7   : > { %v3630_v53 = vadd.f32 %v3594_v28, %v3338_v49 }
 0x4a9   : > { %v3662_v2 = vpack.c.bf16 %v3630_v53, %v3630_v53 }
 0x4aa   : > { %v3304_v57 = vpop.f32.mrf.mxu2 }
 0x4ab   : > { %3695 = vst.msk [vmem:[%s5876_s28 + $0x74] sm:$0xf] %vm3665_vm12, %v3662_v2  ;;  %v3305_v17 = vadd.f32 %v5860_v30, %v3304_v57 }
 0x4ad   : > { %v3339_v44 = vmax.f32 %v3305_v17, 0.0 }
 0x4af   : > { %v3631_v50 = vadd.f32 %v3597_v36, %v3339_v44 }
 0x4b1   : > { %v3663_v48 = vpack.c.bf16 %v3631_v50, %v3631_v50 }
 0x4b2   : > { %v3306_v56 = vpop.f32.mrf.mxu2 }
 0x4b3   : > { %3696 = vst.msk [vmem:[%s5876_s28 + $0x78] sm:$0xf] %vm3665_vm12, %v3663_v48  ;;  %v3307_v10 = vadd.f32 %v5860_v30, %v3306_v56 }
 0x4b5   : > { %v3340_v0 = vmax.f32 %v3307_v10, 0.0 }
 0x4b7   : > { %v3632_v14 = vadd.f32 %v3599_v9, %v3340_v0 }
 0x4b9   : > { %v3664_v25 = vpack.c.bf16 %v3632_v14, %v3632_v14 }
 0x4bb   : > { %3697 = vst.msk [vmem:[%s5876_s28 + $0x7c] sm:$0xf] %vm3665_vm12, %v3664_v25 }
 0x4bc   : > { %4651 = shalt.err (!%p4648_p9)
}
 0x4bd   : > { %s4712_s25 = smov 64   ;;  %s4713_s28 = smov 4  }
 0x4be   : > { %4511 = dma.vmem_to_hbm [thread:$0]  (%p4804_p4), %s3715_s18, 2048, %s3717_s20, %s3699_s12, %s4712_s25, %s4712_s25, %s4713_s28  }
 0x4bf PF: > { %p4523_p10 = scmp.ge.s32.totalorder %s4706_s14, 2  ;;  %s3731_s27 = sand.u32 1, %s4686_s30  }
 0x4c0   : > { %s3732_s23 = scalar_lea.sflag [#allocation5], %s3731_s27 }
 0x4c1   : > { %p4518_p11 = pnand %p4523_p10, %p4811_p8 }
 0x4c3   : > { %p4519_p12 = pneg %p4518_p11 }
 0x4c5   : > { %4681 = dma.done.wait (%p4519_p12), %s3732_s23, 2048  }
 0x4c6   : > { %4683 = vsyncadd (%p4519_p12), %s3732_s23, 4294965248  ;;  %s23_s14 = sadd.s32 1, %s4706_s14   ;;  %s6218_s30 = smov %s4690_s10 }
 0x4c7   : > { %p20_p13 = scmp.ge.s32.totalorder %s23_s14, 4   ;;  %s6219_s10 = smov %s4694_s11 }
 0x4c8   : > { %s6220_s11 = smov %s4817_s22  ;;  %s6221_s12 = smov %s4702_s13 }
 0x4c9   : > { %s6222_s13 = smov %s6224_s17  ;;  %22 = sbr.rel (!%p20_p13) target bundleno = 5 (0x5), region = 104 }
 0x4ce   :  { %3738 = vsyncpa [#allocation4], 1 }
 0x4cf   :  { %3740 = vsyncpa [#allocation4 + $0x1], 1 }
 0x4d0   :  { %3741 = vsyncpa [#allocation5], 1 }
 0x4d1   :  { %3743 = vsyncpa [#allocation5 + $0x1], 1 }

</bundles_post_ra>
